<compile_context>
chip_gen: v5e
topology: v5e:2x2
jax: 0.10.0
libtpu: 0.0.40
codegen_flags: <defaults>
</compile_context>

<pallas_src>
import jax
import jax.numpy as jnp
from jax.experimental import pallas as pl
from jax.experimental.pallas import tpu as pltpu

CPAD = 128  # every channel-like dim is zero-padded to one 128-lane vreg width


def _pick_vmem_limit():
    # 96 MiB on 128-MiB VMEM parts (v5e/v6e); ~48 MiB cap on v7x (64 MiB physical).
    try:
        cap = getattr(pltpu.get_tpu_info(), "vmem_capacity_bytes", 128 * 1024 * 1024)
        return int(min(96 * 1024 * 1024, cap * 3 // 4))
    except Exception:
        return 64 * 1024 * 1024


_VMEM_LIMIT = _pick_vmem_limit()


# ----------------------------- tiled fused matmul (MXU) ----------------------


def _matmul_kernel_k1(act):
    # Single K step: dot + folded-BN + activation, written straight to the output block.
    def kernel(a_ref, b_ref, scale_ref, shift_ref, o_ref):
        y = jnp.dot(a_ref[...], b_ref[...], preferred_element_type=jnp.float32)
        y = y * scale_ref[...] + shift_ref[...]
        if act == "swish":
            y = y * jax.nn.sigmoid(y)
        elif act == "sigmoid":
            y = jax.nn.sigmoid(y)
        o_ref[...] = y.astype(o_ref.dtype)

    return kernel


def _matmul_kernel_acc(act):
    # Multi-step K: f32 VMEM accumulator with pl.when init / finalize.
    def kernel(a_ref, b_ref, scale_ref, shift_ref, o_ref, acc_ref):
        @pl.when(pl.program_id(2) == 0)
        def _():
            acc_ref[...] = jnp.zeros_like(acc_ref)

        acc_ref[...] += jnp.dot(a_ref[...], b_ref[...],
                                preferred_element_type=jnp.float32)

        @pl.when(pl.program_id(2) == pl.num_programs(2) - 1)
        def _():
            y = acc_ref[...] * scale_ref[...] + shift_ref[...]
            if act == "swish":
                y = y * jax.nn.sigmoid(y)
            elif act == "sigmoid":
                y = jax.nn.sigmoid(y)
            o_ref[...] = y.astype(o_ref.dtype)

    return kernel


def _pick(dim, prefs):
    for t in prefs:
        if dim % t == 0:
            return t
    return dim


def matmul_affine_act(a, b, scale, shift, act="none", out_dtype=jnp.float32):
    """out = act((a @ b) * scale + shift); bf16 operands as stored, f32 accumulate,
    lane-dense (N pre-padded to a multiple of 128 by the callers)."""
    m, k = a.shape
    k2, n = b.shape
    assert k == k2
    assert n % 128 == 0, "pad N to a multiple of 128 for lane-dense (unmasked) stores"
    scale = scale.reshape(1, n).astype(jnp.float32)
    shift = shift.reshape(1, n).astype(jnp.float32)
    tm = _pick(m, (256, 128, 64, 32, 16, 8))
    tn = _pick(n, (512, 256, 128))
    tk = _pick(k, (512, 256, 128)) if k % 128 == 0 else k
    gm, gn, gk = m // tm, n // tn, k // tk
    cost = pl.CostEstimate(
        flops=2 * m * n * k,
        transcendentals=m * n if act in ("swish", "sigmoid") else 0,
        bytes_accessed=(m * k * jnp.dtype(a.dtype).itemsize
                        + k * n * jnp.dtype(b.dtype).itemsize
                        + m * n * jnp.dtype(out_dtype).itemsize + 8 * n))
    if gk == 1:
        return pl.pallas_call(
            _matmul_kernel_k1(act),
            out_shape=jax.ShapeDtypeStruct((m, n), out_dtype),
            grid_spec=pltpu.PrefetchScalarGridSpec(
                num_scalar_prefetch=0,
                grid=(gm, gn),
                in_specs=[pl.BlockSpec((tm, k), lambda i, j: (i, 0)),
                          pl.BlockSpec((k, tn), lambda i, j: (0, j)),
                          pl.BlockSpec((1, tn), lambda i, j: (0, j)),
                          pl.BlockSpec((1, tn), lambda i, j: (0, j))],
                out_specs=pl.BlockSpec((tm, tn), lambda i, j: (i, j))),
            compiler_params=pltpu.CompilerParams(
                dimension_semantics=("parallel", "parallel"),
                vmem_limit_bytes=_VMEM_LIMIT),
            cost_estimate=cost,
        )(a, b, scale, shift)
    return pl.pallas_call(
        _matmul_kernel_acc(act),
        out_shape=jax.ShapeDtypeStruct((m, n), out_dtype),
        grid_spec=pltpu.PrefetchScalarGridSpec(
            num_scalar_prefetch=0,
            grid=(gm, gn, gk),
            in_specs=[pl.BlockSpec((tm, tk), lambda i, j, kk: (i, kk)),
                      pl.BlockSpec((tk, tn), lambda i, j, kk: (kk, j)),
                      pl.BlockSpec((1, tn), lambda i, j, kk: (0, j)),
                      pl.BlockSpec((1, tn), lambda i, j, kk: (0, j))],
            out_specs=pl.BlockSpec((tm, tn), lambda i, j, kk: (i, j)),
            scratch_shapes=[pltpu.VMEM((tm, tn), jnp.float32)]),
        compiler_params=pltpu.CompilerParams(
            dimension_semantics=("parallel", "parallel", "arbitrary"),
            vmem_limit_bytes=_VMEM_LIMIT),
        cost_estimate=cost,
    )(a, b, scale, shift)


# ----------------------------- SAME padding / phase split --------------------


def _same_pad(x, kh, kw, stride):
    # TF-style static "same" padding (matches Conv2dStaticSamePadding).
    n, h, w, c = x.shape
    oh = -(-h // stride)
    ow = -(-w // stride)
    ph = max((oh - 1) * stride + kh - h, 0)
    pw = max((ow - 1) * stride + kw - w, 0)
    xp = jnp.pad(x, ((0, 0), (ph // 2, ph - ph // 2), (pw // 2, pw - pw // 2), (0, 0)))
    return xp, oh, ow


def _same_pad_phases(x, kh, kw, stride):
    # SAME-pad then split into stride*stride phase sub-grids so every depthwise tap is
    # a contiguous in-VMEM slice inside the kernel.  Phases are stacked along rows:
    # result [N, s*s*hph, wph, C], phase p occupies rows [p*hph, (p+1)*hph).
    n, h, w, c = x.shape
    oh = -(-h // stride)
    ow = -(-w // stride)
    ph = max((oh - 1) * stride + kh - h, 0)
    pw = max((ow - 1) * stride + kw - w, 0)
    hp, wp = h + ph, w + pw
    hp2 = -(-hp // stride) * stride
    wp2 = -(-wp // stride) * stride
    xp = jnp.pad(x, ((0, 0),
                     (ph // 2, ph - ph // 2 + hp2 - hp),
                     (pw // 2, pw - pw // 2 + wp2 - wp),
                     (0, 0)))
    phases = jnp.concatenate(
        [xp[:, a::stride, b::stride, :] for a in range(stride) for b in range(stride)],
        axis=1)
    return phases, oh, ow, hp2 // stride, wp2 // stride


def _prep_dw_input(x_nhwc, kh, kw, stride):
    """Phase-split the *raw* (narrow) block input only; the expanded tensor is built
    in-VMEM by the fused kernel.  Also builds a validity mask (1 = real pixel,
    0 = SAME padding) in the same phase layout, used to zero padded positions after
    the in-kernel expand + BN + swish."""
    n, h, w, c = x_nhwc.shape
    phases, oh, ow, hph, wph = _same_pad_phases(x_nhwc, kh, kw, stride)
    wphp = -(-wph // 8) * 8                                     # sublane-aligned width
    phases = jnp.pad(phases, ((0, 0), (0, 0), (0, wphp - wph), (0, 0)))
    rows = phases.shape[1]
    ones = jnp.ones((1, h, w, 1), jnp.float32)
    mph, _, _, _, _ = _same_pad_phases(ones, kh, kw, stride)
    mph = jnp.pad(mph, ((0, 0), (0, 0), (0, wphp - wph), (0, 0)))
    mask = mph.reshape(rows * wphp, 1)
    return phases, mask, oh, ow, hph, wphp


# ----------------------------- fused MBConv block kernel ---------------------


def _mbconv_kernel(expand, kh, kw, stride, oh, ow, hph, wphp, has_skip):
    """One fused MBConv block for a single batch element:
       [expand 1x1 + BN + swish] -> depthwise kxk + BN + swish -> SE -> project 1x1
       + BN [-> residual].  Everything stays in VMEM; only block in/out touch HBM."""

    def kernel(*refs):
        if expand:
            e_sc = refs[-1]
            refs = refs[:-1]
        o_ref = refs[-1]
        refs = refs[:-1]
        if has_skip:
            res_ref = refs[-1]
            refs = refs[:-1]
        xph_ref = refs[0]
        if expand:
            mask_ref, ew_ref, escale_ref, eshift_ref = refs[1:5]
            rest = refs[5:]
        else:
            rest = refs[1:]
        (dw_ref, dscale_ref, dshift_ref, sw1_ref, sb1_ref, sw2_ref, sb2_ref,
         pw_ref, pscale_ref, pshift_ref) = rest

        if expand:
            # 1x1 expand conv: bf16 MXU matmul, f32 accumulate, folded-BN + swish.
            e = jnp.dot(xph_ref[0], ew_ref[...], preferred_element_type=jnp.float32)
            e = e * escale_ref[...] + eshift_ref[...]
            e = e * jax.nn.sigmoid(e)
            e = e * mask_ref[...]          # zero the SAME-padding positions post-act
            e_sc[...] = e.reshape(e_sc.shape)

            def tap(r0, c0):
                return e_sc[r0:r0 + oh, c0:c0 + ow, :]
        else:
            def tap(r0, c0):
                return xph_ref[0, r0:r0 + oh, c0:c0 + ow, :].astype(jnp.float32)

        # Depthwise conv: per-tap VPU FMAs on contiguous phase-split slices.
        # TODO(synk): strip-tile the accumulator over output rows at real resolutions.
        wv = dw_ref[...]                                       # (KH*KW, C)
        acc = jnp.zeros((oh, ow, wv.shape[-1]), jnp.float32)
        for i in range(kh):
            for j in range(kw):
                p = (i % stride) * stride + (j % stride)
                r0 = p * hph + i // stride
                c0 = j // stride
                acc = acc + tap(r0, c0) * wv[i * kw + j:i * kw + j + 1, :]
        y = acc * dscale_ref[...] + dshift_ref[...]
        y = y * jax.nn.sigmoid(y)
        y2 = y.reshape(oh * ow, wv.shape[-1])

        # Squeeze-and-excite: GAP -> dense swish -> dense sigmoid -> channel scaling.
        pooled = jnp.mean(y2, axis=0, keepdims=True)
        h1 = jnp.dot(pooled, sw1_ref[...], preferred_element_type=jnp.float32) + sb1_ref[...]
        h1 = h1 * jax.nn.sigmoid(h1)
        se = jax.nn.sigmoid(
            jnp.dot(h1, sw2_ref[...], preferred_element_type=jnp.float32) + sb2_ref[...])
        ys = y2 * se

        # 1x1 project conv (bf16 MXU) + folded BN (no activation) + optional residual.
        yp = jnp.dot(ys.astype(jnp.bfloat16), pw_ref[...],
                     preferred_element_type=jnp.float32)
        yp = yp * pscale_ref[...] + pshift_ref[...]
        if has_skip:
            yp = yp + res_ref[0].astype(jnp.float32)
        o_ref[0] = yp.astype(o_ref.dtype)

    return kernel


def mbconv_block(x_nhwc, p, expand_ratio, k, stride, has_skip):
    n, h, w, cpad = x_nhwc.shape
    expand = expand_ratio != 1
    xph, mask, oh, ow, hph, wphp = _prep_dw_input(x_nhwc, k, k, stride)
    rows = xph.shape[1]
    hw_out = oh * ow

    args = []
    in_specs = []
    if expand:
        args.append(xph.reshape(n, rows * wphp, cpad))
        in_specs.append(pl.BlockSpec((1, rows * wphp, cpad), lambda b: (b, 0, 0)))
        args.append(mask)
        in_specs.append(pl.BlockSpec(mask.shape, lambda b: (0, 0)))
        args += [p["expand_w"], p["expand_scale"], p["expand_shift"]]
        in_specs += [pl.BlockSpec((cpad, cpad), lambda b: (0, 0)),
                     pl.BlockSpec((1, cpad), lambda b: (0, 0)),
                     pl.BlockSpec((1, cpad), lambda b: (0, 0))]
    else:
        args.append(xph)
        in_specs.append(pl.BlockSpec((1, rows, wphp, cpad), lambda b: (b, 0, 0, 0)))

    args += [p["dw_w"], p["dw_scale"], p["dw_shift"],
             p["se_w1"], p["se_b1"], p["se_w2"], p["se_b2"],
             p["proj_w"], p["proj_scale"], p["proj_shift"]]
    in_specs += [pl.BlockSpec(p["dw_w"].shape, lambda b: (0, 0)),
                 pl.BlockSpec((1, cpad), lambda b: (0, 0)),
                 pl.BlockSpec((1, cpad), lambda b: (0, 0)),
                 pl.BlockSpec((cpad, cpad), lambda b: (0, 0)),
                 pl.BlockSpec((1, cpad), lambda b: (0, 0)),
                 pl.BlockSpec((cpad, cpad), lambda b: (0, 0)),
                 pl.BlockSpec((1, cpad), lambda b: (0, 0)),
                 pl.BlockSpec((cpad, cpad), lambda b: (0, 0)),
                 pl.BlockSpec((1, cpad), lambda b: (0, 0)),
                 pl.BlockSpec((1, cpad), lambda b: (0, 0))]
    if has_skip:
        args.append(x_nhwc.reshape(n, h * w, cpad))
        in_specs.append(pl.BlockSpec((1, hw_out, cpad), lambda b: (b, 0, 0)))

    scratch = []
    if expand:
        scratch.append(pltpu.VMEM((rows, wphp, cpad), jnp.float32))

    out = pl.pallas_call(
        _mbconv_kernel(expand, k, k, stride, oh, ow, hph, wphp, has_skip),
        out_shape=jax.ShapeDtypeStruct((n, hw_out, cpad), jnp.bfloat16),
        grid_spec=pltpu.PrefetchScalarGridSpec(
            num_scalar_prefetch=0,
            grid=(n,),
            in_specs=in_specs,
            out_specs=pl.BlockSpec((1, hw_out, cpad), lambda b: (b, 0, 0)),
            scratch_shapes=scratch),
        compiler_params=pltpu.CompilerParams(
            dimension_semantics=("parallel",), vmem_limit_bytes=_VMEM_LIMIT),
    )(*args)
    return out.reshape(n, oh, ow, cpad)


# ----------------------------- fused head conv + GAP + FC --------------------


def _head_gap_fc_kernel(x_ref, hw_ref, hs_ref, hb_ref, fw_ref, fb_ref, o_ref, pooled_sc):
    b = pl.program_id(0)

    @pl.when(b == 0)
    def _():
        pooled_sc[...] = jnp.zeros_like(pooled_sc)

    y = jnp.dot(x_ref[0], hw_ref[...], preferred_element_type=jnp.float32)   # head 1x1
    y = y * hs_ref[...] + hb_ref[...]                                         # folded BN
    y = y * jax.nn.sigmoid(y)                                                 # swish
    pooled = jnp.mean(y, axis=0, keepdims=True)                               # GAP
    rows = jax.lax.broadcasted_iota(jnp.int32, pooled_sc.shape, 0)
    pooled_sc[...] = jnp.where(rows == b, pooled, pooled_sc[...])

    @pl.when(b == pl.num_programs(0) - 1)
    def _():
        # Batched FC: one (Npad x C) @ (C x classes) dot, no M=1 dots per batch element.
        o_ref[...] = (jnp.dot(pooled_sc[...], fw_ref[...],
                              preferred_element_type=jnp.float32) + fb_ref[...])


def head_gap_fc(x_nhwc, p, classes):
    n, h, w, cpad = x_nhwc.shape
    hw = h * w
    npad = -(-n // 8) * 8
    out = pl.pallas_call(
        _head_gap_fc_kernel,
        out_shape=jax.ShapeDtypeStruct((npad, CPAD), jnp.float32),
        grid_spec=pltpu.PrefetchScalarGridSpec(
            num_scalar_prefetch=0,
            grid=(n,),
            in_specs=[pl.BlockSpec((1, hw, cpad), lambda b: (b, 0, 0)),
                      pl.BlockSpec((cpad, CPAD), lambda b: (0, 0)),
                      pl.BlockSpec((1, CPAD), lambda b: (0, 0)),
                      pl.BlockSpec((1, CPAD), lambda b: (0, 0)),
                      pl.BlockSpec((CPAD, CPAD), lambda b: (0, 0)),
                      pl.BlockSpec((1, CPAD), lambda b: (0, 0))],
            out_specs=pl.BlockSpec((npad, CPAD), lambda b: (0, 0)),
            scratch_shapes=[pltpu.VMEM((npad, CPAD), jnp.float32)]),
        compiler_params=pltpu.CompilerParams(
            dimension_semantics=("arbitrary",), vmem_limit_bytes=_VMEM_LIMIT),
    )(x_nhwc.reshape(n, hw, cpad), p["head_w"], p["head_scale"], p["head_shift"],
      p["fc_w"], p["fc_b"])
    return out[:n, :classes]


# ----------------------------- stem conv ---------------------------------------


def stem_conv_bn_swish(x, params, stride=2):
    # Stem 3x3 s2 conv (Cin=3): tiny im2col feeding the tiled matmul kernel.
    # TODO(synk): at real b4 resolution form the taps in-kernel (halo/phase) instead.
    kh = kw = 3
    n, h, w, cin = x.shape
    xp, oh, ow = _same_pad(x, kh, kw, stride)
    taps = [xp[:, i:i + stride * oh:stride, j:j + stride * ow:stride, :]
            for i in range(kh) for j in range(kw)]
    patches = jnp.concatenate(taps, axis=-1)                  # (N, OH, OW, KH*KW*Cin)
    a = patches.reshape(n * oh * ow, kh * kw * cin)
    kpad = params["stem_w"].shape[0]
    a = jnp.pad(a, ((0, 0), (0, kpad - a.shape[1]))).astype(jnp.bfloat16)
    y = matmul_affine_act(a, params["stem_w"], params["stem_scale"],
                          params["stem_shift"], act="swish", out_dtype=jnp.bfloat16)
    return y.reshape(n, oh, ow, CPAD)


# ----------------------------- scaled-down EfficientNet ----------------------

STEM_C = 8
HEAD_C = 32
# (expand_ratio, kernel, stride, cin, cout)
BLOCK_CFG = [
    (1, 3, 1, STEM_C, 8),
    (6, 3, 2, 8, 16),
]


def effinet_forward(image_nchw, params, classes):
    # layout: NCHW (PyTorch) -> NHWC so channels sit on the 128-lane axis
    x = jnp.transpose(image_nchw, (0, 2, 3, 1)).astype(jnp.float32)
    x = stem_conv_bn_swish(x, params, stride=2)
    for i, (e, k, s, cin, cout) in enumerate(BLOCK_CFG):
        x = mbconv_block(x, params["blocks"][i], e, k, s,
                         has_skip=(s == 1 and cin == cout))
    # Head 1x1 conv + BN + swish + global average pool + new FC (nn.Linear of EffiNet)
    return head_gap_fc(x, params, classes)


# ----------------------------- deterministic parameter init ------------------


def init_params(classes, key):
    keys = iter(jax.random.split(key, 64))

    def conv_w(kh, kw, cin, cout):
        fan = kh * kw * cin
        return jax.random.normal(next(keys), (kh, kw, cin, cout), jnp.float32) * (2.0 / fan) ** 0.5

    def dw_w(kh, kw, c):
        return jax.random.normal(next(keys), (kh, kw, c), jnp.float32) * (2.0 / (kh * kw)) ** 0.5

    def bn(c, eps=1e-3):
        gamma = jnp.abs(jax.random.normal(next(keys), (c,), jnp.float32)) * 0.5 + 0.5
        beta = jax.random.normal(next(keys), (c,), jnp.float32) * 0.1
        mean = jnp.zeros((c,), jnp.float32)
        var = jnp.ones((c,), jnp.float32)
        scale = gamma / jnp.sqrt(var + eps)
        shift = beta - mean * scale
        return scale, shift

    p = {}
    p["stem_w"] = conv_w(3, 3, 3, STEM_C)
    p["stem_scale"], p["stem_shift"] = bn(STEM_C)

    blocks = []
    for (e, k, s, cin, cout) in BLOCK_CFG:
        bp = {}
        cmid = cin * e
        if e != 1:
            bp["expand_w"] = conv_w(1, 1, cin, cmid)
            bp["expand_scale"], bp["expand_shift"] = bn(cmid)
        bp["dw_w"] = dw_w(k, k, cmid)
        bp["dw_scale"], bp["dw_shift"] = bn(cmid)
        cse = max(1, cin // 4)
        bp["se_w1"] = jax.random.normal(next(keys), (cmid, cse), jnp.float32) * (2.0 / cmid) ** 0.5
        bp["se_b1"] = jnp.zeros((cse,), jnp.float32)
        bp["se_w2"] = jax.random.normal(next(keys), (cse, cmid), jnp.float32) * (2.0 / cse) ** 0.5
        bp["se_b2"] = jnp.zeros((cmid,), jnp.float32)
        bp["proj_w"] = conv_w(1, 1, cmid, cout)
        bp["proj_scale"], bp["proj_shift"] = bn(cout)
        blocks.append(bp)
    p["blocks"] = blocks

    p["head_w"] = conv_w(1, 1, BLOCK_CFG[-1][4], HEAD_C)
    p["head_scale"], p["head_shift"] = bn(HEAD_C)

    p["fc_w"] = jax.random.normal(next(keys), (HEAD_C, classes), jnp.float32) * (1.0 / HEAD_C) ** 0.5
    p["fc_b"] = jnp.zeros((classes,), jnp.float32)
    return p


def _pad2(x, r, c):
    return jnp.pad(x, ((0, r - x.shape[0]), (0, c - x.shape[1])))


def prepare_params(p):
    """One-time wrapper-side prep (per perf review): matmul weights stored bf16,
    everything zero-padded to 128 lanes so all kernel stores are lane-dense, all
    BN scales/shifts pre-folded to f32 (1, 128) rows."""
    def w2(x, dtype):
        if x.ndim == 4:                       # (1, 1, cin, cout) 1x1 convs
            x = x.reshape(x.shape[-2], x.shape[-1])
        return _pad2(x, CPAD, CPAD).astype(dtype)

    def vec(v):
        return jnp.pad(v, (0, CPAD - v.shape[0])).reshape(1, CPAD).astype(jnp.float32)

    q = {}
    sw = p["stem_w"].reshape(-1, p["stem_w"].shape[-1])          # (27, STEM_C)
    kpad = -(-sw.shape[0] // 8) * 8
    q["stem_w"] = jnp.pad(sw, ((0, kpad - sw.shape[0]),
                               (0, CPAD - sw.shape[1]))).astype(jnp.bfloat16)
    q["stem_scale"] = vec(p["stem_scale"])
    q["stem_shift"] = vec(p["stem_shift"])

    q["blocks"] = []
    for bp in p["blocks"]:
        bq = {}
        if "expand_w" in bp:
            bq["expand_w"] = w2(bp["expand_w"], jnp.bfloat16)
            bq["expand_scale"] = vec(bp["expand_scale"])
            bq["expand_shift"] = vec(bp["expand_shift"])
        k2 = bp["dw_w"].shape[0] * bp["dw_w"].shape[1]
        bq["dw_w"] = _pad2(bp["dw_w"].reshape(k2, -1), k2, CPAD).astype(jnp.float32)
        bq["dw_scale"] = vec(bp["dw_scale"])
        bq["dw_shift"] = vec(bp["dw_shift"])
        bq["se_w1"] = w2(bp["se_w1"], jnp.float32)
        bq["se_b1"] = vec(bp["se_b1"])
        bq["se_w2"] = w2(bp["se_w2"], jnp.float32)
        bq["se_b2"] = vec(bp["se_b2"])
        bq["proj_w"] = w2(bp["proj_w"], jnp.bfloat16)
        bq["proj_scale"] = vec(bp["proj_scale"])
        bq["proj_shift"] = vec(bp["proj_shift"])
        q["blocks"].append(bq)

    q["head_w"] = w2(p["head_w"], jnp.bfloat16)
    q["head_scale"] = vec(p["head_scale"])
    q["head_shift"] = vec(p["head_shift"])
    q["fc_w"] = w2(p["fc_w"], jnp.float32)
    q["fc_b"] = vec(p["fc_b"])
    return q


# ----------------------------- main -------------------------------------------

if __name__ == "__main__":
    classes = 4
    key = jax.random.PRNGKey(0)
    kparams, kimg = jax.random.split(key)

    params = init_params(classes, kparams)
    pparams = prepare_params(params)                        # bf16 / 128-padded, once
    image = jax.random.normal(kimg, (2, 3, 32, 32), jnp.float32)  # NCHW like PyTorch

    fwd = jax.jit(effinet_forward, static_argnums=2)
    out = jax.block_until_ready(fwd(image, pparams, classes))

    assert out.shape == (2, classes), out.shape
    assert bool(jnp.all(jnp.isfinite(out)))
    print("KERNEL_OK")
</pallas_src>

<mosaic_0001>
module attributes {stable_mosaic.version = 11 : i64} {
  func.func @kernel(%arg0: i32, %arg1: i32, %arg2: memref<256x32xbf16, #tpu.memory_space<vmem>>, %arg3: memref<32x128xbf16, #tpu.memory_space<vmem>>, %arg4: memref<1x128xf32, #tpu.memory_space<vmem>>, %arg5: memref<1x128xf32, #tpu.memory_space<vmem>>, %arg6: memref<256x128xbf16, #tpu.memory_space<vmem>>) attributes {dimension_semantics = [#tpu.dimension_semantics<parallel>, #tpu.dimension_semantics<parallel>], iteration_bounds = array<i64: 2, 1>, scalar_prefetch = 0 : i64, scratch_operands = 0 : i64, tpu.core_type = #tpu.core_type<tc>, window_params = [{transform_indices = @transform_0, window_bounds = array<i64: 256, 32>}, {transform_indices = @transform_1, window_bounds = array<i64: 32, 128>}, {transform_indices = @transform_2, window_bounds = array<i64: 1, 128>}, {transform_indices = @transform_3, window_bounds = array<i64: 1, 128>}, {transform_indices = @transform_4, window_bounds = array<i64: 256, 128>}]} {
    %c0 = arith.constant 0 : index
    %c0_0 = arith.constant 0 : index
    %0 = vector.load %arg2[%c0, %c0_0] : memref<256x32xbf16, #tpu.memory_space<vmem>>, vector<256x32xbf16>
    %c0_1 = arith.constant 0 : index
    %c0_2 = arith.constant 0 : index
    %1 = vector.load %arg3[%c0_1, %c0_2] : memref<32x128xbf16, #tpu.memory_space<vmem>>, vector<32x128xbf16>
    %cst = arith.constant dense<0.000000e+00> : vector<256x128xf32>
    %2 = tpu.matmul %0, %1, %cst {dimension_numbers = #tpu.dot_dimension_numbers<[1], [0], [0], [1], [0, 0, 1, 1], [], []>} : vector<256x32xbf16>, vector<32x128xbf16>, vector<256x128xf32> -> vector<256x128xf32>
    %c0_3 = arith.constant 0 : index
    %c0_4 = arith.constant 0 : index
    %3 = vector.load %arg4[%c0_3, %c0_4] : memref<1x128xf32, #tpu.memory_space<vmem>>, vector<1x128xf32>
    %4 = vector.broadcast %3 : vector<1x128xf32> to vector<256x128xf32>
    %5 = arith.mulf %2, %4 : vector<256x128xf32>
    %c0_5 = arith.constant 0 : index
    %c0_6 = arith.constant 0 : index
    %6 = vector.load %arg5[%c0_5, %c0_6] : memref<1x128xf32, #tpu.memory_space<vmem>>, vector<1x128xf32>
    %7 = vector.broadcast %6 : vector<1x128xf32> to vector<256x128xf32>
    %8 = arith.addf %5, %7 : vector<256x128xf32>
    %9 = arith.negf %8 : vector<256x128xf32>
    %10 = math.exp %9 : vector<256x128xf32>
    %cst_7 = arith.constant 1.000000e+00 : f32
    %11 = vector.broadcast %cst_7 : f32 to vector<256x128xf32>
    %12 = arith.addf %11, %10 : vector<256x128xf32>
    %13 = arith.divf %11, %12 : vector<256x128xf32>
    %14 = arith.mulf %8, %13 : vector<256x128xf32>
    %15 = arith.truncf %14 : vector<256x128xf32> to vector<256x128xbf16>
    %c0_8 = arith.constant 0 : index
    %c0_9 = arith.constant 0 : index
    %16 = vector.load %arg6[%c0_8, %c0_9] : memref<256x128xbf16, #tpu.memory_space<vmem>>, vector<256x128xbf16>
    tpu.vector_store %arg6[%c0_8, %c0_9], %15 {strides = array<i32>} : memref<256x128xbf16, #tpu.memory_space<vmem>>, vector<256x128xbf16>,
    return
  }
  func.func @transform_0(%arg0: i32, %arg1: i32) -> (i32, i32) {
    %c0_i32 = arith.constant 0 : i32
    %c0_i32_0 = arith.constant 0 : i32
    return %arg0, %c0_i32 : i32, i32
  }
  func.func @transform_1(%arg0: i32, %arg1: i32) -> (i32, i32) {
    %c0_i32 = arith.constant 0 : i32
    %c0_i32_0 = arith.constant 0 : i32
    return %c0_i32, %arg1 : i32, i32
  }
  func.func @transform_2(%arg0: i32, %arg1: i32) -> (i32, i32) {
    %c0_i32 = arith.constant 0 : i32
    %c0_i32_0 = arith.constant 0 : i32
    return %c0_i32, %arg1 : i32, i32
  }
  func.func @transform_3(%arg0: i32, %arg1: i32) -> (i32, i32) {
    %c0_i32 = arith.constant 0 : i32
    %c0_i32_0 = arith.constant 0 : i32
    return %c0_i32, %arg1 : i32, i32
  }
  func.func @transform_4(%arg0: i32, %arg1: i32) -> (i32, i32) {
    %c0_i32 = arith.constant 0 : i32
    return %arg0, %arg1 : i32, i32
  }
}

module attributes {stable_mosaic.version = 11 : i64} {
  func.func @kernel(%arg0: i32, %arg1: memref<1x18x24x128xbf16, #tpu.memory_space<vmem>>, %arg2: memref<9x128xf32, #tpu.memory_space<vmem>>, %arg3: memref<1x128xf32, #tpu.memory_space<vmem>>, %arg4: memref<1x128xf32, #tpu.memory_space<vmem>>, %arg5: memref<128x128xf32, #tpu.memory_space<vmem>>, %arg6: memref<1x128xf32, #tpu.memory_space<vmem>>, %arg7: memref<128x128xf32, #tpu.memory_space<vmem>>, %arg8: memref<1x128xf32, #tpu.memory_space<vmem>>, %arg9: memref<128x128xbf16, #tpu.memory_space<vmem>>, %arg10: memref<1x128xf32, #tpu.memory_space<vmem>>, %arg11: memref<1x128xf32, #tpu.memory_space<vmem>>, %arg12: memref<1x256x128xbf16, #tpu.memory_space<vmem>>, %arg13: memref<1x256x128xbf16, #tpu.memory_space<vmem>>) attributes {dimension_semantics = [#tpu.dimension_semantics<parallel>], iteration_bounds = array<i64: 2>, scalar_prefetch = 0 : i64, scratch_operands = 0 : i64, tpu.core_type = #tpu.core_type<tc>, window_params = [{transform_indices = @transform_0, window_bounds = array<i64: 1, 18, 24, 128>}, {pipeline_mode = #tpu.pipeline_mode<synchronous>, transform_indices = @transform_1, window_bounds = array<i64: 9, 128>}, {pipeline_mode = #tpu.pipeline_mode<synchronous>, transform_indices = @transform_2, window_bounds = array<i64: 1, 128>}, {pipeline_mode = #tpu.pipeline_mode<synchronous>, transform_indices = @transform_3, window_bounds = array<i64: 1, 128>}, {pipeline_mode = #tpu.pipeline_mode<synchronous>, transform_indices = @transform_4, window_bounds = array<i64: 128, 128>}, {pipeline_mode = #tpu.pipeline_mode<synchronous>, transform_indices = @transform_5, window_bounds = array<i64: 1, 128>}, {pipeline_mode = #tpu.pipeline_mode<synchronous>, transform_indices = @transform_6, window_bounds = array<i64: 128, 128>}, {pipeline_mode = #tpu.pipeline_mode<synchronous>, transform_indices = @transform_7, window_bounds = array<i64: 1, 128>}, {pipeline_mode = #tpu.pipeline_mode<synchronous>, transform_indices = @transform_8, window_bounds = array<i64: 128, 128>}, {pipeline_mode = #tpu.pipeline_mode<synchronous>, transform_indices = @transform_9, window_bounds = array<i64: 1, 128>}, {pipeline_mode = #tpu.pipeline_mode<synchronous>, transform_indices = @transform_10, window_bounds = array<i64: 1, 128>}, {transform_indices = @transform_11, window_bounds = array<i64: 1, 256, 128>}, {transform_indices = @transform_12, window_bounds = array<i64: 1, 256, 128>}]} {
    %c0 = arith.constant 0 : index
    %c0_0 = arith.constant 0 : index
    %0 = vector.load %arg2[%c0, %c0_0] : memref<9x128xf32, #tpu.memory_space<vmem>>, vector<9x128xf32>
    %cst = arith.constant 0.000000e+00 : f32
    %1 = vector.broadcast %cst : f32 to vector<16x16x128xf32>
    %c0_1 = arith.constant 0 : index
    %c0_2 = arith.constant 0 : index
    %c0_3 = arith.constant 0 : index
    %c0_4 = arith.constant 0 : index
    %2 = vector.load %arg1[%c0_1, %c0_2, %c0_3, %c0_4] : memref<1x18x24x128xbf16, #tpu.memory_space<vmem>>, vector<1x16x16x128xbf16>
    %3 = vector.shape_cast %2 : vector<1x16x16x128xbf16> to vector<16x16x128xbf16>
    %4 = arith.extf %3 : vector<16x16x128xbf16> to vector<16x16x128xf32>
    %5 = vector.extract_strided_slice %0 {offsets = [0, 0], sizes = [1, 128], strides = [1, 1]} : vector<9x128xf32> to vector<1x128xf32>
    %6 = vector.shape_cast %5 : vector<1x128xf32> to vector<1x1x128xf32>
    %7 = vector.broadcast %6 : vector<1x1x128xf32> to vector<16x16x128xf32>
    %8 = arith.mulf %4, %7 : vector<16x16x128xf32>
    %9 = arith.addf %1, %8 : vector<16x16x128xf32>
    %c0_5 = arith.constant 0 : index
    %c0_6 = arith.constant 0 : index
    %c1 = arith.constant 1 : index
    %c0_7 = arith.constant 0 : index
    %10 = vector.load %arg1[%c0_5, %c0_6, %c1, %c0_7] : memref<1x18x24x128xbf16, #tpu.memory_space<vmem>>, vector<1x16x16x128xbf16>
    %11 = vector.shape_cast %10 : vector<1x16x16x128xbf16> to vector<16x16x128xbf16>
    %12 = arith.extf %11 : vector<16x16x128xbf16> to vector<16x16x128xf32>
    %13 = vector.extract_strided_slice %0 {offsets = [1, 0], sizes = [1, 128], strides = [1, 1]} : vector<9x128xf32> to vector<1x128xf32>
    %14 = vector.shape_cast %13 : vector<1x128xf32> to vector<1x1x128xf32>
    %15 = vector.broadcast %14 : vector<1x1x128xf32> to vector<16x16x128xf32>
    %16 = arith.mulf %12, %15 : vector<16x16x128xf32>
    %17 = arith.addf %9, %16 : vector<16x16x128xf32>
    %c0_8 = arith.constant 0 : index
    %c0_9 = arith.constant 0 : index
    %c2 = arith.constant 2 : index
    %c0_10 = arith.constant 0 : index
    %18 = vector.load %arg1[%c0_8, %c0_9, %c2, %c0_10] : memref<1x18x24x128xbf16, #tpu.memory_space<vmem>>, vector<1x16x16x128xbf16>
    %19 = vector.shape_cast %18 : vector<1x16x16x128xbf16> to vector<16x16x128xbf16>
    %20 = arith.extf %19 : vector<16x16x128xbf16> to vector<16x16x128xf32>
    %21 = vector.extract_strided_slice %0 {offsets = [2, 0], sizes = [1, 128], strides = [1, 1]} : vector<9x128xf32> to vector<1x128xf32>
    %22 = vector.shape_cast %21 : vector<1x128xf32> to vector<1x1x128xf32>
    %23 = vector.broadcast %22 : vector<1x1x128xf32> to vector<16x16x128xf32>
    %24 = arith.mulf %20, %23 : vector<16x16x128xf32>
    %25 = arith.addf %17, %24 : vector<16x16x128xf32>
    %c0_11 = arith.constant 0 : index
    %c1_12 = arith.constant 1 : index
    %c0_13 = arith.constant 0 : index
    %c0_14 = arith.constant 0 : index
    %26 = vector.load %arg1[%c0_11, %c1_12, %c0_13, %c0_14] : memref<1x18x24x128xbf16, #tpu.memory_space<vmem>>, vector<1x16x16x128xbf16>
    %27 = vector.shape_cast %26 : vector<1x16x16x128xbf16> to vector<16x16x128xbf16>
    %28 = arith.extf %27 : vector<16x16x128xbf16> to vector<16x16x128xf32>
    %29 = vector.extract_strided_slice %0 {offsets = [3, 0], sizes = [1, 128], strides = [1, 1]} : vector<9x128xf32> to vector<1x128xf32>
    %30 = vector.shape_cast %29 : vector<1x128xf32> to vector<1x1x128xf32>
    %31 = vector.broadcast %30 : vector<1x1x128xf32> to vector<16x16x128xf32>
    %32 = arith.mulf %28, %31 : vector<16x16x128xf32>
    %33 = arith.addf %25, %32 : vector<16x16x128xf32>
    %c0_15 = arith.constant 0 : index
    %c1_16 = arith.constant 1 : index
    %c1_17 = arith.constant 1 : index
    %c0_18 = arith.constant 0 : index
    %34 = vector.load %arg1[%c0_15, %c1_16, %c1_17, %c0_18] : memref<1x18x24x128xbf16, #tpu.memory_space<vmem>>, vector<1x16x16x128xbf16>
    %35 = vector.shape_cast %34 : vector<1x16x16x128xbf16> to vector<16x16x128xbf16>
    %36 = arith.extf %35 : vector<16x16x128xbf16> to vector<16x16x128xf32>
    %37 = vector.extract_strided_slice %0 {offsets = [4, 0], sizes = [1, 128], strides = [1, 1]} : vector<9x128xf32> to vector<1x128xf32>
    %38 = vector.shape_cast %37 : vector<1x128xf32> to vector<1x1x128xf32>
    %39 = vector.broadcast %38 : vector<1x1x128xf32> to vector<16x16x128xf32>
    %40 = arith.mulf %36, %39 : vector<16x16x128xf32>
    %41 = arith.addf %33, %40 : vector<16x16x128xf32>
    %c0_19 = arith.constant 0 : index
    %c1_20 = arith.constant 1 : index
    %c2_21 = arith.constant 2 : index
    %c0_22 = arith.constant 0 : index
    %42 = vector.load %arg1[%c0_19, %c1_20, %c2_21, %c0_22] : memref<1x18x24x128xbf16, #tpu.memory_space<vmem>>, vector<1x16x16x128xbf16>
    %43 = vector.shape_cast %42 : vector<1x16x16x128xbf16> to vector<16x16x128xbf16>
    %44 = arith.extf %43 : vector<16x16x128xbf16> to vector<16x16x128xf32>
    %45 = vector.extract_strided_slice %0 {offsets = [5, 0], sizes = [1, 128], strides = [1, 1]} : vector<9x128xf32> to vector<1x128xf32>
    %46 = vector.shape_cast %45 : vector<1x128xf32> to vector<1x1x128xf32>
    %47 = vector.broadcast %46 : vector<1x1x128xf32> to vector<16x16x128xf32>
    %48 = arith.mulf %44, %47 : vector<16x16x128xf32>
    %49 = arith.addf %41, %48 : vector<16x16x128xf32>
    %c0_23 = arith.constant 0 : index
    %c2_24 = arith.constant 2 : index
    %c0_25 = arith.constant 0 : index
    %c0_26 = arith.constant 0 : index
    %50 = vector.load %arg1[%c0_23, %c2_24, %c0_25, %c0_26] : memref<1x18x24x128xbf16, #tpu.memory_space<vmem>>, vector<1x16x16x128xbf16>
    %51 = vector.shape_cast %50 : vector<1x16x16x128xbf16> to vector<16x16x128xbf16>
    %52 = arith.extf %51 : vector<16x16x128xbf16> to vector<16x16x128xf32>
    %53 = vector.extract_strided_slice %0 {offsets = [6, 0], sizes = [1, 128], strides = [1, 1]} : vector<9x128xf32> to vector<1x128xf32>
    %54 = vector.shape_cast %53 : vector<1x128xf32> to vector<1x1x128xf32>
    %55 = vector.broadcast %54 : vector<1x1x128xf32> to vector<16x16x128xf32>
    %56 = arith.mulf %52, %55 : vector<16x16x128xf32>
    %57 = arith.addf %49, %56 : vector<16x16x128xf32>
    %c0_27 = arith.constant 0 : index
    %c2_28 = arith.constant 2 : index
    %c1_29 = arith.constant 1 : index
    %c0_30 = arith.constant 0 : index
    %58 = vector.load %arg1[%c0_27, %c2_28, %c1_29, %c0_30] : memref<1x18x24x128xbf16, #tpu.memory_space<vmem>>, vector<1x16x16x128xbf16>
    %59 = vector.shape_cast %58 : vector<1x16x16x128xbf16> to vector<16x16x128xbf16>
    %60 = arith.extf %59 : vector<16x16x128xbf16> to vector<16x16x128xf32>
    %61 = vector.extract_strided_slice %0 {offsets = [7, 0], sizes = [1, 128], strides = [1, 1]} : vector<9x128xf32> to vector<1x128xf32>
    %62 = vector.shape_cast %61 : vector<1x128xf32> to vector<1x1x128xf32>
    %63 = vector.broadcast %62 : vector<1x1x128xf32> to vector<16x16x128xf32>
    %64 = arith.mulf %60, %63 : vector<16x16x128xf32>
    %65 = arith.addf %57, %64 : vector<16x16x128xf32>
    %c0_31 = arith.constant 0 : index
    %c2_32 = arith.constant 2 : index
    %c2_33 = arith.constant 2 : index
    %c0_34 = arith.constant 0 : index
    %66 = vector.load %arg1[%c0_31, %c2_32, %c2_33, %c0_34] : memref<1x18x24x128xbf16, #tpu.memory_space<vmem>>, vector<1x16x16x128xbf16>
    %67 = vector.shape_cast %66 : vector<1x16x16x128xbf16> to vector<16x16x128xbf16>
    %68 = arith.extf %67 : vector<16x16x128xbf16> to vector<16x16x128xf32>
    %69 = vector.extract_strided_slice %0 {offsets = [8, 0], sizes = [1, 128], strides = [1, 1]} : vector<9x128xf32> to vector<1x128xf32>
    %70 = vector.shape_cast %69 : vector<1x128xf32> to vector<1x1x128xf32>
    %71 = vector.broadcast %70 : vector<1x1x128xf32> to vector<16x16x128xf32>
    %72 = arith.mulf %68, %71 : vector<16x16x128xf32>
    %73 = arith.addf %65, %72 : vector<16x16x128xf32>
    %c0_35 = arith.constant 0 : index
    %c0_36 = arith.constant 0 : index
    %74 = vector.load %arg3[%c0_35, %c0_36] : memref<1x128xf32, #tpu.memory_space<vmem>>, vector<1x128xf32>
    %75 = vector.shape_cast %74 : vector<1x128xf32> to vector<1x1x128xf32>
    %76 = vector.broadcast %75 : vector<1x1x128xf32> to vector<16x16x128xf32>
    %77 = arith.mulf %73, %76 : vector<16x16x128xf32>
    %c0_37 = arith.constant 0 : index
    %c0_38 = arith.constant 0 : index
    %78 = vector.load %arg4[%c0_37, %c0_38] : memref<1x128xf32, #tpu.memory_space<vmem>>, vector<1x128xf32>
    %79 = vector.shape_cast %78 : vector<1x128xf32> to vector<1x1x128xf32>
    %80 = vector.broadcast %79 : vector<1x1x128xf32> to vector<16x16x128xf32>
    %81 = arith.addf %77, %80 : vector<16x16x128xf32>
    %82 = arith.negf %81 : vector<16x16x128xf32>
    %83 = math.exp %82 : vector<16x16x128xf32>
    %cst_39 = arith.constant 1.000000e+00 : f32
    %84 = vector.broadcast %cst_39 : f32 to vector<16x16x128xf32>
    %85 = arith.addf %84, %83 : vector<16x16x128xf32>
    %86 = arith.divf %84, %85 : vector<16x16x128xf32>
    %87 = arith.mulf %81, %86 : vector<16x16x128xf32>
    %88 = vector.shape_cast %87 : vector<16x16x128xf32> to vector<256x128xf32>
    %cst_40 = arith.constant dense<0.000000e+00> : vector<128xf32>
    %89 = vector.multi_reduction <add>, %88, %cst_40 [0] : vector<256x128xf32> to vector<128xf32>
    %90 = vector.shape_cast %89 : vector<128xf32> to vector<1x128xf32>
    %cst_41 = arith.constant 2.560000e+02 : f32
    %91 = vector.broadcast %cst_41 : f32 to vector<1x128xf32>
    %92 = arith.divf %90, %91 : vector<1x128xf32>
    %c0_42 = arith.constant 0 : index
    %c0_43 = arith.constant 0 : index
    %93 = vector.load %arg5[%c0_42, %c0_43] : memref<128x128xf32, #tpu.memory_space<vmem>>, vector<128x128xf32>
    %cst_44 = arith.constant dense<0.000000e+00> : vector<1x128xf32>
    %94 = tpu.matmul %92, %93, %cst_44 {dimension_numbers = #tpu.dot_dimension_numbers<[1], [0], [0], [1], [0, 0, 1, 1], [], []>} : vector<1x128xf32>, vector<128x128xf32>, vector<1x128xf32> -> vector<1x128xf32>
    %c0_45 = arith.constant 0 : index
    %c0_46 = arith.constant 0 : index
    %95 = vector.load %arg6[%c0_45, %c0_46] : memref<1x128xf32, #tpu.memory_space<vmem>>, vector<1x128xf32>
    %96 = arith.addf %94, %95 : vector<1x128xf32>
    %97 = arith.negf %96 : vector<1x128xf32>
    %98 = math.exp %97 : vector<1x128xf32>
    %cst_47 = arith.constant 1.000000e+00 : f32
    %99 = vector.broadcast %cst_47 : f32 to vector<1x128xf32>
    %100 = arith.addf %99, %98 : vector<1x128xf32>
    %101 = arith.divf %99, %100 : vector<1x128xf32>
    %102 = arith.mulf %96, %101 : vector<1x128xf32>
    %c0_48 = arith.constant 0 : index
    %c0_49 = arith.constant 0 : index
    %103 = vector.load %arg7[%c0_48, %c0_49] : memref<128x128xf32, #tpu.memory_space<vmem>>, vector<128x128xf32>
    %cst_50 = arith.constant dense<0.000000e+00> : vector<1x128xf32>
    %104 = tpu.matmul %102, %103, %cst_50 {dimension_numbers = #tpu.dot_dimension_numbers<[1], [0], [0], [1], [0, 0, 1, 1], [], []>} : vector<1x128xf32>, vector<128x128xf32>, vector<1x128xf32> -> vector<1x128xf32>
    %c0_51 = arith.constant 0 : index
    %c0_52 = arith.constant 0 : index
    %105 = vector.load %arg8[%c0_51, %c0_52] : memref<1x128xf32, #tpu.memory_space<vmem>>, vector<1x128xf32>
    %106 = arith.addf %104, %105 : vector<1x128xf32>
    %107 = arith.negf %106 : vector<1x128xf32>
    %108 = math.exp %107 : vector<1x128xf32>
    %cst_53 = arith.constant 1.000000e+00 : f32
    %109 = vector.broadcast %cst_53 : f32 to vector<1x128xf32>
    %110 = arith.addf %109, %108 : vector<1x128xf32>
    %111 = arith.divf %109, %110 : vector<1x128xf32>
    %112 = vector.broadcast %111 : vector<1x128xf32> to vector<256x128xf32>
    %113 = arith.mulf %88, %112 : vector<256x128xf32>
    %114 = arith.truncf %113 : vector<256x128xf32> to vector<256x128xbf16>
    %c0_54 = arith.constant 0 : index
    %c0_55 = arith.constant 0 : index
    %115 = vector.load %arg9[%c0_54, %c0_55] : memref<128x128xbf16, #tpu.memory_space<vmem>>, vector<128x128xbf16>
    %cst_56 = arith.constant dense<0.000000e+00> : vector<256x128xf32>
    %116 = tpu.matmul %114, %115, %cst_56 {dimension_numbers = #tpu.dot_dimension_numbers<[1], [0], [0], [1], [0, 0, 1, 1], [], []>} : vector<256x128xbf16>, vector<128x128xbf16>, vector<256x128xf32> -> vector<256x128xf32>
    %c0_57 = arith.constant 0 : index
    %c0_58 = arith.constant 0 : index
    %117 = vector.load %arg10[%c0_57, %c0_58] : memref<1x128xf32, #tpu.memory_space<vmem>>, vector<1x128xf32>
    %118 = vector.broadcast %117 : vector<1x128xf32> to vector<256x128xf32>
    %119 = arith.mulf %116, %118 : vector<256x128xf32>
    %c0_59 = arith.constant 0 : index
    %c0_60 = arith.constant 0 : index
    %120 = vector.load %arg11[%c0_59, %c0_60] : memref<1x128xf32, #tpu.memory_space<vmem>>, vector<1x128xf32>
    %121 = vector.broadcast %120 : vector<1x128xf32> to vector<256x128xf32>
    %122 = arith.addf %119, %121 : vector<256x128xf32>
    %c0_61 = arith.constant 0 : index
    %c0_62 = arith.constant 0 : index
    %c0_63 = arith.constant 0 : index
    %123 = vector.load %arg12[%c0_61, %c0_62, %c0_63] : memref<1x256x128xbf16, #tpu.memory_space<vmem>>, vector<1x256x128xbf16>
    %124 = vector.shape_cast %123 : vector<1x256x128xbf16> to vector<256x128xbf16>
    %125 = arith.extf %124 : vector<256x128xbf16> to vector<256x128xf32>
    %126 = arith.addf %122, %125 : vector<256x128xf32>
    %127 = arith.truncf %126 : vector<256x128xf32> to vector<256x128xbf16>
    %c0_64 = arith.constant 0 : index
    %c0_65 = arith.constant 0 : index
    %c0_66 = arith.constant 0 : index
    %128 = vector.load %arg13[%c0_64, %c0_65, %c0_66] : memref<1x256x128xbf16, #tpu.memory_space<vmem>>, vector<1x256x128xbf16>
    %129 = vector.shape_cast %128 : vector<1x256x128xbf16> to vector<256x128xbf16>
    %130 = vector.shape_cast %127 : vector<256x128xbf16> to vector<1x256x128xbf16>
    tpu.vector_store %arg13[%c0_64, %c0_65, %c0_66], %130 {strides = array<i32>} : memref<1x256x128xbf16, #tpu.memory_space<vmem>>, vector<1x256x128xbf16>,
    return
  }
  func.func @transform_0(%arg0: i32) -> (i32, i32, i32, i32) {
    %c0_i32 = arith.constant 0 : i32
    %c0_i32_0 = arith.constant 0 : i32
    %c0_i32_1 = arith.constant 0 : i32
    %c0_i32_2 = arith.constant 0 : i32
    return %arg0, %c0_i32, %c0_i32_0, %c0_i32_1 : i32, i32, i32, i32
  }
  func.func @transform_1(%arg0: i32) -> (i32, i32) {
    %c0_i32 = arith.constant 0 : i32
    %c0_i32_0 = arith.constant 0 : i32
    %c0_i32_1 = arith.constant 0 : i32
    return %c0_i32, %c0_i32_0 : i32, i32
  }
  func.func @transform_2(%arg0: i32) -> (i32, i32) {
    %c0_i32 = arith.constant 0 : i32
    %c0_i32_0 = arith.constant 0 : i32
    %c0_i32_1 = arith.constant 0 : i32
    return %c0_i32, %c0_i32_0 : i32, i32
  }
  func.func @transform_3(%arg0: i32) -> (i32, i32) {
    %c0_i32 = arith.constant 0 : i32
    %c0_i32_0 = arith.constant 0 : i32
    %c0_i32_1 = arith.constant 0 : i32
    return %c0_i32, %c0_i32_0 : i32, i32
  }
  func.func @transform_4(%arg0: i32) -> (i32, i32) {
    %c0_i32 = arith.constant 0 : i32
    %c0_i32_0 = arith.constant 0 : i32
    %c0_i32_1 = arith.constant 0 : i32
    return %c0_i32, %c0_i32_0 : i32, i32
  }
  func.func @transform_5(%arg0: i32) -> (i32, i32) {
    %c0_i32 = arith.constant 0 : i32
    %c0_i32_0 = arith.constant 0 : i32
    %c0_i32_1 = arith.constant 0 : i32
    return %c0_i32, %c0_i32_0 : i32, i32
  }
  func.func @transform_6(%arg0: i32) -> (i32, i32) {
    %c0_i32 = arith.constant 0 : i32
    %c0_i32_0 = arith.constant 0 : i32
    %c0_i32_1 = arith.constant 0 : i32
    return %c0_i32, %c0_i32_0 : i32, i32
  }
  func.func @transform_7(%arg0: i32) -> (i32, i32) {
    %c0_i32 = arith.constant 0 : i32
    %c0_i32_0 = arith.constant 0 : i32
    %c0_i32_1 = arith.constant 0 : i32
    return %c0_i32, %c0_i32_0 : i32, i32
  }
  func.func @transform_8(%arg0: i32) -> (i32, i32) {
    %c0_i32 = arith.constant 0 : i32
    %c0_i32_0 = arith.constant 0 : i32
    %c0_i32_1 = arith.constant 0 : i32
    return %c0_i32, %c0_i32_0 : i32, i32
  }
  func.func @transform_9(%arg0: i32) -> (i32, i32) {
    %c0_i32 = arith.constant 0 : i32
    %c0_i32_0 = arith.constant 0 : i32
    %c0_i32_1 = arith.constant 0 : i32
    return %c0_i32, %c0_i32_0 : i32, i32
  }
  func.func @transform_10(%arg0: i32) -> (i32, i32) {
    %c0_i32 = arith.constant 0 : i32
    %c0_i32_0 = arith.constant 0 : i32
    %c0_i32_1 = arith.constant 0 : i32
    return %c0_i32, %c0_i32_0 : i32, i32
  }
  func.func @transform_11(%arg0: i32) -> (i32, i32, i32) {
    %c0_i32 = arith.constant 0 : i32
    %c0_i32_0 = arith.constant 0 : i32
    %c0_i32_1 = arith.constant 0 : i32
    return %arg0, %c0_i32, %c0_i32_0 : i32, i32, i32
  }
  func.func @transform_12(%arg0: i32) -> (i32, i32, i32) {
    %c0_i32 = arith.constant 0 : i32
    %c0_i32_0 = arith.constant 0 : i32
    %c0_i32_1 = arith.constant 0 : i32
    return %arg0, %c0_i32, %c0_i32_0 : i32, i32, i32
  }
}

module attributes {stable_mosaic.version = 11 : i64} {
  func.func @kernel(%arg0: i32, %arg1: memref<1x576x128xbf16, #tpu.memory_space<vmem>>, %arg2: memref<576x1xf32, #tpu.memory_space<vmem>>, %arg3: memref<128x128xbf16, #tpu.memory_space<vmem>>, %arg4: memref<1x128xf32, #tpu.memory_space<vmem>>, %arg5: memref<1x128xf32, #tpu.memory_space<vmem>>, %arg6: memref<9x128xf32, #tpu.memory_space<vmem>>, %arg7: memref<1x128xf32, #tpu.memory_space<vmem>>, %arg8: memref<1x128xf32, #tpu.memory_space<vmem>>, %arg9: memref<128x128xf32, #tpu.memory_space<vmem>>, %arg10: memref<1x128xf32, #tpu.memory_space<vmem>>, %arg11: memref<128x128xf32, #tpu.memory_space<vmem>>, %arg12: memref<1x128xf32, #tpu.memory_space<vmem>>, %arg13: memref<128x128xbf16, #tpu.memory_space<vmem>>, %arg14: memref<1x128xf32, #tpu.memory_space<vmem>>, %arg15: memref<1x128xf32, #tpu.memory_space<vmem>>, %arg16: memref<1x64x128xbf16, #tpu.memory_space<vmem>>, %arg17: memref<36x16x128xf32, #tpu.memory_space<vmem>>) attributes {dimension_semantics = [#tpu.dimension_semantics<parallel>], iteration_bounds = array<i64: 2>, scalar_prefetch = 0 : i64, scratch_operands = 1 : i64, tpu.core_type = #tpu.core_type<tc>, window_params = [{transform_indices = @transform_0, window_bounds = array<i64: 1, 576, 128>}, {pipeline_mode = #tpu.pipeline_mode<synchronous>, transform_indices = @transform_1, window_bounds = array<i64: 576, 1>}, {pipeline_mode = #tpu.pipeline_mode<synchronous>, transform_indices = @transform_2, window_bounds = array<i64: 128, 128>}, {pipeline_mode = #tpu.pipeline_mode<synchronous>, transform_indices = @transform_3, window_bounds = array<i64: 1, 128>}, {pipeline_mode = #tpu.pipeline_mode<synchronous>, transform_indices = @transform_4, window_bounds = array<i64: 1, 128>}, {pipeline_mode = #tpu.pipeline_mode<synchronous>, transform_indices = @transform_5, window_bounds = array<i64: 9, 128>}, {pipeline_mode = #tpu.pipeline_mode<synchronous>, transform_indices = @transform_6, window_bounds = array<i64: 1, 128>}, {pipeline_mode = #tpu.pipeline_mode<synchronous>, transform_indices = @transform_7, window_bounds = array<i64: 1, 128>}, {pipeline_mode = #tpu.pipeline_mode<synchronous>, transform_indices = @transform_8, window_bounds = array<i64: 128, 128>}, {pipeline_mode = #tpu.pipeline_mode<synchronous>, transform_indices = @transform_9, window_bounds = array<i64: 1, 128>}, {pipeline_mode = #tpu.pipeline_mode<synchronous>, transform_indices = @transform_10, window_bounds = array<i64: 128, 128>}, {pipeline_mode = #tpu.pipeline_mode<synchronous>, transform_indices = @transform_11, window_bounds = array<i64: 1, 128>}, {pipeline_mode = #tpu.pipeline_mode<synchronous>, transform_indices = @transform_12, window_bounds = array<i64: 128, 128>}, {pipeline_mode = #tpu.pipeline_mode<synchronous>, transform_indices = @transform_13, window_bounds = array<i64: 1, 128>}, {pipeline_mode = #tpu.pipeline_mode<synchronous>, transform_indices = @transform_14, window_bounds = array<i64: 1, 128>}, {transform_indices = @transform_15, window_bounds = array<i64: 1, 64, 128>}]} {
    %c0 = arith.constant 0 : index
    %c0_0 = arith.constant 0 : index
    %c0_1 = arith.constant 0 : index
    %0 = vector.load %arg1[%c0, %c0_0, %c0_1] : memref<1x576x128xbf16, #tpu.memory_space<vmem>>, vector<1x576x128xbf16>
    %1 = vector.shape_cast %0 : vector<1x576x128xbf16> to vector<576x128xbf16>
    %c0_2 = arith.constant 0 : index
    %c0_3 = arith.constant 0 : index
    %2 = vector.load %arg3[%c0_2, %c0_3] : memref<128x128xbf16, #tpu.memory_space<vmem>>, vector<128x128xbf16>
    %cst = arith.constant dense<0.000000e+00> : vector<576x128xf32>
    %3 = tpu.matmul %1, %2, %cst {dimension_numbers = #tpu.dot_dimension_numbers<[1], [0], [0], [1], [0, 0, 1, 1], [], []>} : vector<576x128xbf16>, vector<128x128xbf16>, vector<576x128xf32> -> vector<576x128xf32>
    %c0_4 = arith.constant 0 : index
    %c0_5 = arith.constant 0 : index
    %4 = vector.load %arg4[%c0_4, %c0_5] : memref<1x128xf32, #tpu.memory_space<vmem>>, vector<1x128xf32>
    %5 = vector.broadcast %4 : vector<1x128xf32> to vector<576x128xf32>
    %6 = arith.mulf %3, %5 : vector<576x128xf32>
    %c0_6 = arith.constant 0 : index
    %c0_7 = arith.constant 0 : index
    %7 = vector.load %arg5[%c0_6, %c0_7] : memref<1x128xf32, #tpu.memory_space<vmem>>, vector<1x128xf32>
    %8 = vector.broadcast %7 : vector<1x128xf32> to vector<576x128xf32>
    %9 = arith.addf %6, %8 : vector<576x128xf32>
    %10 = arith.negf %9 : vector<576x128xf32>
    %11 = math.exp %10 : vector<576x128xf32>
    %cst_8 = arith.constant 1.000000e+00 : f32
    %12 = vector.broadcast %cst_8 : f32 to vector<576x128xf32>
    %13 = arith.addf %12, %11 : vector<576x128xf32>
    %14 = arith.divf %12, %13 : vector<576x128xf32>
    %15 = arith.mulf %9, %14 : vector<576x128xf32>
    %c0_9 = arith.constant 0 : index
    %c0_10 = arith.constant 0 : index
    %16 = vector.load %arg2[%c0_9, %c0_10] : memref<576x1xf32, #tpu.memory_space<vmem>>, vector<576x1xf32>
    %17 = vector.broadcast %16 : vector<576x1xf32> to vector<576x128xf32>
    %18 = arith.mulf %15, %17 : vector<576x128xf32>
    %19 = vector.shape_cast %18 : vector<576x128xf32> to vector<36x16x128xf32>
    %c0_11 = arith.constant 0 : index
    %c0_12 = arith.constant 0 : index
    %c0_13 = arith.constant 0 : index
    %20 = vector.load %arg17[%c0_11, %c0_12, %c0_13] : memref<36x16x128xf32, #tpu.memory_space<vmem>>, vector<36x16x128xf32>
    tpu.vector_store %arg17[%c0_11, %c0_12, %c0_13], %19 {strides = array<i32>} : memref<36x16x128xf32, #tpu.memory_space<vmem>>, vector<36x16x128xf32>,
    %c0_14 = arith.constant 0 : index
    %c0_15 = arith.constant 0 : index
    %21 = vector.load %arg6[%c0_14, %c0_15] : memref<9x128xf32, #tpu.memory_space<vmem>>, vector<9x128xf32>
    %cst_16 = arith.constant 0.000000e+00 : f32
    %22 = vector.broadcast %cst_16 : f32 to vector<8x8x128xf32>
    %c0_17 = arith.constant 0 : index
    %c0_18 = arith.constant 0 : index
    %c0_19 = arith.constant 0 : index
    %23 = vector.load %arg17[%c0_17, %c0_18, %c0_19] : memref<36x16x128xf32, #tpu.memory_space<vmem>>, vector<8x8x128xf32>
    %24 = vector.extract_strided_slice %21 {offsets = [0, 0], sizes = [1, 128], strides = [1, 1]} : vector<9x128xf32> to vector<1x128xf32>
    %25 = vector.shape_cast %24 : vector<1x128xf32> to vector<1x1x128xf32>
    %26 = vector.broadcast %25 : vector<1x1x128xf32> to vector<8x8x128xf32>
    %27 = arith.mulf %23, %26 : vector<8x8x128xf32>
    %28 = arith.addf %22, %27 : vector<8x8x128xf32>
    %c9 = arith.constant 9 : index
    %c0_20 = arith.constant 0 : index
    %c0_21 = arith.constant 0 : index
    %29 = vector.load %arg17[%c9, %c0_20, %c0_21] : memref<36x16x128xf32, #tpu.memory_space<vmem>>, vector<8x8x128xf32>
    %30 = vector.extract_strided_slice %21 {offsets = [1, 0], sizes = [1, 128], strides = [1, 1]} : vector<9x128xf32> to vector<1x128xf32>
    %31 = vector.shape_cast %30 : vector<1x128xf32> to vector<1x1x128xf32>
    %32 = vector.broadcast %31 : vector<1x1x128xf32> to vector<8x8x128xf32>
    %33 = arith.mulf %29, %32 : vector<8x8x128xf32>
    %34 = arith.addf %28, %33 : vector<8x8x128xf32>
    %c0_22 = arith.constant 0 : index
    %c1 = arith.constant 1 : index
    %c0_23 = arith.constant 0 : index
    %35 = vector.load %arg17[%c0_22, %c1, %c0_23] : memref<36x16x128xf32, #tpu.memory_space<vmem>>, vector<8x8x128xf32>
    %36 = vector.extract_strided_slice %21 {offsets = [2, 0], sizes = [1, 128], strides = [1, 1]} : vector<9x128xf32> to vector<1x128xf32>
    %37 = vector.shape_cast %36 : vector<1x128xf32> to vector<1x1x128xf32>
    %38 = vector.broadcast %37 : vector<1x1x128xf32> to vector<8x8x128xf32>
    %39 = arith.mulf %35, %38 : vector<8x8x128xf32>
    %40 = arith.addf %34, %39 : vector<8x8x128xf32>
    %c18 = arith.constant 18 : index
    %c0_24 = arith.constant 0 : index
    %c0_25 = arith.constant 0 : index
    %41 = vector.load %arg17[%c18, %c0_24, %c0_25] : memref<36x16x128xf32, #tpu.memory_space<vmem>>, vector<8x8x128xf32>
    %42 = vector.extract_strided_slice %21 {offsets = [3, 0], sizes = [1, 128], strides = [1, 1]} : vector<9x128xf32> to vector<1x128xf32>
    %43 = vector.shape_cast %42 : vector<1x128xf32> to vector<1x1x128xf32>
    %44 = vector.broadcast %43 : vector<1x1x128xf32> to vector<8x8x128xf32>
    %45 = arith.mulf %41, %44 : vector<8x8x128xf32>
    %46 = arith.addf %40, %45 : vector<8x8x128xf32>
    %c27 = arith.constant 27 : index
    %c0_26 = arith.constant 0 : index
    %c0_27 = arith.constant 0 : index
    %47 = vector.load %arg17[%c27, %c0_26, %c0_27] : memref<36x16x128xf32, #tpu.memory_space<vmem>>, vector<8x8x128xf32>
    %48 = vector.extract_strided_slice %21 {offsets = [4, 0], sizes = [1, 128], strides = [1, 1]} : vector<9x128xf32> to vector<1x128xf32>
    %49 = vector.shape_cast %48 : vector<1x128xf32> to vector<1x1x128xf32>
    %50 = vector.broadcast %49 : vector<1x1x128xf32> to vector<8x8x128xf32>
    %51 = arith.mulf %47, %50 : vector<8x8x128xf32>
    %52 = arith.addf %46, %51 : vector<8x8x128xf32>
    %c18_28 = arith.constant 18 : index
    %c1_29 = arith.constant 1 : index
    %c0_30 = arith.constant 0 : index
    %53 = vector.load %arg17[%c18_28, %c1_29, %c0_30] : memref<36x16x128xf32, #tpu.memory_space<vmem>>, vector<8x8x128xf32>
    %54 = vector.extract_strided_slice %21 {offsets = [5, 0], sizes = [1, 128], strides = [1, 1]} : vector<9x128xf32> to vector<1x128xf32>
    %55 = vector.shape_cast %54 : vector<1x128xf32> to vector<1x1x128xf32>
    %56 = vector.broadcast %55 : vector<1x1x128xf32> to vector<8x8x128xf32>
    %57 = arith.mulf %53, %56 : vector<8x8x128xf32>
    %58 = arith.addf %52, %57 : vector<8x8x128xf32>
    %c1_31 = arith.constant 1 : index
    %c0_32 = arith.constant 0 : index
    %c0_33 = arith.constant 0 : index
    %59 = vector.load %arg17[%c1_31, %c0_32, %c0_33] : memref<36x16x128xf32, #tpu.memory_space<vmem>>, vector<8x8x128xf32>
    %60 = vector.extract_strided_slice %21 {offsets = [6, 0], sizes = [1, 128], strides = [1, 1]} : vector<9x128xf32> to vector<1x128xf32>
    %61 = vector.shape_cast %60 : vector<1x128xf32> to vector<1x1x128xf32>
    %62 = vector.broadcast %61 : vector<1x1x128xf32> to vector<8x8x128xf32>
    %63 = arith.mulf %59, %62 : vector<8x8x128xf32>
    %64 = arith.addf %58, %63 : vector<8x8x128xf32>
    %c10 = arith.constant 10 : index
    %c0_34 = arith.constant 0 : index
    %c0_35 = arith.constant 0 : index
    %65 = vector.load %arg17[%c10, %c0_34, %c0_35] : memref<36x16x128xf32, #tpu.memory_space<vmem>>, vector<8x8x128xf32>
    %66 = vector.extract_strided_slice %21 {offsets = [7, 0], sizes = [1, 128], strides = [1, 1]} : vector<9x128xf32> to vector<1x128xf32>
    %67 = vector.shape_cast %66 : vector<1x128xf32> to vector<1x1x128xf32>
    %68 = vector.broadcast %67 : vector<1x1x128xf32> to vector<8x8x128xf32>
    %69 = arith.mulf %65, %68 : vector<8x8x128xf32>
    %70 = arith.addf %64, %69 : vector<8x8x128xf32>
    %c1_36 = arith.constant 1 : index
    %c1_37 = arith.constant 1 : index
    %c0_38 = arith.constant 0 : index
    %71 = vector.load %arg17[%c1_36, %c1_37, %c0_38] : memref<36x16x128xf32, #tpu.memory_space<vmem>>, vector<8x8x128xf32>
    %72 = vector.extract_strided_slice %21 {offsets = [8, 0], sizes = [1, 128], strides = [1, 1]} : vector<9x128xf32> to vector<1x128xf32>
    %73 = vector.shape_cast %72 : vector<1x128xf32> to vector<1x1x128xf32>
    %74 = vector.broadcast %73 : vector<1x1x128xf32> to vector<8x8x128xf32>
    %75 = arith.mulf %71, %74 : vector<8x8x128xf32>
    %76 = arith.addf %70, %75 : vector<8x8x128xf32>
    %c0_39 = arith.constant 0 : index
    %c0_40 = arith.constant 0 : index
    %77 = vector.load %arg7[%c0_39, %c0_40] : memref<1x128xf32, #tpu.memory_space<vmem>>, vector<1x128xf32>
    %78 = vector.shape_cast %77 : vector<1x128xf32> to vector<1x1x128xf32>
    %79 = vector.broadcast %78 : vector<1x1x128xf32> to vector<8x8x128xf32>
    %80 = arith.mulf %76, %79 : vector<8x8x128xf32>
    %c0_41 = arith.constant 0 : index
    %c0_42 = arith.constant 0 : index
    %81 = vector.load %arg8[%c0_41, %c0_42] : memref<1x128xf32, #tpu.memory_space<vmem>>, vector<1x128xf32>
    %82 = vector.shape_cast %81 : vector<1x128xf32> to vector<1x1x128xf32>
    %83 = vector.broadcast %82 : vector<1x1x128xf32> to vector<8x8x128xf32>
    %84 = arith.addf %80, %83 : vector<8x8x128xf32>
    %85 = arith.negf %84 : vector<8x8x128xf32>
    %86 = math.exp %85 : vector<8x8x128xf32>
    %cst_43 = arith.constant 1.000000e+00 : f32
    %87 = vector.broadcast %cst_43 : f32 to vector<8x8x128xf32>
    %88 = arith.addf %87, %86 : vector<8x8x128xf32>
    %89 = arith.divf %87, %88 : vector<8x8x128xf32>
    %90 = arith.mulf %84, %89 : vector<8x8x128xf32>
    %91 = vector.shape_cast %90 : vector<8x8x128xf32> to vector<64x128xf32>
    %cst_44 = arith.constant dense<0.000000e+00> : vector<128xf32>
    %92 = vector.multi_reduction <add>, %91, %cst_44 [0] : vector<64x128xf32> to vector<128xf32>
    %93 = vector.shape_cast %92 : vector<128xf32> to vector<1x128xf32>
    %cst_45 = arith.constant 6.400000e+01 : f32
    %94 = vector.broadcast %cst_45 : f32 to vector<1x128xf32>
    %95 = arith.divf %93, %94 : vector<1x128xf32>
    %c0_46 = arith.constant 0 : index
    %c0_47 = arith.constant 0 : index
    %96 = vector.load %arg9[%c0_46, %c0_47] : memref<128x128xf32, #tpu.memory_space<vmem>>, vector<128x128xf32>
    %cst_48 = arith.constant dense<0.000000e+00> : vector<1x128xf32>
    %97 = tpu.matmul %95, %96, %cst_48 {dimension_numbers = #tpu.dot_dimension_numbers<[1], [0], [0], [1], [0, 0, 1, 1], [], []>} : vector<1x128xf32>, vector<128x128xf32>, vector<1x128xf32> -> vector<1x128xf32>
    %c0_49 = arith.constant 0 : index
    %c0_50 = arith.constant 0 : index
    %98 = vector.load %arg10[%c0_49, %c0_50] : memref<1x128xf32, #tpu.memory_space<vmem>>, vector<1x128xf32>
    %99 = arith.addf %97, %98 : vector<1x128xf32>
    %100 = arith.negf %99 : vector<1x128xf32>
    %101 = math.exp %100 : vector<1x128xf32>
    %cst_51 = arith.constant 1.000000e+00 : f32
    %102 = vector.broadcast %cst_51 : f32 to vector<1x128xf32>
    %103 = arith.addf %102, %101 : vector<1x128xf32>
    %104 = arith.divf %102, %103 : vector<1x128xf32>
    %105 = arith.mulf %99, %104 : vector<1x128xf32>
    %c0_52 = arith.constant 0 : index
    %c0_53 = arith.constant 0 : index
    %106 = vector.load %arg11[%c0_52, %c0_53] : memref<128x128xf32, #tpu.memory_space<vmem>>, vector<128x128xf32>
    %cst_54 = arith.constant dense<0.000000e+00> : vector<1x128xf32>
    %107 = tpu.matmul %105, %106, %cst_54 {dimension_numbers = #tpu.dot_dimension_numbers<[1], [0], [0], [1], [0, 0, 1, 1], [], []>} : vector<1x128xf32>, vector<128x128xf32>, vector<1x128xf32> -> vector<1x128xf32>
    %c0_55 = arith.constant 0 : index
    %c0_56 = arith.constant 0 : index
    %108 = vector.load %arg12[%c0_55, %c0_56] : memref<1x128xf32, #tpu.memory_space<vmem>>, vector<1x128xf32>
    %109 = arith.addf %107, %108 : vector<1x128xf32>
    %110 = arith.negf %109 : vector<1x128xf32>
    %111 = math.exp %110 : vector<1x128xf32>
    %cst_57 = arith.constant 1.000000e+00 : f32
    %112 = vector.broadcast %cst_57 : f32 to vector<1x128xf32>
    %113 = arith.addf %112, %111 : vector<1x128xf32>
    %114 = arith.divf %112, %113 : vector<1x128xf32>
    %115 = vector.broadcast %114 : vector<1x128xf32> to vector<64x128xf32>
    %116 = arith.mulf %91, %115 : vector<64x128xf32>
    %117 = arith.truncf %116 : vector<64x128xf32> to vector<64x128xbf16>
    %c0_58 = arith.constant 0 : index
    %c0_59 = arith.constant 0 : index
    %118 = vector.load %arg13[%c0_58, %c0_59] : memref<128x128xbf16, #tpu.memory_space<vmem>>, vector<128x128xbf16>
    %cst_60 = arith.constant dense<0.000000e+00> : vector<64x128xf32>
    %119 = tpu.matmul %117, %118, %cst_60 {dimension_numbers = #tpu.dot_dimension_numbers<[1], [0], [0], [1], [0, 0, 1, 1], [], []>} : vector<64x128xbf16>, vector<128x128xbf16>, vector<64x128xf32> -> vector<64x128xf32>
    %c0_61 = arith.constant 0 : index
    %c0_62 = arith.constant 0 : index
    %120 = vector.load %arg14[%c0_61, %c0_62] : memref<1x128xf32, #tpu.memory_space<vmem>>, vector<1x128xf32>
    %121 = vector.broadcast %120 : vector<1x128xf32> to vector<64x128xf32>
    %122 = arith.mulf %119, %121 : vector<64x128xf32>
    %c0_63 = arith.constant 0 : index
    %c0_64 = arith.constant 0 : index
    %123 = vector.load %arg15[%c0_63, %c0_64] : memref<1x128xf32, #tpu.memory_space<vmem>>, vector<1x128xf32>
    %124 = vector.broadcast %123 : vector<1x128xf32> to vector<64x128xf32>
    %125 = arith.addf %122, %124 : vector<64x128xf32>
    %126 = arith.truncf %125 : vector<64x128xf32> to vector<64x128xbf16>
    %c0_65 = arith.constant 0 : index
    %c0_66 = arith.constant 0 : index
    %c0_67 = arith.constant 0 : index
    %127 = vector.load %arg16[%c0_65, %c0_66, %c0_67] : memref<1x64x128xbf16, #tpu.memory_space<vmem>>, vector<1x64x128xbf16>
    %128 = vector.shape_cast %127 : vector<1x64x128xbf16> to vector<64x128xbf16>
    %129 = vector.shape_cast %126 : vector<64x128xbf16> to vector<1x64x128xbf16>
    tpu.vector_store %arg16[%c0_65, %c0_66, %c0_67], %129 {strides = array<i32>} : memref<1x64x128xbf16, #tpu.memory_space<vmem>>, vector<1x64x128xbf16>,
    return
  }
  func.func @transform_0(%arg0: i32) -> (i32, i32, i32) {
    %c0_i32 = arith.constant 0 : i32
    %c0_i32_0 = arith.constant 0 : i32
    %c0_i32_1 = arith.constant 0 : i32
    return %arg0, %c0_i32, %c0_i32_0 : i32, i32, i32
  }
  func.func @transform_1(%arg0: i32) -> (i32, i32) {
    %c0_i32 = arith.constant 0 : i32
    %c0_i32_0 = arith.constant 0 : i32
    %c0_i32_1 = arith.constant 0 : i32
    return %c0_i32, %c0_i32_0 : i32, i32
  }
  func.func @transform_2(%arg0: i32) -> (i32, i32) {
    %c0_i32 = arith.constant 0 : i32
    %c0_i32_0 = arith.constant 0 : i32
    %c0_i32_1 = arith.constant 0 : i32
    return %c0_i32, %c0_i32_0 : i32, i32
  }
  func.func @transform_3(%arg0: i32) -> (i32, i32) {
    %c0_i32 = arith.constant 0 : i32
    %c0_i32_0 = arith.constant 0 : i32
    %c0_i32_1 = arith.constant 0 : i32
    return %c0_i32, %c0_i32_0 : i32, i32
  }
  func.func @transform_4(%arg0: i32) -> (i32, i32) {
    %c0_i32 = arith.constant 0 : i32
    %c0_i32_0 = arith.constant 0 : i32
    %c0_i32_1 = arith.constant 0 : i32
    return %c0_i32, %c0_i32_0 : i32, i32
  }
  func.func @transform_5(%arg0: i32) -> (i32, i32) {
    %c0_i32 = arith.constant 0 : i32
    %c0_i32_0 = arith.constant 0 : i32
    %c0_i32_1 = arith.constant 0 : i32
    return %c0_i32, %c0_i32_0 : i32, i32
  }
  func.func @transform_6(%arg0: i32) -> (i32, i32) {
    %c0_i32 = arith.constant 0 : i32
    %c0_i32_0 = arith.constant 0 : i32
    %c0_i32_1 = arith.constant 0 : i32
    return %c0_i32, %c0_i32_0 : i32, i32
  }
  func.func @transform_7(%arg0: i32) -> (i32, i32) {
    %c0_i32 = arith.constant 0 : i32
    %c0_i32_0 = arith.constant 0 : i32
    %c0_i32_1 = arith.constant 0 : i32
    return %c0_i32, %c0_i32_0 : i32, i32
  }
  func.func @transform_8(%arg0: i32) -> (i32, i32) {
    %c0_i32 = arith.constant 0 : i32
    %c0_i32_0 = arith.constant 0 : i32
    %c0_i32_1 = arith.constant 0 : i32
    return %c0_i32, %c0_i32_0 : i32, i32
  }
  func.func @transform_9(%arg0: i32) -> (i32, i32) {
    %c0_i32 = arith.constant 0 : i32
    %c0_i32_0 = arith.constant 0 : i32
    %c0_i32_1 = arith.constant 0 : i32
    return %c0_i32, %c0_i32_0 : i32, i32
  }
  func.func @transform_10(%arg0: i32) -> (i32, i32) {
    %c0_i32 = arith.constant 0 : i32
    %c0_i32_0 = arith.constant 0 : i32
    %c0_i32_1 = arith.constant 0 : i32
    return %c0_i32, %c0_i32_0 : i32, i32
  }
  func.func @transform_11(%arg0: i32) -> (i32, i32) {
    %c0_i32 = arith.constant 0 : i32
    %c0_i32_0 = arith.constant 0 : i32
    %c0_i32_1 = arith.constant 0 : i32
    return %c0_i32, %c0_i32_0 : i32, i32
  }
  func.func @transform_12(%arg0: i32) -> (i32, i32) {
    %c0_i32 = arith.constant 0 : i32
    %c0_i32_0 = arith.constant 0 : i32
    %c0_i32_1 = arith.constant 0 : i32
    return %c0_i32, %c0_i32_0 : i32, i32
  }
  func.func @transform_13(%arg0: i32) -> (i32, i32) {
    %c0_i32 = arith.constant 0 : i32
    %c0_i32_0 = arith.constant 0 : i32
    %c0_i32_1 = arith.constant 0 : i32
    return %c0_i32, %c0_i32_0 : i32, i32
  }
  func.func @transform_14(%arg0: i32) -> (i32, i32) {
    %c0_i32 = arith.constant 0 : i32
    %c0_i32_0 = arith.constant 0 : i32
    %c0_i32_1 = arith.constant 0 : i32
    return %c0_i32, %c0_i32_0 : i32, i32
  }
  func.func @transform_15(%arg0: i32) -> (i32, i32, i32) {
    %c0_i32 = arith.constant 0 : i32
    %c0_i32_0 = arith.constant 0 : i32
    %c0_i32_1 = arith.constant 0 : i32
    return %arg0, %c0_i32, %c0_i32_0 : i32, i32, i32
  }
}

module attributes {stable_mosaic.version = 11 : i64} {
  func.func @_head_gap_fc_kernel(%arg0: i32, %arg1: memref<1x64x128xbf16, #tpu.memory_space<vmem>>, %arg2: memref<128x128xbf16, #tpu.memory_space<vmem>>, %arg3: memref<1x128xf32, #tpu.memory_space<vmem>>, %arg4: memref<1x128xf32, #tpu.memory_space<vmem>>, %arg5: memref<128x128xf32, #tpu.memory_space<vmem>>, %arg6: memref<1x128xf32, #tpu.memory_space<vmem>>, %arg7: memref<8x128xf32, #tpu.memory_space<vmem>>, %arg8: memref<8x128xf32, #tpu.memory_space<vmem>>) attributes {dimension_semantics = [#tpu.dimension_semantics<arbitrary>], iteration_bounds = array<i64: 2>, scalar_prefetch = 0 : i64, scratch_operands = 1 : i64, tpu.core_type = #tpu.core_type<tc>, window_params = [{transform_indices = @transform_0, window_bounds = array<i64: 1, 64, 128>}, {pipeline_mode = #tpu.pipeline_mode<synchronous>, transform_indices = @transform_1, window_bounds = array<i64: 128, 128>}, {pipeline_mode = #tpu.pipeline_mode<synchronous>, transform_indices = @transform_2, window_bounds = array<i64: 1, 128>}, {pipeline_mode = #tpu.pipeline_mode<synchronous>, transform_indices = @transform_3, window_bounds = array<i64: 1, 128>}, {pipeline_mode = #tpu.pipeline_mode<synchronous>, transform_indices = @transform_4, window_bounds = array<i64: 128, 128>}, {pipeline_mode = #tpu.pipeline_mode<synchronous>, transform_indices = @transform_5, window_bounds = array<i64: 1, 128>}, {pipeline_mode = #tpu.pipeline_mode<synchronous>, transform_indices = @transform_6, window_bounds = array<i64: 8, 128>}]} {
    %c0_i32 = arith.constant 0 : i32
    %0 = arith.cmpi eq, %arg0, %c0_i32 : i32
    %1 = arith.extui %0 : i1 to i32
    %c0_i32_0 = arith.constant 0 : i32
    %2 = arith.cmpi ne, %1, %c0_i32_0 : i32
    scf.if %2 {
      %cst_17 = arith.constant 0.000000e+00 : f32
      %34 = vector.broadcast %cst_17 : f32 to vector<8x128xf32>
      %c0_18 = arith.constant 0 : index
      %c0_19 = arith.constant 0 : index
      %35 = vector.load %arg8[%c0_18, %c0_19] : memref<8x128xf32, #tpu.memory_space<vmem>>, vector<8x128xf32>
      tpu.vector_store %arg8[%c0_18, %c0_19], %34 {strides = array<i32>} : memref<8x128xf32, #tpu.memory_space<vmem>>, vector<8x128xf32>,
    } else {
    }
    %c0 = arith.constant 0 : index
    %c0_1 = arith.constant 0 : index
    %c0_2 = arith.constant 0 : index
    %3 = vector.load %arg1[%c0, %c0_1, %c0_2] : memref<1x64x128xbf16, #tpu.memory_space<vmem>>, vector<1x64x128xbf16>
    %4 = vector.shape_cast %3 : vector<1x64x128xbf16> to vector<64x128xbf16>
    %c0_3 = arith.constant 0 : index
    %c0_4 = arith.constant 0 : index
    %5 = vector.load %arg2[%c0_3, %c0_4] : memref<128x128xbf16, #tpu.memory_space<vmem>>, vector<128x128xbf16>
    %cst = arith.constant dense<0.000000e+00> : vector<64x128xf32>
    %6 = tpu.matmul %4, %5, %cst {dimension_numbers = #tpu.dot_dimension_numbers<[1], [0], [0], [1], [0, 0, 1, 1], [], []>} : vector<64x128xbf16>, vector<128x128xbf16>, vector<64x128xf32> -> vector<64x128xf32>
    %c0_5 = arith.constant 0 : index
    %c0_6 = arith.constant 0 : index
    %7 = vector.load %arg3[%c0_5, %c0_6] : memref<1x128xf32, #tpu.memory_space<vmem>>, vector<1x128xf32>
    %8 = vector.broadcast %7 : vector<1x128xf32> to vector<64x128xf32>
    %9 = arith.mulf %6, %8 : vector<64x128xf32>
    %c0_7 = arith.constant 0 : index
    %c0_8 = arith.constant 0 : index
    %10 = vector.load %arg4[%c0_7, %c0_8] : memref<1x128xf32, #tpu.memory_space<vmem>>, vector<1x128xf32>
    %11 = vector.broadcast %10 : vector<1x128xf32> to vector<64x128xf32>
    %12 = arith.addf %9, %11 : vector<64x128xf32>
    %13 = arith.negf %12 : vector<64x128xf32>
    %14 = math.exp %13 : vector<64x128xf32>
    %cst_9 = arith.constant 1.000000e+00 : f32
    %15 = vector.broadcast %cst_9 : f32 to vector<64x128xf32>
    %16 = arith.addf %15, %14 : vector<64x128xf32>
    %17 = arith.divf %15, %16 : vector<64x128xf32>
    %18 = arith.mulf %12, %17 : vector<64x128xf32>
    %cst_10 = arith.constant dense<0.000000e+00> : vector<128xf32>
    %19 = vector.multi_reduction <add>, %18, %cst_10 [0] : vector<64x128xf32> to vector<128xf32>
    %20 = vector.shape_cast %19 : vector<128xf32> to vector<1x128xf32>
    %cst_11 = arith.constant 6.400000e+01 : f32
    %21 = vector.broadcast %cst_11 : f32 to vector<1x128xf32>
    %22 = arith.divf %20, %21 : vector<1x128xf32>
    %23 = tpu.iota {dimensions = array<i32: 0>} : vector<8x128xi32>
    %24 = vector.broadcast %arg0 : i32 to vector<8x128xi32>
    %25 = arith.cmpi eq, %23, %24 : vector<8x128xi32>
    %c0_12 = arith.constant 0 : index
    %c0_13 = arith.constant 0 : index
    %26 = vector.load %arg8[%c0_12, %c0_13] : memref<8x128xf32, #tpu.memory_space<vmem>>, vector<8x128xf32>
    %27 = vector.shape_cast %22 : vector<1x128xf32> to vector<1x128xf32>
    %28 = vector.broadcast %27 : vector<1x128xf32> to vector<8x128xf32>
    %29 = arith.select %25, %28, %26 : vector<8x128xi1>, vector<8x128xf32>
    %c0_14 = arith.constant 0 : index
    %c0_15 = arith.constant 0 : index
    %30 = vector.load %arg8[%c0_14, %c0_15] : memref<8x128xf32, #tpu.memory_space<vmem>>, vector<8x128xf32>
    tpu.vector_store %arg8[%c0_14, %c0_15], %29 {strides = array<i32>} : memref<8x128xf32, #tpu.memory_space<vmem>>, vector<8x128xf32>,
    %c1_i32 = arith.constant 1 : i32
    %31 = arith.cmpi eq, %arg0, %c1_i32 : i32
    %32 = arith.extui %31 : i1 to i32
    %c0_i32_16 = arith.constant 0 : i32
    %33 = arith.cmpi ne, %32, %c0_i32_16 : i32
    scf.if %33 {
      %c0_17 = arith.constant 0 : index
      %c0_18 = arith.constant 0 : index
      %34 = vector.load %arg8[%c0_17, %c0_18] : memref<8x128xf32, #tpu.memory_space<vmem>>, vector<8x128xf32>
      %c0_19 = arith.constant 0 : index
      %c0_20 = arith.constant 0 : index
      %35 = vector.load %arg5[%c0_19, %c0_20] : memref<128x128xf32, #tpu.memory_space<vmem>>, vector<128x128xf32>
      %cst_21 = arith.constant dense<0.000000e+00> : vector<8x128xf32>
      %36 = tpu.matmul %34, %35, %cst_21 {dimension_numbers = #tpu.dot_dimension_numbers<[1], [0], [0], [1], [0, 0, 1, 1], [], []>} : vector<8x128xf32>, vector<128x128xf32>, vector<8x128xf32> -> vector<8x128xf32>
      %c0_22 = arith.constant 0 : index
      %c0_23 = arith.constant 0 : index
      %37 = vector.load %arg6[%c0_22, %c0_23] : memref<1x128xf32, #tpu.memory_space<vmem>>, vector<1x128xf32>
      %38 = vector.broadcast %37 : vector<1x128xf32> to vector<8x128xf32>
      %39 = arith.addf %36, %38 : vector<8x128xf32>
      %c0_24 = arith.constant 0 : index
      %c0_25 = arith.constant 0 : index
      %40 = vector.load %arg7[%c0_24, %c0_25] : memref<8x128xf32, #tpu.memory_space<vmem>>, vector<8x128xf32>
      tpu.vector_store %arg7[%c0_24, %c0_25], %39 {strides = array<i32>} : memref<8x128xf32, #tpu.memory_space<vmem>>, vector<8x128xf32>,
    } else {
    }
    return
  }
  func.func @transform_0(%arg0: i32) -> (i32, i32, i32) {
    %c0_i32 = arith.constant 0 : i32
    %c0_i32_0 = arith.constant 0 : i32
    %c0_i32_1 = arith.constant 0 : i32
    return %arg0, %c0_i32, %c0_i32_0 : i32, i32, i32
  }
  func.func @transform_1(%arg0: i32) -> (i32, i32) {
    %c0_i32 = arith.constant 0 : i32
    %c0_i32_0 = arith.constant 0 : i32
    %c0_i32_1 = arith.constant 0 : i32
    return %c0_i32, %c0_i32_0 : i32, i32
  }
  func.func @transform_2(%arg0: i32) -> (i32, i32) {
    %c0_i32 = arith.constant 0 : i32
    %c0_i32_0 = arith.constant 0 : i32
    %c0_i32_1 = arith.constant 0 : i32
    return %c0_i32, %c0_i32_0 : i32, i32
  }
  func.func @transform_3(%arg0: i32) -> (i32, i32) {
    %c0_i32 = arith.constant 0 : i32
    %c0_i32_0 = arith.constant 0 : i32
    %c0_i32_1 = arith.constant 0 : i32
    return %c0_i32, %c0_i32_0 : i32, i32
  }
  func.func @transform_4(%arg0: i32) -> (i32, i32) {
    %c0_i32 = arith.constant 0 : i32
    %c0_i32_0 = arith.constant 0 : i32
    %c0_i32_1 = arith.constant 0 : i32
    return %c0_i32, %c0_i32_0 : i32, i32
  }
  func.func @transform_5(%arg0: i32) -> (i32, i32) {
    %c0_i32 = arith.constant 0 : i32
    %c0_i32_0 = arith.constant 0 : i32
    %c0_i32_1 = arith.constant 0 : i32
    return %c0_i32, %c0_i32_0 : i32, i32
  }
  func.func @transform_6(%arg0: i32) -> (i32, i32) {
    %c0_i32 = arith.constant 0 : i32
    %c0_i32_0 = arith.constant 0 : i32
    %c0_i32_1 = arith.constant 0 : i32
    return %c0_i32, %c0_i32_0 : i32, i32
  }
}

</mosaic_0001>

<bundles_post_ra>
// kernel: effinet_forward.4
= control target key start
LH: loop header
LB: loop body
LE: loop exit
PB: predicated region body
PF: predicated region fallthrough
CT: control target
= control target key end

     0   :  { %s1881_s15 = smov 0   ;;  %s1883_s16 = smov 0   ;;  %s2873_s0 = inlined_call_operand.vmem [shape: bf16[512,32], index: 0, kind: input, shape index: {}]   ;;  %s2874_s1 = inlined_call_operand.vmem [shape: bf16[32,128], index: 1, kind: input, shape index: {}]   ;;  %s2875_s2 = inlined_call_operand.vmem [shape: f32[1,128], index: 2, kind: input, shape index: {}]   ;;  %s2876_s3 = inlined_call_operand.vmem [shape: f32[1,128], index: 3, kind: input, shape index: {}]   ;;  %s2877_s4 = inlined_call_operand.vmem [shape: bf16[512,128], index: 4, kind: output, shape index: {}]  }
   0x1   :  { %s1885_s17 = smov 0  }
   0x2 LB: > { %s26_s18 = sadd.s32 1, %s1850_s16  ;;  %p1430_p0 = scmp.ge.s32.totalorder %s1854_s17, 1  ;;  %s1854_s17 = sphi %s1885_s17, %s14_s17   ;;  %s1850_s16 = sphi %s1883_s16, %s2959_s16   ;;  %s1846_s15 = sphi %s1881_s15, %s2958_s15  }
   0x3   : > { %p28_p1 = scmp.ge.s32.totalorder %s26_s18, 2  ;;  %p202_p2 = scmp.lt.s32.totalorder %s1854_s17, 3 }
   0x5   : > { %s2961_s18 = smov (%p28_p1, %s26_s18), 0  ;;  %p203_p3 = pnand %p1430_p0, %p202_p2 }
   0x6   : > { %s1431_s21 = sshll.u32 (!%p203_p3), %s1846_s15, 5 }
   0x7   : > { %206 = sbr.rel (%p203_p3) target bundleno = 317 (0x13d), region = 36  ;;  %p242_p4 = scmp.lt.s32.totalorder (!%p203_p3), %s1431_s21, 63 }
   0xc   : > { %v1574_v0 = vld [vmem:[%s2874_s1 + $0x8] sm:$0xff]  ;;  %v1573_v1 = vld [vmem:[%s2874_s1] sm:$0xff]  ;;  %s2963_s21 = smov (!%p242_p4, %s1431_s21), 63  ;;  %vm395_vm0 = vcmask 261120  }
   0xd   : > { %450 = vmatpush.bf16.msra.mxu0 %v1574_v0  ;;  %1670 = vmatpush.bf16.msra.mxu1 %v1574_v0  ;;  %s1432_s24 = sshll.u32 %s2963_s21, 2  ;;  %v1950_v18 = vld [vmem:[%s2875_s2] ss:$0 sm:$0xff] }
   0xe   : > { %1671 = vmatpush.bf16.msra.mxu2 %v1574_v0  ;;  %1672 = vmatpush.bf16.msra.mxu3 %v1574_v0  ;;  %s1913_s27 = scalar_lea.vmem %s2873_s0, %s1432_s24  ;;  %v1955_v19 = vld [vmem:[%s2876_s3] ss:$0 sm:$0xff]  ;;  %s2176_s8 = scalar_lea.vmem %s2877_s4, %s1432_s24 }
   0xf   : > { %v1557_v2 = vld [vmem:[%s1913_s27] sm:$0xff]  ;;  %v1558_v6 = vld [vmem:[%s1913_s27 + $0x8] sm:$0xff]  ;;  %v1559_v10 = vld [vmem:[%s1913_s27 + $0x10] sm:$0xff] }
  0x10   : > { %v1561_v3 = vld [vmem:[%s1913_s27 + $0x20] sm:$0xff]  ;;  %v1562_v7 = vld [vmem:[%s1913_s27 + $0x28] sm:$0xff]  ;;  %v1563_v11 = vld [vmem:[%s1913_s27 + $0x30] sm:$0xff] }
  0x11   : > { %451 = vmatpush.bf16.msra.mxu0 %v1573_v1  ;;  %1673 = vmatpush.bf16.msra.mxu1 %v1573_v1  ;;  %v1565_v4 = vld [vmem:[%s1913_s27 + $0x40] sm:$0xff]  ;;  %v1566_v8 = vld [vmem:[%s1913_s27 + $0x48] sm:$0xff]  ;;  %v1567_v12 = vld [vmem:[%s1913_s27 + $0x50] sm:$0xff] }
  0x12   : > { %1674 = vmatpush.bf16.msra.mxu2 %v1573_v1  ;;  %1675 = vmatpush.bf16.msra.mxu3 %v1573_v1  ;;  %v1569_v5 = vld [vmem:[%s1913_s27 + $0x60] sm:$0xff]  ;;  %v1570_v9 = vld [vmem:[%s1913_s27 + $0x68] sm:$0xff]  ;;  %v1571_v13 = vld [vmem:[%s1913_s27 + $0x70] sm:$0xff] }
  0x13   : > { %v1560_v14 = vld [vmem:[%s1913_s27 + $0x18] sm:$0xff] }
  0x14   : > { %1507 = vmatmul.msk.bf16.vlgmr.msra.gmra.mxu0 %vm395_vm0, %v1557_v2  ;;  %1511 = vmatmul.msk.bf16.vlgmr.msra.gmra.mxu1 %vm395_vm0, %v1561_v3  ;;  %v1564_v15 = vld [vmem:[%s1913_s27 + $0x38] sm:$0xff] }
  0x15   : > { %1515 = vmatmul.msk.bf16.vlgmr.msra.gmra.mxu2 %vm395_vm0, %v1565_v4  ;;  %1519 = vmatmul.msk.bf16.vlgmr.msra.gmra.mxu3 %vm395_vm0, %v1569_v5  ;;  %v1568_v16 = vld [vmem:[%s1913_s27 + $0x58] sm:$0xff] }
  0x16   : > { %v1572_v17 = vld [vmem:[%s1913_s27 + $0x78] sm:$0xff] }
  0x24   : > { %1508 = vmatmul.msk.bf16.gmra.mxu0 %vm395_vm0, %v1558_v6  ;;  %1512 = vmatmul.msk.bf16.gmra.mxu1 %vm395_vm0, %v1562_v7 }
  0x25   : > { %1516 = vmatmul.msk.bf16.gmra.mxu2 %vm395_vm0, %v1566_v8  ;;  %1520 = vmatmul.msk.bf16.gmra.mxu3 %vm395_vm0, %v1570_v9 }
  0x34   : > { %1509 = vmatmul.msk.bf16.gmra.mxu0 %vm395_vm0, %v1559_v10  ;;  %1513 = vmatmul.msk.bf16.gmra.mxu1 %vm395_vm0, %v1563_v11 }
  0x35   : > { %1517 = vmatmul.msk.bf16.gmra.mxu2 %vm395_vm0, %v1567_v12  ;;  %1521 = vmatmul.msk.bf16.gmra.mxu3 %vm395_vm0, %v1571_v13 }
  0x44   : > { %1510 = vmatmul.msk.bf16.gmra.mxu0 %vm395_vm0, %v1560_v14  ;;  %1514 = vmatmul.msk.bf16.gmra.mxu1 %vm395_vm0, %v1564_v15 }
  0x45   : > { %1518 = vmatmul.msk.bf16.gmra.mxu2 %vm395_vm0, %v1568_v16  ;;  %1522 = vmatmul.msk.bf16.gmra.mxu3 %vm395_vm0, %v1572_v17 }
  0x91   : > { %v453_v20 = vpop.f32.mrf.mxu0  ;;  %v473_v21 = vpop.f32.mrf.mxu1 }
  0x92   : > { %v537_v22 = vmul.f32 %v1950_v18, %v453_v20  ;;  %v545_v23 = vmul.f32 %v1950_v18, %v473_v21 }
  0x94   : > { %v1960_v24 = vadd.f32 %v1955_v19, %v537_v22  ;;  %v1963_v25 = vadd.f32 %v1955_v19, %v545_v23 }
  0x96   : > { %v1523_v26 = vmul.f32 -1.442695, %v1960_v24  ;;  %v1531_v27 = vmul.f32 -1.442695, %v1963_v25 }
  0x98   : > { %1702 = vpow2.f32 %v1523_v26  ;;  %v493_v28 = vpop.f32.mrf.mxu2  ;;  %v513_v29 = vpop.f32.mrf.mxu3 }
  0x99   : > { %1704 = vpow2.f32 %v1531_v27  ;;  %v553_v30 = vmul.f32 %v1950_v18, %v493_v28  ;;  %v561_v31 = vmul.f32 %v1950_v18, %v513_v29  ;;  %v455_v32 = vpop.f32.mrf.mxu0  ;;  %v475_v33 = vpop.f32.mrf.mxu1 }
  0x9a   : > { %v538_v34 = vmul.f32 %v1950_v18, %v455_v32  ;;  %v546_v35 = vmul.f32 %v1950_v18, %v475_v33 }
  0x9b   : > { %v1972_v36 = vadd.f32 %v1955_v19, %v553_v30  ;;  %v1975_v37 = vadd.f32 %v1955_v19, %v561_v31 }
  0x9c   : > { %v1978_v38 = vadd.f32 %v1955_v19, %v538_v34  ;;  %v1981_v39 = vadd.f32 %v1955_v19, %v546_v35 }
  0x9d   : > { %v1539_v40 = vmul.f32 -1.442695, %v1972_v36  ;;  %v1547_v41 = vmul.f32 -1.442695, %v1975_v37 }
  0x9e   : > { %v1703_v42 = vpop.eup %1702  ;;  %v1524_v45 = vmul.f32 -1.442695, %v1978_v38  ;;  %v1532_v47 = vmul.f32 -1.442695, %v1981_v39 }
  0x9f   : > { %v1705_v43 = vpop.eup %1704  ;;  %v1985_v44 = vadd.f32 1.0, %v1703_v42  ;;  %1706 = vpow2.f32 %v1539_v40 }
  0xa0   : > { %v1988_v46 = vadd.f32 1.0, %v1705_v43  ;;  %1708 = vpow2.f32 %v1547_v41  ;;  %v495_v48 = vpop.f32.mrf.mxu2  ;;  %v515_v52 = vpop.f32.mrf.mxu3 }
  0xa1   : > { %1710 = vrcp.f32 %v1985_v44  ;;  %v554_v49 = vmul.f32 %v1950_v18, %v495_v48  ;;  %v744_v56 = vand.u32 2147483648, %v1985_v44  ;;  %v742_v60 = vand.u32 2147483647, %v1985_v44  ;;  %v458_v62 = vpop.f32.mrf.mxu0  ;;  %v478_v63 = vpop.f32.mrf.mxu1 }
  0xa2   : > { %1712 = vrcp.f32 %v1988_v46  ;;  %v562_v61 = vmul.f32 %v1950_v18, %v515_v52  ;;  %vm738_vm1 = vweird.f32 %v1985_v44  ;;  %v864_v2 = vand.u32 2147483648, %v1988_v46 }
  0xa3   : > { %1714 = vpow2.f32 %v1524_v45  ;;  %v1995_v51 = vadd.f32 %v1955_v19, %v554_v49  ;;  %vm858_vm2 = vweird.f32 %v1988_v46  ;;  %v862_v6 = vand.u32 2147483647, %v1988_v46 }
  0xa4   : > { %1716 = vpow2.f32 %v1532_v47  ;;  %v745_v7 = vor.u32 1.1754944e-38, %v744_v56  ;;  %v539_v9 = vmul.f32 %v1950_v18, %v458_v62  ;;  %v547_v10 = vmul.f32 %v1950_v18, %v478_v63 }
  0xa5   : > { %v1707_v50 = vpop.eup %1706  ;;  %v1540_v3 = vmul.f32 -1.442695, %v1995_v51  ;;  %vm2022_vm3 = vcmp.eq.f32.partialorder %v742_v60, 8.507059e+37  ;;  %v2031_v15 = vadd.f32 %v1955_v19, %v562_v61  ;;  %v865_v17 = vor.u32 1.1754944e-38, %v864_v2 }
  0xa6   : > { %v1709_v53 = vpop.eup %1708  ;;  %v1997_v54 = vadd.f32 1.0, %v1707_v50  ;;  %vm2038_vm5 = vcmp.eq.f32.partialorder %v862_v6, 8.507059e+37  ;;  %v2049_v29 = vadd.f32 %v1955_v19, %v539_v9  ;;  %v2052_v30 = vadd.f32 %v1955_v19, %v547_v10 }
  0xa7   : > { %v1999_v55 = vpop.eup %1710  ;;  %v2002_v57 = vadd.f32 1.0, %v1709_v53  ;;  %v1548_v33 = vmul.f32 -1.442695, %v2031_v15 }
  0xa8   : > { %v2004_v58 = vpop.eup %1712  ;;  %v734_v59 = vmul.f32 %v1999_v55, %v1985_v44  ;;  %1718 = vrcp.f32 %v1997_v54  ;;  %vm739_vm4 = vweird.f32 %v1999_v55  ;;  %v984_v23 = vand.u32 2147483648, %v1997_v54 }
  0xa9   : > { %v1715_v0 = vpop.eup %1714  ;;  %v854_v1 = vmul.f32 %v2004_v58, %v1988_v46  ;;  %1720 = vrcp.f32 %v2002_v57  ;;  %v1104_v26 = vand.u32 2147483648, %v2002_v57  ;;  %v982_v28 = vand.u32 2147483647, %v1997_v54  ;;  %vm2064_vm7 = vmor %vm738_vm1, %vm739_vm4  ;;  %v460_v34 = vpop.f32.mrf.mxu0 }
  0xaa   : > { %v1717_v4 = vpop.eup %1716  ;;  %v735_v5 = vsub.f32 1.0, %v734_v59  ;;  %v2026_v13 = vadd.f32 1.0, %v1715_v0  ;;  %1722 = vpow2.f32 %v1540_v3  ;;  %vm859_vm6 = vweird.f32 %v2004_v58 }
  0xab   : > { %v855_v8 = vsub.f32 1.0, %v854_v1  ;;  %v2028_v14 = vadd.f32 1.0, %v1717_v4  ;;  %vm978_vm8 = vweird.f32 %v1997_v54  ;;  %v985_v43 = vor.u32 1.1754944e-38, %v984_v23  ;;  %vm2080_vm9 = vmor %vm858_vm2, %vm859_vm6 }
  0xac   : > { %v736_v11 = vmul.f32 %v1999_v55, %v735_v5  ;;  %1724 = vrcp.f32 %v2026_v13  ;;  %v757_v41 = vand.u32 2147483647, %v2026_v13  ;;  %v1102_v45 = vand.u32 2147483647, %v2002_v57  ;;  %v498_v5 = vpop.f32.mrf.mxu2 }
  0xad   : > { %v856_v16 = vmul.f32 %v2004_v58, %v855_v8  ;;  %1726 = vrcp.f32 %v2028_v14  ;;  %v2076_v44 = vor.u32 1.1754944e-38, %v1104_v26  ;;  %vm2086_vm11 = vcmp.eq.f32.partialorder %v982_v28, 8.507059e+37  ;;  %v518_v26 = vpop.f32.mrf.mxu3 }
  0xae   : > { %v2035_v20 = vpop.eup %1718  ;;  %v737_v21 = vadd.f32 %v1999_v55, %v736_v11  ;;  %vm753_vm12 = vweird.f32 %v2026_v13  ;;  %v759_v52 = vand.u32 2147483648, %v2026_v13  ;;  %1728 = vpow2.f32 %v1548_v33 }
  0xaf   : > { %v974_v27 = vmul.f32 %v2035_v20, %v1997_v54  ;;  %v2054_v31 = vpop.eup %1720  ;;  %v857_v32 = vadd.f32 %v2004_v58, %v856_v16  ;;  %vm979_vm10 = vweird.f32 %v2035_v20  ;;  %vm2101_vm13 = vcmp.eq.f32.partialorder %v757_v41, 8.507059e+37 }
  0xb0   : > { %v1094_v40 = vmul.f32 %v2054_v31, %v2002_v57  ;;  %v741_v42 = vsel %vm2064_vm7, %v1999_v55, %v737_v21  ;;  %v1723_v47 = vpop.eup %1722  ;;  %vm1098_vm14 = vweird.f32 %v2002_v57  ;;  %v879_v0 = vand.u32 2147483648, %v2028_v14  ;;  %vm2119_vm0 = vmor %vm978_vm8, %vm979_vm10 }
  0xb1   : > { %v975_v35 = vsub.f32 1.0, %v974_v27  ;;  %v861_v46 = vsel %vm2080_vm9, %v2004_v58, %v857_v32  ;;  %v2095_v56 = vadd.f32 1.0, %v1723_v47  ;;  %v746_v59 = vsel %vm2022_vm3, %v745_v7, %v741_v42 }
  0xb2   : > { %v1725_v53 = vpop.eup %1724  ;;  %v1095_v55 = vsub.f32 1.0, %v1094_v40  ;;  %v877_v58 = vand.u32 2147483647, %v2028_v14  ;;  %v1525_v1 = vmul.f32 -1.442695, %v2049_v29  ;;  %v866_v2 = vsel %vm2038_vm5, %v865_v17, %v861_v46 }
  0xb3   : > { %v976_v49 = vmul.f32 %v2035_v20, %v975_v35  ;;  %v749_v61 = vmul.f32 %v1725_v53, %v2026_v13  ;;  %v1727_v63 = vpop.eup %1726  ;;  %1730 = vrcp.f32 %v2095_v56  ;;  %vm873_vm15 = vweird.f32 %v2028_v14 }
  0xb4   : > { %v869_v4 = vmul.f32 %v1727_v63, %v2028_v14  ;;  %v1213_v6 = vmul.f32 %v746_v59, %v1960_v24  ;;  %v1096_v8 = vmul.f32 %v2054_v31, %v1095_v55  ;;  %vm1099_vm1 = vweird.f32 %v2054_v31  ;;  %v1729_v12 = vpop.eup %1728 }
  0xb5   : > { %v977_v60 = vadd.f32 %v2035_v20, %v976_v49  ;;  %v750_v3 = vsub.f32 1.0, %v749_v61  ;;  %v760_v9 = vor.u32 1.1754944e-38, %v759_v52  ;;  %vm754_vm2 = vweird.f32 %v1725_v53  ;;  %vm2162_vm9 = vmor %vm1098_vm14, %vm1099_vm1 }
  0xb6   : > { %v870_v24 = vsub.f32 1.0, %v869_v4  ;;  %v1221_v16 = vmul.f32 %v866_v2, %v1963_v25  ;;  %vm2129_vm3 = vcmp.eq.f32.partialorder %v1102_v45, 8.507059e+37  ;;  %vm2133_vm4 = vcmp.eq.f32.partialorder %v877_v58, 8.507059e+37  ;;  %vm755_vm7 = vmor %vm753_vm12, %vm754_vm2 }
  0xb7   : > { %v981_v10 = vsel %vm2119_vm0, %v2035_v20, %v977_v60  ;;  %v751_v11 = vmul.f32 %v1725_v53, %v750_v3  ;;  %v880_v21 = vor.u32 1.1754944e-38, %v879_v0  ;;  %1732 = vpow2.f32 %v1525_v1  ;;  %v500_v60 = vpop.f32.mrf.mxu2 }
  0xb8   : > { %v871_v23 = vmul.f32 %v1727_v63, %v870_v24  ;;  %vm874_vm5 = vweird.f32 %v1727_v63  ;;  %vm993_vm6 = vweird.f32 %v2095_v56  ;;  %v2138_v20 = vadd.f32 1.0, %v1729_v12 }
  0xb9   : > { %v752_v22 = vadd.f32 %v1725_v53, %v751_v11  ;;  %v1731_v27 = vpop.eup %1730  ;;  %v986_v25 = vsel %vm2086_vm11, %v985_v43, %v981_v10  ;;  %v1097_v28 = vadd.f32 %v2054_v31, %v1096_v8  ;;  %v1533_v32 = vmul.f32 -1.442695, %v2052_v30  ;;  %vm875_vm8 = vmor %vm873_vm15, %vm874_vm5  ;;  %v520_v11 = vpop.f32.mrf.mxu3 }
  0xba   : > { %v555_v33 = vmul.f32 %v1950_v18, %v498_v5  ;;  %v872_v40 = vadd.f32 %v1727_v63, %v871_v23  ;;  %v989_v41 = vmul.f32 %v1731_v27, %v2095_v56  ;;  %v997_v42 = vand.u32 2147483647, %v2095_v56 }
  0xbb   : > { %v756_v35 = vsel %vm755_vm7, %v1725_v53, %v752_v22  ;;  %v999_v13 = vand.u32 2147483648, %v2095_v56  ;;  %1734 = vrcp.f32 %v2138_v20  ;;  %v563_v45 = vmul.f32 %v1950_v18, %v518_v26 }
  0xbc   : > { %v761_v43 = vsel %vm2101_vm13, %v760_v9, %v756_v35  ;;  %v876_v49 = vsel %vm875_vm8, %v1727_v63, %v872_v40  ;;  %v990_v50 = vsub.f32 1.0, %v989_v41  ;;  %v540_v14 = vmul.f32 %v1950_v18, %v460_v34 }
  0xbd   : > { %v1214_v48 = vmul.f32 %v761_v43, %v1978_v38  ;;  %v1733_v52 = vpop.eup %1732  ;;  %v1101_v53 = vsel %vm2162_vm9, %v2054_v31, %v1097_v28  ;;  %v881_v57 = vsel %vm2133_vm4, %v880_v21, %v876_v49  ;;  %1736 = vpow2.f32 %v1533_v32  ;;  %v480_v31 = vpop.f32.mrf.mxu1 }
  0xbe   : > { %v2181_v38 = vadd.f32 %v1955_v19, %v555_v33  ;;  %v1222_v55 = vmul.f32 %v881_v57, %v1981_v39  ;;  %v991_v59 = vmul.f32 %v1731_v27, %v990_v50  ;;  %vm994_vm10 = vweird.f32 %v1731_v27 }
  0xbf   : > { %v1578_v46 = vpack.c.bf16 %v1214_v48, %v1213_v6  ;;  %v1229_v61 = vmul.f32 %v986_v25, %v1972_v36  ;;  %v2185_v62 = vadd.f32 1.0, %v1733_v52  ;;  %v2189_v58 = vadd.f32 %v1955_v19, %v563_v45  ;;  %vm995_vm11 = vmor %vm993_vm6, %vm994_vm10 }
  0xc0   : > { %v1541_v63 = vmul.f32 -1.442695, %v2181_v38  ;;  %v1106_v0 = vsel %vm2129_vm3, %v2076_v44, %v1101_v53  ;;  %v1598_v39 = vpack.c.bf16 %v1222_v55, %v1221_v16  ;;  %v992_v1 = vadd.f32 %v1731_v27, %v991_v59 }
  0xc1   : > { %1579 = vst [vmem:[%s2176_s8] sm:$0xff] %v1578_v46   ;;  %v2196_v2 = vadd.f32 %v1955_v19, %v540_v14  ;;  %v1735_v3 = vpop.eup %1734  ;;  %v1000_v36 = vor.u32 1.1754944e-38, %v999_v13  ;;  %1738 = vrcp.f32 %v2185_v62  ;;  %v548_v4 = vmul.f32 %v1950_v18, %v480_v31 }
  0xc2   : > { %v556_v5 = vmul.f32 %v1950_v18, %v500_v60  ;;  %1658 = vst [vmem:[%s2176_s8 + $0x20] sm:$0xff] %v1598_v39   ;;  %v996_v6 = vsel %vm995_vm11, %v1731_v27, %v992_v1  ;;  %vm998_vm12 = vcmp.eq.f32.partialorder %v997_v42, 8.507059e+37  ;;  %v1109_v44 = vmul.f32 %v1735_v3, %v2138_v20 }
  0xc3   : > { %1740 = vpow2.f32 %v1541_v63  ;;  %v1737_v7 = vpop.eup %1736  ;;  %v1001_v8 = vsel %vm998_vm12, %v1000_v36, %v996_v6  ;;  %v1117_v9 = vand.u32 2147483647, %v2138_v20  ;;  %v1119_v56 = vand.u32 2147483648, %v2138_v20 }
  0xc4   : > { %v1549_v10 = vmul.f32 -1.442695, %v2189_v58  ;;  %v1230_v24 = vmul.f32 %v1001_v8, %v1995_v51  ;;  %v1110_v12 = vsub.f32 1.0, %v1109_v44  ;;  %v2209_v16 = vadd.f32 1.0, %v1737_v7 }
  0xc5   : > { %v1526_v54 = vmul.f32 -1.442695, %v2196_v2  ;;  %vm1114_vm13 = vweird.f32 %v1735_v3  ;;  %v2213_v17 = vadd.f32 %v1955_v19, %v548_v4  ;;  %v2216_v21 = vadd.f32 %v1955_v19, %v556_v5 }
  0xc6   : > { %1742 = vpow2.f32 %v1549_v10  ;;  %v1618_v22 = vpack.c.bf16 %v1230_v24, %v1229_v61  ;;  %v1111_v23 = vmul.f32 %v1735_v3, %v1110_v12  ;;  %v564_v51 = vmul.f32 %v1950_v18, %v520_v11 }
  0xc7   : > { %1744 = vrcp.f32 %v2209_v16  ;;  %v2220_v26 = vpop.eup %1738  ;;  %v1534_v27 = vmul.f32 -1.442695, %v2213_v17  ;;  %v1237_v28 = vmul.f32 %v1106_v0, %v1975_v37  ;;  %vm1113_vm14 = vweird.f32 %v2138_v20 }
  0xc8   : > { %1746 = vpow2.f32 %v1526_v54  ;;  %1662 = vst [vmem:[%s2176_s8 + $0x40] sm:$0xff] %v1618_v22   ;;  %v1112_v32 = vadd.f32 %v1735_v3, %v1111_v23  ;;  %v764_v33 = vmul.f32 %v2220_v26, %v2185_v62  ;;  %vm1115_vm15 = vmor %vm1113_vm14, %vm1114_vm13  ;;  %v1120_v34 = vor.u32 1.1754944e-38, %v1119_v56 }
  0xc9   : > { %v1741_v25 = vpop.eup %1740  ;;  %1748 = vpow2.f32 %v1534_v27  ;;  %v1542_v40 = vmul.f32 -1.442695, %v2216_v21  ;;  %vm1118_vm0 = vcmp.eq.f32.partialorder %v1117_v9, 8.507059e+37  ;;  %v2233_v37 = vadd.f32 %v1955_v19, %v564_v51 }
  0xca   : > { %v2229_v35 = vadd.f32 1.0, %v1741_v25  ;;  %v1116_v41 = vsel %vm1115_vm15, %v1735_v3, %v1112_v32  ;;  %v765_v42 = vsub.f32 1.0, %v764_v33  ;;  %vm768_vm1 = vweird.f32 %v2185_v62 }
  0xcb   : > { %v1121_v13 = vsel %vm1118_vm0, %v1120_v34, %v1116_v41  ;;  %v772_v20 = vand.u32 2147483647, %v2185_v62  ;;  %v774_v49 = vand.u32 2147483648, %v2185_v62  ;;  %v892_v53 = vand.u32 2147483647, %v2209_v16 }
  0xcc   : > { %v1743_v43 = vpop.eup %1742  ;;  %1750 = vrcp.f32 %v2229_v35  ;;  %v1238_v47 = vmul.f32 %v1121_v13, %v2031_v15  ;;  %v766_v48 = vmul.f32 %v2220_v26, %v765_v42  ;;  %v1550_v57 = vmul.f32 -1.442695, %v2233_v37 }
  0xcd   : > { %v2238_v45 = vpop.eup %1744  ;;  %v2243_v50 = vadd.f32 1.0, %v1743_v43  ;;  %1752 = vpow2.f32 %v1542_v40  ;;  %vm769_vm2 = vweird.f32 %v2220_v26  ;;  %vm2252_vm3 = vcmp.eq.f32.partialorder %v772_v20, 8.507059e+37 }
  0xce   : > { %v1747_v14 = vpop.eup %1746  ;;  %v884_v52 = vmul.f32 %v2238_v45, %v2209_v16  ;;  %v1638_v46 = vpack.c.bf16 %v1238_v47, %v1237_v28  ;;  %v767_v55 = vadd.f32 %v2220_v26, %v766_v48  ;;  %v894_v60 = vand.u32 2147483648, %v2209_v16  ;;  %vm2266_vm4 = vmor %vm768_vm1, %vm769_vm2  ;;  %v463_v47 = vpop.f32.mrf.mxu0 }
  0xcf   : > { %1754 = vrcp.f32 %v2243_v50  ;;  %v1749_v15 = vpop.eup %1748  ;;  %v1012_v61 = vand.u32 2147483647, %v2229_v35  ;;  %v1014_v63 = vand.u32 2147483648, %v2229_v35  ;;  %v2260_v0 = vadd.f32 1.0, %v1747_v14  ;;  %v483_v48 = vpop.f32.mrf.mxu1 }
  0xd0   : > { %v885_v31 = vsub.f32 1.0, %v884_v52  ;;  %1666 = vst [vmem:[%s2176_s8 + $0x60] sm:$0xff] %v1638_v46   ;;  %v2262_v39 = vadd.f32 1.0, %v1749_v15  ;;  %1756 = vpow2.f32 %v1550_v57  ;;  %v775_v36 = vor.u32 1.1754944e-38, %v774_v49 }
  0xd1   : > { %vm888_vm5 = vweird.f32 %v2209_v16  ;;  %vm2272_vm6 = vcmp.eq.f32.partialorder %v892_v53, 8.507059e+37  ;;  %v771_v6 = vsel %vm2266_vm4, %v2220_v26, %v767_v55  ;;  %vm889_vm7 = vweird.f32 %v2238_v45  ;;  %v503_v53 = vpop.f32.mrf.mxu2 }
  0xd2   : > { %v1751_v1 = vpop.eup %1750  ;;  %v886_v4 = vmul.f32 %v2238_v45, %v885_v31  ;;  %1758 = vrcp.f32 %v2260_v0  ;;  %v895_v8 = vor.u32 1.1754944e-38, %v894_v60  ;;  %vm1008_vm8 = vweird.f32 %v2229_v35  ;;  %vm2296_vm10 = vmor %vm888_vm5, %vm889_vm7 }
  0xd3   : > { %v1004_v62 = vmul.f32 %v1751_v1, %v2229_v35  ;;  %v1753_v44 = vpop.eup %1752  ;;  %v1134_v9 = vand.u32 2147483648, %v2243_v50  ;;  %vm2287_vm9 = vcmp.eq.f32.partialorder %v1012_v61, 8.507059e+37  ;;  %v1015_v24 = vor.u32 1.1754944e-38, %v1014_v63 }
  0xd4   : > { %v887_v7 = vadd.f32 %v2238_v45, %v886_v4  ;;  %1760 = vrcp.f32 %v2262_v39  ;;  %v776_v12 = vsel %vm2252_vm3, %v775_v36, %v771_v6  ;;  %vm1128_vm11 = vweird.f32 %v2243_v50 }
  0xd5   : > { %v2285_v56 = vpop.eup %1754  ;;  %v1005_v10 = vsub.f32 1.0, %v1004_v62  ;;  %v1132_v23 = vand.u32 2147483647, %v2243_v50  ;;  %v787_v51 = vand.u32 2147483647, %v2260_v0  ;;  %vm1009_vm12 = vweird.f32 %v1751_v1 }
  0xd6   : > { %v1124_v22 = vmul.f32 %v2285_v56, %v2243_v50  ;;  %v1757_v26 = vpop.eup %1756  ;;  %v891_v27 = vsel %vm2296_vm10, %v2238_v45, %v887_v7  ;;  %v789_v16 = vand.u32 2147483648, %v2260_v0  ;;  %v2309_v32 = vor.u32 1.1754944e-38, %v1134_v9  ;;  %vm1010_vm15 = vmor %vm1008_vm8, %vm1009_vm12 }
  0xd7   : > { %v1006_v25 = vmul.f32 %v1751_v1, %v1005_v10  ;;  %v907_v33 = vand.u32 2147483647, %v2262_v39  ;;  %v2312_v34 = vadd.f32 1.0, %v1753_v44  ;;  %v2315_v41 = vmul.f32 %v776_v12, %v2049_v29 }
  0xd8   : > { %v1125_v28 = vsub.f32 1.0, %v1124_v22  ;;  %v1759_v40 = vpop.eup %1758  ;;  %vm1129_vm13 = vweird.f32 %v2285_v56  ;;  %vm783_vm14 = vweird.f32 %v2260_v0  ;;  %v896_v43 = vsel %vm2272_vm6, %v895_v8, %v891_v27  ;;  %v523_v22 = vpop.f32.mrf.mxu3 }
  0xd9   : > { %v1007_v42 = vadd.f32 %v1751_v1, %v1006_v25  ;;  %v779_v20 = vmul.f32 %v1759_v40, %v2260_v0  ;;  %vm2325_vm0 = vcmp.eq.f32.partialorder %v787_v51, 8.507059e+37  ;;  %vm903_vm1 = vweird.f32 %v2262_v39  ;;  %vm2357_vm4 = vmor %vm1128_vm11, %vm1129_vm13 }
  0xda   : > { %v1126_v13 = vmul.f32 %v2285_v56, %v1125_v28  ;;  %v2330_v29 = vadd.f32 1.0, %v1757_v26  ;;  %v1761_v49 = vpop.eup %1760  ;;  %v790_v52 = vor.u32 1.1754944e-38, %v789_v16  ;;  %v909_v35 = vand.u32 2147483648, %v2262_v39 }
  0xdb   : > { %v1011_v14 = vsel %vm1010_vm15, %v1751_v1, %v1007_v42  ;;  %1762 = vrcp.f32 %v2312_v34  ;;  %v780_v55 = vsub.f32 1.0, %v779_v20  ;;  %v899_v15 = vmul.f32 %v1761_v49, %v2262_v39 }
  0xdc   : > { %v1016_v57 = vsel %vm2287_vm9, %v1015_v24, %v1011_v14  ;;  %v2337_v46 = vadd.f32 %v2285_v56, %v1126_v13  ;;  %vm2340_vm2 = vcmp.eq.f32.partialorder %v907_v33, 8.507059e+37  ;;  %vm784_vm3 = vweird.f32 %v1759_v40  ;;  %v505_v13 = vpop.f32.mrf.mxu2 }
  0xdd   : > { %v1029_v31 = vand.u32 2147483648, %v2312_v34  ;;  %v541_v60 = vmul.f32 %v1950_v18, %v463_v47  ;;  %v549_v61 = vmul.f32 %v1950_v18, %v483_v48  ;;  %v781_v63 = vmul.f32 %v1759_v40, %v780_v55  ;;  %vm785_vm8 = vmor %vm783_vm14, %vm784_vm3 }
  0xde   : > { %v900_v1 = vsub.f32 1.0, %v899_v15  ;;  %v1027_v3 = vand.u32 2147483647, %v2312_v34  ;;  %1764 = vrcp.f32 %v2330_v29  ;;  %v1223_v36 = vmul.f32 %v896_v43, %v2052_v30  ;;  %v485_v43 = vpop.f32.mrf.mxu1 }
  0xdf   : > { %v2351_v4 = vmul.f32 %v1016_v57, %v2181_v38  ;;  %vm904_vm5 = vweird.f32 %v1761_v49  ;;  %v910_v6 = vor.u32 1.1754944e-38, %v909_v35  ;;  %v1131_v62 = vsel %vm2357_vm4, %v2285_v56, %v2337_v46 }
  0xe0   : > { %v782_v44 = vadd.f32 %v1759_v40, %v781_v63  ;;  %v901_v30 = vmul.f32 %v1761_v49, %v900_v1  ;;  %vm1023_vm6 = vweird.f32 %v2312_v34  ;;  %v1030_v38 = vor.u32 1.1754944e-38, %v1029_v31  ;;  %vm905_vm10 = vmor %vm903_vm1, %vm904_vm5  ;;  %v525_v5 = vpop.f32.mrf.mxu3 }
  0xe1   : > { %v1763_v7 = vpop.eup %1762  ;;  %vm2366_vm7 = vcmp.eq.f32.partialorder %v1132_v23, 8.507059e+37  ;;  %v1147_v50 = vand.u32 2147483647, %v2330_v29  ;;  %v2375_v9 = vadd.f32 %v1955_v19, %v541_v60  ;;  %v2378_v56 = vadd.f32 %v1955_v19, %v549_v61 }
  0xe2   : > { %v557_v10 = vmul.f32 %v1950_v18, %v503_v53  ;;  %v786_v11 = vsel %vm785_vm8, %v1759_v40, %v782_v44  ;;  %v902_v24 = vadd.f32 %v1761_v49, %v901_v30  ;;  %v1019_v12 = vmul.f32 %v1763_v7, %v2312_v34  ;;  %v465_v40 = vpop.f32.mrf.mxu0 }
  0xe3   : > { %vm2382_vm9 = vcmp.eq.f32.partialorder %v1027_v3, 8.507059e+37  ;;  %v1149_v0 = vand.u32 2147483648, %v2330_v29  ;;  %v791_v23 = vsel %vm2325_vm0, %v790_v52, %v786_v11  ;;  %vm1024_vm11 = vweird.f32 %v1763_v7 }
  0xe4   : > { %v1527_v51 = vmul.f32 -1.442695, %v2375_v9  ;;  %v1535_v26 = vmul.f32 -1.442695, %v2378_v56  ;;  %v1765_v27 = vpop.eup %1764  ;;  %v1216_v25 = vmul.f32 %v791_v23, %v2196_v2  ;;  %v906_v16 = vsel %vm905_vm10, %v1761_v49, %v902_v24  ;;  %vm1025_vm13 = vmor %vm1023_vm6, %vm1024_vm11 }
  0xe5   : > { %v1020_v28 = vsub.f32 1.0, %v1019_v12  ;;  %v2396_v33 = vadd.f32 %v1955_v19, %v557_v10  ;;  %v911_v42 = vsel %vm2340_vm2, %v910_v6, %v906_v16  ;;  %v1139_v39 = vmul.f32 %v1765_v27, %v2330_v29 }
  0xe6   : > { %vm1144_vm12 = vweird.f32 %v1765_v27  ;;  %1766 = vpow2.f32 %v1527_v51  ;;  %v1583_v20 = vpack.c.bf16 %v1216_v25, %v2315_v41  ;;  %v1224_v2 = vmul.f32 %v911_v42, %v2213_v17 }
  0xe7   : > { %v1021_v45 = vmul.f32 %v1763_v7, %v1020_v28  ;;  %1768 = vpow2.f32 %v1535_v26  ;;  %v1140_v47 = vsub.f32 1.0, %v1139_v39  ;;  %v1543_v48 = vmul.f32 -1.442695, %v2396_v33 }
  0xe8   : > { %v565_v49 = vmul.f32 %v1950_v18, %v523_v22  ;;  %v542_v14 = vmul.f32 %v1950_v18, %v465_v40  ;;  %1655 = vst [vmem:[%s2176_s8 + $0x8] sm:$0xff] %v1583_v20   ;;  %v1603_v52 = vpack.c.bf16 %v1224_v2, %v1223_v36  ;;  %v550_v53 = vmul.f32 %v1950_v18, %v485_v43 }
  0xe9   : > { %v1022_v35 = vadd.f32 %v1763_v7, %v1021_v45  ;;  %v558_v57 = vmul.f32 %v1950_v18, %v505_v13  ;;  %v1141_v17 = vmul.f32 %v1765_v27, %v1140_v47  ;;  %1770 = vpow2.f32 %v1543_v48  ;;  %v488_v13 = vpop.f32.mrf.mxu1 }
  0xea   : > { %v2413_v41 = vadd.f32 %v1955_v19, %v565_v49  ;;  %v2416_v46 = vadd.f32 %v1955_v19, %v542_v14  ;;  %v1136_v55 = vsel %vm2366_vm7, %v2309_v32, %v1131_v62  ;;  %1659 = vst [vmem:[%s2176_s8 + $0x28] sm:$0xff] %v1603_v52   ;;  %vm1143_vm14 = vweird.f32 %v2330_v29  ;;  %v468_v16 = vpop.f32.mrf.mxu0 }
  0xeb   : > { %v1026_v15 = vsel %vm1025_vm13, %v1763_v7, %v1022_v35  ;;  %vm2423_vm15 = vcmp.eq.f32.partialorder %v1147_v50, 8.507059e+37  ;;  %v1142_v60 = vadd.f32 %v1765_v27, %v1141_v17  ;;  %v2431_v63 = vadd.f32 %v1955_v19, %v550_v53  ;;  %vm1145_vm0 = vmor %vm1143_vm14, %vm1144_vm12 }
  0xec   : > { %v1767_v34 = vpop.eup %1766  ;;  %v1031_v31 = vsel %vm2382_vm9, %v1030_v38, %v1026_v15  ;;  %v1551_v61 = vmul.f32 -1.442695, %v2413_v41  ;;  %v1150_v29 = vor.u32 1.1754944e-38, %v1149_v0  ;;  %v2438_v36 = vadd.f32 %v1955_v19, %v558_v57 }
  0xed   : > { %v1769_v1 = vpop.eup %1768  ;;  %v1232_v32 = vmul.f32 %v1031_v31, %v2216_v21  ;;  %v2435_v3 = vadd.f32 1.0, %v1767_v34  ;;  %v1146_v6 = vsel %vm1145_vm0, %v1765_v27, %v1142_v60  ;;  %v1528_v44 = vmul.f32 -1.442695, %v2416_v46  ;;  %v2623_v31 = vld [vmem:[%s2875_s2] ss:$0 sm:$0xff] }
  0xee   : > { %v2440_v62 = vadd.f32 1.0, %v1769_v1  ;;  %1772 = vpow2.f32 %v1551_v61  ;;  %v1239_v30 = vmul.f32 %v1136_v55, %v2189_v58  ;;  %v1151_v38 = vsel %vm2423_vm15, %v1150_v29, %v1146_v6 }
  0xef   : > { %v1623_v21 = vpack.c.bf16 %v1232_v32, %v2351_v4  ;;  %1774 = vrcp.f32 %v2435_v3  ;;  %v1771_v7 = vpop.eup %1770  ;;  %v1240_v8 = vmul.f32 %v1151_v38, %v2233_v37  ;;  %v1536_v50 = vmul.f32 -1.442695, %v2431_v63 }
  0xf0   : > { %1776 = vrcp.f32 %v2440_v62  ;;  %v566_v10 = vmul.f32 %v1950_v18, %v525_v5  ;;  %v2453_v11 = vadd.f32 1.0, %v1771_v7  ;;  %v1544_v4 = vmul.f32 -1.442695, %v2438_v36 }
  0xf1   : > { %1663 = vst [vmem:[%s2176_s8 + $0x48] sm:$0xff] %v1623_v21   ;;  %v1643_v58 = vpack.c.bf16 %v1240_v8, %v1239_v30  ;;  %1778 = vpow2.f32 %v1528_v44  ;;  %v804_v12 = vand.u32 2147483648, %v2435_v3  ;;  %v924_v0 = vand.u32 2147483648, %v2440_v62 }
  0xf2   : > { %1780 = vrcp.f32 %v2453_v11  ;;  %v2460_v37 = vadd.f32 %v1955_v19, %v566_v10  ;;  %vm798_vm1 = vweird.f32 %v2435_v3  ;;  %v802_v26 = vand.u32 2147483647, %v2435_v3 }
  0xf3   : > { %1667 = vst [vmem:[%s2176_s8 + $0x68] sm:$0xff] %v1643_v58   ;;  %1782 = vpow2.f32 %v1536_v50  ;;  %vm918_vm2 = vweird.f32 %v2440_v62  ;;  %v922_v25 = vand.u32 2147483647, %v2440_v62  ;;  %v805_v42 = vor.u32 1.1754944e-38, %v804_v12 }
  0xf4   : > { %v1773_v24 = vpop.eup %1772  ;;  %1784 = vpow2.f32 %v1544_v4  ;;  %v1042_v39 = vand.u32 2147483647, %v2453_v11  ;;  %v1552_v43 = vmul.f32 -1.442695, %v2460_v37  ;;  %v925_v45 = vor.u32 1.1754944e-38, %v924_v0 }
  0xf5   : > { %v2462_v54 = vpop.eup %1774  ;;  %v2465_v22 = vadd.f32 1.0, %v1773_v24  ;;  %vm1038_vm3 = vweird.f32 %v2453_v11  ;;  %vm2484_vm4 = vcmp.eq.f32.partialorder %v802_v26, 8.507059e+37  ;;  %v1044_v35 = vand.u32 2147483648, %v2453_v11 }
  0xf6   : > { %v2467_v23 = vpop.eup %1776  ;;  %v794_v51 = vmul.f32 %v2462_v54, %v2435_v3  ;;  %v543_v53 = vmul.f32 %v1950_v18, %v468_v16  ;;  %vm799_vm5 = vweird.f32 %v2462_v54  ;;  %vm2493_vm6 = vcmp.eq.f32.partialorder %v922_v25, 8.507059e+37  ;;  %v2636_v3 = vld [vmem:[%s2876_s3] ss:$0 sm:$0xff] }
  0xf7   : > { %v914_v27 = vmul.f32 %v2467_v23, %v2440_v62  ;;  %1786 = vrcp.f32 %v2465_v22  ;;  %v1779_v28 = vpop.eup %1778  ;;  %v551_v55 = vmul.f32 %v1950_v18, %v488_v13  ;;  %vm2500_vm7 = vcmp.eq.f32.partialorder %v1042_v39, 8.507059e+37  ;;  %vm2520_vm10 = vmor %vm798_vm1, %vm799_vm5 }
  0xf8   : > { %v795_v40 = vsub.f32 1.0, %v794_v51  ;;  %v1781_v20 = vpop.eup %1780  ;;  %v2481_v47 = vadd.f32 1.0, %v1779_v28  ;;  %vm919_vm8 = vweird.f32 %v2467_v23  ;;  %v1164_v1 = vand.u32 2147483648, %v2465_v22 }
  0xf9   : > { %v915_v2 = vsub.f32 1.0, %v914_v27  ;;  %v1783_v48 = vpop.eup %1782  ;;  %v1034_v52 = vmul.f32 %v1781_v20, %v2453_v11  ;;  %vm1039_vm9 = vweird.f32 %v1781_v20  ;;  %v2514_v5 = vadd.f32 %v1955_v19, %v543_v53  ;;  %vm2535_vm11 = vmor %vm918_vm2, %vm919_vm8 }
  0xfa   : > { %v796_v49 = vmul.f32 %v2462_v54, %v795_v40  ;;  %1788 = vrcp.f32 %v2481_v47  ;;  %v1785_v15 = vpop.eup %1784  ;;  %v2509_v32 = vadd.f32 1.0, %v1783_v48  ;;  %v1045_v44 = vor.u32 1.1754944e-38, %v1044_v35  ;;  %vm2546_vm12 = vmor %vm1038_vm3, %vm1039_vm9  ;;  %v508_v35 = vpop.f32.mrf.mxu2 }
  0xfb   : > { %v916_v57 = vmul.f32 %v2467_v23, %v915_v2  ;;  %v1035_v34 = vsub.f32 1.0, %v1034_v52  ;;  %1790 = vpow2.f32 %v1552_v43  ;;  %v1162_v30 = vand.u32 2147483647, %v2465_v22 }
  0xfc   : > { %v797_v59 = vadd.f32 %v2462_v54, %v796_v49  ;;  %v2525_v21 = vadd.f32 1.0, %v1785_v15  ;;  %v2528_v38 = vadd.f32 %v1955_v19, %v551_v55  ;;  %v817_v10 = vand.u32 2147483647, %v2481_v47 }
  0xfd   : > { %v2504_v60 = vpop.eup %1786  ;;  %v917_v61 = vadd.f32 %v2467_v23, %v916_v57  ;;  %v1036_v18 = vmul.f32 %v1781_v20, %v1035_v34  ;;  %vm1158_vm13 = vweird.f32 %v2465_v22  ;;  %v2551_v62 = vor.u32 1.1754944e-38, %v1164_v1 }
  0xfe   : > { %v1154_v29 = vmul.f32 %v2504_v60, %v2465_v22  ;;  %v801_v7 = vsel %vm2520_vm10, %v2462_v54, %v797_v59  ;;  %v819_v24 = vand.u32 2147483648, %v2481_v47  ;;  %1792 = vrcp.f32 %v2509_v32 }
  0xff   : > { %v1037_v8 = vadd.f32 %v1781_v20, %v1036_v18  ;;  %v921_v19 = vsel %vm2535_vm11, %v2467_v23, %v917_v61  ;;  %vm813_vm14 = vweird.f32 %v2481_v47  ;;  %v1529_v11 = vmul.f32 -1.442695, %v2514_v5 }
 0x100   : > { %v1155_v50 = vsub.f32 1.0, %v1154_v29  ;;  %v1789_v58 = vpop.eup %1788  ;;  %v806_v23 = vsel %vm2484_vm4, %v805_v42, %v801_v7  ;;  %vm1159_vm15 = vweird.f32 %v2504_v60  ;;  %1794 = vrcp.f32 %v2525_v21 }
 0x101   : > { %v1791_v12 = vpop.eup %1790  ;;  %v1041_v54 = vsel %vm2546_vm12, %v1781_v20, %v1037_v8  ;;  %v809_v0 = vmul.f32 %v1789_v58, %v2481_v47  ;;  %v926_v26 = vsel %vm2493_vm6, %v925_v45, %v921_v19  ;;  %vm2567_vm0 = vcmp.eq.f32.partialorder %v817_v10, 8.507059e+37  ;;  %vm2604_vm6 = vmor %vm1158_vm13, %vm1159_vm15  ;;  %v470_v19 = vpop.f32.mrf.mxu0 }
 0x102   : > { %v1156_v51 = vmul.f32 %v2504_v60, %v1155_v50  ;;  %v937_v16 = vand.u32 2147483647, %v2509_v32  ;;  %v1046_v28 = vsel %vm2500_vm7, %v1045_v44, %v1041_v54  ;;  %vm814_vm1 = vweird.f32 %v1789_v58  ;;  %v528_v44 = vpop.f32.mrf.mxu3 }
 0x103   : > { %v810_v27 = vsub.f32 1.0, %v809_v0  ;;  %v820_v40 = vor.u32 1.1754944e-38, %v819_v24  ;;  %v2574_v42 = vadd.f32 1.0, %v1791_v12  ;;  %v939_v43 = vand.u32 2147483648, %v2509_v32  ;;  %vm815_vm4 = vmor %vm813_vm14, %vm814_vm1 }
 0x104   : > { %1796 = vpow2.f32 %v1529_v11  ;;  %v1537_v13 = vmul.f32 -1.442695, %v2528_v38  ;;  %v1793_v20 = vpop.eup %1792  ;;  %v1217_v2 = vmul.f32 %v806_v23, %v2375_v9  ;;  %v2580_v45 = vmul.f32 %v926_v26, %v2378_v56 }
 0x105   : > { %v811_v39 = vmul.f32 %v1789_v58, %v810_v27  ;;  %v2583_v48 = vadd.f32 %v2504_v60, %v1156_v51  ;;  %1798 = vrcp.f32 %v2574_v42  ;;  %v929_v14 = vmul.f32 %v1793_v20, %v2509_v32 }
 0x106   : > { %vm933_vm2 = vweird.f32 %v2509_v32  ;;  %vm2588_vm3 = vcmp.eq.f32.partialorder %v937_v16, 8.507059e+37  ;;  %v1795_v53 = vpop.eup %1794  ;;  %v2593_v9 = vmul.f32 %v1046_v28, %v2396_v33  ;;  %vm1053_vm5 = vweird.f32 %v2525_v21  ;;  %v490_v16 = vpop.f32.mrf.mxu1 }
 0x107   : > { %v812_v49 = vadd.f32 %v1789_v58, %v811_v39  ;;  %v1057_v56 = vand.u32 2147483647, %v2525_v21  ;;  %1800 = vpow2.f32 %v1537_v13  ;;  %vm2608_vm7 = vcmp.eq.f32.partialorder %v1162_v30, 8.507059e+37 }
 0x108   : > { %v930_v47 = vsub.f32 1.0, %v929_v14  ;;  %v940_v55 = vor.u32 1.1754944e-38, %v939_v43  ;;  %v1049_v15 = vmul.f32 %v1795_v53, %v2525_v21  ;;  %v1161_v59 = vsel %vm2604_vm6, %v2504_v60, %v2583_v48  ;;  %v510_v14 = vpop.f32.mrf.mxu2 }
 0x109   : > { %v816_v17 = vsel %vm815_vm4, %v1789_v58, %v812_v49  ;;  %v1059_v34 = vand.u32 2147483648, %v2525_v21  ;;  %v559_v61 = vmul.f32 %v2623_v31, %v508_v35  ;;  %vm934_vm8 = vweird.f32 %v1793_v20 }
 0x10a   : > { %v821_v22 = vsel %vm2567_vm0, %v820_v40, %v816_v17  ;;  %v1797_v1 = vpop.eup %1796  ;;  %v931_v29 = vmul.f32 %v1793_v20, %v930_v47  ;;  %v1050_v6 = vsub.f32 1.0, %v1049_v15  ;;  %vm1054_vm9 = vweird.f32 %v1795_v53  ;;  %vm935_vm11 = vmor %vm933_vm2, %vm934_vm8  ;;  %v530_v35 = vpop.f32.mrf.mxu3 }
 0x10b   : > { %v1218_v18 = vmul.f32 %v821_v22, %v2416_v46  ;;  %v1799_v60 = vpop.eup %1798  ;;  %vm2627_vm10 = vcmp.eq.f32.partialorder %v1057_v56, 8.507059e+37  ;;  %v2631_v7 = vadd.f32 1.0, %v1797_v1  ;;  %v2639_v46 = vadd.f32 %v2636_v3, %v559_v61  ;;  %vm1055_vm12 = vmor %vm1053_vm5, %vm1054_vm9 }
 0x10c   : > { %v932_v50 = vadd.f32 %v1793_v20, %v931_v29  ;;  %v1051_v10 = vmul.f32 %v1795_v53, %v1050_v6  ;;  %v1169_v58 = vmul.f32 %v1799_v60, %v2574_v42  ;;  %v1060_v24 = vor.u32 1.1754944e-38, %v1059_v34 }
 0x10d   : > { %v1588_v8 = vpack.c.bf16 %v1218_v18, %v1217_v2  ;;  %v1801_v4 = vpop.eup %1800  ;;  %v1177_v12 = vand.u32 2147483647, %v2574_v42  ;;  %v1179_v54 = vand.u32 2147483648, %v2574_v42  ;;  %1802 = vrcp.f32 %v2631_v7 }
 0x10e   : > { %v936_v0 = vsel %vm935_vm11, %v1793_v20, %v932_v50  ;;  %v1052_v11 = vadd.f32 %v1795_v53, %v1051_v10  ;;  %v1170_v23 = vsub.f32 1.0, %v1169_v58  ;;  %v567_v51 = vmul.f32 %v2623_v31, %v528_v44 }
 0x10f   : > { %1656 = vst [vmem:[%s2176_s8 + $0x10] sm:$0xff] %v1588_v8   ;;  %v941_v26 = vsel %vm2588_vm3, %v940_v55, %v936_v0  ;;  %v2655_v32 = vadd.f32 1.0, %v1801_v4  ;;  %v1545_v27 = vmul.f32 -1.442695, %v2639_v46  ;;  %v544_v25 = vmul.f32 %v2623_v31, %v470_v19 }
 0x110   : > { %v1226_v28 = vmul.f32 %v941_v26, %v2431_v63  ;;  %v1056_v40 = vsel %vm1055_vm12, %v1795_v53, %v1052_v11  ;;  %v1171_v39 = vmul.f32 %v1799_v60, %v1170_v23  ;;  %vm1174_vm13 = vweird.f32 %v1799_v60 }
 0x111   : > { %v1166_v43 = vsel %vm2608_vm7, %v2551_v62, %v1161_v59  ;;  %v1061_v21 = vsel %vm2627_vm10, %v1060_v24, %v1056_v40  ;;  %vm1173_vm14 = vweird.f32 %v2574_v42  ;;  %1804 = vrcp.f32 %v2655_v32 }
 0x112   : > { %v1608_v13 = vpack.c.bf16 %v1226_v28, %v2580_v45  ;;  %v1234_v20 = vmul.f32 %v1061_v21, %v2438_v36  ;;  %v1172_v63 = vadd.f32 %v1799_v60, %v1171_v39  ;;  %v552_v2 = vmul.f32 %v2623_v31, %v490_v16  ;;  %vm1175_vm15 = vmor %vm1173_vm14, %vm1174_vm13 }
 0x113   : > { %v2670_v48 = vpop.eup %1802  ;;  %v1180_v49 = vor.u32 1.1754944e-38, %v1179_v54  ;;  %1806 = vpow2.f32 %v1545_v27  ;;  %v2673_v62 = vadd.f32 %v2636_v3, %v567_v51  ;;  %v2676_v42 = vadd.f32 %v2636_v3, %v544_v25 }
 0x114   : > { %1660 = vst [vmem:[%s2176_s8 + $0x30] sm:$0xff] %v1608_v13   ;;  %v1628_v45 = vpack.c.bf16 %v1234_v20, %v2593_v9  ;;  %v1176_v36 = vsel %vm1175_vm15, %v1799_v60, %v1172_v63  ;;  %vm1178_vm0 = vcmp.eq.f32.partialorder %v1177_v12, 8.507059e+37  ;;  %v824_v52 = vmul.f32 %v2670_v48, %v2631_v7 }
 0x115   : > { %v1241_v53 = vmul.f32 %v1166_v43, %v2413_v41  ;;  %v1181_v56 = vsel %vm1178_vm0, %v1180_v49, %v1176_v36  ;;  %v1553_v57 = vmul.f32 -1.442695, %v2673_v62  ;;  %v1530_v33 = vmul.f32 -1.442695, %v2676_v42 }
 0x116   : > { %1664 = vst [vmem:[%s2176_s8 + $0x50] sm:$0xff] %v1628_v45   ;;  %v1242_v17 = vmul.f32 %v1181_v56, %v2460_v37  ;;  %v825_v47 = vsub.f32 1.0, %v824_v52  ;;  %v2688_v9 = vadd.f32 %v2636_v3, %v552_v2  ;;  %v560_v55 = vmul.f32 %v2623_v31, %v510_v14 }
 0x117   : > { %v2691_v15 = vpop.eup %1804  ;;  %1808 = vpow2.f32 %v1553_v57  ;;  %v568_v41 = vmul.f32 %v2623_v31, %v530_v35  ;;  %vm828_vm1 = vweird.f32 %v2631_v7  ;;  %vm829_vm2 = vweird.f32 %v2670_v48 }
 0x118   : > { %v1648_v59 = vpack.c.bf16 %v1242_v17, %v1241_v53  ;;  %v826_v22 = vmul.f32 %v2670_v48, %v825_v47  ;;  %v944_v34 = vmul.f32 %v2691_v15, %v2655_v32  ;;  %1810 = vpow2.f32 %v1530_v33  ;;  %vm2720_vm3 = vmor %vm828_vm1, %vm829_vm2 }
 0x119   : > { %v1807_v61 = vpop.eup %1806  ;;  %v1538_v37 = vmul.f32 -1.442695, %v2688_v9  ;;  %v2699_v1 = vadd.f32 %v2636_v3, %v560_v55  ;;  %v2702_v18 = vadd.f32 %v2636_v3, %v568_v41  ;;  %v834_v8 = vand.u32 2147483648, %v2631_v7 }
 0x11a   : > { %1668 = vst [vmem:[%s2176_s8 + $0x70] sm:$0xff] %v1648_v59   ;;  %v945_v29 = vsub.f32 1.0, %v944_v34  ;;  %v2705_v6 = vadd.f32 1.0, %v1807_v61  ;;  %v827_v60 = vadd.f32 %v2670_v48, %v826_v22  ;;  %v832_v50 = vand.u32 2147483647, %v2631_v7 }
 0x11b   : > { %1812 = vpow2.f32 %v1538_v37  ;;  %v1546_v31 = vmul.f32 -1.442695, %v2699_v1  ;;  %v1554_v44 = vmul.f32 -1.442695, %v2702_v18  ;;  %vm948_vm4 = vweird.f32 %v2655_v32 }
 0x11c   : > { %v946_v30 = vmul.f32 %v2691_v15, %v945_v29  ;;  %1814 = vrcp.f32 %v2705_v6  ;;  %v831_v4 = vsel %vm2720_vm3, %v2670_v48, %v827_v60  ;;  %vm949_vm5 = vweird.f32 %v2691_v15 }
 0x11d   : > { %v1809_v3 = vpop.eup %1808  ;;  %1816 = vpow2.f32 %v1546_v31  ;;  %v835_v54 = vor.u32 1.1754944e-38, %v834_v8  ;;  %v952_v7 = vand.u32 2147483647, %v2655_v32  ;;  %v954_v0 = vand.u32 2147483648, %v2655_v32  ;;  %vm2742_vm7 = vmor %vm948_vm4, %vm949_vm5 }
 0x11e   : > { %v2716_v10 = vadd.f32 1.0, %v1809_v3  ;;  %1818 = vpow2.f32 %v1554_v44  ;;  %v1811_v58 = vpop.eup %1810  ;;  %v947_v24 = vadd.f32 %v2691_v15, %v946_v30  ;;  %vm833_vm6 = vcmp.eq.f32.partialorder %v832_v50, 8.507059e+37 }
 0x11f   : > { %v2733_v11 = vadd.f32 1.0, %v1811_v58  ;;  %v1074_v51 = vand.u32 2147483648, %v2705_v6  ;;  %v836_v25 = vsel %vm833_vm6, %v835_v54, %v831_v4  ;;  %vm953_vm8 = vcmp.eq.f32.partialorder %v952_v7, 8.507059e+37 }
 0x120   : > { %1820 = vrcp.f32 %v2716_v10  ;;  %v951_v39 = vsel %vm2742_vm7, %v2691_v15, %v947_v24  ;;  %v955_v43 = vor.u32 1.1754944e-38, %v954_v0  ;;  %v1072_v32 = vand.u32 2147483647, %v2705_v6 }
 0x121   : > { %v1813_v12 = vpop.eup %1812  ;;  %1822 = vrcp.f32 %v2733_v11  ;;  %v2757_v20 = vmul.f32 %v836_v25, %v2514_v5  ;;  %vm1068_vm9 = vweird.f32 %v2705_v6  ;;  %v2760_v63 = vor.u32 1.1754944e-38, %v1074_v51 }
 0x122   : > { %v2735_v23 = vpop.eup %1814  ;;  %v2738_v26 = vadd.f32 1.0, %v1813_v12  ;;  %v956_v49 = vsel %vm953_vm8, %v955_v43, %v951_v39  ;;  %vm1188_vm10 = vweird.f32 %v2716_v10  ;;  %v1194_v45 = vand.u32 2147483648, %v2716_v10 }
 0x123   : > { %v1817_v27 = vpop.eup %1816  ;;  %v1064_v28 = vmul.f32 %v2735_v23, %v2705_v6  ;;  %v1192_v36 = vand.u32 2147483647, %v2716_v10  ;;  %v847_v5 = vand.u32 2147483647, %v2733_v11  ;;  %v849_v52 = vand.u32 2147483648, %v2733_v11 }
 0x124   : > { %v1819_v40 = vpop.eup %1818  ;;  %1824 = vrcp.f32 %v2738_v26  ;;  %v2762_v2 = vadd.f32 1.0, %v1817_v27  ;;  %v967_v57 = vand.u32 2147483647, %v2738_v26  ;;  %v2778_v17 = vmul.f32 %v956_v49, %v2528_v38 }
 0x125   : > { %v1065_v21 = vsub.f32 1.0, %v1064_v28  ;;  %v2764_v48 = vadd.f32 1.0, %v1819_v40  ;;  %vm1069_vm11 = vweird.f32 %v2735_v23  ;;  %v969_v55 = vand.u32 2147483648, %v2738_v26 }
 0x126   : > { %v2754_v13 = vpop.eup %1820  ;;  %1826 = vrcp.f32 %v2762_v2  ;;  %v1195_v41 = vor.u32 1.1754944e-38, %v1194_v45  ;;  %vm843_vm12 = vweird.f32 %v2733_v11  ;;  %vm2786_vm13 = vcmp.eq.f32.partialorder %v847_v5, 8.507059e+37  ;;  %vm2810_vm4 = vmor %vm1068_vm9, %vm1069_vm11 }
 0x127   : > { %v1184_v14 = vmul.f32 %v2754_v13, %v2716_v10  ;;  %v1823_v35 = vpop.eup %1822  ;;  %v1066_v53 = vmul.f32 %v2735_v23, %v1065_v21  ;;  %1828 = vrcp.f32 %v2764_v48  ;;  %v850_v38 = vor.u32 1.1754944e-38, %v849_v52 }
 0x128   : > { %v839_v47 = vmul.f32 %v1823_v35, %v2733_v11  ;;  %vm963_vm14 = vweird.f32 %v2738_v26  ;;  %vm2792_vm15 = vcmp.eq.f32.partialorder %v1072_v32, 8.507059e+37  ;;  %vm1189_vm0 = vweird.f32 %v2754_v13 }
 0x129   : > { %v1185_v56 = vsub.f32 1.0, %v1184_v14  ;;  %v1067_v61 = vadd.f32 %v2735_v23, %v1066_v53  ;;  %vm2797_vm1 = vcmp.eq.f32.partialorder %v967_v57, 8.507059e+37  ;;  %vm2802_vm2 = vcmp.eq.f32.partialorder %v1192_v36, 8.507059e+37  ;;  %vm2820_vm7 = vmor %vm1188_vm10, %vm1189_vm0 }
 0x12a   : > { %v1825_v33 = vpop.eup %1824  ;;  %v840_v22 = vsub.f32 1.0, %v839_v47  ;;  %vm844_vm3 = vweird.f32 %v1823_v35  ;;  %v970_v8 = vor.u32 1.1754944e-38, %v969_v55  ;;  %vm1083_vm6 = vweird.f32 %v2762_v2 }
 0x12b   : > { %v1186_v15 = vmul.f32 %v2754_v13, %v1185_v56  ;;  %v959_v59 = vmul.f32 %v1825_v33, %v2738_v26  ;;  %vm964_vm5 = vweird.f32 %v1825_v33  ;;  %v1087_v6 = vand.u32 2147483647, %v2762_v2  ;;  %vm845_vm8 = vmor %vm843_vm12, %vm844_vm3 }
 0x12c   : > { %v1827_v44 = vpop.eup %1826  ;;  %v841_v3 = vmul.f32 %v1823_v35, %v840_v22  ;;  %v1089_v54 = vand.u32 2147483648, %v2762_v2  ;;  %v1071_v0 = vsel %vm2810_vm4, %v2735_v23, %v1067_v61  ;;  %v1207_v27 = vand.u32 2147483647, %v2764_v48  ;;  %vm965_vm9 = vmor %vm963_vm14, %vm964_vm5 }
 0x12d   : > { %v960_v29 = vsub.f32 1.0, %v959_v59  ;;  %v1187_v60 = vadd.f32 %v2754_v13, %v1186_v15  ;;  %v1829_v50 = vpop.eup %1828  ;;  %v1079_v4 = vmul.f32 %v1827_v44, %v2762_v2  ;;  %v1209_v40 = vand.u32 2147483648, %v2764_v48 }
 0x12e   : > { %v842_v12 = vadd.f32 %v1823_v35, %v841_v3  ;;  %v1199_v7 = vmul.f32 %v1829_v50, %v2764_v48  ;;  %vm1084_vm10 = vweird.f32 %v1827_v44  ;;  %vm1204_vm11 = vweird.f32 %v1829_v50 }
 0x12f   : > { %v961_v19 = vmul.f32 %v1825_v33, %v960_v29  ;;  %v1080_v10 = vsub.f32 1.0, %v1079_v4  ;;  %v1191_v25 = vsel %vm2820_vm7, %v2754_v13, %v1187_v60  ;;  %vm1088_vm12 = vcmp.eq.f32.partialorder %v1087_v6, 8.507059e+37 }
 0x130   : > { %v846_v16 = vsel %vm845_vm8, %v1823_v35, %v842_v12  ;;  %v1200_v28 = vsub.f32 1.0, %v1199_v7  ;;  %vm1203_vm14 = vweird.f32 %v2764_v48  ;;  %v1076_v49 = vsel %vm2792_vm15, %v2760_v63, %v1071_v0 }
 0x131   : > { %v962_v51 = vadd.f32 %v1825_v33, %v961_v19  ;;  %v851_v11 = vsel %vm2786_vm13, %v850_v38, %v846_v16  ;;  %v1081_v39 = vmul.f32 %v1827_v44, %v1080_v10  ;;  %vm1085_vm13 = vmor %vm1083_vm6, %vm1084_vm10  ;;  %v1196_v36 = vsel %vm2802_vm2, %v1195_v41, %v1191_v25 }
 0x132   : > { %v1220_v43 = vmul.f32 %v851_v11, %v2676_v42  ;;  %v1201_v32 = vmul.f32 %v1829_v50, %v1200_v28  ;;  %v1090_v42 = vor.u32 1.1754944e-38, %v1089_v54  ;;  %vm1205_vm0 = vmor %vm1203_vm14, %vm1204_vm11  ;;  %v1210_v48 = vor.u32 1.1754944e-38, %v1209_v40 }
 0x133   : > { %v966_v23 = vsel %vm965_vm9, %v1825_v33, %v962_v51  ;;  %v1082_v13 = vadd.f32 %v1827_v44, %v1081_v39  ;;  %vm1208_vm15 = vcmp.eq.f32.partialorder %v1207_v27, 8.507059e+37  ;;  %v1243_v53 = vmul.f32 %v1196_v36, %v2673_v62 }
 0x134   : > { %v971_v21 = vsel %vm2797_vm1, %v970_v8, %v966_v23  ;;  %v1593_v14 = vpack.c.bf16 %v1220_v43, %v2757_v20  ;;  %v1202_v45 = vadd.f32 %v1829_v50, %v1201_v32  ;;  %v1235_v20 = vmul.f32 %v1076_v49, %v2639_v46 }
 0x135   : > { %v1228_v26 = vmul.f32 %v971_v21, %v2688_v9  ;;  %v1086_v5 = vsel %vm1085_vm13, %v1827_v44, %v1082_v13 }
 0x136   : > { %1657 = vst [vmem:[%s2176_s8 + $0x18] sm:$0xff] %v1593_v14   ;;  %v1091_v52 = vsel %vm1088_vm12, %v1090_v42, %v1086_v5  ;;  %v1206_v63 = vsel %vm1205_vm0, %v1829_v50, %v1202_v45 }
 0x137   : > { %v1613_v9 = vpack.c.bf16 %v1228_v26, %v2778_v17  ;;  %v1236_v2 = vmul.f32 %v1091_v52, %v2699_v1  ;;  %v1211_v35 = vsel %vm1208_vm15, %v1210_v48, %v1206_v63 }
 0x138   : > { %v1244_v56 = vmul.f32 %v1211_v35, %v2702_v18 }
 0x139   : > { %1661 = vst [vmem:[%s2176_s8 + $0x38] sm:$0xff] %v1613_v9   ;;  %v1633_v57 = vpack.c.bf16 %v1236_v2, %v1235_v20 }
 0x13a   : > { %v1653_v33 = vpack.c.bf16 %v1244_v56, %v1243_v53 }
 0x13b   : > { %1665 = vst [vmem:[%s2176_s8 + $0x58] sm:$0xff] %v1633_v57  }
 0x13c   : > { %1669 = vst [vmem:[%s2176_s8 + $0x78] sm:$0xff] %v1653_v33  }
 0x13d PF: > { %s14_s17 = sadd.s32 1, %s1854_s17   ;;  %s2958_s15 = smov %s1850_s16 }
 0x13e   : > { %p11_p5 = scmp.ge.s32.totalorder %s14_s17, 4   ;;  %s2959_s16 = smov %s2961_s18 }
 0x140   :  { %13 = sbr.rel (!%p11_p5) target bundleno = 2 (0x2), region = 75 }

// kernel: effinet_forward.7
= control target key start
LH: loop header
LB: loop body
LE: loop exit
PB: predicated region body
PF: predicated region fallthrough
CT: control target
= control target key end

     0   :  { %s848_s21 = smov 0   ;;  %s1122_s0 = inlined_call_operand.vmem [shape: bf16[2,64,128], index: 0, kind: input, shape index: {}]   ;;  %s1123_s1 = inlined_call_operand.vmem [shape: bf16[128,128], index: 1, kind: input, shape index: {}]   ;;  %s1124_s2 = inlined_call_operand.vmem [shape: f32[1,128], index: 2, kind: input, shape index: {}]   ;;  %s1125_s3 = inlined_call_operand.vmem [shape: f32[1,128], index: 3, kind: input, shape index: {}]   ;;  %s1126_s4 = inlined_call_operand.vmem [shape: f32[128,128], index: 4, kind: input, shape index: {}]   ;;  %s1127_s5 = inlined_call_operand.vmem [shape: f32[1,128], index: 5, kind: input, shape index: {}]   ;;  %s1128_s6 = inlined_call_operand.vmem [shape: f32[8,128], index: 6, kind: output, shape index: {}]  }
   0x1 LB: > { %s854_s22 = sadd.s32 4294967295, %s809_s21   ;;  %p656_p0 = scmp.ge.s32.totalorder %s809_s21, 1  ;;  %s809_s21 = sphi %s848_s21, %s16_s21  }
   0x2   : > { %p207_p1 = scmp.lt.s32.totalorder %s809_s21, 3 }
   0x4   : > { %p208_p2 = pnand %p656_p0, %p207_p1 }
   0x5   : > { %p232_p3 = scmp.lt.s32.totalorder (!%p208_p2), %s854_s22, 1  ;;  %p659_p4 = scmp.ne.s32.totalorder (!%p208_p2), %s854_s22, 0 }
   0x6   : > { %211 = sbr.rel (%p208_p2) target bundleno = 413 (0x19d), region = 44 }
   0xb   : > { %s233_s23 = scalar_select %p232_p3, %s854_s22, 1 }
   0xc   : > { %240 = sbr.rel (%p659_p4) target bundleno = 19 (0x13), region = 48 }
   0xd   : > { %s719_s24 = sshll.u32 %s233_s23, 5 }
   0xe   : > { %s863_s27 = scalar_lea.vmem %s1122_s0, %s719_s24 }
  0x11   : > { %v811_v0 = vmov 0.0  }
  0x12   : > { %241 = vst [vmem:[#allocation2] sm:$0xff] %v811_v0 }
  0x13 PF: > { %v731_v1 = vld [vmem:[%s1123_s1 + $0x38] sm:$0xff]  ;;  %v730_v2 = vld [vmem:[%s1123_s1 + $0x30] sm:$0xff]  ;;  %v729_v3 = vld [vmem:[%s1123_s1 + $0x28] sm:$0xff]  ;;  %p716_p5 = scmp.ne.s32.totalorder %s854_s22, 1 }
  0x14   : > { %338 = vmatpush.bf16.msra.mxu0 %v731_v1  ;;  %732 = vmatpush.bf16.msra.mxu1 %v731_v1  ;;  %v728_v4 = vld [vmem:[%s1123_s1 + $0x20] sm:$0xff]  ;;  %v727_v5 = vld [vmem:[%s1123_s1 + $0x18] sm:$0xff]  ;;  %v726_v6 = vld [vmem:[%s1123_s1 + $0x10] sm:$0xff] }
  0x15   : > { %733 = vmatpush.bf16.msra.mxu2 %v731_v1  ;;  %734 = vmatpush.bf16.msra.mxu3 %v731_v1  ;;  %v725_v7 = vld [vmem:[%s1123_s1 + $0x8] sm:$0xff]  ;;  %v724_v8 = vld [vmem:[%s1123_s1] sm:$0xff]  ;;  %v722_v11 = vld [vmem:[%s863_s27 + $0x10] sm:$0xff] }
  0x16   : > { %v720_v9 = vld [vmem:[%s863_s27] sm:$0xff]  ;;  %v721_v10 = vld [vmem:[%s863_s27 + $0x8] sm:$0xff]  ;;  %v723_v12 = vld [vmem:[%s863_s27 + $0x18] sm:$0xff] }
  0x17   : > { %v766_v13 = vld [vmem:[%s1124_s2] ss:$0 sm:$0xff] }
  0x18   : > { %339 = vmatpush.bf16.msra.mxu0 %v730_v2  ;;  %735 = vmatpush.bf16.msra.mxu1 %v730_v2  ;;  %v767_v14 = vld [vmem:[%s1125_s3] ss:$0 sm:$0xff] }
  0x19   : > { %736 = vmatpush.bf16.msra.mxu2 %v730_v2  ;;  %737 = vmatpush.bf16.msra.mxu3 %v730_v2 }
  0x1c   : > { %340 = vmatpush.bf16.msra.mxu0 %v729_v3  ;;  %738 = vmatpush.bf16.msra.mxu1 %v729_v3 }
  0x1d   : > { %739 = vmatpush.bf16.msra.mxu2 %v729_v3  ;;  %740 = vmatpush.bf16.msra.mxu3 %v729_v3 }
  0x20   : > { %341 = vmatpush.bf16.msra.mxu0 %v728_v4  ;;  %741 = vmatpush.bf16.msra.mxu1 %v728_v4 }
  0x21   : > { %742 = vmatpush.bf16.msra.mxu2 %v728_v4  ;;  %743 = vmatpush.bf16.msra.mxu3 %v728_v4 }
  0x24   : > { %342 = vmatpush.bf16.msra.mxu0 %v727_v5  ;;  %744 = vmatpush.bf16.msra.mxu1 %v727_v5 }
  0x25   : > { %745 = vmatpush.bf16.msra.mxu2 %v727_v5  ;;  %746 = vmatpush.bf16.msra.mxu3 %v727_v5 }
  0x28   : > { %343 = vmatpush.bf16.msra.mxu0 %v726_v6  ;;  %747 = vmatpush.bf16.msra.mxu1 %v726_v6 }
  0x29   : > { %748 = vmatpush.bf16.msra.mxu2 %v726_v6  ;;  %749 = vmatpush.bf16.msra.mxu3 %v726_v6 }
  0x2c   : > { %344 = vmatpush.bf16.msra.mxu0 %v725_v7  ;;  %750 = vmatpush.bf16.msra.mxu1 %v725_v7 }
  0x2d   : > { %751 = vmatpush.bf16.msra.mxu2 %v725_v7  ;;  %752 = vmatpush.bf16.msra.mxu3 %v725_v7 }
  0x30   : > { %345 = vmatpush.bf16.msra.mxu0 %v724_v8  ;;  %753 = vmatpush.bf16.msra.mxu1 %v724_v8 }
  0x31   : > { %754 = vmatpush.bf16.msra.mxu2 %v724_v8  ;;  %755 = vmatpush.bf16.msra.mxu3 %v724_v8 }
  0x33   : > { %346 = vmatmul.bf16.vlgmr.msra.gmra.mxu0 %v720_v9  ;;  %351 = vmatmul.bf16.vlgmr.msra.gmra.mxu1 %v721_v10 }
  0x34   : > { %356 = vmatmul.bf16.vlgmr.msra.gmra.mxu2 %v722_v11  ;;  %361 = vmatmul.bf16.vlgmr.msra.gmra.mxu3 %v723_v12 }
  0xb0   : > { %v347_v15 = vpop.f32.mrf.mxu0  ;;  %v352_v16 = vpop.f32.mrf.mxu1 }
  0xb1   : > { %v371_v17 = vmul.f32 %v766_v13, %v347_v15  ;;  %v373_v18 = vmul.f32 %v766_v13, %v352_v16 }
  0xb3   : > { %v900_v19 = vadd.f32 %v767_v14, %v371_v17  ;;  %v902_v20 = vadd.f32 %v767_v14, %v373_v18 }
  0xb5   : > { %v708_v21 = vmul.f32 -1.442695, %v900_v19  ;;  %v710_v22 = vmul.f32 -1.442695, %v902_v20 }
  0xb7   : > { %768 = vpow2.f32 %v708_v21  ;;  %v357_v23 = vpop.f32.mrf.mxu2  ;;  %v362_v24 = vpop.f32.mrf.mxu3 }
  0xb8   : > { %770 = vpow2.f32 %v710_v22  ;;  %v375_v25 = vmul.f32 %v766_v13, %v357_v23  ;;  %v377_v26 = vmul.f32 %v766_v13, %v362_v24  ;;  %v349_v27 = vpop.f32.mrf.mxu0  ;;  %v354_v28 = vpop.f32.mrf.mxu1 }
  0xb9   : > { %v372_v29 = vmul.f32 %v766_v13, %v349_v27  ;;  %v374_v30 = vmul.f32 %v766_v13, %v354_v28 }
  0xba   : > { %v906_v31 = vadd.f32 %v767_v14, %v375_v25  ;;  %v908_v32 = vadd.f32 %v767_v14, %v377_v26 }
  0xbb   : > { %v910_v33 = vadd.f32 %v767_v14, %v372_v29  ;;  %v912_v34 = vadd.f32 %v767_v14, %v374_v30 }
  0xbc   : > { %v712_v35 = vmul.f32 -1.442695, %v906_v31  ;;  %v714_v36 = vmul.f32 -1.442695, %v908_v32 }
  0xbd   : > { %v769_v37 = vpop.eup %768  ;;  %v709_v40 = vmul.f32 -1.442695, %v910_v33  ;;  %v711_v42 = vmul.f32 -1.442695, %v912_v34 }
  0xbe   : > { %v771_v38 = vpop.eup %770  ;;  %v415_v39 = vadd.f32 1.0, %v769_v37  ;;  %772 = vpow2.f32 %v712_v35 }
  0xbf   : > { %v417_v41 = vadd.f32 1.0, %v771_v38  ;;  %774 = vpow2.f32 %v714_v36  ;;  %v359_v43 = vpop.f32.mrf.mxu2  ;;  %v364_v47 = vpop.f32.mrf.mxu3 }
  0xc0   : > { %776 = vrcp.f32 %v415_v39  ;;  %v376_v44 = vmul.f32 %v766_v13, %v359_v43  ;;  %v378_v54 = vmul.f32 %v766_v13, %v364_v47  ;;  %v432_v3 = vand.u32 2147483647, %v415_v39 }
  0xc1   : > { %778 = vrcp.f32 %v417_v41  ;;  %v434_v4 = vand.u32 2147483648, %v415_v39  ;;  %v462_v5 = vand.u32 2147483647, %v417_v41  ;;  %v464_v8 = vand.u32 2147483648, %v417_v41 }
  0xc2   : > { %780 = vpow2.f32 %v709_v40  ;;  %v918_v46 = vadd.f32 %v767_v14, %v376_v44  ;;  %v937_v63 = vadd.f32 %v767_v14, %v378_v54  ;;  %vm428_vm2 = vweird.f32 %v415_v39 }
  0xc3   : > { %782 = vpow2.f32 %v711_v42  ;;  %vm458_vm3 = vweird.f32 %v417_v41  ;;  %vm961_vm5 = vcmp.eq.f32.partialorder %v432_v3, 8.507059e+37  ;;  %v435_v18 = vor.u32 1.1754944e-38, %v434_v4 }
  0xc4   : > { %v773_v45 = vpop.eup %772  ;;  %v713_v57 = vmul.f32 -1.442695, %v918_v46  ;;  %v715_v9 = vmul.f32 -1.442695, %v937_v63  ;;  %vm965_vm6 = vcmp.eq.f32.partialorder %v462_v5, 8.507059e+37  ;;  %v465_v25 = vor.u32 1.1754944e-38, %v464_v8 }
  0xc5   : > { %v775_v48 = vpop.eup %774  ;;  %v920_v49 = vadd.f32 1.0, %v773_v45 }
  0xc6   : > { %v922_v50 = vpop.eup %776  ;;  %v924_v51 = vadd.f32 1.0, %v775_v48 }
  0xc7   : > { %v926_v52 = vpop.eup %778  ;;  %v424_v53 = vmul.f32 %v922_v50, %v415_v39  ;;  %784 = vrcp.f32 %v920_v49  ;;  %vm429_vm0 = vweird.f32 %v922_v50  ;;  %v494_v13 = vand.u32 2147483648, %v920_v49 }
  0xc8   : > { %v781_v55 = vpop.eup %780  ;;  %v454_v56 = vmul.f32 %v926_v52, %v417_v41  ;;  %786 = vrcp.f32 %v924_v51  ;;  %vm459_vm1 = vweird.f32 %v926_v52  ;;  %vm957_vm4 = vmor %vm428_vm2, %vm429_vm0  ;;  %v492_v22 = vand.u32 2147483647, %v920_v49 }
  0xc9   : > { %v783_v58 = vpop.eup %782  ;;  %v425_v59 = vsub.f32 1.0, %v424_v53  ;;  %v933_v61 = vadd.f32 1.0, %v781_v55  ;;  %788 = vpow2.f32 %v713_v57  ;;  %vm970_vm7 = vmor %vm458_vm3, %vm459_vm1  ;;  %vm488_vm8 = vweird.f32 %v920_v49 }
  0xca   : > { %v455_v60 = vsub.f32 1.0, %v454_v56  ;;  %v935_v62 = vadd.f32 1.0, %v783_v58  ;;  %v495_v37 = vor.u32 1.1754944e-38, %v494_v13  ;;  %vm988_vm10 = vcmp.eq.f32.partialorder %v492_v22, 8.507059e+37 }
  0xcb   : > { %v426_v0 = vmul.f32 %v922_v50, %v425_v59  ;;  %790 = vrcp.f32 %v933_v61  ;;  %v447_v26 = vand.u32 2147483647, %v933_v61  ;;  %vm443_vm11 = vweird.f32 %v933_v61 }
  0xcc   : > { %v456_v1 = vmul.f32 %v926_v52, %v455_v60  ;;  %792 = vrcp.f32 %v935_v62  ;;  %vm518_vm12 = vweird.f32 %v924_v51  ;;  %v449_v45 = vand.u32 2147483648, %v933_v61 }
  0xcd   : > { %v941_v2 = vpop.eup %784  ;;  %v427_v10 = vadd.f32 %v922_v50, %v426_v0  ;;  %794 = vpow2.f32 %v715_v9  ;;  %vm999_vm13 = vcmp.eq.f32.partialorder %v447_v26, 8.507059e+37  ;;  %vm473_vm15 = vweird.f32 %v935_v62 }
  0xce   : > { %v484_v6 = vmul.f32 %v941_v2, %v920_v49  ;;  %v946_v7 = vpop.eup %786  ;;  %v457_v11 = vadd.f32 %v926_v52, %v456_v1  ;;  %vm489_vm9 = vweird.f32 %v941_v2  ;;  %v477_v54 = vand.u32 2147483647, %v935_v62 }
  0xcf   : > { %v514_v14 = vmul.f32 %v946_v7, %v924_v51  ;;  %v789_v15 = vpop.eup %788  ;;  %v431_v28 = vsel %vm957_vm4, %v922_v50, %v427_v10  ;;  %v479_v55 = vand.u32 2147483648, %v935_v62  ;;  %vm1013_vm0 = vmor %vm488_vm8, %vm489_vm9  ;;  %vm519_vm2 = vweird.f32 %v946_v7 }
  0xd0   : > { %v485_v12 = vsub.f32 1.0, %v484_v6  ;;  %v975_v27 = vadd.f32 1.0, %v789_v15  ;;  %v461_v29 = vsel %vm970_vm7, %v926_v52, %v457_v11  ;;  %v436_v42 = vsel %vm961_vm5, %v435_v18, %v431_v28  ;;  %vm1047_vm8 = vmor %vm518_vm12, %vm519_vm2 }
  0xd1   : > { %v791_v23 = vpop.eup %790  ;;  %v515_v38 = vsub.f32 1.0, %v514_v14  ;;  %v466_v43 = vsel %vm965_vm6, %v465_v25, %v461_v29  ;;  %v543_v0 = vmul.f32 %v436_v42, %v900_v19  ;;  %v450_v49 = vor.u32 1.1754944e-38, %v449_v45 }
  0xd2   : > { %v486_v30 = vmul.f32 %v941_v2, %v485_v12  ;;  %v439_v35 = vmul.f32 %v791_v23, %v933_v61  ;;  %v793_v36 = vpop.eup %792  ;;  %796 = vrcp.f32 %v975_v27  ;;  %vm444_vm14 = vweird.f32 %v791_v23 }
  0xd3   : > { %v469_v41 = vmul.f32 %v793_v36, %v935_v62  ;;  %v795_v52 = vpop.eup %794  ;;  %v516_v53 = vmul.f32 %v946_v7, %v515_v38  ;;  %vm474_vm1 = vweird.f32 %v793_v36  ;;  %v545_v1 = vmul.f32 %v466_v43, %v902_v20  ;;  %vm445_vm3 = vmor %vm443_vm11, %vm444_vm14 }
  0xd4   : > { %v440_v40 = vsub.f32 1.0, %v439_v35  ;;  %v487_v47 = vadd.f32 %v941_v2, %v486_v30  ;;  %v1017_v59 = vadd.f32 1.0, %v795_v52  ;;  %vm475_vm4 = vmor %vm473_vm15, %vm474_vm1  ;;  %vm478_vm5 = vcmp.eq.f32.partialorder %v477_v54, 8.507059e+37 }
  0xd5   : > { %v470_v50 = vsub.f32 1.0, %v469_v41  ;;  %v480_v20 = vor.u32 1.1754944e-38, %v479_v55  ;;  %v517_v61 = vadd.f32 %v946_v7, %v516_v53  ;;  %v509_v12 = vand.u32 2147483648, %v975_v27 }
  0xd6   : > { %v441_v48 = vmul.f32 %v791_v23, %v440_v40  ;;  %v491_v3 = vsel %vm1013_vm0, %v941_v2, %v487_v47  ;;  %798 = vrcp.f32 %v1017_v59  ;;  %v507_v62 = vand.u32 2147483647, %v975_v27 }
  0xd7   : > { %v471_v58 = vmul.f32 %v793_v36, %v470_v50  ;;  %v496_v10 = vsel %vm988_vm10, %v495_v37, %v491_v3  ;;  %v522_v15 = vand.u32 2147483647, %v924_v51  ;;  %v524_v16 = vand.u32 2147483648, %v924_v51  ;;  %v576_v3 = vld [vmem:[#allocation2] sm:$0xff] }
  0xd8   : > { %v442_v57 = vadd.f32 %v791_v23, %v441_v48  ;;  %v797_v60 = vpop.eup %796  ;;  %vm503_vm7 = vweird.f32 %v975_v27  ;;  %v812_v22 = vmov 64.0   ;;  %v547_v24 = vmul.f32 %v496_v10, %v906_v31 }
  0xd9   : > { %v472_v5 = vadd.f32 %v793_v36, %v471_v58  ;;  %v499_v6 = vmul.f32 %v797_v60, %v975_v27  ;;  %vm504_vm6 = vweird.f32 %v797_v60  ;;  %800 = vrcp.f32 %v812_v22 }
  0xda   : > { %v446_v4 = vsel %vm445_vm3, %v791_v23, %v442_v57  ;;  %v521_v25 = vsel %vm1047_vm8, %v946_v7, %v517_v61  ;;  %vm505_vm9 = vmor %vm503_vm7, %vm504_vm6  ;;  %v510_v26 = vor.u32 1.1754944e-38, %v509_v12  ;;  %vm508_vm10 = vcmp.eq.f32.partialorder %v507_v62, 8.507059e+37 }
  0xdb   : > { %v451_v19 = vsel %vm999_vm13, %v450_v49, %v446_v4  ;;  %v476_v9 = vsel %vm475_vm4, %v793_v36, %v472_v5  ;;  %v500_v2 = vsub.f32 1.0, %v499_v6  ;;  %v525_v29 = vor.u32 1.1754944e-38, %v524_v16 }
  0xdc   : > { %v544_v8 = vmul.f32 %v451_v19, %v910_v33  ;;  %v481_v11 = vsel %vm478_vm5, %v480_v20, %v476_v9  ;;  %v799_v23 = vpop.eup %798  ;;  %vm523_vm11 = vcmp.eq.f32.partialorder %v522_v15, 8.507059e+37  ;;  %v539_v31 = vand.u32 2147483648, %v1017_v59 }
  0xdd   : > { %v501_v14 = vmul.f32 %v797_v60, %v500_v2  ;;  %v546_v17 = vmul.f32 %v481_v11, %v912_v34  ;;  %v529_v28 = vmul.f32 %v799_v23, %v1017_v59  ;;  %v526_v37 = vsel %vm523_vm11, %v525_v29, %v521_v25 }
  0xde   : > { %v551_v13 = vadd.f32 %v544_v8, %v543_v0  ;;  %vm534_vm12 = vweird.f32 %v799_v23  ;;  %v537_v40 = vand.u32 2147483647, %v1017_v59  ;;  %v549_v41 = vmul.f32 %v526_v37, %v908_v32 }
  0xdf   : > { %v502_v21 = vadd.f32 %v797_v60, %v501_v14  ;;  %v530_v36 = vsub.f32 1.0, %v529_v28  ;;  %v801_v38 = vpop.eup %800  ;;  %vm533_vm13 = vweird.f32 %v1017_v59  ;;  %v540_v43 = vor.u32 1.1754944e-38, %v539_v31 }
  0xe0   : > { %v552_v18 = vadd.f32 %v551_v13, %v545_v1  ;;  %vm535_vm14 = vmor %vm533_vm13, %vm534_vm12  ;;  %v565_v44 = vmul.f32 64.0, %v801_v38  ;;  %vm538_vm15 = vcmp.eq.f32.partialorder %v537_v40, 8.507059e+37  ;;  %v572_v56 = vlaneseq }
  0xe1   : > { %v506_v27 = vsel %vm505_vm9, %v797_v60, %v502_v21  ;;  %v531_v7 = vmul.f32 %v799_v23, %v530_v36  ;;  %vm569_vm0 = vweird.f32 %v801_v38  ;;  %v574_v0 = vstv %s854_s22 }
  0xe2   : > { %v553_v51 = vadd.f32 %v552_v18, %v546_v17  ;;  %v511_v34 = vsel %vm508_vm10, %v510_v26, %v506_v27  ;;  %v566_v50 = vsub.f32 1.0, %v565_v44  ;;  %v573_v59 = vshrl.u32 %v572_v56, 7 }
  0xe3   : > { %v548_v30 = vmul.f32 %v511_v34, %v918_v46  ;;  %v532_v42 = vadd.f32 %v799_v23, %v531_v7 }
  0xe4   : > { %v554_v35 = vadd.f32 %v553_v51, %v547_v24  ;;  %v567_v54 = vmul.f32 %v801_v38, %v566_v50  ;;  %vm575_vm1 = vcmp.eq.s32.totalorder %v573_v59, %v574_v0 }
  0xe5   : > { %v536_v46 = vsel %vm535_vm14, %v799_v23, %v532_v42 }
  0xe6   : > { %v555_v39 = vadd.f32 %v554_v35, %v548_v30  ;;  %v541_v47 = vsel %vm538_vm15, %v540_v43, %v536_v46  ;;  %v568_v57 = vadd.f32 %v801_v38, %v567_v54 }
  0xe7   : > { %v550_v48 = vmul.f32 %v541_v47, %v937_v63 }
  0xe8   : > { %v556_v45 = vadd.f32 %v555_v39, %v549_v41  ;;  %v570_v1 = vsel %vm569_vm0, %v801_v38, %v568_v57 }
  0xea   : > { %v557_v52 = vadd.f32 %v556_v45, %v550_v48 }
  0xec   : > { %v558_v53 = vrot.slane %v557_v52, 4 }
  0xee   : > { %v559_v55 = vadd.f32 %v558_v53, %v557_v52 }
  0xf0   : > { %v560_v32 = vrot.slane %v559_v55, 2 }
  0xf2   : > { %v561_v58 = vadd.f32 %v560_v32, %v559_v55 }
  0xf4   : > { %v562_v60 = vrot.slane %v561_v58, 1 }
  0xf6   : > { %v563_v49 = vadd.f32 %v562_v60, %v561_v58 }
  0xf7   : > { %582 = sbr.rel (%p716_p5) target bundleno = 413 (0x19d), region = 52 }
  0xf8   : > { %v571_v4 = vmul.f32 %v570_v1, %v563_v49 }
  0xfa   : > { %v577_v5 = vsel %vm575_vm1, %v571_v4, %v576_v3 }
  0xfb   : > { %578 = vst [vmem:[#allocation2] sm:$0xff] %v577_v5 }
  0xfc   : > { %v599_v63 = vld [vmem:[%s1126_s4 + $0x78] sm:$0xff]  ;;  %v598_v6 = vld [vmem:[%s1126_s4 + $0x70] sm:$0xff]  ;;  %v597_v19 = vld [vmem:[%s1126_s4 + $0x68] sm:$0xff] }
  0xfd   : > { %604 = vmatpush.msra.mxu0 %v599_v63  ;;  %v596_v20 = vld [vmem:[%s1126_s4 + $0x60] sm:$0xff]  ;;  %v595_v61 = vld [vmem:[%s1126_s4 + $0x58] sm:$0xff]  ;;  %v594_v8 = vld [vmem:[%s1126_s4 + $0x50] sm:$0xff] }
  0xfe   : > { %v593_v9 = vld [vmem:[%s1126_s4 + $0x48] sm:$0xff]  ;;  %v592_v2 = vld [vmem:[%s1126_s4 + $0x40] sm:$0xff]  ;;  %v591_v10 = vld [vmem:[%s1126_s4 + $0x38] sm:$0xff] }
  0xff   : > { %605 = vmatpush.msra.mxu0 %v598_v6  ;;  %v590_v11 = vld [vmem:[%s1126_s4 + $0x30] sm:$0xff]  ;;  %v589_v12 = vld [vmem:[%s1126_s4 + $0x28] sm:$0xff]  ;;  %v588_v13 = vld [vmem:[%s1126_s4 + $0x20] sm:$0xff] }
 0x100   : > { %v587_v14 = vld [vmem:[%s1126_s4 + $0x18] sm:$0xff]  ;;  %v586_v62 = vld [vmem:[%s1126_s4 + $0x10] sm:$0xff]  ;;  %v585_v15 = vld [vmem:[%s1126_s4 + $0x8] sm:$0xff] }
 0x101   : > { %606 = vmatpush.msra.mxu0 %v597_v19  ;;  %v584_v16 = vld [vmem:[%s1126_s4] sm:$0xff] }
 0x102   : > { %v583_v33 = vld [vmem:[#allocation2] sm:$0xff] }
 0x103   : > { %607 = vmatpush.msra.mxu0 %v596_v20  ;;  %v802_v17 = vld [vmem:[%s1127_s5] ss:$0 sm:$0xff] }
 0x105   : > { %608 = vmatpush.msra.mxu0 %v595_v61 }
 0x107   : > { %609 = vmatpush.msra.mxu0 %v594_v8 }
 0x109   : > { %610 = vmatpush.msra.mxu0 %v593_v9 }
 0x10b   : > { %611 = vmatpush.msra.mxu0 %v592_v2 }
 0x10d   : > { %612 = vmatpush.msra.mxu0 %v591_v10 }
 0x10f   : > { %613 = vmatpush.msra.mxu0 %v590_v11 }
 0x111   : > { %614 = vmatpush.msra.mxu0 %v589_v12 }
 0x113   : > { %615 = vmatpush.msra.mxu0 %v588_v13 }
 0x115   : > { %616 = vmatpush.msra.mxu0 %v587_v14 }
 0x117   : > { %617 = vmatpush.msra.mxu0 %v586_v62 }
 0x119   : > { %618 = vmatpush.msra.mxu0 %v585_v15 }
 0x11b   : > { %619 = vmatpush.msra.mxu0 %v584_v16 }
 0x11c   : > { %620 = vmatmul.f32.vlgmr.msra.gmra.mxu0 %v583_v33 }
 0x199   : > { %v621_v18 = vpop.f32.mrf.mxu0 }
 0x19a   : > { %v622_v21 = vadd.f32 %v802_v17, %v621_v18 }
 0x19c   : > { %624 = vst [vmem:[%s1128_s6] sm:$0xff] %v622_v21 }
 0x19d PF: > { %s16_s21 = sadd.s32 1, %s809_s21  }
 0x19e   : > { %p13_p6 = scmp.ge.s32.totalorder %s16_s21, 4  }
 0x1a0   :  { %15 = sbr.rel (!%p13_p6) target bundleno = 1 (0x1), region = 78 }

// kernel: effinet_forward.5
= control target key start
LH: loop header
LB: loop body
LE: loop exit
PB: predicated region body
PF: predicated region fallthrough
CT: control target
= control target key end

     0   :  { %s4597_s21 = smov 0   ;;  %s9539_s0 = inlined_call_operand.vmem [shape: bf16[2,18,24,128], index: 0, kind: input, shape index: {}]   ;;  %s9540_s1 = inlined_call_operand.vmem [shape: f32[9,128], index: 1, kind: input, shape index: {}]   ;;  %s9541_s2 = inlined_call_operand.vmem [shape: f32[1,128], index: 2, kind: input, shape index: {}]   ;;  %s9542_s3 = inlined_call_operand.vmem [shape: f32[1,128], index: 3, kind: input, shape index: {}]   ;;  %s9543_s4 = inlined_call_operand.vmem [shape: f32[128,128], index: 4, kind: input, shape index: {}]   ;;  %s9544_s5 = inlined_call_operand.vmem [shape: f32[1,128], index: 5, kind: input, shape index: {}]   ;;  %s9545_s6 = inlined_call_operand.vmem [shape: f32[128,128], index: 6, kind: input, shape index: {}]   ;;  %s9546_s7 = inlined_call_operand.vmem [shape: f32[1,128], index: 7, kind: input, shape index: {}]   ;;  %s9547_s8 = inlined_call_operand.vmem [shape: bf16[128,128], index: 8, kind: input, shape index: {}]   ;;  %s9548_s9 = inlined_call_operand.vmem [shape: f32[1,128], index: 9, kind: input, shape index: {}]   ;;  %s9549_s10 = inlined_call_operand.vmem [shape: f32[1,128], index: 10, kind: input, shape index: {}]   ;;  %s9550_s11 = inlined_call_operand.vmem [shape: bf16[2,256,128], index: 11, kind: input, shape index: {}]   ;;  %s9551_s12 = inlined_call_operand.vmem [shape: bf16[2,256,128], index: 12, kind: output, shape index: {}]  }
   0x1 LB: > { %s3836_s22 = sadd.s32 4294967295, %s4529_s21   ;;  %p3840_p0 = scmp.ge.s32.totalorder %s4529_s21, 1  ;;  %s4529_s21 = sphi %s4597_s21, %s22_s21  }
   0x2   : > { %p372_p1 = scmp.lt.s32.totalorder %s4529_s21, 3 }
   0x4   : > { %p373_p2 = pnand %p3840_p0, %p372_p1 }
   0x6   : > { %376 = sbr.rel (%p373_p2) target bundleno = 1239 (0x4d7), region = 68 }
   0xb   : > { %v3237_v0 = vld [vmem:[%s9543_s4 + $0x78] sm:$0xff]  ;;  %v3236_v1 = vld [vmem:[%s9543_s4 + $0x70] sm:$0xff]  ;;  %v3235_v2 = vld [vmem:[%s9543_s4 + $0x68] sm:$0xff]  ;;  %p419_p3 = scmp.lt.s32.totalorder %s3836_s22, 1  ;;  %vm694_vm0 = vcmask 1046528   ;;  %vm968_vm1 = vcmask 1045504  }
   0xc   : > { %3239 = vmatpush.msra.mxu0 %v3237_v0  ;;  %v3234_v3 = vld [vmem:[%s9543_s4 + $0x60] sm:$0xff]  ;;  %v3233_v4 = vld [vmem:[%s9543_s4 + $0x58] sm:$0xff]  ;;  %v3232_v5 = vld [vmem:[%s9543_s4 + $0x50] sm:$0xff] }
   0xd   : > { %v3231_v6 = vld [vmem:[%s9543_s4 + $0x48] sm:$0xff]  ;;  %v3230_v7 = vld [vmem:[%s9543_s4 + $0x40] sm:$0xff]  ;;  %v3229_v8 = vld [vmem:[%s9543_s4 + $0x38] sm:$0xff]  ;;  %s10841_s22 = smov (!%p419_p3, %s3836_s22), 1 }
   0xe   : > { %3240 = vmatpush.msra.mxu0 %v3236_v1  ;;  %v3228_v9 = vld [vmem:[%s9543_s4 + $0x30] sm:$0xff]  ;;  %v3227_v10 = vld [vmem:[%s9543_s4 + $0x28] sm:$0xff]  ;;  %v3226_v11 = vld [vmem:[%s9543_s4 + $0x20] sm:$0xff]  ;;  %s4369_s23 = smul.u32 216, %s10841_s22  ;;  %s4042_s25 = sshll.u32 %s10841_s22, 7 }
   0xf   : > { %v3225_v12 = vld [vmem:[%s9543_s4 + $0x18] sm:$0xff]  ;;  %v3224_v13 = vld [vmem:[%s9543_s4 + $0x10] sm:$0xff]  ;;  %v3223_v14 = vld [vmem:[%s9543_s4 + $0x8] sm:$0xff]  ;;  %s9426_s30 = scalar_lea.vmem %s9550_s11, %s4042_s25  ;;  %s9452_s17 = scalar_lea.vmem %s9551_s12, %s4042_s25 }
  0x10   : > { %3241 = vmatpush.msra.mxu0 %v3235_v2  ;;  %v3222_v15 = vld [vmem:[%s9543_s4] sm:$0xff]  ;;  %s4663_s26 = scalar_lea.vmem %s9539_s0, %s4369_s23 }
  0x11   : > { %v4668_v16 = vld [vmem:[%s9540_s1] sm:$0xff]  ;;  %v4292_v18 = vld [vmem:[%s4663_s26 + $0x18] sm:$0xff]   ;;  %v4293_v19 = vld [vmem:[%s4663_s26 + $0x30] sm:$0xff]  }
  0x12   : > { %3242 = vmatpush.msra.mxu0 %v3234_v3  ;;  %9774 = vst [vmem:[#allocation2_spill] sm:$0xff] %v4668_v16  ;;  %v4671_v17 = vld [vmem:[%s4663_s26] sm:$0xff]   ;;  %v4676_v20 = vld [vmem:[%s4663_s26 + $0xc] sm:$0xff]   ;;  %v4296_v24 = vld [vmem:[%s4663_s26 + $0x78] sm:$0xff]   ;;  %v4683_v25 = vperm.slane %v4668_v16, 0  ;;  %v4686_v26 = vperm.slane %v4668_v16, 1  ;;  %v4691_v28 = vunpack.c.l.bf16 %v4292_v18  ;;  %v4693_v29 = vunpack.c.h.bf16 %v4292_v18 }
  0x13   : > { %v4294_v21 = vld [vmem:[%s4663_s26 + $0x48] sm:$0xff]   ;;  %v9556_v22 = vunpack.c.l.bf16 %v4671_v17  ;;  %v4295_v23 = vld [vmem:[%s4663_s26 + $0x60] sm:$0xff]   ;;  %v4689_v27 = vunpack.c.h.bf16 %v4671_v17  ;;  %v4698_v31 = vunpack.c.l.bf16 %v4293_v19  ;;  %v4297_v32 = vld [vmem:[%s4663_s26 + $0x90] sm:$0xff]   ;;  %v4701_v33 = vunpack.c.h.bf16 %v4293_v19 }
  0x14   : > { %3243 = vmatpush.msra.mxu0 %v3233_v4  ;;  %9775 = vst [vmem:[#allocation3_spill] sm:$0xff] %v4691_v28  ;;  %v4696_v30 = vld [vmem:[%s4663_s26 + $0x24] sm:$0xff]   ;;  %v4704_v34 = vld [vmem:[%s4663_s26 + $0x3c] sm:$0xff]   ;;  %v4706_v35 = vunpack.c.l.bf16 %v4294_v21  ;;  %v9555_v37 = vunpack.c.l.bf16 %v4676_v20  ;;  %v4711_v38 = vunpack.c.h.bf16 %v4676_v20  ;;  %v4713_v39 = vunpack.c.h.bf16 %v4294_v21  ;;  %v4716_v40 = vld [vmem:[%s4663_s26 + $0x54] sm:$0xff]  }
  0x15   : > { %9776 = vst [vmem:[#allocation4_spill] sm:$0xff] %v4693_v29  ;;  %v4298_v36 = vld [vmem:[%s4663_s26 + $0xa8] sm:$0xff]   ;;  %v4718_v41 = vunpack.c.l.bf16 %v4295_v23  ;;  %v4720_v42 = vunpack.c.h.bf16 %v4295_v23  ;;  %v4725_v44 = vunpack.c.l.bf16 %v4296_v24  ;;  %v4727_v45 = vunpack.c.h.bf16 %v4296_v24  ;;  %v4735_v48 = vld [vmem:[%s4663_s26 + $0x9c] sm:$0xff]   ;;  %v4748_v54 = vld [vmem:[%s4663_s26 + $0xb4] sm:$0xff]  }
  0x16   : > { %3244 = vmatpush.msra.mxu0 %v3232_v5  ;;  %9777 = vst [vmem:[#allocation5_spill] sm:$0xff] %v4698_v31  ;;  %v4723_v43 = vld [vmem:[%s4663_s26 + $0x6c] sm:$0xff]   ;;  %v4730_v46 = vld [vmem:[%s4663_s26 + $0x84] sm:$0xff]   ;;  %v4732_v47 = vunpack.c.l.bf16 %v4297_v32  ;;  %v9554_v49 = vunpack.c.l.bf16 %v4696_v30  ;;  %v4739_v50 = vunpack.c.h.bf16 %v4696_v30  ;;  %v4741_v51 = vunpack.c.h.bf16 %v4297_v32 }
  0x17   : > { %9778 = vst [vmem:[#allocation6_spill] sm:$0xff] %v4701_v33  ;;  %v4743_v52 = vunpack.c.l.bf16 %v4298_v36  ;;  %v4745_v53 = vunpack.c.h.bf16 %v4298_v36  ;;  %v9553_v55 = vunpack.c.l.bf16 %v4704_v34  ;;  %v4752_v56 = vunpack.c.h.bf16 %v4704_v34  ;;  %v4848_v24 = vld [vmem:[%s4663_s26 + $0x8] sm:$0x1] }
  0x18   : > { %3245 = vmatpush.msra.mxu0 %v3231_v6  ;;  %9779 = vst [vmem:[#allocation7_spill] sm:$0xff] %v4706_v35  ;;  %v9552_v57 = vunpack.c.l.bf16 %v4716_v40  ;;  %v4756_v58 = vunpack.c.h.bf16 %v4716_v40  ;;  %v9557_v59 = vunpack.c.l.bf16 %v4723_v43  ;;  %v4760_v60 = vunpack.c.h.bf16 %v4723_v43 }
  0x19   : > { %9780 = vst [vmem:[#allocation8_spill] sm:$0xff] %v4711_v38  ;;  %v9560_v61 = vunpack.c.l.bf16 %v4730_v46  ;;  %v4764_v62 = vunpack.c.h.bf16 %v4730_v46  ;;  %v4768_v0 = vunpack.c.h.bf16 %v4735_v48  ;;  %v4772_v2 = vunpack.c.h.bf16 %v4748_v54 }
  0x1a   : > { %3246 = vmatpush.msra.mxu0 %v3230_v7  ;;  %9781 = vst [vmem:[#allocation9_spill] sm:$0xff] %v4713_v39  ;;  %v4777_v3 = vmul.f32 %v9556_v22, %v4683_v25  ;;  %v4781_v4 = vmul.f32 %v4689_v27, %v4683_v25  ;;  %v4786_v5 = vmul.f32 %v4683_v25, %v9555_v37  ;;  %v4871_v37 = vld [vmem:[%s4663_s26 + $0x20] sm:$0x1]  ;;  %v4874_v22 = vld [vmem:[%s4663_s26 + $0x2c] sm:$0x1] }
  0x1b   : > { %9782 = vst [vmem:[#allocation10_spill] sm:$0xff] %v4718_v41  ;;  %v4790_v6 = vmul.f32 %v4683_v25, %v4711_v38  ;;  %v4794_v7 = vmul.f32 %v4691_v28, %v4683_v25  ;;  %v4832_v18 = vmul.f32 %v4713_v39, %v4683_v25  ;;  %v4837_v19 = vmul.f32 %v4683_v25, %v9552_v57 }
  0x1c   : > { %3247 = vmatpush.msra.mxu0 %v3229_v8  ;;  %9783 = vst [vmem:[#allocation11_spill] sm:$0xff] %v4720_v42  ;;  %v4798_v8 = vmul.f32 %v4693_v29, %v4683_v25  ;;  %v4841_v21 = vmul.f32 %v4683_v25, %v4756_v58  ;;  %v4845_v23 = vmul.f32 %v4718_v41, %v4683_v25 }
  0x1d   : > { %9784 = vst [vmem:[#allocation12_spill] sm:$0xff] %v4725_v44  ;;  %v4852_v32 = vmul.f32 %v4720_v42, %v4683_v25  ;;  %v4857_v36 = vmul.f32 %v4683_v25, %v9557_v59  ;;  %v4861_v57 = vmul.f32 %v4683_v25, %v4760_v60  ;;  %v4878_v59 = vmul.f32 %v4727_v45, %v4683_v25 }
  0x1e   : > { %3248 = vmatpush.msra.mxu0 %v3228_v9  ;;  %9785 = vst [vmem:[#allocation13_spill] sm:$0xff] %v4727_v45  ;;  %v4803_v9 = vmul.f32 %v4683_v25, %v9554_v49  ;;  %v4868_v49 = vld [vmem:[%s4663_s26 + $0x14] sm:$0x1]  ;;  %v4883_v1 = vmul.f32 %v4683_v25, %v9560_v61  ;;  %v4887_v63 = vmul.f32 %v4683_v25, %v4764_v62 }
  0x1f   : > { %9786 = vst [vmem:[#allocation14_spill] sm:$0xff] %v4732_v47  ;;  %v4891_v16 = vmul.f32 %v4732_v47, %v4683_v25  ;;  %v4904_v61 = vmul.f32 %v4741_v51, %v4683_v25 }
  0x20   : > { %3249 = vmatpush.msra.mxu0 %v3227_v10  ;;  %9787 = vst [vmem:[#allocation15_spill] sm:$0xff] %v4739_v50  ;;  %v4807_v10 = vmul.f32 %v4683_v25, %v4739_v50 }
  0x21   : > { %9788 = vst [vmem:[#allocation16_spill] sm:$0xff] %v4741_v51 }
  0x22   : > { %3250 = vmatpush.msra.mxu0 %v3226_v11  ;;  %9789 = vst [vmem:[#allocation17_spill] sm:$0xff] %v4743_v52  ;;  %v4811_v11 = vmul.f32 %v4698_v31, %v4683_v25 }
  0x23   : > { %9790 = vst [vmem:[#allocation18_spill] sm:$0xff] %v4745_v53 }
  0x24   : > { %3251 = vmatpush.msra.mxu0 %v3225_v12  ;;  %9791 = vst [vmem:[#allocation19_spill] sm:$0xff] %v4752_v56  ;;  %v4815_v12 = vmul.f32 %v4701_v33, %v4683_v25 }
  0x25   : > { %9792 = vst [vmem:[#allocation20_spill] sm:$0xff] %v4756_v58 }
  0x26   : > { %3252 = vmatpush.msra.mxu0 %v3224_v13  ;;  %9793 = vst [vmem:[#allocation21_spill] sm:$0xff] %v4760_v60  ;;  %v4820_v13 = vmul.f32 %v4683_v25, %v9553_v55  ;;  %v4865_v55 = vmul.f32 %v4725_v44, %v4683_v25 }
  0x27   : > { %9794 = vst [vmem:[#allocation22_spill] sm:$0xff] %v4764_v62 }
  0x28   : > { %3253 = vmatpush.msra.mxu0 %v3223_v14  ;;  %9795 = vst [vmem:[#allocation23_spill] sm:$0xff] %v4768_v0  ;;  %v4824_v14 = vmul.f32 %v4683_v25, %v4752_v56 }
  0x29   : > { %9796 = vst [vmem:[#allocation24_spill] sm:$0xff] %v4772_v2 }
  0x2a   : > { %3254 = vmatpush.msra.mxu0 %v3222_v15  ;;  %9797 = vst [vmem:[#allocation25_spill] sm:$0xff] %v4798_v8  ;;  %v4828_v15 = vmul.f32 %v4706_v35, %v4683_v25 }
  0x2b   : > { %9798 = vst [vmem:[#allocation26_spill] sm:$0xff] %v4803_v9  ;;  %v9843_v9 = vunpack.c.l.bf16 %v4848_v24 }
  0x2c   : > { %9799 = vst [vmem:[#allocation27_spill] sm:$0xff] %v4807_v10  ;;  %v599_v10 = vmul.f32 %v4689_v27, %v4686_v26 }
  0x2d   : > { %9800 = vst [vmem:[#allocation28_spill] sm:$0xff] %v4811_v11  ;;  %v9842_v11 = vunpack.c.l.bf16 %v4671_v17  ;;  %v600_v8 = vmul.f32 %v4686_v26, %v9843_v9  ;;  %v5003_v9 = vmul.f32 %v4693_v29, %v4686_v26 }
  0x2e   : > { %9801 = vst [vmem:[#allocation29_spill] sm:$0xff] %v4815_v12  ;;  %v9845_v12 = vunpack.c.l.bf16 %v4868_v49 }
  0x2f   : > { %9802 = vst [vmem:[#allocation30_spill] sm:$0xff] %v4820_v13  ;;  %v4958_v13 = vld [vmem:[%s4663_s26 + $0xbc] sm:$0x1] }
  0x30   : > { %9803 = vst [vmem:[#allocation31_spill] sm:$0xff] %v4824_v14  ;;  %v4952_v14 = vld [vmem:[%s4663_s26 + $0xa4] sm:$0x1]  ;;  %v4995_v17 = vmul.f32 %v4686_v26, %v9845_v12  ;;  %v5017_v12 = vmul.f32 %v4686_v26, %v4739_v50  ;;  %v9850_v50 = vunpack.c.l.bf16 %v4704_v34 }
  0x31   : > { %9804 = vst [vmem:[#allocation32_spill] sm:$0xff] %v4828_v15  ;;  %v598_v15 = vmul.f32 %v9842_v11, %v4686_v26  ;;  %v4999_v11 = vmul.f32 %v4691_v28, %v4686_v26  ;;  %v9848_v28 = vunpack.c.l.bf16 %v4874_v22 }
  0x32   : > { %9805 = vst [vmem:[#allocation33_spill] sm:$0xff] %v4832_v18  ;;  %v4948_v18 = vld [vmem:[%s4663_s26 + $0x98] sm:$0x1] }
  0x33   : > { %9806 = vst [vmem:[#allocation34_spill] sm:$0xff] %v4837_v19  ;;  %v4945_v19 = vld [vmem:[%s4663_s26 + $0x8c] sm:$0x1] }
  0x34   : > { %9807 = vst [vmem:[#allocation35_spill] sm:$0xff] %v4841_v21  ;;  %v4926_v21 = vld [vmem:[%s4663_s26 + $0x74] sm:$0x1] }
  0x35   : > { %9808 = vst [vmem:[#allocation36_spill] sm:$0xff] %v4845_v23  ;;  %v4923_v23 = vld [vmem:[%s4663_s26 + $0x68] sm:$0x1] }
  0x36   : > { %9809 = vst [vmem:[#allocation37_spill] sm:$0xff] %v4848_v24  ;;  %v9863_v24 = vunpack.c.l.bf16 %v4952_v14 }
  0x37   : > { %9810 = vst [vmem:[#allocation38_spill] sm:$0xff] %v4852_v32  ;;  %v4920_v32 = vld [vmem:[%s4663_s26 + $0x5c] sm:$0x1] }
  0x38   : > { %9811 = vst [vmem:[#allocation39_spill] sm:$0xff] %v4857_v36  ;;  %v4917_v36 = vmul.f32 %v4743_v52, %v4683_v25 }
  0x39   : > { %9812 = vst [vmem:[#allocation40_spill] sm:$0xff] %v4861_v57  ;;  %v4897_v57 = vld [vmem:[%s4663_s26 + $0x44] sm:$0x1] }
  0x3a   : > { %9813 = vst [vmem:[#allocation41_spill] sm:$0xff] %v4865_v55  ;;  %v4894_v55 = vld [vmem:[%s4663_s26 + $0x38] sm:$0x1] }
  0x3b   : > { %9814 = vst [vmem:[#allocation42_spill] sm:$0xff] %v4868_v49 }
  0x3c   : > { %9815 = vst [vmem:[#allocation43_spill] sm:$0xff] %v4871_v37 }
  0x3d   : > { %9816 = vst [vmem:[#allocation44_spill] sm:$0xff] %v4874_v22  ;;  %v5040_v22 = vmul.f32 %v4686_v26, %v9850_v50 }
  0x3e   : > { %9817 = vst [vmem:[#allocation45_spill] sm:$0xff] %v4878_v59  ;;  %v4900_v59 = vld [vmem:[%s4663_s26 + $0x50] sm:$0x1] }
  0x3f   : > { %9818 = vst [vmem:[#allocation46_spill] sm:$0xff] %v4883_v1  ;;  %v9852_v34 = vunpack.c.l.bf16 %v4900_v59 }
  0x40   : > { %9819 = vst [vmem:[#allocation47_spill] sm:$0xff] %v4887_v63  ;;  %v9825_v63 = vunpack.c.l.bf16 %v4735_v48 }
  0x41   : > { %9820 = vst [vmem:[#allocation48_spill] sm:$0xff] %v4891_v16  ;;  %v4913_v16 = vmul.f32 %v4683_v25, %v4768_v0  ;;  %v5062_v50 = vmul.f32 %v4686_v26, %v9852_v34  ;;  %v5084_v34 = vmul.f32 %v4720_v42, %v4686_v26 }
  0x42   : > { %9821 = vst [vmem:[#allocation49_spill] sm:$0xff] %v4894_v55  ;;  %v4909_v1 = vmul.f32 %v4683_v25, %v9825_v63  ;;  %v9833_v63 = vunpack.c.l.bf16 %v4748_v54 }
  0x43   : > { %9822 = vst [vmem:[#allocation50_spill] sm:$0xff] %v4897_v57 }
  0x44   : > { %9823 = vst [vmem:[#allocation51_spill] sm:$0xff] %v4900_v59  ;;  %v5080_v59 = vmul.f32 %v4718_v41, %v4686_v26  ;;  %v9857_v41 = vunpack.c.l.bf16 %v4926_v21 }
  0x45   : > { %9824 = vst [vmem:[#allocation52_spill] sm:$0xff] %v4904_v61  ;;  %v4930_v61 = vmul.f32 %v4745_v53, %v4683_v25 }
  0x46   : > { %9826 = vst [vmem:[#allocation53_spill] sm:$0xff] %v4909_v1  ;;  %v4935_v1 = vmul.f32 %v4683_v25, %v9833_v63  ;;  %v9844_v63 = vunpack.c.l.bf16 %v4676_v20  ;;  %v9846_v20 = vunpack.c.l.bf16 %v4871_v37  ;;  %v5026_v37 = vmul.f32 %v4698_v31, %v4686_v26 }
  0x47   : > { %9827 = vst [vmem:[#allocation54_spill] sm:$0xff] %v4913_v16  ;;  %v4939_v16 = vmul.f32 %v4683_v25, %v4772_v2  ;;  %v9847_v25 = vunpack.c.l.bf16 %v4696_v30  ;;  %v5030_v30 = vmul.f32 %v4701_v33, %v4686_v26  ;;  %v9851_v31 = vunpack.c.l.bf16 %v4897_v57 }
  0x48   : > { %9828 = vst [vmem:[#allocation55_spill] sm:$0xff] %v4917_v36  ;;  %v4942_v36 = vld [vmem:[%s4663_s26 + $0x80] sm:$0x1] }
  0x49   : > { %9829 = vst [vmem:[#allocation56_spill] sm:$0xff] %v4920_v32  ;;  %v5013_v49 = vmul.f32 %v4686_v26, %v9847_v25  ;;  %v9849_v25 = vunpack.c.l.bf16 %v4894_v55  ;;  %v5049_v29 = vmul.f32 %v4686_v26, %v9851_v31  ;;  %v5053_v55 = vmul.f32 %v4706_v35, %v4686_v26 }
  0x4a   : > { %9830 = vst [vmem:[#allocation57_spill] sm:$0xff] %v4923_v23  ;;  %v5071_v31 = vmul.f32 %v4686_v26, %v4756_v58  ;;  %v9854_v35 = vunpack.c.l.bf16 %v4920_v32  ;;  %v9856_v58 = vunpack.c.l.bf16 %v4723_v43  ;;  %v9858_v43 = vunpack.c.l.bf16 %v4942_v36 }
  0x4b   : > { %9831 = vst [vmem:[#allocation58_spill] sm:$0xff] %v4926_v21 }
  0x4c   : > { %9832 = vst [vmem:[#allocation59_spill] sm:$0xff] %v4930_v61  ;;  %v4955_v61 = vld [vmem:[%s4663_s26 + $0xb0] sm:$0x1]  ;;  %v5076_v33 = vmul.f32 %v4686_v26, %v9854_v35  ;;  %v5094_v32 = vmul.f32 %v4686_v26, %v9856_v58  ;;  %v5098_v35 = vmul.f32 %v4686_v26, %v4760_v60  ;;  %v5116_v58 = vmul.f32 %v4686_v26, %v9858_v43 }
  0x4d   : > { %9834 = vst [vmem:[#allocation60_spill] sm:$0xff] %v4935_v1  ;;  %v4986_v1 = vmul.f32 %v4686_v26, %v9844_v63  ;;  %v5008_v63 = vmul.f32 %v4686_v26, %v9846_v20  ;;  %v5035_v20 = vmul.f32 %v4686_v26, %v9849_v25  ;;  %v5057_v25 = vmul.f32 %v4713_v39, %v4686_v26 }
  0x4e   : > { %9835 = vst [vmem:[#allocation61_spill] sm:$0xff] %v4939_v16  ;;  %v4990_v16 = vmul.f32 %v4686_v26, %v4711_v38  ;;  %v5022_v38 = vmul.f32 %v4686_v26, %v9848_v28  ;;  %v5044_v28 = vmul.f32 %v4686_v26, %v4752_v56  ;;  %v9853_v56 = vunpack.c.l.bf16 %v4716_v40 }
  0x4f   : > { %9836 = vst [vmem:[#allocation62_spill] sm:$0xff] %v4942_v36  ;;  %v9855_v40 = vunpack.c.l.bf16 %v4923_v23  ;;  %v5103_v39 = vmul.f32 %v4686_v26, %v9857_v41  ;;  %v5107_v23 = vmul.f32 %v4725_v44, %v4686_v26  ;;  %v9859_v60 = vunpack.c.l.bf16 %v4730_v46 }
  0x50   : > { %9837 = vst [vmem:[#allocation63_spill] sm:$0xff] %v4945_v19  ;;  %v5067_v57 = vmul.f32 %v4686_v26, %v9853_v56  ;;  %v5125_v41 = vmul.f32 %v4686_v26, %v4764_v62  ;;  %v9860_v44 = vunpack.c.l.bf16 %v4945_v19  ;;  %v5134_v36 = vmul.f32 %v4732_v47, %v4686_v26 }
  0x51   : > { %9838 = vst [vmem:[#allocation64_spill] sm:$0xff] %v4948_v18  ;;  %v5089_v56 = vmul.f32 %v4686_v26, %v9855_v40  ;;  %v5111_v40 = vmul.f32 %v4727_v45, %v4686_v26  ;;  %v5121_v21 = vmul.f32 %v4686_v26, %v9859_v60  ;;  %v5138_v43 = vmul.f32 %v4741_v51, %v4686_v26 }
  0x52   : > { %9839 = vst [vmem:[#allocation65_spill] sm:$0xff] %v4952_v14  ;;  %v5130_v42 = vmul.f32 %v4686_v26, %v9860_v44  ;;  %v9861_v46 = vunpack.c.l.bf16 %v4948_v18  ;;  %v695_v62 = vrot.slane %v598_v15, 1  ;;  %v696_v45 = vrot.slane %v599_v10, 1 }
  0x53   : > { %9840 = vst [vmem:[#allocation66_spill] sm:$0xff] %v4955_v61  ;;  %v9862_v19 = vunpack.c.l.bf16 %v4735_v48  ;;  %v5152_v47 = vmul.f32 %v4686_v26, %v4768_v0  ;;  %v5157_v51 = vmul.f32 %v4686_v26, %v9863_v24  ;;  %v698_v18 = vrot.slane %v600_v8, 1 }
  0x54   : > { %9841 = vst [vmem:[#allocation67_spill] sm:$0xff] %v4958_v13  ;;  %v5143_v60 = vmul.f32 %v4686_v26, %v9861_v46  ;;  %v5161_v46 = vmul.f32 %v4743_v52, %v4686_v26  ;;  %v5165_v48 = vmul.f32 %v4745_v53, %v4686_v26  ;;  %v9864_v10 = vunpack.c.l.bf16 %v4955_v61 }
  0x55   : > { %v5148_v44 = vmul.f32 %v4686_v26, %v9862_v19  ;;  %v9865_v19 = vunpack.c.l.bf16 %v4748_v54  ;;  %v5179_v8 = vmul.f32 %v4686_v26, %v4772_v2  ;;  %v9866_v24 = vunpack.c.l.bf16 %v4958_v13 }
  0x56   : > { %v5170_v15 = vmul.f32 %v4686_v26, %v9864_v10  ;;  %v700_v53 = vrot.slane %v4986_v1, 1  ;;  %v701_v61 = vrot.slane %v4990_v16, 1  ;;  %v5189_v10 = vsel %vm694_vm0, %v695_v62, %v696_v45 }
  0x57   : > { %v5175_v14 = vmul.f32 %v4686_v26, %v9865_v19  ;;  %v5184_v52 = vmul.f32 %v4686_v26, %v9866_v24  ;;  %v703_v54 = vrot.slane %v4995_v17, 1  ;;  %v705_v19 = vrot.slane %v4999_v11, 1 }
  0x58   : > { %v706_v0 = vrot.slane %v5003_v9, 1  ;;  %v5195_v2 = vsel %vm694_vm0, %v696_v45, %v698_v18  ;;  %v708_v13 = vrot.slane %v5008_v63, 1  ;;  %v710_v26 = vrot.slane %v5013_v49, 1 }
  0x59   : > { %v711_v1 = vrot.slane %v5017_v12, 1  ;;  %v713_v16 = vrot.slane %v5022_v38, 1  ;;  %v715_v62 = vrot.slane %v5026_v37, 1  ;;  %v716_v24 = vrot.slane %v5030_v30, 1 }
  0x5a   : > { %v718_v17 = vrot.slane %v5035_v20, 1  ;;  %v720_v11 = vrot.slane %v5040_v22, 1  ;;  %v721_v9 = vrot.slane %v5044_v28, 1  ;;  %v723_v45 = vrot.slane %v5049_v29, 1 }
  0x5b   : > { %v725_v18 = vrot.slane %v5053_v55, 1  ;;  %v726_v49 = vrot.slane %v5057_v25, 1  ;;  %v728_v63 = vrot.slane %v5062_v50, 1  ;;  %v730_v38 = vrot.slane %v5067_v57, 1 }
  0x5c   : > { %v731_v37 = vrot.slane %v5071_v31, 1  ;;  %v702_v12 = vsel %vm694_vm0, %v700_v53, %v701_v61  ;;  %v733_v30 = vrot.slane %v5076_v33, 1  ;;  %v735_v22 = vrot.slane %v5080_v59, 1 }
  0x5d   : > { %v736_v20 = vrot.slane %v5084_v34, 1  ;;  %v704_v29 = vsel %vm694_vm0, %v701_v61, %v703_v54  ;;  %v707_v55 = vsel %vm694_vm0, %v705_v19, %v706_v0  ;;  %v709_v28 = vsel %vm694_vm0, %v706_v0, %v708_v13 }
  0x5e   : > { %v712_v25 = vsel %vm694_vm0, %v710_v26, %v711_v1  ;;  %v714_v57 = vsel %vm694_vm0, %v711_v1, %v713_v16  ;;  %v717_v50 = vsel %vm694_vm0, %v715_v62, %v716_v24  ;;  %v719_v53 = vsel %vm694_vm0, %v716_v24, %v718_v17 }
  0x5f   : > { %v722_v33 = vsel %vm694_vm0, %v720_v11, %v721_v9  ;;  %v724_v59 = vsel %vm694_vm0, %v721_v9, %v723_v45  ;;  %v727_v31 = vsel %vm694_vm0, %v725_v18, %v726_v49  ;;  %v729_v61 = vsel %vm694_vm0, %v726_v49, %v728_v63 }
  0x60   : > { %v732_v34 = vsel %vm694_vm0, %v730_v38, %v731_v37  ;;  %v734_v0 = vsel %vm694_vm0, %v731_v37, %v733_v30  ;;  %v737_v13 = vsel %vm694_vm0, %v735_v22, %v736_v20  ;;  %v738_v54 = vrot.slane %v5089_v56, 1 }
  0x61   : > { %v740_v19 = vrot.slane %v5094_v32, 1  ;;  %v741_v26 = vrot.slane %v5098_v35, 1  ;;  %v743_v1 = vrot.slane %v5103_v39, 1  ;;  %v745_v16 = vrot.slane %v5107_v23, 1 }
  0x62   : > { %v746_v62 = vrot.slane %v5111_v40, 1  ;;  %v748_v24 = vrot.slane %v5116_v58, 1  ;;  %v750_v17 = vrot.slane %v5121_v21, 1  ;;  %v751_v11 = vrot.slane %v5125_v41, 1 }
  0x63   : > { %v753_v9 = vrot.slane %v5130_v42, 1  ;;  %v755_v56 = vrot.slane %v5134_v36, 1  ;;  %v756_v32 = vrot.slane %v5138_v43, 1  ;;  %v758_v35 = vrot.slane %v5143_v60, 1 }
  0x64   : > { %v760_v39 = vrot.slane %v5148_v44, 1  ;;  %v761_v23 = vrot.slane %v5152_v47, 1  ;;  %v763_v40 = vrot.slane %v5157_v51, 1  ;;  %v765_v58 = vrot.slane %v5161_v46, 1 }
  0x65   : > { %v766_v21 = vrot.slane %v5165_v48, 1  ;;  %v739_v41 = vsel %vm694_vm0, %v736_v20, %v738_v54  ;;  %v768_v42 = vrot.slane %v5170_v15, 1  ;;  %v770_v36 = vrot.slane %v5175_v14, 1 }
  0x66   : > { %v771_v43 = vrot.slane %v5179_v8, 1  ;;  %v742_v60 = vsel %vm694_vm0, %v740_v19, %v741_v26  ;;  %v744_v44 = vsel %vm694_vm0, %v741_v26, %v743_v1  ;;  %v747_v47 = vsel %vm694_vm0, %v745_v16, %v746_v62  ;;  %v9867_v19 = vld [vmem:[#allocation25_spill] sm:$0xff]  ;;  %v9872_v1 = vld [vmem:[#allocation28_spill] sm:$0xff] }
  0x67   : > { %v773_v51 = vrot.slane %v5184_v52, 1  ;;  %v749_v46 = vsel %vm694_vm0, %v746_v62, %v748_v24  ;;  %v752_v48 = vsel %vm694_vm0, %v750_v17, %v751_v11  ;;  %v754_v45 = vsel %vm694_vm0, %v751_v11, %v753_v9  ;;  %v9884_v24 = vld [vmem:[#allocation34_spill] sm:$0xff]  ;;  %v9886_v17 = vld [vmem:[#allocation35_spill] sm:$0xff]  ;;  %v9888_v11 = vld [vmem:[#allocation36_spill] sm:$0xff] }
  0x68   : > { %v757_v15 = vsel %vm694_vm0, %v755_v56, %v756_v32  ;;  %v759_v14 = vsel %vm694_vm0, %v756_v32, %v758_v35  ;;  %v762_v8 = vsel %vm694_vm0, %v760_v39, %v761_v23  ;;  %v764_v18 = vsel %vm694_vm0, %v761_v23, %v763_v40  ;;  %v840_v9 = vld [vmem:[%s4663_s26 + $0xc] sm:$0xe]  ;;  %v9890_v56 = vld [vmem:[#allocation38_spill] sm:$0xff]  ;;  %v9894_v35 = vld [vmem:[#allocation40_spill] sm:$0xff] }
  0x69   : > { %v767_v49 = vsel %vm694_vm0, %v765_v58, %v766_v21  ;;  %v769_v63 = vsel %vm694_vm0, %v766_v21, %v768_v42  ;;  %v772_v52 = vsel %vm694_vm0, %v770_v36, %v771_v43  ;;  %v5268_v38 = vadd.f32 %v5189_v10, %v4777_v3  ;;  %v9868_v10 = vld [vmem:[#allocation26_spill] sm:$0xff]  ;;  %v9892_v32 = vld [vmem:[#allocation39_spill] sm:$0xff]  ;;  %v9896_v39 = vld [vmem:[#allocation41_spill] sm:$0xff] }
  0x6a   : > { %v5272_v37 = vadd.f32 %v5195_v2, %v4781_v4  ;;  %v774_v30 = vsel %vm694_vm0, %v771_v43, %v773_v51  ;;  %v5276_v22 = vadd.f32 %v702_v12, %v4786_v5  ;;  %v5279_v20 = vadd.f32 %v704_v29, %v4790_v6  ;;  %v9870_v2 = vld [vmem:[#allocation27_spill] sm:$0xff]  ;;  %v9874_v12 = vld [vmem:[#allocation29_spill] sm:$0xff]  ;;  %v9876_v29 = vld [vmem:[#allocation30_spill] sm:$0xff] }
  0x6b   : > { %v5282_v54 = vadd.f32 %v707_v55, %v4794_v7  ;;  %v5285_v3 = vadd.f32 %v709_v28, %v9867_v19  ;;  %v5288_v26 = vadd.f32 %v712_v25, %v9868_v10  ;;  %v5291_v4 = vadd.f32 %v714_v57, %v9870_v2  ;;  %v9878_v55 = vld [vmem:[#allocation31_spill] sm:$0xff]  ;;  %v9880_v25 = vld [vmem:[#allocation32_spill] sm:$0xff]  ;;  %v9882_v57 = vld [vmem:[#allocation33_spill] sm:$0xff] }
  0x6c   : > { %v5294_v5 = vadd.f32 %v717_v50, %v9872_v1  ;;  %v5297_v6 = vadd.f32 %v719_v53, %v9874_v12  ;;  %v5300_v7 = vadd.f32 %v722_v33, %v9876_v29  ;;  %v5303_v28 = vadd.f32 %v724_v59, %v9878_v55  ;;  %v839_v59 = vld [vmem:[%s4663_s26] sm:$0xe]  ;;  %v841_v23 = vld [vmem:[%s4663_s26 + $0x18] sm:$0xe]  ;;  %v843_v40 = vld [vmem:[%s4663_s26 + $0x30] sm:$0xe] }
  0x6d   : > { %9869 = vst [vmem:[#allocation25_spill] sm:$0xff] %v5288_v26  ;;  %v5306_v16 = vadd.f32 %v727_v31, %v9880_v25  ;;  %v5309_v62 = vadd.f32 %v729_v61, %v9882_v57  ;;  %v5312_v50 = vadd.f32 %v732_v34, %v9884_v24  ;;  %v5315_v53 = vadd.f32 %v734_v0, %v9886_v17  ;;  %v9898_v58 = vld [vmem:[#allocation45_spill] sm:$0xff]  ;;  %v9902_v36 = vld [vmem:[#allocation47_spill] sm:$0xff]  ;;  %v846_v19 = vld [vmem:[%s4663_s26 + $0x54] sm:$0xe] }
  0x6e   : > { %9871 = vst [vmem:[#allocation26_spill] sm:$0xff] %v5291_v4  ;;  %v5318_v33 = vadd.f32 %v737_v13, %v9888_v11  ;;  %v5323_v31 = vadd.f32 %v739_v41, %v9890_v56  ;;  %v5326_v61 = vadd.f32 %v742_v60, %v9892_v32  ;;  %v5329_v34 = vadd.f32 %v744_v44, %v9894_v35  ;;  %v842_v13 = vld [vmem:[%s4663_s26 + $0x24] sm:$0xe]  ;;  %v9904_v60 = vld [vmem:[#allocation48_spill] sm:$0xff]  ;;  %v845_v51 = vld [vmem:[%s4663_s26 + $0x48] sm:$0xe] }
  0x6f   : > { %9873 = vst [vmem:[#allocation27_spill] sm:$0xff] %v5294_v5  ;;  %v5332_v0 = vadd.f32 %v747_v47, %v9896_v39  ;;  %v5338_v21 = vadd.f32 %v749_v46, %v9898_v58  ;;  %v9900_v41 = vld [vmem:[#allocation46_spill] sm:$0xff]  ;;  %v5344_v43 = vadd.f32 %v754_v45, %v9902_v36  ;;  %v5347_v44 = vadd.f32 %v757_v15, %v9904_v60  ;;  %v844_v47 = vld [vmem:[%s4663_s26 + $0x3c] sm:$0xe]  ;;  %v9906_v10 = vld [vmem:[#allocation52_spill] sm:$0xff] }
  0x70   : > { %9875 = vst [vmem:[#allocation28_spill] sm:$0xff] %v5297_v6  ;;  %v5341_v42 = vadd.f32 %v752_v48, %v9900_v41  ;;  %v5353_v46 = vadd.f32 %v759_v14, %v9906_v10  ;;  %v9908_v2 = vld [vmem:[#allocation53_spill] sm:$0xff]  ;;  %v9910_v1 = vld [vmem:[#allocation54_spill] sm:$0xff]  ;;  %v9912_v45 = vld [vmem:[#allocation55_spill] sm:$0xff]  ;;  %v855_v35 = vunpack.c.l.bf16 %v839_v59  ;;  %v856_v58 = vunpack.c.l.bf16 %v840_v9 }
  0x71   : > { %9877 = vst [vmem:[#allocation29_spill] sm:$0xff] %v5300_v7  ;;  %v5356_v48 = vadd.f32 %v762_v8, %v9908_v2  ;;  %v5359_v12 = vadd.f32 %v764_v18, %v9910_v1  ;;  %v5362_v29 = vadd.f32 %v767_v49, %v9912_v45  ;;  %v847_v15 = vld [vmem:[%s4663_s26 + $0x60] sm:$0xe]  ;;  %v848_v55 = vld [vmem:[%s4663_s26 + $0x6c] sm:$0xe]  ;;  %v9916_v17 = vld [vmem:[#allocation60_spill] sm:$0xff]  ;;  %v857_v41 = vunpack.c.l.bf16 %v841_v23 }
  0x72   : > { %9879 = vst [vmem:[#allocation30_spill] sm:$0xff] %v5303_v28  ;;  %v849_v25 = vld [vmem:[%s4663_s26 + $0x78] sm:$0xe]  ;;  %v9914_v57 = vld [vmem:[#allocation59_spill] sm:$0xff]  ;;  %v5371_v11 = vadd.f32 %v772_v52, %v9916_v17  ;;  %v850_v8 = vld [vmem:[%s4663_s26 + $0x84] sm:$0xe]  ;;  %v859_v52 = vunpack.c.l.bf16 %v843_v40  ;;  %v860_v10 = vunpack.c.l.bf16 %v844_v47  ;;  %v861_v2 = vunpack.c.l.bf16 %v845_v51 }
  0x73   : > { %9881 = vst [vmem:[#allocation31_spill] sm:$0xff] %v5306_v16  ;;  %v5368_v24 = vadd.f32 %v769_v63, %v9914_v57  ;;  %v9918_v14 = vld [vmem:[#allocation61_spill] sm:$0xff]  ;;  %v851_v32 = vld [vmem:[%s4663_s26 + $0x90] sm:$0xe]  ;;  %v5382_v49 = vld [vmem:[%s4663_s26 + $0xa8] sm:$0xe]  ;;  %v858_v63 = vunpack.c.l.bf16 %v842_v13  ;;  %v863_v45 = vunpack.c.l.bf16 %v847_v15  ;;  %v864_v57 = vunpack.c.l.bf16 %v848_v55 }
  0x74   : > { %9883 = vst [vmem:[#allocation32_spill] sm:$0xff] %v5309_v62  ;;  %v5374_v56 = vadd.f32 %v774_v30, %v9918_v14  ;;  %v5379_v18 = vld [vmem:[%s4663_s26 + $0x9c] sm:$0xe]  ;;  %v5385_v39 = vld [vmem:[%s4663_s26 + $0xb4] sm:$0xe]  ;;  %v9920_v36 = vld [vmem:[#allocation2_spill] sm:$0xff]  ;;  %v862_v30 = vunpack.c.l.bf16 %v846_v19  ;;  %v865_v17 = vunpack.c.l.bf16 %v849_v25  ;;  %v866_v59 = vunpack.c.l.bf16 %v850_v8 }
  0x75   : > { %9885 = vst [vmem:[#allocation33_spill] sm:$0xff] %v5312_v50  ;;  %v5388_v60 = vperm.slane %v9920_v36, 2  ;;  %v5391_v1 = vld [vmem:[%s4663_s26 + $0xc] sm:$0xff]   ;;  %v867_v14 = vunpack.c.l.bf16 %v851_v32  ;;  %v869_v9 = vunpack.c.l.bf16 %v5382_v49  ;;  %v870_v23 = vunpack.c.l.bf16 %v5385_v39  ;;  %v9923_v19 = vld [vmem:[#allocation37_spill] sm:$0xff] }
  0x76   : > { %9887 = vst [vmem:[#allocation34_spill] sm:$0xff] %v5315_v53  ;;  %v5401_v51 = vunpack.c.h.bf16 %v5391_v1  ;;  %v9924_v15 = vunpack.c.l.bf16 %v9923_v19  ;;  %v9925_v8 = vld [vmem:[#allocation8_spill] sm:$0xff] }
  0x77   : > { %9889 = vst [vmem:[#allocation35_spill] sm:$0xff] %v5318_v33  ;;  %v872_v13 = vmul.f32 %v5388_v60, %v855_v35  ;;  %v873_v40 = vmul.f32 %v4689_v27, %v5388_v60  ;;  %v5407_v25 = vmul.f32 %v5388_v60, %v856_v58  ;;  %v5411_v32 = vmul.f32 %v5388_v60, %v9925_v8  ;;  %v9928_v39 = vld [vmem:[#allocation4_spill] sm:$0xff] }
  0x78   : > { %9891 = vst [vmem:[#allocation36_spill] sm:$0xff] %v5323_v31  ;;  %v874_v55 = vmul.f32 %v5388_v60, %v9924_v15  ;;  %v5419_v49 = vmul.f32 %v5388_v60, %v857_v41  ;;  %v5423_v19 = vmul.f32 %v9928_v39, %v5388_v60  ;;  %v9929_v15 = vld [vmem:[#allocation43_spill] sm:$0xff]  ;;  %v5431_v8 = vmul.f32 %v5388_v60, %v858_v63  ;;  %v9955_v31 = vld [vmem:[#allocation22_spill] sm:$0xff]  ;;  %v9967_v6 = vld [vmem:[#allocation24_spill] sm:$0xff] }
  0x79   : > { %9893 = vst [vmem:[#allocation38_spill] sm:$0xff] %v5326_v61  ;;  %v9930_v47 = vunpack.c.l.bf16 %v9929_v15  ;;  %v5443_v39 = vmul.f32 %v5388_v60, %v859_v52  ;;  %v9934_v15 = vld [vmem:[#allocation6_spill] sm:$0xff]  ;;  %v969_v62 = vrot.slane %v872_v13, 2  ;;  %v975_v4 = vrot.slane %v5411_v32, 2 }
  0x7a   : > { %9895 = vst [vmem:[#allocation39_spill] sm:$0xff] %v5329_v34  ;;  %v5447_v36 = vmul.f32 %v9934_v15, %v5388_v60  ;;  %v5467_v15 = vmul.f32 %v5388_v60, %v861_v2  ;;  %v972_v16 = vrot.slane %v874_v55, 2  ;;  %v980_v26 = vrot.slane %v5423_v19, 2 }
  0x7b   : > { %9897 = vst [vmem:[#allocation40_spill] sm:$0xff] %v5332_v0  ;;  %v5428_v58 = vmul.f32 %v5388_v60, %v9930_v47  ;;  %v9935_v47 = vld [vmem:[#allocation49_spill] sm:$0xff]  ;;  %v989_v32 = vrot.slane %v5443_v39, 2 }
  0x7c   : > { %9899 = vst [vmem:[#allocation41_spill] sm:$0xff] %v5338_v21  ;;  %v9936_v63 = vunpack.c.l.bf16 %v9935_v47  ;;  %v9940_v47 = vld [vmem:[#allocation9_spill] sm:$0xff] }
  0x7d   : > { %9901 = vst [vmem:[#allocation45_spill] sm:$0xff] %v5341_v42  ;;  %v9949_v21 = vld [vmem:[#allocation21_spill] sm:$0xff] }
  0x7e   : > { %9903 = vst [vmem:[#allocation46_spill] sm:$0xff] %v5344_v43 }
  0x7f   : > { %9905 = vst [vmem:[#allocation47_spill] sm:$0xff] %v5347_v44 }
  0x80   : > { %9907 = vst [vmem:[#allocation48_spill] sm:$0xff] %v5353_v46  ;;  %v9943_v46 = vld [vmem:[#allocation20_spill] sm:$0xff] }
  0x81   : > { %9909 = vst [vmem:[#allocation52_spill] sm:$0xff] %v5356_v48 }
  0x82   : > { %9911 = vst [vmem:[#allocation53_spill] sm:$0xff] %v5359_v12  ;;  %v5471_v12 = vmul.f32 %v9940_v47, %v5388_v60  ;;  %v5491_v47 = vmul.f32 %v5388_v60, %v863_v45 }
  0x83   : > { %9913 = vst [vmem:[#allocation54_spill] sm:$0xff] %v5362_v29 }
  0x84   : > { %9915 = vst [vmem:[#allocation55_spill] sm:$0xff] %v5368_v24  ;;  %v9938_v24 = vld [vmem:[#allocation50_spill] sm:$0xff] }
  0x85   : > { %9917 = vst [vmem:[#allocation59_spill] sm:$0xff] %v5371_v11  ;;  %v5452_v11 = vmul.f32 %v5388_v60, %v9936_v63  ;;  %v9939_v52 = vunpack.c.l.bf16 %v9938_v24  ;;  %v9941_v63 = vld [vmem:[#allocation51_spill] sm:$0xff]  ;;  %v5483_v24 = vmul.f32 %v5388_v60, %v9943_v46  ;;  %v5503_v46 = vmul.f32 %v5388_v60, %v864_v57 }
  0x86   : > { %9919 = vst [vmem:[#allocation60_spill] sm:$0xff] %v5374_v56  ;;  %v868_v56 = vunpack.c.l.bf16 %v5379_v18  ;;  %v9926_v18 = vld [vmem:[#allocation42_spill] sm:$0xff]  ;;  %v9942_v48 = vunpack.c.l.bf16 %v9941_v63  ;;  %v9946_v63 = vld [vmem:[#allocation11_spill] sm:$0xff] }
  0x87   : > { %9921 = vst [vmem:[#allocation61_spill] sm:$0xff] %v5391_v1  ;;  %v9927_v35 = vunpack.c.l.bf16 %v9926_v18  ;;  %v5464_v29 = vmul.f32 %v5388_v60, %v9939_v52  ;;  %v9944_v52 = vld [vmem:[#allocation56_spill] sm:$0xff]  ;;  %v5495_v43 = vmul.f32 %v9946_v63, %v5388_v60  ;;  %v5515_v63 = vmul.f32 %v5388_v60, %v865_v17 }
  0x88   : > { %9922 = vst [vmem:[#allocation68_spill] sm:$0xff] %v5401_v51  ;;  %v9931_v51 = vld [vmem:[#allocation15_spill] sm:$0xff]  ;;  %v9945_v44 = vunpack.c.l.bf16 %v9944_v52  ;;  %v5507_v52 = vmul.f32 %v5388_v60, %v9949_v21  ;;  %v5527_v21 = vmul.f32 %v5388_v60, %v866_v59  ;;  %v1005_v39 = vrot.slane %v5483_v24, 2 }
  0x89   : > { %v5416_v27 = vmul.f32 %v5388_v60, %v9927_v35  ;;  %v5435_v18 = vmul.f32 %v5388_v60, %v9931_v51  ;;  %v9932_v35 = vld [vmem:[#allocation44_spill] sm:$0xff]  ;;  %v5455_v51 = vmul.f32 %v5388_v60, %v860_v10  ;;  %v5476_v10 = vmul.f32 %v5388_v60, %v9942_v48  ;;  %v9947_v48 = vld [vmem:[#allocation57_spill] sm:$0xff] }
  0x8a   : > { %v9933_v1 = vunpack.c.l.bf16 %v9932_v35  ;;  %v9937_v35 = vld [vmem:[#allocation19_spill] sm:$0xff]  ;;  %v5488_v2 = vmul.f32 %v5388_v60, %v9945_v44  ;;  %v9948_v42 = vunpack.c.l.bf16 %v9947_v48  ;;  %v9950_v44 = vld [vmem:[#allocation58_spill] sm:$0xff]  ;;  %v9952_v48 = vld [vmem:[#allocation13_spill] sm:$0xff]  ;;  %v997_v19 = vrot.slane %v5464_v29, 2 }
  0x8b   : > { %v9951_v0 = vunpack.c.l.bf16 %v9950_v44  ;;  %v5519_v34 = vmul.f32 %v9952_v48, %v5388_v60  ;;  %v5531_v44 = vmul.f32 %v5388_v60, %v9955_v31  ;;  %v5539_v48 = vmul.f32 %v5388_v60, %v867_v14  ;;  %v9962_v14 = vld [vmem:[#allocation65_spill] sm:$0xff] }
  0x8c   : > { %v5440_v41 = vmul.f32 %v5388_v60, %v9933_v1  ;;  %v5459_v1 = vmul.f32 %v5388_v60, %v9937_v35  ;;  %v5479_v35 = vmul.f32 %v5388_v60, %v862_v30  ;;  %v5500_v30 = vmul.f32 %v5388_v60, %v9948_v42  ;;  %v9953_v42 = vld [vmem:[#allocation62_spill] sm:$0xff] }
  0x8d   : > { %v5512_v45 = vmul.f32 %v5388_v60, %v9951_v0  ;;  %v9954_v61 = vunpack.c.l.bf16 %v9953_v42  ;;  %v9956_v0 = vld [vmem:[#allocation63_spill] sm:$0xff]  ;;  %v9958_v42 = vld [vmem:[#allocation16_spill] sm:$0xff]  ;;  %v970_v31 = vrot.slane %v873_v40, 2  ;;  %v9963_v7 = vunpack.c.l.bf16 %v9962_v14  ;;  %v9965_v40 = vld [vmem:[#allocation66_spill] sm:$0xff] }
  0x8e   : > { %v9957_v33 = vunpack.c.l.bf16 %v9956_v0  ;;  %v5543_v53 = vmul.f32 %v9958_v42, %v5388_v60  ;;  %v5551_v0 = vmul.f32 %v5388_v60, %v868_v56  ;;  %v9966_v55 = vunpack.c.l.bf16 %v9965_v40 }
  0x8f   : > { %v5524_v57 = vmul.f32 %v5388_v60, %v9954_v61  ;;  %v9959_v61 = vld [vmem:[#allocation64_spill] sm:$0xff]  ;;  %v5560_v42 = vmul.f32 %v5388_v60, %v9963_v7  ;;  %v5579_v14 = vmul.f32 %v5388_v60, %v9967_v6  ;;  %v9968_v7 = vld [vmem:[#allocation67_spill] sm:$0xff]  ;;  %v977_v40 = vrot.slane %v5416_v27, 2 }
  0x90   : > { %v5536_v17 = vmul.f32 %v5388_v60, %v9957_v33  ;;  %v9960_v50 = vunpack.c.l.bf16 %v9959_v61  ;;  %v9961_v33 = vld [vmem:[#allocation23_spill] sm:$0xff]  ;;  %v5563_v61 = vmul.f32 %v5388_v60, %v869_v9  ;;  %v5572_v56 = vmul.f32 %v5388_v60, %v9966_v55 }
  0x91   : > { %v5555_v28 = vmul.f32 %v5388_v60, %v9961_v33  ;;  %v5575_v33 = vmul.f32 %v5388_v60, %v870_v23  ;;  %v9969_v5 = vunpack.c.l.bf16 %v9968_v7  ;;  %v5590_v55 = vsel %vm968_vm1, %v969_v62, %v970_v31 }
  0x92   : > { %v5548_v59 = vmul.f32 %v5388_v60, %v9960_v50  ;;  %v9964_v50 = vld [vmem:[#allocation18_spill] sm:$0xff]  ;;  %v5593_v23 = vsel %vm968_vm1, %v970_v31, %v972_v16  ;;  %v979_v6 = vrot.slane %v5419_v49, 2  ;;  %v982_v7 = vrot.slane %v5428_v58, 2 }
  0x93   : > { %v5567_v13 = vmul.f32 %v9964_v50, %v5388_v60  ;;  %v5584_v9 = vmul.f32 %v5388_v60, %v9969_v5  ;;  %v974_v50 = vrot.slane %v5407_v25, 2  ;;  %v984_v5 = vrot.slane %v5431_v8, 2 }
  0x94   : > { %v985_v60 = vrot.slane %v5435_v18, 2  ;;  %v987_v25 = vrot.slane %v5440_v41, 2  ;;  %v990_v62 = vrot.slane %v5447_v36, 2  ;;  %v992_v27 = vrot.slane %v5452_v11, 2 }
  0x95   : > { %v994_v16 = vrot.slane %v5455_v51, 2  ;;  %v995_v49 = vrot.slane %v5459_v1, 2  ;;  %v999_v58 = vrot.slane %v5467_v15, 2  ;;  %v1000_v8 = vrot.slane %v5471_v12, 2 }
  0x96   : > { %v1002_v18 = vrot.slane %v5476_v10, 2  ;;  %v1004_v41 = vrot.slane %v5479_v35, 2  ;;  %v1007_v36 = vrot.slane %v5488_v2, 2  ;;  %v976_v11 = vsel %vm968_vm1, %v974_v50, %v975_v4 }
  0x97   : > { %v978_v51 = vsel %vm968_vm1, %v975_v4, %v977_v40  ;;  %v1009_v1 = vrot.slane %v5491_v47, 2  ;;  %v1010_v29 = vrot.slane %v5495_v43, 2  ;;  %v981_v15 = vsel %vm968_vm1, %v979_v6, %v980_v26 }
  0x98   : > { %v983_v12 = vsel %vm968_vm1, %v980_v26, %v982_v7  ;;  %v986_v10 = vsel %vm968_vm1, %v984_v5, %v985_v60  ;;  %v988_v35 = vsel %vm968_vm1, %v985_v60, %v987_v25  ;;  %v991_v24 = vsel %vm968_vm1, %v989_v32, %v990_v62 }
  0x99   : > { %v993_v2 = vsel %vm968_vm1, %v990_v62, %v992_v27  ;;  %v996_v31 = vsel %vm968_vm1, %v994_v16, %v995_v49  ;;  %v998_v4 = vsel %vm968_vm1, %v995_v49, %v997_v19  ;;  %v1001_v47 = vsel %vm968_vm1, %v999_v58, %v1000_v8 }
  0x9a   : > { %v1003_v43 = vsel %vm968_vm1, %v1000_v8, %v1002_v18  ;;  %v1006_v50 = vsel %vm968_vm1, %v1004_v41, %v1005_v39  ;;  %v1008_v26 = vsel %vm968_vm1, %v1005_v39, %v1007_v36  ;;  %v1011_v40 = vsel %vm968_vm1, %v1009_v1, %v1010_v29 }
  0x9b   : > { %v1012_v6 = vrot.slane %v5500_v30, 2  ;;  %v1014_v7 = vrot.slane %v5503_v46, 2  ;;  %v1015_v5 = vrot.slane %v5507_v52, 2  ;;  %v1017_v60 = vrot.slane %v5512_v45, 2 }
  0x9c   : > { %v1019_v25 = vrot.slane %v5515_v63, 2  ;;  %v1020_v32 = vrot.slane %v5519_v34, 2  ;;  %v1022_v62 = vrot.slane %v5524_v57, 2  ;;  %v1024_v27 = vrot.slane %v5527_v21, 2 }
  0x9d   : > { %v1025_v16 = vrot.slane %v5531_v44, 2  ;;  %v1027_v49 = vrot.slane %v5536_v17, 2  ;;  %v1029_v30 = vrot.slane %v5539_v48, 2  ;;  %v1030_v46 = vrot.slane %v5543_v53, 2 }
  0x9e   : > { %v1032_v52 = vrot.slane %v5548_v59, 2  ;;  %v1034_v45 = vrot.slane %v5551_v0, 2  ;;  %v1035_v63 = vrot.slane %v5555_v28, 2  ;;  %v1037_v34 = vrot.slane %v5560_v42, 2 }
  0x9f   : > { %v1039_v57 = vrot.slane %v5563_v61, 2  ;;  %v1040_v21 = vrot.slane %v5567_v13, 2  ;;  %v1042_v44 = vrot.slane %v5572_v56, 2  ;;  %v1013_v17 = vsel %vm968_vm1, %v1010_v29, %v1012_v6 }
  0xa0   : > { %v1044_v48 = vrot.slane %v5575_v33, 2  ;;  %v1045_v53 = vrot.slane %v5579_v14, 2  ;;  %v1047_v59 = vrot.slane %v5584_v9, 2  ;;  %v1016_v0 = vsel %vm968_vm1, %v1014_v7, %v1015_v5 }
  0xa1   : > { %v1018_v28 = vsel %vm968_vm1, %v1015_v5, %v1017_v60  ;;  %v1021_v42 = vsel %vm968_vm1, %v1019_v25, %v1020_v32  ;;  %v1023_v61 = vsel %vm968_vm1, %v1020_v32, %v1022_v62  ;;  %v1026_v13 = vsel %vm968_vm1, %v1024_v27, %v1025_v16  ;;  %v9970_v5 = vld [vmem:[#allocation25_spill] sm:$0xff]  ;;  %v9979_v32 = vld [vmem:[#allocation34_spill] sm:$0xff]  ;;  %v9980_v62 = vld [vmem:[#allocation35_spill] sm:$0xff] }
  0xa2   : > { %v1028_v56 = vsel %vm968_vm1, %v1025_v16, %v1027_v49  ;;  %v1031_v19 = vsel %vm968_vm1, %v1029_v30, %v1030_v46  ;;  %v1033_v33 = vsel %vm968_vm1, %v1030_v46, %v1032_v52  ;;  %v1036_v14 = vsel %vm968_vm1, %v1034_v45, %v1035_v63  ;;  %v9978_v25 = vld [vmem:[#allocation33_spill] sm:$0xff]  ;;  %v9981_v27 = vld [vmem:[#allocation36_spill] sm:$0xff]  ;;  %v9982_v16 = vld [vmem:[#allocation38_spill] sm:$0xff] }
  0xa3   : > { %v1038_v9 = vsel %vm968_vm1, %v1035_v63, %v1037_v34  ;;  %v1041_v58 = vsel %vm968_vm1, %v1039_v57, %v1040_v21  ;;  %v1043_v8 = vsel %vm968_vm1, %v1040_v21, %v1042_v44  ;;  %v1046_v18 = vsel %vm968_vm1, %v1044_v48, %v1045_v53  ;;  %v9983_v49 = vld [vmem:[#allocation39_spill] sm:$0xff]  ;;  %v9985_v30 = vld [vmem:[#allocation40_spill] sm:$0xff]  ;;  %v9987_v46 = vld [vmem:[#allocation41_spill] sm:$0xff] }
  0xa4   : > { %v1048_v41 = vsel %vm968_vm1, %v1045_v53, %v1047_v59  ;;  %v5669_v39 = vadd.f32 %v5590_v55, %v5268_v38  ;;  %v5673_v36 = vadd.f32 %v5593_v23, %v5272_v37  ;;  %v5676_v1 = vadd.f32 %v976_v11, %v5276_v22  ;;  %v9971_v38 = vld [vmem:[#allocation26_spill] sm:$0xff]  ;;  %v9972_v37 = vld [vmem:[#allocation27_spill] sm:$0xff]  ;;  %v9973_v22 = vld [vmem:[#allocation28_spill] sm:$0xff] }
  0xa5   : > { %v5679_v29 = vadd.f32 %v978_v51, %v5279_v20  ;;  %v5682_v6 = vadd.f32 %v981_v15, %v5282_v54  ;;  %v5685_v7 = vadd.f32 %v983_v12, %v5285_v3  ;;  %v5688_v60 = vadd.f32 %v986_v10, %v9970_v5  ;;  %v9974_v20 = vld [vmem:[#allocation29_spill] sm:$0xff]  ;;  %v9975_v54 = vld [vmem:[#allocation30_spill] sm:$0xff]  ;;  %v9976_v3 = vld [vmem:[#allocation31_spill] sm:$0xff] }
  0xa6   : > { %v5691_v55 = vadd.f32 %v988_v35, %v9971_v38  ;;  %v5694_v23 = vadd.f32 %v991_v24, %v9972_v37  ;;  %v5697_v11 = vadd.f32 %v993_v2, %v9973_v22  ;;  %v5700_v51 = vadd.f32 %v996_v31, %v9974_v20  ;;  %v9977_v10 = vld [vmem:[#allocation32_spill] sm:$0xff]  ;;  %v9989_v52 = vld [vmem:[#allocation45_spill] sm:$0xff]  ;;  %v9991_v63 = vld [vmem:[#allocation46_spill] sm:$0xff] }
  0xa7   : > { %v5703_v15 = vadd.f32 %v998_v4, %v9975_v54  ;;  %v5706_v12 = vadd.f32 %v1001_v47, %v9976_v3  ;;  %v5709_v35 = vadd.f32 %v1003_v43, %v9977_v10  ;;  %v5712_v24 = vadd.f32 %v1006_v50, %v9978_v25  ;;  %v9993_v57 = vld [vmem:[#allocation47_spill] sm:$0xff]  ;;  %v9995_v44 = vld [vmem:[#allocation48_spill] sm:$0xff]  ;;  %v5752_v53 = vld [vmem:[%s4663_s26 + $0x3c] sm:$0xff]  }
  0xa8   : > { %v5715_v2 = vadd.f32 %v1008_v26, %v9979_v32  ;;  %v5718_v31 = vadd.f32 %v1011_v40, %v9980_v62  ;;  %v5721_v4 = vadd.f32 %v1013_v17, %v9981_v27  ;;  %v5724_v47 = vadd.f32 %v1016_v0, %v9982_v16  ;;  %v4306_v40 = vld [vmem:[%s4663_s26 + $0xc0] sm:$0xff]   ;;  %9998 = vst [vmem:[#allocation50_spill] sm:$0xff] %v5752_v53  ;;  %v9999_v59 = vld [vmem:[#allocation52_spill] sm:$0xff]  ;;  %v10009_v38 = vld [vmem:[#allocation59_spill] sm:$0xff] }
  0xa9   : > { %v5727_v43 = vadd.f32 %v1018_v28, %v9983_v49  ;;  %v5730_v50 = vadd.f32 %v1021_v42, %v9985_v30  ;;  %v5733_v26 = vadd.f32 %v1023_v61, %v9987_v46  ;;  %v5737_v45 = vadd.f32 %v1026_v13, %v9989_v52  ;;  %v5749_v48 = vld [vmem:[%s4663_s26 + $0x24] sm:$0xff]   ;;  %v10001_v28 = vld [vmem:[#allocation53_spill] sm:$0xff]  ;;  %v5770_v5 = vld [vmem:[%s4663_s26 + $0x6c] sm:$0xff]  }
  0xaa   : > { %v5740_v34 = vadd.f32 %v1028_v56, %v9991_v63  ;;  %v5743_v21 = vadd.f32 %v1031_v19, %v9993_v57  ;;  %v5746_v17 = vadd.f32 %v1033_v33, %v9995_v44  ;;  %9997 = vst [vmem:[#allocation19_spill] sm:$0xff] %v5749_v48  ;;  %v5755_v0 = vadd.f32 %v1036_v14, %v9999_v59  ;;  %v10003_v61 = vld [vmem:[#allocation54_spill] sm:$0xff]  ;;  %v10005_v56 = vld [vmem:[#allocation55_spill] sm:$0xff]  ;;  %v5767_v33 = vld [vmem:[%s4663_s26 + $0x54] sm:$0xff]  }
  0xab   : > { %9984 = vst [vmem:[#allocation37_spill] sm:$0xff] %v5727_v43  ;;  %v5758_v42 = vadd.f32 %v1038_v9, %v10001_v28  ;;  %v5761_v13 = vadd.f32 %v1041_v58, %v10003_v61  ;;  %v5764_v19 = vadd.f32 %v1043_v8, %v10005_v56  ;;  %v5773_v37 = vadd.f32 %v1046_v18, %v10009_v38  ;;  %v10011_v14 = vld [vmem:[#allocation60_spill] sm:$0xff]  ;;  %v5779_v9 = vld [vmem:[%s4663_s26 + $0x84] sm:$0xff]   ;;  %v5782_v58 = vld [vmem:[%s4663_s26 + $0x9c] sm:$0xff]  }
  0xac   : > { %9986 = vst [vmem:[#allocation8_spill] sm:$0xff] %v5730_v50  ;;  %v5776_v22 = vadd.f32 %v1048_v41, %v10011_v14  ;;  %v5785_v20 = vld [vmem:[%s4663_s26 + $0xb4] sm:$0xff]   ;;  %v5787_v8 = vunpack.c.l.bf16 %v4306_v40  ;;  %v5789_v54 = vunpack.c.h.bf16 %v4306_v40  ;;  %v5793_v18 = vunpack.c.h.bf16 %v5749_v48  ;;  %v5803_v32 = vld [vmem:[%s4663_s26 + $0x20] sm:$0x1]  ;;  %v5806_v62 = vld [vmem:[%s4663_s26 + $0x2c] sm:$0x1] }
  0xad   : > { %9988 = vst [vmem:[#allocation42_spill] sm:$0xff] %v5733_v26  ;;  %v5797_v10 = vunpack.c.h.bf16 %v5752_v53  ;;  %v5800_v25 = vld [vmem:[%s4663_s26 + $0x14] sm:$0x1]  ;;  %v5810_v16 = vunpack.c.h.bf16 %v5767_v33  ;;  %v10021_v30 = vld [vmem:[#allocation2_spill] sm:$0xff]  ;;  %v5815_v40 = vld [vmem:[%s4663_s26 + $0x38] sm:$0x1]  ;;  %v5821_v63 = vunpack.c.h.bf16 %v5770_v5  ;;  %v5825_v44 = vunpack.c.h.bf16 %v5779_v9 }
  0xae   : > { %9990 = vst [vmem:[#allocation43_spill] sm:$0xff] %v5737_v45  ;;  %v1178_v46 = vperm.slane %v10021_v30, 3  ;;  %v5818_v52 = vld [vmem:[%s4663_s26 + $0x44] sm:$0x1]  ;;  %v5829_v28 = vld [vmem:[%s4663_s26 + $0x50] sm:$0x1]  ;;  %v5835_v56 = vunpack.c.h.bf16 %v5782_v58  ;;  %v5839_v14 = vunpack.c.h.bf16 %v5785_v20  ;;  %v10035_v57 = vunpack.c.l.bf16 %v5749_v48 }
  0xaf   : > { %9992 = vst [vmem:[#allocation15_spill] sm:$0xff] %v5740_v34  ;;  %v5832_v61 = vld [vmem:[%s4663_s26 + $0x5c] sm:$0x1]  ;;  %v10034_v30 = vld [vmem:[#allocation4_spill] sm:$0xff]  ;;  %v10042_v48 = vld [vmem:[#allocation10_spill] sm:$0xff] }
  0xb0   : > { %9994 = vst [vmem:[#allocation44_spill] sm:$0xff] %v5743_v21  ;;  %v10030_v41 = vld [vmem:[#allocation61_spill] sm:$0xff]  ;;  %v1183_v49 = vmul.f32 %v1178_v46, %v10035_v57  ;;  %v1184_v59 = vmul.f32 %v1178_v46, %v5793_v18  ;;  %v1188_v38 = vmul.f32 %v1178_v46, %v5797_v10  ;;  %v1192_v57 = vmul.f32 %v1178_v46, %v5810_v16  ;;  %v10049_v45 = vld [vmem:[#allocation16_spill] sm:$0xff]  ;;  %v10052_v50 = vld [vmem:[#allocation18_spill] sm:$0xff] }
  0xb1   : > { %9996 = vst [vmem:[#allocation49_spill] sm:$0xff] %v5746_v17  ;;  %v10031_v3 = vunpack.c.l.bf16 %v10030_v41  ;;  %v10043_v41 = vld [vmem:[#allocation11_spill] sm:$0xff]  ;;  %v10046_v21 = vld [vmem:[#allocation13_spill] sm:$0xff] }
  0xb2   : > { %10000 = vst [vmem:[#allocation51_spill] sm:$0xff] %v5755_v0 }
  0xb3   : > { %10002 = vst [vmem:[#allocation20_spill] sm:$0xff] %v5758_v42  ;;  %v10033_v42 = vld [vmem:[#allocation3_spill] sm:$0xff] }
  0xb4   : > { %10004 = vst [vmem:[#allocation56_spill] sm:$0xff] %v5761_v13  ;;  %v1181_v0 = vmul.f32 %v10033_v42, %v1178_v46 }
  0xb5   : > { %10006 = vst [vmem:[#allocation57_spill] sm:$0xff] %v5764_v19 }
  0xb6   : > { %10007 = vst [vmem:[#allocation21_spill] sm:$0xff] %v5767_v33 }
  0xb7   : > { %10008 = vst [vmem:[#allocation58_spill] sm:$0xff] %v5770_v5 }
  0xb8   : > { %10010 = vst [vmem:[#allocation62_spill] sm:$0xff] %v5773_v37  ;;  %v10032_v37 = vld [vmem:[#allocation68_spill] sm:$0xff] }
  0xb9   : > { %10012 = vst [vmem:[#allocation22_spill] sm:$0xff] %v5776_v22  ;;  %v1179_v22 = vmul.f32 %v1178_v46, %v10031_v3  ;;  %v1180_v19 = vmul.f32 %v1178_v46, %v10032_v37  ;;  %v10038_v3 = vunpack.c.l.bf16 %v5752_v53  ;;  %v10045_v53 = vld [vmem:[#allocation12_spill] sm:$0xff] }
  0xba   : > { %10013 = vst [vmem:[#allocation63_spill] sm:$0xff] %v5787_v8 }
  0xbb   : > { %10014 = vst [vmem:[#allocation64_spill] sm:$0xff] %v5789_v54 }
  0xbc   : > { %10015 = vst [vmem:[#allocation23_spill] sm:$0xff] %v5793_v18  ;;  %v1193_v18 = vmul.f32 %v10042_v48, %v1178_v46  ;;  %v1202_v48 = vmul.f32 %v10049_v45, %v1178_v46  ;;  %v5889_v45 = vadd.f32 %v1179_v22, %v5669_v39 }
  0xbd   : > { %10016 = vst [vmem:[#allocation65_spill] sm:$0xff] %v5797_v10  ;;  %v1197_v10 = vmul.f32 %v10045_v53, %v1178_v46  ;;  %v1206_v53 = vmul.f32 %v10052_v50, %v1178_v46 }
  0xbe   : > { %10017 = vst [vmem:[#allocation66_spill] sm:$0xff] %v5800_v25  ;;  %v1182_v25 = vmul.f32 %v10034_v30, %v1178_v46  ;;  %v10041_v30 = vunpack.c.l.bf16 %v5767_v33  ;;  %v10048_v33 = vld [vmem:[#allocation14_spill] sm:$0xff] }
  0xbf   : > { %10018 = vst [vmem:[#allocation24_spill] sm:$0xff] %v5803_v32  ;;  %v1187_v32 = vmul.f32 %v1178_v46, %v10038_v3  ;;  %v1196_v3 = vmul.f32 %v1178_v46, %v5821_v63 }
  0xc0   : > { %10019 = vst [vmem:[#allocation67_spill] sm:$0xff] %v5806_v62  ;;  %v1191_v37 = vmul.f32 %v1178_v46, %v10041_v30  ;;  %v1200_v30 = vmul.f32 %v1178_v46, %v5825_v44  ;;  %v5898_v50 = vadd.f32 %v1182_v25, %v5679_v29 }
  0xc1   : > { %10020 = vst [vmem:[#allocation25_spill] sm:$0xff] %v5810_v16  ;;  %v1201_v16 = vmul.f32 %v10048_v33, %v1178_v46  ;;  %v1210_v33 = vmul.f32 %v5789_v54, %v1178_v46 }
  0xc2   : > { %10022 = vst [vmem:[#allocation26_spill] sm:$0xff] %v5815_v40  ;;  %v10036_v40 = vld [vmem:[#allocation5_spill] sm:$0xff] }
  0xc3   : > { %10023 = vst [vmem:[#allocation27_spill] sm:$0xff] %v5818_v52  ;;  %v1185_v27 = vmul.f32 %v10036_v40, %v1178_v46  ;;  %v10037_v52 = vld [vmem:[#allocation6_spill] sm:$0xff]  ;;  %v1194_v40 = vmul.f32 %v10043_v41, %v1178_v46  ;;  %v10050_v41 = vunpack.c.l.bf16 %v5782_v58 }
  0xc4   : > { %10024 = vst [vmem:[#allocation28_spill] sm:$0xff] %v5821_v63  ;;  %v1186_v62 = vmul.f32 %v10037_v52, %v1178_v46  ;;  %v10044_v52 = vunpack.c.l.bf16 %v5770_v5  ;;  %v10051_v5 = vld [vmem:[#allocation17_spill] sm:$0xff] }
  0xc5   : > { %10025 = vst [vmem:[#allocation29_spill] sm:$0xff] %v5825_v44  ;;  %v1203_v26 = vmul.f32 %v1178_v46, %v10050_v41  ;;  %v1205_v63 = vmul.f32 %v10051_v5, %v1178_v46  ;;  %v1209_v44 = vmul.f32 %v5787_v8, %v1178_v46  ;;  %v5892_v41 = vadd.f32 %v1180_v19, %v5673_v36  ;;  %v10077_v19 = vld [vmem:[#allocation43_spill] sm:$0xff] }
  0xc6   : > { %10026 = vst [vmem:[#allocation30_spill] sm:$0xff] %v5829_v28  ;;  %v10039_v28 = vld [vmem:[#allocation7_spill] sm:$0xff]  ;;  %v1195_v17 = vmul.f32 %v1178_v46, %v10044_v52  ;;  %v1204_v52 = vmul.f32 %v1178_v46, %v5835_v56  ;;  %v5904_v8 = vadd.f32 %v1184_v59, %v5685_v7  ;;  %v5910_v39 = vadd.f32 %v1186_v62, %v5691_v55  ;;  %v5982_v62 = vld [vmem:[%s4663_s26 + $0xa4] sm:$0x1]  ;;  %v10092_v59 = vld [vmem:[#allocation56_spill] sm:$0xff] }
  0xc7   : > { %10027 = vst [vmem:[#allocation31_spill] sm:$0xff] %v5832_v61  ;;  %v1189_v13 = vmul.f32 %v10039_v28, %v1178_v46  ;;  %v10040_v61 = vld [vmem:[#allocation9_spill] sm:$0xff]  ;;  %v1198_v28 = vmul.f32 %v10046_v21, %v1178_v46  ;;  %v10053_v21 = vunpack.c.l.bf16 %v5785_v20  ;;  %v5913_v36 = vadd.f32 %v1187_v32, %v5694_v23 }
  0xc8   : > { %10028 = vst [vmem:[#allocation32_spill] sm:$0xff] %v5835_v56  ;;  %v1190_v42 = vmul.f32 %v10040_v61, %v1178_v46  ;;  %v10047_v61 = vunpack.c.l.bf16 %v5779_v9  ;;  %v5895_v56 = vadd.f32 %v1181_v0, %v5676_v1  ;;  %v5916_v1 = vadd.f32 %v1188_v38, %v5697_v11  ;;  %v10070_v0 = vld [vmem:[#allocation8_spill] sm:$0xff]  ;;  %v5979_v32 = vld [vmem:[%s4663_s26 + $0x98] sm:$0x1]  ;;  %v6000_v38 = vld [vmem:[%s4663_s26 + $0xc8] sm:$0x1] }
  0xc9   : > { %10029 = vst [vmem:[#allocation33_spill] sm:$0xff] %v5839_v14  ;;  %v1207_v43 = vmul.f32 %v1178_v46, %v10053_v21  ;;  %v5901_v21 = vadd.f32 %v1183_v49, %v5682_v6  ;;  %v5919_v29 = vadd.f32 %v1189_v13, %v5700_v51  ;;  %v5925_v7 = vadd.f32 %v1191_v37, %v5706_v12  ;;  %v5964_v13 = vld [vmem:[%s4663_s26 + $0x8c] sm:$0x1] }
  0xca   : > { %v1199_v34 = vmul.f32 %v1178_v46, %v10047_v61  ;;  %v1208_v61 = vmul.f32 %v1178_v46, %v5839_v14  ;;  %v5907_v46 = vadd.f32 %v1185_v27, %v5688_v60  ;;  %10055 = vst [vmem:[#allocation35_spill] sm:$0xff] %v5910_v39  ;;  %v5922_v6 = vadd.f32 %v1190_v42, %v5703_v15  ;;  %v5943_v15 = vld [vmem:[%s4663_s26 + $0x68] sm:$0x1]  ;;  %v10072_v42 = vld [vmem:[#allocation42_spill] sm:$0xff]  ;;  %v5985_v27 = vld [vmem:[%s4663_s26 + $0xb0] sm:$0x1] }
  0xcb   : > { %10056 = vst [vmem:[#allocation36_spill] sm:$0xff] %v5913_v36  ;;  %v5928_v60 = vadd.f32 %v1192_v57, %v5709_v35  ;;  %v5931_v55 = vadd.f32 %v1193_v18, %v5712_v24  ;;  %v5934_v23 = vadd.f32 %v1194_v40, %v5715_v2  ;;  %v5937_v11 = vadd.f32 %v1195_v17, %v5718_v31  ;;  %v10068_v35 = vld [vmem:[#allocation37_spill] sm:$0xff]  ;;  %v5958_v17 = vld [vmem:[%s4663_s26 + $0x74] sm:$0x1]  ;;  %v10079_v37 = vld [vmem:[#allocation15_spill] sm:$0xff] }
  0xcc   : > { %10054 = vst [vmem:[#allocation34_spill] sm:$0xff] %v5907_v46  ;;  %v5940_v51 = vadd.f32 %v1196_v3, %v5721_v4  ;;  %v5946_v12 = vadd.f32 %v1197_v10, %v5724_v47  ;;  %v5949_v24 = vadd.f32 %v1198_v28, %v10068_v35  ;;  %v5952_v2 = vadd.f32 %v1199_v34, %v10070_v0  ;;  %v5961_v4 = vld [vmem:[%s4663_s26 + $0x80] sm:$0x1]  ;;  %v10081_v18 = vld [vmem:[#allocation44_spill] sm:$0xff]  ;;  %v10083_v34 = vld [vmem:[#allocation49_spill] sm:$0xff] }
  0xcd   : > { %10057 = vst [vmem:[#allocation38_spill] sm:$0xff] %v5916_v1  ;;  %v5955_v31 = vadd.f32 %v1200_v30, %v10072_v42  ;;  %v5967_v47 = vadd.f32 %v1201_v16, %v10077_v19  ;;  %v5970_v22 = vadd.f32 %v1202_v48, %v10079_v37  ;;  %v5973_v10 = vadd.f32 %v1203_v26, %v10081_v18  ;;  %v10088_v49 = vld [vmem:[#allocation51_spill] sm:$0xff]  ;;  %v10090_v40 = vld [vmem:[#allocation20_spill] sm:$0xff]  ;;  %v5997_v28 = vld [vmem:[%s4663_s26 + $0xbc] sm:$0x1] }
  0xce   : > { %10058 = vst [vmem:[#allocation39_spill] sm:$0xff] %v5919_v29  ;;  %v5976_v25 = vadd.f32 %v1204_v52, %v10083_v34  ;;  %v5988_v16 = vadd.f32 %v1205_v63, %v10088_v49  ;;  %v5991_v48 = vadd.f32 %v1206_v53, %v10090_v40  ;;  %v5994_v26 = vadd.f32 %v1207_v43, %v10092_v59  ;;  %v6005_v57 = vld [vmem:[%s9540_s1] sm:$0xff]  ;;  %v10097_v63 = vld [vmem:[#allocation57_spill] sm:$0xff]  ;;  %v6021_v42 = vld [vmem:[%s4663_s26 + $0xc] sm:$0xe] }
  0xcf   : > { %10059 = vst [vmem:[#allocation40_spill] sm:$0xff] %v5922_v6  ;;  %v6008_v3 = vperm.slane %v6005_v57, 4  ;;  %v6011_v30 = vadd.f32 %v1208_v61, %v10097_v63  ;;  %v10099_v53 = vld [vmem:[#allocation62_spill] sm:$0xff]  ;;  %v6024_v19 = vld [vmem:[%s4663_s26 + $0x18] sm:$0xe]  ;;  %v10110_v49 = vld [vmem:[#allocation3_spill] sm:$0xff]  ;;  %v10157_v39 = vunpack.c.l.bf16 %v5985_v27 }
  0xd0   : > { %10060 = vst [vmem:[#allocation41_spill] sm:$0xff] %v5925_v7  ;;  %v6014_v52 = vadd.f32 %v1209_v44, %v10099_v53  ;;  %v10101_v43 = vld [vmem:[#allocation22_spill] sm:$0xff]  ;;  %v10105_v59 = vld [vmem:[#allocation61_spill] sm:$0xff]  ;;  %v10111_v40 = vld [vmem:[#allocation4_spill] sm:$0xff] }
  0xd1   : > { %10061 = vst [vmem:[#allocation45_spill] sm:$0xff] %v5928_v60  ;;  %v6017_v35 = vadd.f32 %v1210_v33, %v10101_v43  ;;  %v10106_v63 = vunpack.c.l.bf16 %v10105_v59  ;;  %v10107_v43 = vld [vmem:[#allocation68_spill] sm:$0xff]  ;;  %v10108_v61 = vld [vmem:[#allocation66_spill] sm:$0xff]  ;;  %v6046_v33 = vmul.f32 %v10110_v49, %v6008_v3  ;;  %v6050_v59 = vmul.f32 %v10111_v40, %v6008_v3  ;;  %v10114_v18 = vld [vmem:[#allocation19_spill] sm:$0xff] }
  0xd2   : > { %10062 = vst [vmem:[#allocation46_spill] sm:$0xff] %v5931_v55  ;;  %v1277_v37 = vmul.f32 %v6008_v3, %v10107_v43  ;;  %v10109_v0 = vunpack.c.l.bf16 %v10108_v61  ;;  %v10117_v49 = vld [vmem:[#allocation67_spill] sm:$0xff]  ;;  %v10119_v40 = vld [vmem:[#allocation5_spill] sm:$0xff] }
  0xd3   : > { %10063 = vst [vmem:[#allocation47_spill] sm:$0xff] %v5934_v23  ;;  %v1276_v53 = vmul.f32 %v6008_v3, %v10106_v63  ;;  %v10112_v63 = vld [vmem:[#allocation24_spill] sm:$0xff]  ;;  %v10118_v61 = vunpack.c.l.bf16 %v10117_v49 }
  0xd4   : > { %10064 = vst [vmem:[#allocation48_spill] sm:$0xff] %v5937_v11  ;;  %v1278_v44 = vmul.f32 %v6008_v3, %v10109_v0  ;;  %v1373_v36 = vrot.slane %v1277_v37, 1  ;;  %v6226_v37 = vmul.f32 %v6008_v3, %v5839_v14  ;;  %v1377_v14 = vrot.slane %v6046_v33, 1 }
  0xd5   : > { %10065 = vst [vmem:[#allocation52_spill] sm:$0xff] %v5940_v51 }
  0xd6   : > { %10066 = vst [vmem:[#allocation53_spill] sm:$0xff] %v5943_v15 }
  0xd7   : > { %10067 = vst [vmem:[#allocation54_spill] sm:$0xff] %v5946_v12 }
  0xd8   : > { %10069 = vst [vmem:[#allocation55_spill] sm:$0xff] %v5949_v24 }
  0xd9   : > { %10071 = vst [vmem:[#allocation59_spill] sm:$0xff] %v5952_v2 }
  0xda   : > { %10073 = vst [vmem:[#allocation60_spill] sm:$0xff] %v5955_v31 }
  0xdb   : > { %10074 = vst [vmem:[#allocation2_spill] sm:$0xff] %v5958_v17 }
  0xdc   : > { %10075 = vst [vmem:[#allocation17_spill] sm:$0xff] %v5961_v4 }
  0xdd   : > { %10076 = vst [vmem:[#allocation37_spill] sm:$0xff] %v5964_v13 }
  0xde   : > { %10078 = vst [vmem:[#allocation8_spill] sm:$0xff] %v5967_v47 }
  0xdf   : > { %10080 = vst [vmem:[#allocation42_spill] sm:$0xff] %v5970_v22 }
  0xe0   : > { %10082 = vst [vmem:[#allocation43_spill] sm:$0xff] %v5973_v10 }
  0xe1   : > { %10084 = vst [vmem:[#allocation15_spill] sm:$0xff] %v5976_v25 }
  0xe2   : > { %10085 = vst [vmem:[#allocation44_spill] sm:$0xff] %v5979_v32 }
  0xe3   : > { %10086 = vst [vmem:[#allocation49_spill] sm:$0xff] %v5982_v62 }
  0xe4   : > { %10087 = vst [vmem:[#allocation69_spill] sm:$0xff] %v5985_v27 }
  0xe5   : > { %10089 = vst [vmem:[#allocation51_spill] sm:$0xff] %v5988_v16 }
  0xe6   : > { %10091 = vst [vmem:[#allocation20_spill] sm:$0xff] %v5991_v48 }
  0xe7   : > { %10093 = vst [vmem:[#allocation56_spill] sm:$0xff] %v5994_v26 }
  0xe8   : > { %10094 = vst [vmem:[#allocation70_spill] sm:$0xff] %v5997_v28 }
  0xe9   : > { %10095 = vst [vmem:[#allocation71_spill] sm:$0xff] %v6000_v38 }
  0xea   : > { %10096 = vst [vmem:[#allocation72_spill] sm:$0xff] %v6005_v57  ;;  %v10113_v57 = vunpack.c.l.bf16 %v10112_v63  ;;  %v6073_v63 = vmul.f32 %v10119_v40, %v6008_v3  ;;  %v10126_v40 = vld [vmem:[#allocation27_spill] sm:$0xff] }
  0xeb   : > { %10098 = vst [vmem:[#allocation57_spill] sm:$0xff] %v6011_v30  ;;  %v10127_v16 = vunpack.c.l.bf16 %v10126_v40 }
  0xec   : > { %10100 = vst [vmem:[#allocation62_spill] sm:$0xff] %v6014_v52  ;;  %v6055_v43 = vmul.f32 %v6008_v3, %v10113_v57  ;;  %v10120_v57 = vld [vmem:[#allocation6_spill] sm:$0xff] }
  0xed   : > { %10102 = vst [vmem:[#allocation22_spill] sm:$0xff] %v6017_v35  ;;  %v6069_v35 = vmul.f32 %v6008_v3, %v10118_v61  ;;  %v6077_v52 = vmul.f32 %v10120_v57, %v6008_v3  ;;  %v10125_v61 = vld [vmem:[#allocation65_spill] sm:$0xff]  ;;  %v6096_v25 = vmul.f32 %v6008_v3, %v10127_v16  ;;  %v10128_v57 = vld [vmem:[#allocation7_spill] sm:$0xff] }
  0xee   : > { %10103 = vst [vmem:[#allocation73_spill] sm:$0xff] %v6021_v42  ;;  %v10115_v42 = vunpack.c.l.bf16 %v10114_v18  ;;  %v10121_v18 = vld [vmem:[#allocation26_spill] sm:$0xff]  ;;  %v6091_v48 = vmul.f32 %v6008_v3, %v10125_v61  ;;  %v10132_v61 = vld [vmem:[#allocation21_spill] sm:$0xff] }
  0xef   : > { %10104 = vst [vmem:[#allocation74_spill] sm:$0xff] %v6024_v19  ;;  %v10116_v19 = vld [vmem:[#allocation23_spill] sm:$0xff]  ;;  %v10133_v47 = vunpack.c.l.bf16 %v10132_v61  ;;  %v10134_v16 = vld [vmem:[#allocation25_spill] sm:$0xff]  ;;  %v1388_v33 = vrot.slane %v6077_v52, 1 }
  0xf0   : > { %v6060_v34 = vmul.f32 %v6008_v3, %v10115_v42  ;;  %v6064_v0 = vmul.f32 %v6008_v3, %v10116_v19  ;;  %v10122_v42 = vunpack.c.l.bf16 %v10121_v18  ;;  %v10123_v19 = vld [vmem:[#allocation50_spill] sm:$0xff]  ;;  %v6100_v18 = vmul.f32 %v10128_v57, %v6008_v3  ;;  %v10135_v57 = vld [vmem:[#allocation31_spill] sm:$0xff] }
  0xf1   : > { %v10124_v26 = vunpack.c.l.bf16 %v10123_v19  ;;  %v10130_v19 = vld [vmem:[#allocation30_spill] sm:$0xff]  ;;  %v6114_v40 = vmul.f32 %v6008_v3, %v10133_v47  ;;  %v6118_v31 = vmul.f32 %v6008_v3, %v10134_v16  ;;  %v10136_v2 = vunpack.c.l.bf16 %v10135_v57 }
  0xf2   : > { %v6082_v30 = vmul.f32 %v6008_v3, %v10122_v42  ;;  %v10129_v42 = vld [vmem:[#allocation9_spill] sm:$0xff]  ;;  %v10139_v47 = vunpack.c.l.bf16 %v5943_v15  ;;  %v10140_v16 = vld [vmem:[#allocation58_spill] sm:$0xff]  ;;  %v1383_v46 = vrot.slane %v6064_v0, 1 }
  0xf3   : > { %v6087_v49 = vmul.f32 %v6008_v3, %v10124_v26  ;;  %v6104_v10 = vmul.f32 %v10129_v42, %v6008_v3  ;;  %v10131_v26 = vunpack.c.l.bf16 %v10130_v19  ;;  %v6123_v24 = vmul.f32 %v6008_v3, %v10136_v2  ;;  %v10137_v42 = vld [vmem:[#allocation10_spill] sm:$0xff]  ;;  %v10142_v2 = vld [vmem:[#allocation28_spill] sm:$0xff] }
  0xf4   : > { %v6127_v19 = vmul.f32 %v10137_v42, %v6008_v3  ;;  %v6136_v61 = vmul.f32 %v6008_v3, %v10139_v47  ;;  %v10141_v51 = vunpack.c.l.bf16 %v10140_v16  ;;  %v6145_v11 = vmul.f32 %v6008_v3, %v10142_v2  ;;  %v10145_v47 = vld [vmem:[#allocation13_spill] sm:$0xff] }
  0xf5   : > { %v6109_v22 = vmul.f32 %v6008_v3, %v10131_v26  ;;  %v10138_v26 = vld [vmem:[#allocation11_spill] sm:$0xff]  ;;  %v10143_v42 = vunpack.c.l.bf16 %v5958_v17  ;;  %v6158_v55 = vmul.f32 %v10145_v47, %v6008_v3  ;;  %v10147_v2 = vunpack.c.l.bf16 %v5779_v9  ;;  %v10150_v47 = vld [vmem:[#allocation14_spill] sm:$0xff] }
  0xf6   : > { %v6131_v12 = vmul.f32 %v10138_v26, %v6008_v3  ;;  %v6141_v57 = vmul.f32 %v6008_v3, %v10141_v51  ;;  %v10144_v26 = vld [vmem:[#allocation12_spill] sm:$0xff]  ;;  %v10146_v51 = vunpack.c.l.bf16 %v5961_v4  ;;  %v6181_v4 = vmul.f32 %v10150_v47, %v6008_v3 }
  0xf7   : > { %v6150_v23 = vmul.f32 %v6008_v3, %v10143_v42  ;;  %v6154_v15 = vmul.f32 %v10144_v26, %v6008_v3  ;;  %v6168_v17 = vmul.f32 %v6008_v3, %v10147_v2  ;;  %v10148_v42 = vld [vmem:[#allocation29_spill] sm:$0xff]  ;;  %v10149_v26 = vunpack.c.l.bf16 %v5964_v13 }
  0xf8   : > { %v6163_v16 = vmul.f32 %v6008_v3, %v10146_v51  ;;  %v6172_v60 = vmul.f32 %v6008_v3, %v10148_v42  ;;  %v10151_v51 = vld [vmem:[#allocation16_spill] sm:$0xff]  ;;  %v10152_v9 = vunpack.c.l.bf16 %v5979_v32  ;;  %v10153_v42 = vunpack.c.l.bf16 %v5782_v58  ;;  %v10156_v58 = vld [vmem:[#allocation18_spill] sm:$0xff] }
  0xf9   : > { %v6177_v7 = vmul.f32 %v6008_v3, %v10149_v26  ;;  %v6185_v6 = vmul.f32 %v10151_v51, %v6008_v3  ;;  %v10154_v26 = vld [vmem:[#allocation32_spill] sm:$0xff]  ;;  %v10155_v47 = vunpack.c.l.bf16 %v5982_v62  ;;  %v1372_v51 = vrot.slane %v1276_v53, 1  ;;  %v10160_v53 = vld [vmem:[#allocation63_spill] sm:$0xff] }
  0xfa   : > { %v6190_v2 = vmul.f32 %v6008_v3, %v10152_v9  ;;  %v6195_v13 = vmul.f32 %v6008_v3, %v10153_v42  ;;  %v6199_v29 = vmul.f32 %v6008_v3, %v10154_v26  ;;  %v1375_v32 = vrot.slane %v1278_v44, 1 }
  0xfb   : > { %v6204_v1 = vmul.f32 %v6008_v3, %v10155_v47  ;;  %v6208_v9 = vmul.f32 %v10051_v5, %v6008_v3  ;;  %v6212_v42 = vmul.f32 %v10156_v58, %v6008_v3  ;;  %v6217_v26 = vmul.f32 %v6008_v3, %v10157_v39 }
  0xfc   : > { %v10158_v62 = vunpack.c.l.bf16 %v5785_v20  ;;  %v10159_v5 = vunpack.c.l.bf16 %v5997_v28  ;;  %v6235_v27 = vmul.f32 %v10160_v53, %v6008_v3  ;;  %v6239_v39 = vmul.f32 %v5789_v54, %v6008_v3 }
  0xfd   : > { %v10161_v20 = vunpack.c.l.bf16 %v6000_v38  ;;  %v1378_v28 = vrot.slane %v6050_v59, 1  ;;  %v6250_v58 = vsel %vm694_vm0, %v1372_v51, %v1373_v36  ;;  %v6253_v53 = vsel %vm694_vm0, %v1373_v36, %v1375_v32 }
  0xfe   : > { %v6222_v47 = vmul.f32 %v6008_v3, %v10158_v62  ;;  %v6231_v44 = vmul.f32 %v6008_v3, %v10159_v5  ;;  %v1380_v5 = vrot.slane %v6055_v43, 1  ;;  %v1382_v54 = vrot.slane %v6060_v34, 1 }
  0xff   : > { %v6244_v62 = vmul.f32 %v6008_v3, %v10161_v20  ;;  %v1385_v38 = vrot.slane %v6069_v35, 1  ;;  %v1387_v3 = vrot.slane %v6073_v63, 1  ;;  %v1390_v59 = vrot.slane %v6082_v30, 1 }
 0x100   : > { %v1392_v43 = vrot.slane %v6087_v49, 1  ;;  %v1393_v51 = vrot.slane %v6091_v48, 1  ;;  %v1395_v20 = vrot.slane %v6096_v25, 1  ;;  %v1397_v36 = vrot.slane %v6100_v18, 1 }
 0x101   : > { %v1398_v32 = vrot.slane %v6104_v10, 1  ;;  %v1400_v34 = vrot.slane %v6109_v22, 1  ;;  %v1402_v35 = vrot.slane %v6114_v40, 1  ;;  %v1403_v63 = vrot.slane %v6118_v31, 1 }
 0x102   : > { %v1405_v52 = vrot.slane %v6123_v24, 1  ;;  %v1407_v30 = vrot.slane %v6127_v19, 1  ;;  %v1408_v0 = vrot.slane %v6131_v12, 1  ;;  %v1410_v48 = vrot.slane %v6136_v61, 1 }
 0x103   : > { %v1379_v25 = vsel %vm694_vm0, %v1377_v14, %v1378_v28  ;;  %v1381_v49 = vsel %vm694_vm0, %v1378_v28, %v1380_v5  ;;  %v1412_v10 = vrot.slane %v6141_v57, 1  ;;  %v1413_v22 = vrot.slane %v6145_v11, 1 }
 0x104   : > { %v1384_v18 = vsel %vm694_vm0, %v1382_v54, %v1383_v46  ;;  %v1386_v31 = vsel %vm694_vm0, %v1383_v46, %v1385_v38  ;;  %v1389_v24 = vsel %vm694_vm0, %v1387_v3, %v1388_v33  ;;  %v1391_v40 = vsel %vm694_vm0, %v1388_v33, %v1390_v59 }
 0x105   : > { %v1394_v12 = vsel %vm694_vm0, %v1392_v43, %v1393_v51  ;;  %v1396_v19 = vsel %vm694_vm0, %v1393_v51, %v1395_v20  ;;  %v1399_v14 = vsel %vm694_vm0, %v1397_v36, %v1398_v32  ;;  %v1401_v28 = vsel %vm694_vm0, %v1398_v32, %v1400_v34 }
 0x106   : > { %v1404_v57 = vsel %vm694_vm0, %v1402_v35, %v1403_v63  ;;  %v1406_v11 = vsel %vm694_vm0, %v1403_v63, %v1405_v52  ;;  %v1409_v54 = vsel %vm694_vm0, %v1407_v30, %v1408_v0  ;;  %v1411_v46 = vsel %vm694_vm0, %v1408_v0, %v1410_v48 }
 0x107   : > { %v1414_v38 = vsel %vm694_vm0, %v1412_v10, %v1413_v22  ;;  %v1415_v61 = vrot.slane %v6150_v23, 1  ;;  %v1417_v5 = vrot.slane %v6154_v15, 1  ;;  %v1418_v3 = vrot.slane %v6158_v55, 1 }
 0x108   : > { %v1420_v33 = vrot.slane %v6163_v16, 1  ;;  %v1422_v59 = vrot.slane %v6168_v17, 1  ;;  %v1423_v43 = vrot.slane %v6172_v60, 1  ;;  %v1425_v51 = vrot.slane %v6177_v7, 1 }
 0x109   : > { %v1427_v20 = vrot.slane %v6181_v4, 1  ;;  %v1428_v36 = vrot.slane %v6185_v6, 1  ;;  %v1430_v32 = vrot.slane %v6190_v2, 1  ;;  %v1432_v23 = vrot.slane %v6195_v13, 1 }
 0x10a   : > { %v1433_v15 = vrot.slane %v6199_v29, 1  ;;  %v1435_v55 = vrot.slane %v6204_v1, 1  ;;  %v1437_v16 = vrot.slane %v6208_v9, 1  ;;  %v1438_v17 = vrot.slane %v6212_v42, 1 }
 0x10b   : > { %v1440_v60 = vrot.slane %v6217_v26, 1  ;;  %v1442_v7 = vrot.slane %v6222_v47, 1  ;;  %v1443_v4 = vrot.slane %v6226_v37, 1  ;;  %v1445_v6 = vrot.slane %v6231_v44, 1 }
 0x10c   : > { %v1416_v2 = vsel %vm694_vm0, %v1413_v22, %v1415_v61  ;;  %v1447_v13 = vrot.slane %v6235_v27, 1  ;;  %v1448_v29 = vrot.slane %v6239_v39, 1  ;;  %v1450_v1 = vrot.slane %v6244_v62, 1 }
 0x10d   : > { %v1419_v9 = vsel %vm694_vm0, %v1417_v5, %v1418_v3  ;;  %v1421_v42 = vsel %vm694_vm0, %v1418_v3, %v1420_v33  ;;  %v1424_v26 = vsel %vm694_vm0, %v1422_v59, %v1423_v43  ;;  %v1426_v47 = vsel %vm694_vm0, %v1423_v43, %v1425_v51  ;;  %v10164_v3 = vld [vmem:[#allocation35_spill] sm:$0xff]  ;;  %v10182_v51 = vld [vmem:[#allocation48_spill] sm:$0xff] }
 0x10e   : > { %v1429_v37 = vsel %vm694_vm0, %v1427_v20, %v1428_v36  ;;  %v1431_v44 = vsel %vm694_vm0, %v1428_v36, %v1430_v32  ;;  %v1434_v34 = vsel %vm694_vm0, %v1432_v23, %v1433_v15  ;;  %v1436_v27 = vsel %vm694_vm0, %v1433_v15, %v1435_v55  ;;  %v10180_v43 = vld [vmem:[#allocation47_spill] sm:$0xff]  ;;  %v10184_v20 = vld [vmem:[#allocation52_spill] sm:$0xff]  ;;  %v10186_v32 = vld [vmem:[#allocation54_spill] sm:$0xff] }
 0x10f   : > { %v1439_v39 = vsel %vm694_vm0, %v1437_v16, %v1438_v17  ;;  %v1441_v62 = vsel %vm694_vm0, %v1438_v17, %v1440_v60  ;;  %v1444_v35 = vsel %vm694_vm0, %v1442_v7, %v1443_v4  ;;  %v1446_v63 = vsel %vm694_vm0, %v1443_v4, %v1445_v6  ;;  %v3897_v36 = vld [vmem:[%s4663_s26 + $0x30] sm:$0xe]  ;;  %v10188_v23 = vld [vmem:[#allocation55_spill] sm:$0xff]  ;;  %v3898_v16 = vld [vmem:[%s4663_s26 + $0x3c] sm:$0xe] }
 0x110   : > { %v1449_v52 = vsel %vm694_vm0, %v1447_v13, %v1448_v29  ;;  %v1451_v30 = vsel %vm694_vm0, %v1448_v29, %v1450_v1  ;;  %v6329_v0 = vadd.f32 %v6250_v58, %v5889_v45  ;;  %v6333_v48 = vadd.f32 %v6253_v53, %v5892_v41  ;;  %v10162_v45 = vld [vmem:[#allocation34_spill] sm:$0xff]  ;;  %v10166_v53 = vld [vmem:[#allocation36_spill] sm:$0xff]  ;;  %v10190_v15 = vld [vmem:[#allocation59_spill] sm:$0xff] }
 0x111   : > { %v6336_v10 = vadd.f32 %v1379_v25, %v5895_v56  ;;  %v6339_v22 = vadd.f32 %v1381_v49, %v5898_v50  ;;  %v6342_v61 = vadd.f32 %v1384_v18, %v5901_v21  ;;  %v6345_v5 = vadd.f32 %v1386_v31, %v5904_v8  ;;  %v10168_v25 = vld [vmem:[#allocation38_spill] sm:$0xff]  ;;  %v10170_v49 = vld [vmem:[#allocation39_spill] sm:$0xff]  ;;  %v10172_v18 = vld [vmem:[#allocation40_spill] sm:$0xff] }
 0x112   : > { %v6348_v58 = vadd.f32 %v1389_v24, %v10162_v45  ;;  %v6351_v41 = vadd.f32 %v1391_v40, %v10164_v3  ;;  %v6354_v56 = vadd.f32 %v1394_v12, %v10166_v53  ;;  %v6357_v50 = vadd.f32 %v1396_v19, %v10168_v25  ;;  %v10174_v31 = vld [vmem:[#allocation41_spill] sm:$0xff]  ;;  %v10178_v12 = vld [vmem:[#allocation46_spill] sm:$0xff]  ;;  %v10192_v55 = vld [vmem:[#allocation60_spill] sm:$0xff] }
 0x113   : > { %v6360_v21 = vadd.f32 %v1399_v14, %v10170_v49  ;;  %v6363_v8 = vadd.f32 %v1401_v28, %v10172_v18  ;;  %v6366_v24 = vadd.f32 %v1404_v57, %v10174_v31  ;;  %v10176_v40 = vld [vmem:[#allocation45_spill] sm:$0xff]  ;;  %v6372_v59 = vadd.f32 %v1409_v54, %v10178_v12  ;;  %v3896_v57 = vld [vmem:[%s4663_s26 + $0x24] sm:$0xe]  ;;  %v3899_v17 = vld [vmem:[%s4663_s26 + $0x48] sm:$0xe] }
 0x114   : > { %10163 = vst [vmem:[#allocation61_spill] sm:$0xff] %v6348_v58  ;;  %v6369_v33 = vadd.f32 %v1406_v11, %v10176_v40  ;;  %v6375_v19 = vadd.f32 %v1411_v46, %v10180_v43  ;;  %v6378_v14 = vadd.f32 %v1414_v38, %v10182_v51  ;;  %v6381_v28 = vadd.f32 %v1416_v2, %v10184_v20  ;;  %v3900_v60 = vld [vmem:[%s4663_s26 + $0x54] sm:$0xe]  ;;  %v10196_v6 = vld [vmem:[#allocation42_spill] sm:$0xff]  ;;  %v10198_v13 = vld [vmem:[#allocation43_spill] sm:$0xff] }
 0x115   : > { %10165 = vst [vmem:[#allocation3_spill] sm:$0xff] %v6351_v41  ;;  %v6386_v11 = vadd.f32 %v1419_v9, %v10186_v32  ;;  %v6389_v54 = vadd.f32 %v1421_v42, %v10188_v23  ;;  %v6392_v46 = vadd.f32 %v1424_v26, %v10190_v15  ;;  %v6395_v38 = vadd.f32 %v1426_v47, %v10192_v55  ;;  %v10194_v7 = vld [vmem:[#allocation8_spill] sm:$0xff]  ;;  %v10200_v1 = vld [vmem:[#allocation15_spill] sm:$0xff]  ;;  %v3901_v42 = vld [vmem:[%s4663_s26 + $0x60] sm:$0xe] }
 0x116   : > { %10167 = vst [vmem:[#allocation19_spill] sm:$0xff] %v6354_v56  ;;  %v6401_v4 = vadd.f32 %v1429_v37, %v10194_v7  ;;  %v6404_v2 = vadd.f32 %v1431_v44, %v10196_v6  ;;  %v6407_v29 = vadd.f32 %v1434_v34, %v10198_v13  ;;  %v6410_v9 = vadd.f32 %v1436_v27, %v10200_v1  ;;  %v3902_v26 = vld [vmem:[%s4663_s26 + $0x6c] sm:$0xe]  ;;  %v3903_v47 = vld [vmem:[%s4663_s26 + $0x78] sm:$0xe]  ;;  %v10204_v37 = vld [vmem:[#allocation20_spill] sm:$0xff] }
 0x117   : > { %10169 = vst [vmem:[#allocation5_spill] sm:$0xff] %v6357_v50  ;;  %v10202_v45 = vld [vmem:[#allocation51_spill] sm:$0xff]  ;;  %v6419_v53 = vadd.f32 %v1441_v62, %v10204_v37  ;;  %v10206_v25 = vld [vmem:[#allocation56_spill] sm:$0xff]  ;;  %v10208_v49 = vld [vmem:[#allocation57_spill] sm:$0xff]  ;;  %v1534_v20 = vunpack.c.l.bf16 %v3896_v57  ;;  %v1536_v15 = vunpack.c.l.bf16 %v3898_v16  ;;  %v1537_v55 = vunpack.c.l.bf16 %v3899_v17 }
 0x118   : > { %10171 = vst [vmem:[#allocation50_spill] sm:$0xff] %v6360_v21  ;;  %v6416_v3 = vadd.f32 %v1439_v39, %v10202_v45  ;;  %v6422_v44 = vadd.f32 %v1444_v35, %v10206_v25  ;;  %v6425_v34 = vadd.f32 %v1446_v63, %v10208_v49  ;;  %v3904_v18 = vld [vmem:[%s4663_s26 + $0x84] sm:$0xe]  ;;  %v3905_v27 = vld [vmem:[%s4663_s26 + $0x90] sm:$0xe]  ;;  %v1535_v63 = vunpack.c.l.bf16 %v3897_v36  ;;  %v6449_v6 = vld [vmem:[%s4663_s26 + $0x18] sm:$0xff]  }
 0x119   : > { %10173 = vst [vmem:[#allocation7_spill] sm:$0xff] %v6363_v8  ;;  %v3906_v31 = vld [vmem:[%s4663_s26 + $0x9c] sm:$0xe]  ;;  %v10210_v40 = vld [vmem:[#allocation62_spill] sm:$0xff]  ;;  %v6437_v39 = vld [vmem:[%s4663_s26 + $0xa8] sm:$0xe]  ;;  %v1538_v7 = vunpack.c.l.bf16 %v3900_v60  ;;  %v1540_v13 = vunpack.c.l.bf16 %v3902_v26  ;;  %v1542_v1 = vunpack.c.l.bf16 %v3904_v18  ;;  %v1543_v45 = vunpack.c.l.bf16 %v3905_v27 }
 0x11a   : > { %10175 = vst [vmem:[#allocation21_spill] sm:$0xff] %v6366_v24  ;;  %v6431_v12 = vadd.f32 %v1449_v52, %v10210_v40  ;;  %v10212_v43 = vld [vmem:[#allocation22_spill] sm:$0xff]  ;;  %v6440_v62 = vld [vmem:[%s4663_s26 + $0xb4] sm:$0xe]  ;;  %v1539_v52 = vunpack.c.l.bf16 %v3901_v42  ;;  %v1544_v37 = vunpack.c.l.bf16 %v3906_v31  ;;  %v1545_v25 = vunpack.c.l.bf16 %v6437_v39  ;;  %v10216_v40 = vld [vmem:[#allocation73_spill] sm:$0xff] }
 0x11b   : > { %10177 = vst [vmem:[#allocation10_spill] sm:$0xff] %v6369_v33  ;;  %v6434_v51 = vadd.f32 %v1451_v30, %v10212_v43  ;;  %v10214_v35 = vld [vmem:[#allocation72_spill] sm:$0xff]  ;;  %v6446_v23 = vld [vmem:[%s4663_s26 + $0xc0] sm:$0xe]  ;;  %v1541_v30 = vunpack.c.l.bf16 %v3903_v47  ;;  %v1546_v57 = vunpack.c.l.bf16 %v6440_v62  ;;  %v10217_v43 = vunpack.c.l.bf16 %v10216_v40 }
 0x11c   : > { %10179 = vst [vmem:[#allocation58_spill] sm:$0xff] %v6372_v59  ;;  %v6443_v32 = vperm.slane %v10214_v35, 5  ;;  %v1547_v49 = vunpack.c.l.bf16 %v6446_v23  ;;  %v6459_v17 = vunpack.c.h.bf16 %v6449_v6  ;;  %v10219_v60 = vld [vmem:[#allocation68_spill] sm:$0xff]  ;;  %v10220_v26 = vld [vmem:[#allocation66_spill] sm:$0xff] }
 0x11d   : > { %10181 = vst [vmem:[#allocation12_spill] sm:$0xff] %v6375_v19  ;;  %v10221_v47 = vunpack.c.l.bf16 %v10220_v26  ;;  %v10222_v27 = vld [vmem:[#allocation74_spill] sm:$0xff]  ;;  %v10224_v62 = vld [vmem:[#allocation4_spill] sm:$0xff]  ;;  %v10227_v26 = vld [vmem:[#allocation23_spill] sm:$0xff] }
 0x11e   : > { %10183 = vst [vmem:[#allocation14_spill] sm:$0xff] %v6378_v14  ;;  %v1549_v36 = vmul.f32 %v6443_v32, %v10217_v43  ;;  %v1550_v42 = vmul.f32 %v6443_v32, %v10219_v60  ;;  %v10223_v31 = vunpack.c.l.bf16 %v10222_v27  ;;  %v6473_v23 = vmul.f32 %v10224_v62, %v6443_v32  ;;  %v10225_v40 = vld [vmem:[#allocation24_spill] sm:$0xff]  ;;  %v10228_v27 = vld [vmem:[#allocation67_spill] sm:$0xff] }
 0x11f   : > { %10185 = vst [vmem:[#allocation34_spill] sm:$0xff] %v6381_v28  ;;  %v1551_v18 = vmul.f32 %v6443_v32, %v10221_v47  ;;  %v10226_v43 = vunpack.c.l.bf16 %v10225_v40  ;;  %v6481_v60 = vmul.f32 %v6443_v32, %v1534_v20  ;;  %v6485_v47 = vmul.f32 %v6443_v32, %v10227_v26  ;;  %v10230_v40 = vld [vmem:[#allocation6_spill] sm:$0xff]  ;;  %v10257_v19 = vld [vmem:[#allocation32_spill] sm:$0xff] }
 0x120   : > { %10187 = vst [vmem:[#allocation35_spill] sm:$0xff] %v6386_v11  ;;  %v6469_v39 = vmul.f32 %v6443_v32, %v10223_v31  ;;  %v6493_v62 = vmul.f32 %v6443_v32, %v1535_v63  ;;  %v6505_v26 = vmul.f32 %v6443_v32, %v1536_v15  ;;  %v1645_v33 = vrot.slane %v1549_v36, 2 }
 0x121   : > { %10189 = vst [vmem:[#allocation36_spill] sm:$0xff] %v6389_v54  ;;  %v6478_v16 = vmul.f32 %v6443_v32, %v10226_v43  ;;  %v10231_v43 = vld [vmem:[#allocation26_spill] sm:$0xff]  ;;  %v10251_v54 = vld [vmem:[#allocation29_spill] sm:$0xff]  ;;  %v6613_v24 = vmul.f32 %v6443_v32, %v1545_v25  ;;  %v1651_v41 = vrot.slane %v6473_v23, 2  ;;  %v1656_v58 = vrot.slane %v6485_v47, 2 }
 0x122   : > { %10191 = vst [vmem:[#allocation38_spill] sm:$0xff] %v6392_v46  ;;  %v10232_v35 = vunpack.c.l.bf16 %v10231_v43  ;;  %v10236_v43 = vld [vmem:[#allocation9_spill] sm:$0xff] }
 0x123   : > { %10193 = vst [vmem:[#allocation39_spill] sm:$0xff] %v6395_v38 }
 0x124   : > { %10195 = vst [vmem:[#allocation40_spill] sm:$0xff] %v6401_v4  ;;  %v6502_v20 = vmul.f32 %v6443_v32, %v10232_v35  ;;  %v10237_v35 = vld [vmem:[#allocation30_spill] sm:$0xff] }
 0x125   : > { %10197 = vst [vmem:[#allocation41_spill] sm:$0xff] %v6404_v2  ;;  %v10245_v2 = vld [vmem:[#allocation28_spill] sm:$0xff] }
 0x126   : > { %10199 = vst [vmem:[#allocation45_spill] sm:$0xff] %v6407_v29 }
 0x127   : > { %10201 = vst [vmem:[#allocation46_spill] sm:$0xff] %v6410_v9 }
 0x128   : > { %10203 = vst [vmem:[#allocation47_spill] sm:$0xff] %v6416_v3 }
 0x129   : > { %10205 = vst [vmem:[#allocation48_spill] sm:$0xff] %v6419_v53  ;;  %v10239_v53 = vld [vmem:[#allocation25_spill] sm:$0xff] }
 0x12a   : > { %10207 = vst [vmem:[#allocation52_spill] sm:$0xff] %v6422_v44  ;;  %v10238_v44 = vunpack.c.l.bf16 %v10237_v35  ;;  %v10242_v35 = vld [vmem:[#allocation11_spill] sm:$0xff] }
 0x12b   : > { %10209 = vst [vmem:[#allocation54_spill] sm:$0xff] %v6425_v34  ;;  %v6521_v34 = vmul.f32 %v10236_v43, %v6443_v32  ;;  %v6541_v43 = vmul.f32 %v6443_v32, %v1539_v52  ;;  %v6545_v9 = vmul.f32 %v10242_v35, %v6443_v32  ;;  %v6565_v35 = vmul.f32 %v6443_v32, %v1541_v30 }
 0x12c   : > { %10211 = vst [vmem:[#allocation55_spill] sm:$0xff] %v6431_v12  ;;  %v6526_v15 = vmul.f32 %v6443_v32, %v10238_v44  ;;  %v10243_v44 = vld [vmem:[#allocation53_spill] sm:$0xff] }
 0x12d   : > { %10213 = vst [vmem:[#allocation59_spill] sm:$0xff] %v6434_v51  ;;  %v10233_v51 = vld [vmem:[#allocation65_spill] sm:$0xff]  ;;  %v10244_v29 = vunpack.c.l.bf16 %v10243_v44  ;;  %v1671_v47 = vrot.slane %v6521_v34, 2 }
 0x12e   : > { %10215 = vst [vmem:[#allocation60_spill] sm:$0xff] %v6449_v6  ;;  %v6497_v6 = vmul.f32 %v10230_v40, %v6443_v32  ;;  %v6517_v40 = vmul.f32 %v6443_v32, %v1537_v55  ;;  %v10248_v44 = vld [vmem:[#allocation13_spill] sm:$0xff] }
 0x12f   : > { %10218 = vst [vmem:[#allocation8_spill] sm:$0xff] %v6459_v17  ;;  %v10229_v17 = vunpack.c.l.bf16 %v10228_v27  ;;  %v6509_v27 = vmul.f32 %v6443_v32, %v10233_v51  ;;  %v6529_v51 = vmul.f32 %v6443_v32, %v1538_v7  ;;  %v6550_v7 = vmul.f32 %v6443_v32, %v10244_v29  ;;  %v10249_v29 = vld [vmem:[#allocation17_spill] sm:$0xff] }
 0x130   : > { %v6569_v38 = vmul.f32 %v10248_v44, %v6443_v32  ;;  %v10250_v46 = vunpack.c.l.bf16 %v10249_v29  ;;  %v6589_v44 = vmul.f32 %v6443_v32, %v1543_v45  ;;  %v10254_v29 = vld [vmem:[#allocation16_spill] sm:$0xff] }
 0x131   : > { %v6490_v31 = vmul.f32 %v6443_v32, %v10229_v17  ;;  %v10234_v17 = vld [vmem:[#allocation27_spill] sm:$0xff]  ;;  %v6593_v28 = vmul.f32 %v10254_v29, %v6443_v32  ;;  %v1646_v29 = vrot.slane %v1550_v42, 2  ;;  %v10264_v42 = vld [vmem:[#allocation70_spill] sm:$0xff]  ;;  %v1666_v23 = vrot.slane %v6509_v27, 2 }
 0x132   : > { %v10235_v12 = vunpack.c.l.bf16 %v10234_v17  ;;  %v6533_v17 = vmul.f32 %v6443_v32, %v10239_v53  ;;  %v6553_v53 = vmul.f32 %v6443_v32, %v1540_v13  ;;  %v6574_v13 = vmul.f32 %v6443_v32, %v10250_v46  ;;  %v10255_v46 = vld [vmem:[#allocation44_spill] sm:$0xff] }
 0x133   : > { %v10256_v14 = vunpack.c.l.bf16 %v10255_v46  ;;  %v10265_v25 = vunpack.c.l.bf16 %v10264_v42  ;;  %v6651_v42 = vsel %vm968_vm1, %v1645_v33, %v1646_v29  ;;  %v1665_v33 = vrot.slane %v6505_v26, 2 }
 0x134   : > { %v6514_v63 = vmul.f32 %v6443_v32, %v10235_v12  ;;  %v10240_v12 = vld [vmem:[#allocation31_spill] sm:$0xff]  ;;  %v1681_v26 = vrot.slane %v6545_v9, 2 }
 0x135   : > { %v10241_v3 = vunpack.c.l.bf16 %v10240_v12  ;;  %v6557_v12 = vmul.f32 %v6443_v32, %v10245_v2  ;;  %v6577_v2 = vmul.f32 %v6443_v32, %v1542_v1  ;;  %v6598_v1 = vmul.f32 %v6443_v32, %v10256_v14  ;;  %v10260_v14 = vld [vmem:[#allocation18_spill] sm:$0xff] }
 0x136   : > { %v6617_v46 = vmul.f32 %v10260_v14, %v6443_v32  ;;  %v6634_v50 = vmul.f32 %v6443_v32, %v10265_v25  ;;  %v6637_v14 = vmul.f32 %v6443_v32, %v1547_v49  ;;  %v1653_v25 = vrot.slane %v6478_v16, 2 }
 0x137   : > { %v6538_v55 = vmul.f32 %v6443_v32, %v10241_v3  ;;  %v10246_v3 = vld [vmem:[#allocation2_spill] sm:$0xff]  ;;  %v1655_v49 = vrot.slane %v6481_v60, 2  ;;  %v1668_v16 = vrot.slane %v6514_v63, 2  ;;  %v1670_v60 = vrot.slane %v6517_v40, 2 }
 0x138   : > { %v10247_v4 = vunpack.c.l.bf16 %v10246_v3  ;;  %v6581_v3 = vmul.f32 %v6443_v32, %v10251_v54  ;;  %v6601_v54 = vmul.f32 %v6443_v32, %v1544_v37  ;;  %v10261_v37 = vld [vmem:[#allocation69_spill] sm:$0xff]  ;;  %v1683_v63 = vrot.slane %v6550_v7, 2 }
 0x139   : > { %v10262_v8 = vunpack.c.l.bf16 %v10261_v37  ;;  %v10266_v37 = vld [vmem:[#allocation64_spill] sm:$0xff]  ;;  %v1685_v40 = vrot.slane %v6553_v53, 2  ;;  %v1686_v34 = vrot.slane %v6557_v12, 2  ;;  %v1667_v9 = vsel %vm968_vm1, %v1665_v33, %v1666_v23 }
 0x13a   : > { %v6562_v52 = vmul.f32 %v6443_v32, %v10247_v4  ;;  %v10252_v4 = vld [vmem:[#allocation37_spill] sm:$0xff]  ;;  %v1672_v7 = vsel %vm968_vm1, %v1670_v60, %v1671_v47  ;;  %v1696_v33 = vrot.slane %v6581_v3, 2  ;;  %v1701_v60 = vrot.slane %v6593_v28, 2 }
 0x13b   : > { %v10253_v11 = vunpack.c.l.bf16 %v10252_v4  ;;  %v6605_v4 = vmul.f32 %v6443_v32, %v10257_v19  ;;  %v6622_v21 = vmul.f32 %v6443_v32, %v10262_v8  ;;  %v1648_v19 = vrot.slane %v1551_v18, 2  ;;  %v10267_v18 = vld [vmem:[#allocation71_spill] sm:$0xff] }
 0x13c   : > { %v6641_v8 = vmul.f32 %v10266_v37, %v6443_v32  ;;  %v10268_v56 = vunpack.c.l.bf16 %v10267_v18  ;;  %v1658_v18 = vrot.slane %v6490_v31, 2  ;;  %v1675_v31 = vrot.slane %v6529_v51, 2 }
 0x13d   : > { %v6586_v30 = vmul.f32 %v6443_v32, %v10253_v11  ;;  %v10258_v11 = vld [vmem:[#allocation49_spill] sm:$0xff]  ;;  %v6657_v37 = vsel %vm968_vm1, %v1646_v29, %v1648_v19  ;;  %v1673_v29 = vrot.slane %v6526_v15, 2  ;;  %v1654_v15 = vsel %vm968_vm1, %v1651_v41, %v1653_v25 }
 0x13e   : > { %v10259_v59 = vunpack.c.l.bf16 %v10258_v11  ;;  %v6625_v11 = vmul.f32 %v6443_v32, %v1546_v57  ;;  %v6646_v57 = vmul.f32 %v6443_v32, %v10268_v56  ;;  %v1660_v56 = vrot.slane %v6493_v62, 2 }
 0x13f   : > { %v1676_v62 = vrot.slane %v6533_v17, 2  ;;  %v1657_v51 = vsel %vm968_vm1, %v1655_v49, %v1656_v58  ;;  %v1659_v17 = vsel %vm968_vm1, %v1656_v58, %v1658_v18  ;;  %v1669_v19 = vsel %vm968_vm1, %v1666_v23, %v1668_v16 }
 0x140   : > { %v6610_v45 = vmul.f32 %v6443_v32, %v10259_v59  ;;  %v10263_v59 = vld [vmem:[#allocation33_spill] sm:$0xff]  ;;  %v1674_v53 = vsel %vm968_vm1, %v1671_v47, %v1673_v29  ;;  %v1684_v58 = vsel %vm968_vm1, %v1681_v26, %v1683_v63  ;;  %v1687_v25 = vsel %vm968_vm1, %v1685_v40, %v1686_v34 }
 0x141   : > { %v6629_v36 = vmul.f32 %v6443_v32, %v10263_v59  ;;  %v1650_v59 = vrot.slane %v6469_v39, 2  ;;  %v1661_v32 = vrot.slane %v6497_v6, 2  ;;  %v1663_v39 = vrot.slane %v6502_v20, 2 }
 0x142   : > { %v1678_v6 = vrot.slane %v6538_v55, 2  ;;  %v1680_v20 = vrot.slane %v6541_v43, 2  ;;  %v1677_v12 = vsel %vm968_vm1, %v1675_v31, %v1676_v62  ;;  %v1688_v49 = vrot.slane %v6562_v52, 2 }
 0x143   : > { %v1652_v27 = vsel %vm968_vm1, %v1650_v59, %v1651_v41  ;;  %v1662_v55 = vsel %vm968_vm1, %v1660_v56, %v1661_v32  ;;  %v1664_v43 = vsel %vm968_vm1, %v1661_v32, %v1663_v39  ;;  %v1690_v18 = vrot.slane %v6565_v35, 2 }
 0x144   : > { %v1679_v41 = vsel %vm968_vm1, %v1676_v62, %v1678_v6  ;;  %v1682_v59 = vsel %vm968_vm1, %v1680_v20, %v1681_v26  ;;  %v1691_v56 = vrot.slane %v6569_v38, 2  ;;  %v1693_v32 = vrot.slane %v6574_v13, 2 }
 0x145   : > { %v1695_v39 = vrot.slane %v6577_v2, 2  ;;  %v1698_v23 = vrot.slane %v6586_v30, 2  ;;  %v1700_v16 = vrot.slane %v6589_v44, 2  ;;  %v1703_v47 = vrot.slane %v6598_v1, 2 }
 0x146   : > { %v1705_v52 = vrot.slane %v6601_v54, 2  ;;  %v1706_v35 = vrot.slane %v6605_v4, 2  ;;  %v1708_v38 = vrot.slane %v6610_v45, 2  ;;  %v1710_v13 = vrot.slane %v6613_v24, 2 }
 0x147   : > { %v1711_v2 = vrot.slane %v6617_v46, 2  ;;  %v1713_v3 = vrot.slane %v6622_v21, 2  ;;  %v1715_v30 = vrot.slane %v6625_v11, 2  ;;  %v1716_v44 = vrot.slane %v6629_v36, 2 }
 0x148   : > { %v1689_v28 = vsel %vm968_vm1, %v1686_v34, %v1688_v49  ;;  %v1718_v1 = vrot.slane %v6634_v50, 2  ;;  %v1720_v54 = vrot.slane %v6637_v14, 2  ;;  %v1721_v4 = vrot.slane %v6641_v8, 2 }
 0x149   : > { %v1692_v45 = vsel %vm968_vm1, %v1690_v18, %v1691_v56  ;;  %v1694_v24 = vsel %vm968_vm1, %v1691_v56, %v1693_v32  ;;  %v1697_v46 = vsel %vm968_vm1, %v1695_v39, %v1696_v33  ;;  %v1723_v21 = vrot.slane %v6646_v57, 2  ;;  %v10271_v56 = vld [vmem:[#allocation19_spill] sm:$0xff]  ;;  %v10277_v39 = vld [vmem:[#allocation58_spill] sm:$0xff] }
 0x14a   : > { %v1699_v11 = vsel %vm968_vm1, %v1696_v33, %v1698_v23  ;;  %v1702_v36 = vsel %vm968_vm1, %v1700_v16, %v1701_v60  ;;  %v1704_v29 = vsel %vm968_vm1, %v1701_v60, %v1703_v47  ;;  %v1707_v50 = vsel %vm968_vm1, %v1705_v52, %v1706_v35  ;;  %v10278_v33 = vld [vmem:[#allocation12_spill] sm:$0xff]  ;;  %v10280_v23 = vld [vmem:[#allocation14_spill] sm:$0xff]  ;;  %v10284_v60 = vld [vmem:[#allocation35_spill] sm:$0xff] }
 0x14b   : > { %v1709_v14 = vsel %vm968_vm1, %v1706_v35, %v1708_v38  ;;  %v1712_v8 = vsel %vm968_vm1, %v1710_v13, %v1711_v2  ;;  %v1714_v31 = vsel %vm968_vm1, %v1711_v2, %v1713_v3  ;;  %v1717_v62 = vsel %vm968_vm1, %v1715_v30, %v1716_v44  ;;  %v10282_v16 = vld [vmem:[#allocation34_spill] sm:$0xff]  ;;  %v10286_v47 = vld [vmem:[#allocation36_spill] sm:$0xff]  ;;  %v10295_v2 = vld [vmem:[#allocation41_spill] sm:$0xff] }
 0x14c   : > { %v1719_v6 = vsel %vm968_vm1, %v1716_v44, %v1718_v1  ;;  %v1722_v57 = vsel %vm968_vm1, %v1720_v54, %v1721_v4  ;;  %v6730_v20 = vadd.f32 %v6651_v42, %v6329_v0  ;;  %v6734_v26 = vadd.f32 %v6657_v37, %v6333_v48  ;;  %v10269_v0 = vld [vmem:[#allocation61_spill] sm:$0xff]  ;;  %v10270_v48 = vld [vmem:[#allocation3_spill] sm:$0xff]  ;;  %v10288_v52 = vld [vmem:[#allocation38_spill] sm:$0xff] }
 0x14d   : > { %v1724_v63 = vsel %vm968_vm1, %v1721_v4, %v1723_v21  ;;  %v6738_v40 = vadd.f32 %v1652_v27, %v6336_v10  ;;  %v6741_v34 = vadd.f32 %v1654_v15, %v6339_v22  ;;  %v6744_v49 = vadd.f32 %v1657_v51, %v6342_v61  ;;  %v10272_v10 = vld [vmem:[#allocation5_spill] sm:$0xff]  ;;  %v10273_v22 = vld [vmem:[#allocation50_spill] sm:$0xff]  ;;  %v10274_v61 = vld [vmem:[#allocation7_spill] sm:$0xff] }
 0x14e   : > { %v6747_v18 = vadd.f32 %v1659_v17, %v6345_v5  ;;  %v6750_v42 = vadd.f32 %v1662_v55, %v10269_v0  ;;  %v6753_v37 = vadd.f32 %v1664_v43, %v10270_v48  ;;  %v6756_v32 = vadd.f32 %v1667_v9, %v10271_v56  ;;  %v10275_v51 = vld [vmem:[#allocation21_spill] sm:$0xff]  ;;  %v10276_v55 = vld [vmem:[#allocation10_spill] sm:$0xff]  ;;  %v6795_v35 = vld [vmem:[%s4663_s26 + $0x30] sm:$0xff]  }
 0x14f   : > { %v6759_v27 = vadd.f32 %v1669_v19, %v10272_v10  ;;  %v6762_v15 = vadd.f32 %v1672_v7, %v10273_v22  ;;  %v6765_v5 = vadd.f32 %v1674_v53, %v10274_v61  ;;  %v6768_v17 = vadd.f32 %v1677_v12, %v10275_v51  ;;  %10290 = vst [vmem:[#allocation57_spill] sm:$0xff] %v6795_v35  ;;  %v10293_v38 = vld [vmem:[#allocation40_spill] sm:$0xff]  ;;  %v10297_v30 = vld [vmem:[#allocation45_spill] sm:$0xff]  ;;  %v6813_v1 = vld [vmem:[%s4663_s26 + $0x60] sm:$0xff]  }
 0x150   : > { %v6771_v43 = vadd.f32 %v1679_v41, %v10276_v55  ;;  %v6774_v9 = vadd.f32 %v1682_v59, %v10277_v39  ;;  %v6777_v19 = vadd.f32 %v1684_v58, %v10278_v33  ;;  %v6780_v7 = vadd.f32 %v1687_v25, %v10280_v23  ;;  %v10291_v58 = vld [vmem:[#allocation39_spill] sm:$0xff]  ;;  %10300 = vst [vmem:[#allocation74_spill] sm:$0xff] %v6813_v1  ;;  %v10301_v54 = vld [vmem:[#allocation46_spill] sm:$0xff]  ;;  %v6931_v23 = vld [vmem:[%s4663_s26 + $0x50] sm:$0x1] }
 0x151   : > { %v6783_v53 = vadd.f32 %v1689_v28, %v10282_v16  ;;  %v6786_v12 = vadd.f32 %v1692_v45, %v10284_v60  ;;  %v6789_v41 = vadd.f32 %v1694_v24, %v10286_v47  ;;  %v6792_v59 = vadd.f32 %v1697_v46, %v10288_v52  ;;  %v6810_v28 = vld [vmem:[%s4663_s26 + $0x48] sm:$0xff]   ;;  %v10305_v46 = vld [vmem:[#allocation48_spill] sm:$0xff]  ;;  %v10311_v0 = vld [vmem:[#allocation54_spill] sm:$0xff]  ;;  %10341 = vst [vmem:[#allocation5_spill] sm:$0xff] %v6931_v23 }
 0x152   : > { %10279 = vst [vmem:[#allocation42_spill] sm:$0xff] %v6777_v19  ;;  %v6798_v25 = vadd.f32 %v1699_v11, %v10291_v58  ;;  %v6801_v13 = vadd.f32 %v1702_v36, %v10293_v38  ;;  %v6804_v3 = vadd.f32 %v1704_v29, %v10295_v2  ;;  %v6807_v44 = vadd.f32 %v1707_v50, %v10297_v30  ;;  %v10303_v45 = vld [vmem:[#allocation47_spill] sm:$0xff]  ;;  %v10307_v11 = vld [vmem:[#allocation52_spill] sm:$0xff]  ;;  %v6828_v29 = vld [vmem:[%s4663_s26 + $0x78] sm:$0xff]  }
 0x153   : > { %10281 = vst [vmem:[#allocation43_spill] sm:$0xff] %v6780_v7  ;;  %v6816_v4 = vadd.f32 %v1709_v14, %v10301_v54  ;;  %v6819_v24 = vadd.f32 %v1712_v8, %v10303_v45  ;;  %v6822_v21 = vadd.f32 %v1714_v31, %v10305_v46  ;;  %v6825_v36 = vadd.f32 %v1717_v62, %v10307_v11  ;;  %v6831_v50 = vld [vmem:[%s4663_s26 + $0x90] sm:$0xff]   ;;  %v10313_v14 = vld [vmem:[#allocation55_spill] sm:$0xff]  ;;  %v6881_v58 = vld [vmem:[%s4663_s26 + $0x9c] sm:$0xff]  }
 0x154   : > { %10283 = vst [vmem:[#allocation15_spill] sm:$0xff] %v6783_v53  ;;  %v6834_v48 = vadd.f32 %v1719_v6, %v10311_v0  ;;  %v6837_v56 = vadd.f32 %v1722_v57, %v10313_v14  ;;  %v10315_v10 = vld [vmem:[#allocation59_spill] sm:$0xff]  ;;  %v6850_v61 = vunpack.c.h.bf16 %v6795_v35  ;;  %v6853_v6 = vld [vmem:[%s4663_s26 + $0x3c] sm:$0xff]   ;;  %v6857_v51 = vunpack.c.h.bf16 %v6810_v28  ;;  %v6888_v30 = vld [vmem:[%s4663_s26 + $0xb4] sm:$0xff]  }
 0x155   : > { %10285 = vst [vmem:[#allocation51_spill] sm:$0xff] %v6786_v12  ;;  %v6840_v8 = vadd.f32 %v1724_v63, %v10315_v10  ;;  %v6843_v31 = vld [vmem:[%s4663_s26 + $0x24] sm:$0xff]   ;;  %v6860_v63 = vld [vmem:[%s4663_s26 + $0x54] sm:$0xff]   ;;  %v6864_v39 = vunpack.c.h.bf16 %v6813_v1  ;;  %v6867_v33 = vld [vmem:[%s4663_s26 + $0x6c] sm:$0xff]   ;;  %v6871_v16 = vunpack.c.h.bf16 %v6828_v29  ;;  %v6878_v52 = vunpack.c.h.bf16 %v6831_v50 }
 0x156   : > { %10287 = vst [vmem:[#allocation20_spill] sm:$0xff] %v6789_v41  ;;  %v6847_v22 = vld [vmem:[%s4663_s26 + $0xa8] sm:$0xff]   ;;  %v6895_v46 = vunpack.c.h.bf16 %v6843_v31  ;;  %v6899_v0 = vunpack.c.h.bf16 %v6853_v6  ;;  %v6903_v10 = vld [vmem:[%s4663_s26 + $0x20] sm:$0x1]  ;;  %v6909_v60 = vunpack.c.h.bf16 %v6860_v63  ;;  %v6913_v55 = vunpack.c.h.bf16 %v6867_v33  ;;  %v10336_v57 = vld [vmem:[#allocation72_spill] sm:$0xff] }
 0x157   : > { %10289 = vst [vmem:[#allocation56_spill] sm:$0xff] %v6792_v59  ;;  %v6875_v47 = vld [vmem:[%s4663_s26 + $0x84] sm:$0xff]   ;;  %v6885_v2 = vunpack.c.h.bf16 %v6847_v22  ;;  %v6892_v45 = vld [vmem:[%s4663_s26 + $0xcc] sm:$0xff]   ;;  %v1854_v11 = vperm.slane %v10336_v57, 6  ;;  %v6917_v62 = vld [vmem:[%s4663_s26 + $0x38] sm:$0x1]  ;;  %v10349_v19 = vunpack.c.l.bf16 %v6843_v31  ;;  %v10352_v12 = vunpack.c.l.bf16 %v6810_v28 }
 0x158   : > { %10292 = vst [vmem:[#allocation62_spill] sm:$0xff] %v6798_v25  ;;  %v6906_v38 = vld [vmem:[%s4663_s26 + $0x2c] sm:$0x1]  ;;  %v6920_v54 = vld [vmem:[%s4663_s26 + $0x44] sm:$0x1]  ;;  %v10346_v25 = vld [vmem:[#allocation60_spill] sm:$0xff] }
 0x159   : > { %10294 = vst [vmem:[#allocation22_spill] sm:$0xff] %v6801_v13  ;;  %v10347_v59 = vunpack.c.l.bf16 %v10346_v25  ;;  %v10348_v53 = vld [vmem:[#allocation8_spill] sm:$0xff]  ;;  %v1860_v13 = vmul.f32 %v6850_v61, %v1854_v11  ;;  %v1862_v57 = vmul.f32 %v1854_v11, %v6899_v0  ;;  %v1863_v14 = vmul.f32 %v10352_v12, %v1854_v11 }
 0x15a   : > { %10296 = vst [vmem:[#allocation73_spill] sm:$0xff] %v6804_v3  ;;  %v1856_v7 = vmul.f32 %v10348_v53, %v1854_v11  ;;  %v10350_v3 = vunpack.c.l.bf16 %v6795_v35  ;;  %v1866_v23 = vmul.f32 %v1854_v11, %v6909_v60  ;;  %v10354_v35 = vunpack.c.l.bf16 %v6813_v1 }
 0x15b   : > { %10298 = vst [vmem:[#allocation68_spill] sm:$0xff] %v6807_v44  ;;  %v1855_v41 = vmul.f32 %v10347_v59, %v1854_v11  ;;  %v1858_v44 = vmul.f32 %v1854_v11, %v6895_v46  ;;  %v10351_v59 = vunpack.c.l.bf16 %v6853_v6  ;;  %v10358_v1 = vunpack.c.l.bf16 %v6831_v50 }
 0x15c   : > { %10299 = vst [vmem:[#allocation66_spill] sm:$0xff] %v6810_v28  ;;  %v10356_v28 = vunpack.c.l.bf16 %v6828_v29 }
 0x15d   : > { %10302 = vst [vmem:[#allocation4_spill] sm:$0xff] %v6816_v4  ;;  %v6945_v4 = vunpack.c.h.bf16 %v6892_v45 }
 0x15e   : > { %10304 = vst [vmem:[#allocation24_spill] sm:$0xff] %v6819_v24  ;;  %v6941_v24 = vunpack.c.h.bf16 %v6888_v30  ;;  %v1871_v12 = vmul.f32 %v10356_v28, %v1854_v11 }
 0x15f   : > { %10306 = vst [vmem:[#allocation23_spill] sm:$0xff] %v6822_v21  ;;  %v6937_v21 = vld [vmem:[%s4663_s26 + $0x68] sm:$0x1] }
 0x160   : > { %10308 = vst [vmem:[#allocation67_spill] sm:$0xff] %v6825_v36  ;;  %v6934_v36 = vld [vmem:[%s4663_s26 + $0x5c] sm:$0x1] }
 0x161   : > { %10309 = vst [vmem:[#allocation6_spill] sm:$0xff] %v6828_v29  ;;  %v10360_v29 = vunpack.c.l.bf16 %v6847_v22 }
 0x162   : > { %10310 = vst [vmem:[#allocation26_spill] sm:$0xff] %v6831_v50 }
 0x163   : > { %10312 = vst [vmem:[#allocation65_spill] sm:$0xff] %v6834_v48  ;;  %v6928_v48 = vunpack.c.h.bf16 %v6881_v58  ;;  %v1879_v28 = vmul.f32 %v10360_v29, %v1854_v11  ;;  %v7005_v29 = vadd.f32 %v1856_v7, %v6734_v26  ;;  %v7026_v26 = vadd.f32 %v1863_v14, %v6756_v32  ;;  %v10374_v32 = vld [vmem:[#allocation42_spill] sm:$0xff] }
 0x164   : > { %10314 = vst [vmem:[#allocation27_spill] sm:$0xff] %v6837_v56  ;;  %v1857_v56 = vmul.f32 %v1854_v11, %v10349_v19 }
 0x165   : > { %10316 = vst [vmem:[#allocation9_spill] sm:$0xff] %v6840_v8  ;;  %v6924_v8 = vunpack.c.h.bf16 %v6875_v47 }
 0x166   : > { %10317 = vst [vmem:[#allocation30_spill] sm:$0xff] %v6850_v61  ;;  %v1868_v61 = vmul.f32 %v6864_v39, %v1854_v11 }
 0x167   : > { %10318 = vst [vmem:[#allocation25_spill] sm:$0xff] %v6853_v6  ;;  %v10355_v6 = vunpack.c.l.bf16 %v6867_v33 }
 0x168   : > { %10319 = vst [vmem:[#allocation31_spill] sm:$0xff] %v6857_v51 }
 0x169   : > { %10320 = vst [vmem:[#allocation11_spill] sm:$0xff] %v6860_v63 }
 0x16a   : > { %10321 = vst [vmem:[#allocation53_spill] sm:$0xff] %v6864_v39  ;;  %v1876_v39 = vmul.f32 %v6878_v52, %v1854_v11 }
 0x16b   : > { %10322 = vst [vmem:[#allocation28_spill] sm:$0xff] %v6867_v33  ;;  %v10359_v33 = vunpack.c.l.bf16 %v6881_v58 }
 0x16c   : > { %10323 = vst [vmem:[#allocation2_spill] sm:$0xff] %v6871_v16 }
 0x16d   : > { %10324 = vst [vmem:[#allocation13_spill] sm:$0xff] %v6875_v47 }
 0x16e   : > { %10325 = vst [vmem:[#allocation17_spill] sm:$0xff] %v6878_v52  ;;  %v10364_v52 = vunpack.c.l.bf16 %v6892_v45 }
 0x16f   : > { %10326 = vst [vmem:[#allocation29_spill] sm:$0xff] %v6881_v58 }
 0x170   : > { %10327 = vst [vmem:[#allocation37_spill] sm:$0xff] %v6885_v2  ;;  %v1885_v58 = vmul.f32 %v1854_v11, %v10364_v52 }
 0x171   : > { %10328 = vst [vmem:[#allocation16_spill] sm:$0xff] %v6888_v30 }
 0x172   : > { %10329 = vst [vmem:[#allocation44_spill] sm:$0xff] %v6892_v45  ;;  %v7017_v45 = vadd.f32 %v1860_v13, %v6747_v18 }
 0x173   : > { %10330 = vst [vmem:[#allocation32_spill] sm:$0xff] %v6895_v46 }
 0x174   : > { %10331 = vst [vmem:[#allocation49_spill] sm:$0xff] %v6899_v0  ;;  %v1870_v0 = vmul.f32 %v1854_v11, %v6913_v55 }
 0x175   : > { %10332 = vst [vmem:[#allocation18_spill] sm:$0xff] %v6903_v10 }
 0x176   : > { %10333 = vst [vmem:[#allocation69_spill] sm:$0xff] %v6906_v38  ;;  %v10362_v38 = vld [vmem:[#allocation63_spill] sm:$0xff] }
 0x177   : > { %10334 = vst [vmem:[#allocation33_spill] sm:$0xff] %v6909_v60  ;;  %v1874_v60 = vmul.f32 %v1854_v11, %v6924_v8  ;;  %v1883_v50 = vmul.f32 %v10362_v38, %v1854_v11 }
 0x178   : > { %10335 = vst [vmem:[#allocation70_spill] sm:$0xff] %v6913_v55  ;;  %v1878_v55 = vmul.f32 %v1854_v11, %v6928_v48 }
 0x179   : > { %10337 = vst [vmem:[#allocation71_spill] sm:$0xff] %v6917_v62  ;;  %v1859_v62 = vmul.f32 %v10350_v3, %v1854_v11  ;;  %v1867_v3 = vmul.f32 %v10354_v35, %v1854_v11  ;;  %v1875_v35 = vmul.f32 %v10358_v1, %v1854_v11  ;;  %v10363_v1 = vld [vmem:[#allocation64_spill] sm:$0xff] }
 0x17a   : > { %10338 = vst [vmem:[#allocation61_spill] sm:$0xff] %v6920_v54  ;;  %v1861_v54 = vmul.f32 %v1854_v11, %v10351_v59  ;;  %v1869_v59 = vmul.f32 %v1854_v11, %v10355_v6  ;;  %v1877_v6 = vmul.f32 %v1854_v11, %v10359_v33  ;;  %v1884_v46 = vmul.f32 %v10363_v1, %v1854_v11 }
 0x17b   : > { %10339 = vst [vmem:[#allocation3_spill] sm:$0xff] %v6924_v8  ;;  %v1882_v8 = vmul.f32 %v1854_v11, %v6941_v24  ;;  %v1886_v33 = vmul.f32 %v1854_v11, %v6945_v4  ;;  %v7014_v38 = vadd.f32 %v1859_v62, %v6744_v49  ;;  %v7035_v49 = vadd.f32 %v1866_v23, %v6765_v5  ;;  %v10378_v5 = vld [vmem:[#allocation15_spill] sm:$0xff]  ;;  %v7068_v62 = vld [vmem:[%s4663_s26 + $0x80] sm:$0x1] }
 0x17c   : > { %10340 = vst [vmem:[#allocation19_spill] sm:$0xff] %v6928_v48  ;;  %v7002_v48 = vadd.f32 %v1855_v41, %v6730_v20  ;;  %v7020_v52 = vadd.f32 %v1861_v54, %v6750_v42  ;;  %v7023_v20 = vadd.f32 %v1862_v57, %v6753_v37  ;;  %v7038_v18 = vadd.f32 %v1867_v3, %v6768_v17  ;;  %v10380_v17 = vld [vmem:[#allocation51_spill] sm:$0xff]  ;;  %v10389_v57 = vld [vmem:[#allocation62_spill] sm:$0xff] }
 0x17d   : > { %10342 = vst [vmem:[#allocation50_spill] sm:$0xff] %v6934_v36  ;;  %v10353_v36 = vunpack.c.l.bf16 %v6860_v63  ;;  %v10357_v63 = vunpack.c.l.bf16 %v6875_v47  ;;  %v10361_v47 = vunpack.c.l.bf16 %v6888_v30  ;;  %v7008_v30 = vadd.f32 %v1857_v56, %v6738_v40  ;;  %v7065_v56 = vld [vmem:[%s4663_s26 + $0x74] sm:$0x1]  ;;  %v10391_v23 = vld [vmem:[#allocation22_spill] sm:$0xff] }
 0x17e   : > { %10343 = vst [vmem:[#allocation7_spill] sm:$0xff] %v6937_v21  ;;  %v1864_v21 = vmul.f32 %v6857_v51, %v1854_v11  ;;  %v1872_v51 = vmul.f32 %v6871_v16, %v1854_v11  ;;  %v1880_v16 = vmul.f32 %v6885_v2, %v1854_v11  ;;  %v7041_v42 = vadd.f32 %v1868_v61, %v6771_v43  ;;  %v7071_v61 = vld [vmem:[%s4663_s26 + $0x8c] sm:$0x1]  ;;  %v7089_v3 = vld [vmem:[%s4663_s26 + $0xa4] sm:$0x1] }
 0x17f   : > { %10344 = vst [vmem:[#allocation21_spill] sm:$0xff] %v6941_v24  ;;  %v1865_v19 = vmul.f32 %v1854_v11, %v10353_v36  ;;  %v1873_v36 = vmul.f32 %v1854_v11, %v10357_v63  ;;  %v1881_v63 = vmul.f32 %v1854_v11, %v10361_v47  ;;  %v7011_v47 = vadd.f32 %v1858_v44, %v6741_v34  ;;  %v10382_v44 = vld [vmem:[#allocation20_spill] sm:$0xff]  ;;  %v10393_v11 = vld [vmem:[#allocation73_spill] sm:$0xff] }
 0x180   : > { %10345 = vst [vmem:[#allocation10_spill] sm:$0xff] %v6945_v4  ;;  %v7029_v40 = vadd.f32 %v1864_v21, %v6759_v27  ;;  %v7044_v37 = vadd.f32 %v1869_v59, %v6774_v9  ;;  %v7047_v27 = vadd.f32 %v1870_v0, %v10374_v32  ;;  %v7053_v41 = vadd.f32 %v1872_v51, %v10378_v5  ;;  %v10384_v21 = vld [vmem:[#allocation56_spill] sm:$0xff]  ;;  %v7104_v32 = vld [vmem:[%s4663_s26 + $0xbc] sm:$0x1] }
 0x181   : > { %10365 = vst [vmem:[#allocation58_spill] sm:$0xff] %v7020_v52  ;;  %v7032_v34 = vadd.f32 %v1865_v19, %v6762_v15  ;;  %v10376_v15 = vld [vmem:[#allocation43_spill] sm:$0xff]  ;;  %v7056_v13 = vadd.f32 %v1873_v36, %v10380_v17  ;;  %v7059_v43 = vadd.f32 %v1874_v60, %v10382_v44  ;;  %v7062_v9 = vadd.f32 %v1875_v35, %v10384_v21  ;;  %v10395_v0 = vld [vmem:[#allocation68_spill] sm:$0xff]  ;;  %v7086_v19 = vld [vmem:[%s4663_s26 + $0x98] sm:$0x1] }
 0x182   : > { %10366 = vst [vmem:[#allocation12_spill] sm:$0xff] %v7023_v20  ;;  %v7050_v7 = vadd.f32 %v1871_v12, %v10376_v15  ;;  %v7074_v51 = vadd.f32 %v1876_v39, %v10389_v57  ;;  %v7077_v54 = vadd.f32 %v1877_v6, %v10391_v23  ;;  %v7080_v60 = vadd.f32 %v1878_v55, %v10393_v11  ;;  %v7092_v59 = vld [vmem:[%s4663_s26 + $0xb0] sm:$0x1]  ;;  %v10404_v6 = vld [vmem:[#allocation23_spill] sm:$0xff]  ;;  %v10411_v21 = vld [vmem:[#allocation65_spill] sm:$0xff] }
 0x183   : > { %10367 = vst [vmem:[#allocation14_spill] sm:$0xff] %v7026_v26  ;;  %v7083_v14 = vadd.f32 %v1879_v28, %v10395_v0  ;;  %v10400_v39 = vld [vmem:[#allocation4_spill] sm:$0xff]  ;;  %v7101_v55 = vadd.f32 %v1882_v8, %v10404_v6  ;;  %v7107_v28 = vld [vmem:[%s4663_s26 + $0xc8] sm:$0x1]  ;;  %v7116_v57 = vadd.f32 %v1884_v46, %v10411_v21  ;;  %v7128_v0 = vld [vmem:[%s4663_s26 + $0x18] sm:$0xe] }
 0x184   : > { %10368 = vst [vmem:[#allocation34_spill] sm:$0xff] %v7029_v40  ;;  %v7095_v12 = vadd.f32 %v1880_v16, %v10400_v39  ;;  %v10402_v36 = vld [vmem:[#allocation24_spill] sm:$0xff]  ;;  %v10409_v17 = vld [vmem:[#allocation67_spill] sm:$0xff]  ;;  %v7131_v39 = vld [vmem:[%s4663_s26 + $0x24] sm:$0xe] }
 0x185   : > { %10369 = vst [vmem:[#allocation35_spill] sm:$0xff] %v7032_v34  ;;  %v7098_v35 = vadd.f32 %v1881_v63, %v10402_v36  ;;  %v10408_v15 = vld [vmem:[#allocation72_spill] sm:$0xff]  ;;  %v7113_v44 = vadd.f32 %v1883_v50, %v10409_v17  ;;  %v10413_v16 = vld [vmem:[#allocation27_spill] sm:$0xff]  ;;  %v10415_v63 = vld [vmem:[#allocation9_spill] sm:$0xff] }
 0x186   : > { %10370 = vst [vmem:[#allocation36_spill] sm:$0xff] %v7035_v49  ;;  %v7110_v5 = vperm.slane %v10408_v15, 7  ;;  %v7119_v23 = vadd.f32 %v1885_v58, %v10413_v16  ;;  %v7122_v11 = vadd.f32 %v1886_v33, %v10415_v63  ;;  %v7125_v8 = vld [vmem:[%s4663_s26 + $0xd4] sm:$0x1]  ;;  %v10420_v16 = vunpack.c.l.bf16 %v10346_v25  ;;  %v10426_v36 = vld [vmem:[#allocation57_spill] sm:$0xff] }
 0x187   : > { %10371 = vst [vmem:[#allocation38_spill] sm:$0xff] %v7038_v18  ;;  %v10421_v58 = vunpack.c.l.bf16 %v6903_v10  ;;  %v10422_v33 = vunpack.c.l.bf16 %v6843_v31  ;;  %v10423_v21 = vld [vmem:[#allocation32_spill] sm:$0xff] }
 0x188   : > { %10372 = vst [vmem:[#allocation39_spill] sm:$0xff] %v7041_v42  ;;  %v1952_v63 = vmul.f32 %v10420_v16, %v7110_v5  ;;  %v1953_v46 = vmul.f32 %v10348_v53, %v7110_v5  ;;  %v7159_v25 = vmul.f32 %v7110_v5, %v10423_v21  ;;  %v10424_v16 = vld [vmem:[#allocation69_spill] sm:$0xff] }
 0x189   : > { %10373 = vst [vmem:[#allocation40_spill] sm:$0xff] %v7044_v37  ;;  %v1954_v15 = vmul.f32 %v7110_v5, %v10421_v58  ;;  %v7155_v17 = vmul.f32 %v7110_v5, %v10422_v33  ;;  %v10425_v50 = vunpack.c.l.bf16 %v10424_v16  ;;  %v10428_v58 = vld [vmem:[#allocation30_spill] sm:$0xff]  ;;  %v10429_v33 = vld [vmem:[#allocation71_spill] sm:$0xff]  ;;  %v10431_v21 = vld [vmem:[#allocation25_spill] sm:$0xff] }
 0x18a   : > { %10375 = vst [vmem:[#allocation41_spill] sm:$0xff] %v7047_v27  ;;  %v7173_v31 = vmul.f32 %v10428_v58, %v7110_v5  ;;  %v10430_v53 = vunpack.c.l.bf16 %v10429_v33  ;;  %v10436_v58 = vld [vmem:[#allocation66_spill] sm:$0xff]  ;;  %v2049_v40 = vrot.slane %v1953_v46, 1 }
 0x18b   : > { %10377 = vst [vmem:[#allocation45_spill] sm:$0xff] %v7050_v7  ;;  %v7164_v6 = vmul.f32 %v7110_v5, %v10425_v50  ;;  %v10433_v50 = vld [vmem:[#allocation49_spill] sm:$0xff]  ;;  %v10437_v33 = vunpack.c.l.bf16 %v10436_v58  ;;  %v10444_v58 = vld [vmem:[#allocation50_spill] sm:$0xff] }
 0x18c   : > { %10379 = vst [vmem:[#allocation46_spill] sm:$0xff] %v7053_v41  ;;  %v2059_v52 = vrot.slane %v7173_v31, 1 }
 0x18d   : > { %10381 = vst [vmem:[#allocation47_spill] sm:$0xff] %v7056_v13 }
 0x18e   : > { %10383 = vst [vmem:[#allocation48_spill] sm:$0xff] %v7059_v43 }
 0x18f   : > { %10385 = vst [vmem:[#allocation52_spill] sm:$0xff] %v7062_v9 }
 0x190   : > { %10386 = vst [vmem:[#allocation54_spill] sm:$0xff] %v7065_v56 }
 0x191   : > { %10387 = vst [vmem:[#allocation55_spill] sm:$0xff] %v7068_v62 }
 0x192   : > { %10388 = vst [vmem:[#allocation59_spill] sm:$0xff] %v7071_v61 }
 0x193   : > { %10390 = vst [vmem:[#allocation60_spill] sm:$0xff] %v7074_v51 }
 0x194   : > { %10392 = vst [vmem:[#allocation42_spill] sm:$0xff] %v7077_v54 }
 0x195   : > { %10394 = vst [vmem:[#allocation43_spill] sm:$0xff] %v7080_v60 }
 0x196   : > { %10396 = vst [vmem:[#allocation15_spill] sm:$0xff] %v7083_v14 }
 0x197   : > { %10397 = vst [vmem:[#allocation51_spill] sm:$0xff] %v7086_v19 }
 0x198   : > { %10398 = vst [vmem:[#allocation20_spill] sm:$0xff] %v7089_v3 }
 0x199   : > { %10399 = vst [vmem:[#allocation56_spill] sm:$0xff] %v7092_v59 }
 0x19a   : > { %10401 = vst [vmem:[#allocation62_spill] sm:$0xff] %v7095_v12 }
 0x19b   : > { %10403 = vst [vmem:[#allocation22_spill] sm:$0xff] %v7098_v35 }
 0x19c   : > { %10405 = vst [vmem:[#allocation73_spill] sm:$0xff] %v7101_v55 }
 0x19d   : > { %10406 = vst [vmem:[#allocation68_spill] sm:$0xff] %v7104_v32 }
 0x19e   : > { %10407 = vst [vmem:[#allocation4_spill] sm:$0xff] %v7107_v28 }
 0x19f   : > { %10410 = vst [vmem:[#allocation24_spill] sm:$0xff] %v7113_v44  ;;  %v7197_v44 = vmul.f32 %v10437_v33, %v7110_v5  ;;  %v10445_v33 = vunpack.c.l.bf16 %v10444_v58 }
 0x1a0   : > { %10412 = vst [vmem:[#allocation23_spill] sm:$0xff] %v7116_v57 }
 0x1a1   : > { %10414 = vst [vmem:[#allocation72_spill] sm:$0xff] %v7119_v23  ;;  %v7187_v23 = vmul.f32 %v7110_v5, %v10433_v50  ;;  %v10441_v50 = vld [vmem:[#allocation11_spill] sm:$0xff]  ;;  %v7220_v60 = vmul.f32 %v7110_v5, %v10445_v33  ;;  %v10453_v33 = vld [vmem:[#allocation70_spill] sm:$0xff] }
 0x1a2   : > { %10416 = vst [vmem:[#allocation67_spill] sm:$0xff] %v7122_v11  ;;  %v10432_v11 = vunpack.c.l.bf16 %v10431_v21  ;;  %v10442_v12 = vunpack.c.l.bf16 %v10441_v50  ;;  %v7243_v13 = vmul.f32 %v7110_v5, %v10453_v33  ;;  %v10459_v33 = vld [vmem:[#allocation13_spill] sm:$0xff] }
 0x1a3   : > { %10417 = vst [vmem:[#allocation65_spill] sm:$0xff] %v7125_v8  ;;  %v10460_v27 = vunpack.c.l.bf16 %v10459_v33 }
 0x1a4   : > { %10418 = vst [vmem:[#allocation27_spill] sm:$0xff] %v7128_v0  ;;  %v7178_v0 = vmul.f32 %v7110_v5, %v10430_v53  ;;  %v7183_v16 = vmul.f32 %v7110_v5, %v10432_v11  ;;  %v10438_v53 = vld [vmem:[#allocation31_spill] sm:$0xff]  ;;  %v10439_v11 = vld [vmem:[#allocation5_spill] sm:$0xff] }
 0x1a5   : > { %10419 = vst [vmem:[#allocation9_spill] sm:$0xff] %v7131_v39  ;;  %v10427_v39 = vunpack.c.l.bf16 %v10426_v36  ;;  %v7201_v21 = vmul.f32 %v10438_v53, %v7110_v5  ;;  %v10440_v55 = vunpack.c.l.bf16 %v10439_v11  ;;  %v10446_v53 = vld [vmem:[#allocation74_spill] sm:$0xff] }
 0x1a6   : > { %v10447_v11 = vunpack.c.l.bf16 %v10446_v53  ;;  %v10454_v53 = vunpack.c.l.bf16 %v7065_v56  ;;  %v7267_v56 = vmul.f32 %v7110_v5, %v10460_v27  ;;  %v10466_v27 = vunpack.c.l.bf16 %v7086_v19 }
 0x1a7   : > { %v7169_v10 = vmul.f32 %v10427_v39, %v7110_v5  ;;  %v10434_v39 = vld [vmem:[#allocation61_spill] sm:$0xff]  ;;  %v7206_v35 = vmul.f32 %v7110_v5, %v10440_v55  ;;  %v10471_v19 = vunpack.c.l.bf16 %v6847_v22  ;;  %v7327_v22 = vmul.f32 %v7110_v5, %v6941_v24 }
 0x1a8   : > { %v10435_v36 = vunpack.c.l.bf16 %v10434_v39  ;;  %v7211_v39 = vmul.f32 %v7110_v5, %v10442_v12  ;;  %v7225_v54 = vmul.f32 %v10447_v11, %v7110_v5  ;;  %v10448_v55 = vld [vmem:[#allocation53_spill] sm:$0xff]  ;;  %v10449_v12 = vld [vmem:[#allocation7_spill] sm:$0xff]  ;;  %v7248_v11 = vmul.f32 %v7110_v5, %v10454_v53 }
 0x1a9   : > { %v7229_v50 = vmul.f32 %v10448_v55, %v7110_v5  ;;  %v10450_v51 = vunpack.c.l.bf16 %v10449_v12  ;;  %v10455_v55 = vld [vmem:[#allocation6_spill] sm:$0xff]  ;;  %v10461_v53 = vld [vmem:[#allocation3_spill] sm:$0xff]  ;;  %v7290_v18 = vmul.f32 %v7110_v5, %v10466_v27 }
 0x1aa   : > { %v7192_v57 = vmul.f32 %v7110_v5, %v10435_v36  ;;  %v10443_v36 = vld [vmem:[#allocation33_spill] sm:$0xff]  ;;  %v10456_v12 = vunpack.c.l.bf16 %v10455_v55  ;;  %v7271_v37 = vmul.f32 %v7110_v5, %v10461_v53  ;;  %v10462_v55 = vunpack.c.l.bf16 %v7071_v61 }
 0x1ab   : > { %v7215_v14 = vmul.f32 %v7110_v5, %v10443_v36  ;;  %v7234_v9 = vmul.f32 %v7110_v5, %v10450_v51  ;;  %v10451_v36 = vld [vmem:[#allocation28_spill] sm:$0xff]  ;;  %v10457_v51 = vld [vmem:[#allocation2_spill] sm:$0xff]  ;;  %v10467_v53 = vld [vmem:[#allocation29_spill] sm:$0xff] }
 0x1ac   : > { %v10452_v43 = vunpack.c.l.bf16 %v10451_v36  ;;  %v7253_v41 = vmul.f32 %v10456_v12, %v7110_v5  ;;  %v7257_v36 = vmul.f32 %v10457_v51, %v7110_v5  ;;  %v7276_v12 = vmul.f32 %v7110_v5, %v10462_v55  ;;  %v10463_v51 = vld [vmem:[#allocation26_spill] sm:$0xff]  ;;  %v10469_v55 = vld [vmem:[#allocation19_spill] sm:$0xff] }
 0x1ad   : > { %v10468_v49 = vunpack.c.l.bf16 %v10467_v53  ;;  %v7299_v34 = vmul.f32 %v7110_v5, %v10469_v55  ;;  %v7313_v53 = vmul.f32 %v6885_v2, %v7110_v5  ;;  %v2048_v55 = vrot.slane %v1952_v63, 1  ;;  %v10478_v63 = vld [vmem:[#allocation44_spill] sm:$0xff] }
 0x1ae   : > { %v7239_v58 = vmul.f32 %v7110_v5, %v10452_v43  ;;  %v10458_v43 = vunpack.c.l.bf16 %v7068_v62  ;;  %v10464_v62 = vunpack.c.l.bf16 %v10463_v51  ;;  %v10479_v24 = vunpack.c.l.bf16 %v10478_v63 }
 0x1af   : > { %v7295_v61 = vmul.f32 %v7110_v5, %v10468_v49  ;;  %v10472_v49 = vunpack.c.l.bf16 %v7092_v59  ;;  %v2051_v59 = vrot.slane %v1954_v15, 1  ;;  %v7354_v15 = vmul.f32 %v7110_v5, %v6945_v4 }
 0x1b0   : > { %v7262_v7 = vmul.f32 %v7110_v5, %v10458_v43  ;;  %v7281_v42 = vmul.f32 %v10464_v62, %v7110_v5  ;;  %v10465_v43 = vld [vmem:[#allocation17_spill] sm:$0xff]  ;;  %v10470_v62 = vunpack.c.l.bf16 %v7089_v3  ;;  %v10473_v3 = vld [vmem:[#allocation16_spill] sm:$0xff]  ;;  %v2056_v63 = vrot.slane %v7164_v6, 1 }
 0x1b1   : > { %v7285_v33 = vmul.f32 %v10465_v43, %v7110_v5  ;;  %v7309_v43 = vmul.f32 %v10471_v19, %v7110_v5  ;;  %v7318_v27 = vmul.f32 %v7110_v5, %v10472_v49  ;;  %v10474_v26 = vunpack.c.l.bf16 %v10473_v3  ;;  %v10476_v49 = vld [vmem:[#allocation63_spill] sm:$0xff] }
 0x1b2   : > { %v7304_v51 = vmul.f32 %v7110_v5, %v10470_v62  ;;  %v10475_v19 = vunpack.c.l.bf16 %v7104_v32  ;;  %v7336_v20 = vmul.f32 %v10476_v49, %v7110_v5  ;;  %v7340_v3 = vmul.f32 %v10363_v1, %v7110_v5 }
 0x1b3   : > { %v7323_v62 = vmul.f32 %v7110_v5, %v10474_v26  ;;  %v10477_v26 = vunpack.c.l.bf16 %v7107_v28  ;;  %v7350_v32 = vmul.f32 %v7110_v5, %v10479_v24  ;;  %v2053_v1 = vrot.slane %v7155_v17, 1 }
 0x1b4   : > { %v7332_v2 = vmul.f32 %v7110_v5, %v10475_v19  ;;  %v10480_v19 = vunpack.c.l.bf16 %v7125_v8  ;;  %v2054_v28 = vrot.slane %v7159_v25, 1  ;;  %v2058_v24 = vrot.slane %v7169_v10, 1 }
 0x1b5   : > { %v7345_v46 = vmul.f32 %v7110_v5, %v10477_v26  ;;  %v7364_v26 = vsel %vm694_vm0, %v2048_v55, %v2049_v40  ;;  %v7370_v4 = vsel %vm694_vm0, %v2049_v40, %v2051_v59  ;;  %v2061_v8 = vrot.slane %v7178_v0, 1 }
 0x1b6   : > { %v7359_v49 = vmul.f32 %v7110_v5, %v10480_v19  ;;  %v2063_v5 = vrot.slane %v7183_v16, 1  ;;  %v2064_v17 = vrot.slane %v7187_v23, 1  ;;  %v2066_v25 = vrot.slane %v7192_v57, 1 }
 0x1b7   : > { %v2068_v55 = vrot.slane %v7197_v44, 1  ;;  %v2069_v19 = vrot.slane %v7201_v21, 1  ;;  %v2071_v6 = vrot.slane %v7206_v35, 1  ;;  %v2073_v10 = vrot.slane %v7211_v39, 1 }
 0x1b8   : > { %v2074_v31 = vrot.slane %v7215_v14, 1  ;;  %v2076_v40 = vrot.slane %v7220_v60, 1  ;;  %v2078_v59 = vrot.slane %v7225_v54, 1  ;;  %v2079_v0 = vrot.slane %v7229_v50, 1 }
 0x1b9   : > { %v2081_v23 = vrot.slane %v7234_v9, 1  ;;  %v2083_v57 = vrot.slane %v7239_v58, 1  ;;  %v2084_v44 = vrot.slane %v7243_v13, 1  ;;  %v2055_v16 = vsel %vm694_vm0, %v2053_v1, %v2054_v28 }
 0x1ba   : > { %v2086_v35 = vrot.slane %v7248_v11, 1  ;;  %v2088_v39 = vrot.slane %v7253_v41, 1  ;;  %v2089_v14 = vrot.slane %v7257_v36, 1  ;;  %v2057_v60 = vsel %vm694_vm0, %v2054_v28, %v2056_v63 }
 0x1bb   : > { %v2060_v54 = vsel %vm694_vm0, %v2058_v24, %v2059_v52  ;;  %v2062_v21 = vsel %vm694_vm0, %v2059_v52, %v2061_v8  ;;  %v2065_v9 = vsel %vm694_vm0, %v2063_v5, %v2064_v17  ;;  %v2067_v58 = vsel %vm694_vm0, %v2064_v17, %v2066_v25 }
 0x1bc   : > { %v2070_v13 = vsel %vm694_vm0, %v2068_v55, %v2069_v19  ;;  %v2072_v1 = vsel %vm694_vm0, %v2069_v19, %v2071_v6  ;;  %v2075_v50 = vsel %vm694_vm0, %v2073_v10, %v2074_v31  ;;  %v2077_v41 = vsel %vm694_vm0, %v2074_v31, %v2076_v40 }
 0x1bd   : > { %v2080_v11 = vsel %vm694_vm0, %v2078_v59, %v2079_v0  ;;  %v2082_v28 = vsel %vm694_vm0, %v2079_v0, %v2081_v23  ;;  %v2085_v36 = vsel %vm694_vm0, %v2083_v57, %v2084_v44  ;;  %v2087_v52 = vsel %vm694_vm0, %v2084_v44, %v2086_v35 }
 0x1be   : > { %v2090_v8 = vsel %vm694_vm0, %v2088_v39, %v2089_v14  ;;  %v2091_v63 = vrot.slane %v7262_v7, 1  ;;  %v2093_v24 = vrot.slane %v7267_v56, 1  ;;  %v2094_v5 = vrot.slane %v7271_v37, 1 }
 0x1bf   : > { %v2096_v17 = vrot.slane %v7276_v12, 1  ;;  %v2098_v25 = vrot.slane %v7281_v42, 1  ;;  %v2099_v55 = vrot.slane %v7285_v33, 1  ;;  %v2101_v19 = vrot.slane %v7290_v18, 1 }
 0x1c0   : > { %v2103_v6 = vrot.slane %v7295_v61, 1  ;;  %v2104_v10 = vrot.slane %v7299_v34, 1  ;;  %v2106_v31 = vrot.slane %v7304_v51, 1  ;;  %v2108_v7 = vrot.slane %v7309_v43, 1 }
 0x1c1   : > { %v2109_v56 = vrot.slane %v7313_v53, 1  ;;  %v2111_v37 = vrot.slane %v7318_v27, 1  ;;  %v2113_v12 = vrot.slane %v7323_v62, 1  ;;  %v2114_v42 = vrot.slane %v7327_v22, 1 }
 0x1c2   : > { %v2116_v33 = vrot.slane %v7332_v2, 1  ;;  %v2118_v18 = vrot.slane %v7336_v20, 1  ;;  %v2119_v61 = vrot.slane %v7340_v3, 1  ;;  %v2092_v34 = vsel %vm694_vm0, %v2089_v14, %v2091_v63 }
 0x1c3   : > { %v2121_v51 = vrot.slane %v7345_v46, 1  ;;  %v2123_v43 = vrot.slane %v7350_v32, 1  ;;  %v2124_v53 = vrot.slane %v7354_v15, 1  ;;  %v2095_v27 = vsel %vm694_vm0, %v2093_v24, %v2094_v5 }
 0x1c4   : > { %v2097_v62 = vsel %vm694_vm0, %v2094_v5, %v2096_v17  ;;  %v2100_v22 = vsel %vm694_vm0, %v2098_v25, %v2099_v55  ;;  %v2126_v2 = vrot.slane %v7359_v49, 1  ;;  %v2102_v20 = vsel %vm694_vm0, %v2099_v55, %v2101_v19  ;;  %v10484_v5 = vld [vmem:[#allocation14_spill] sm:$0xff]  ;;  %v10494_v17 = vld [vmem:[#allocation39_spill] sm:$0xff]  ;;  %v10496_v25 = vld [vmem:[#allocation40_spill] sm:$0xff] }
 0x1c5   : > { %v2105_v3 = vsel %vm694_vm0, %v2103_v6, %v2104_v10  ;;  %v2107_v40 = vsel %vm694_vm0, %v2104_v10, %v2106_v31  ;;  %v2110_v46 = vsel %vm694_vm0, %v2108_v7, %v2109_v56  ;;  %v2112_v32 = vsel %vm694_vm0, %v2109_v56, %v2111_v37  ;;  %v10498_v55 = vld [vmem:[#allocation41_spill] sm:$0xff]  ;;  %v10502_v6 = vld [vmem:[#allocation46_spill] sm:$0xff]  ;;  %v3962_v37 = vld [vmem:[%s4663_s26 + $0x48] sm:$0xe] }
 0x1c6   : > { %v2115_v15 = vsel %vm694_vm0, %v2113_v12, %v2114_v42  ;;  %v2117_v59 = vsel %vm694_vm0, %v2114_v42, %v2116_v33  ;;  %v2120_v0 = vsel %vm694_vm0, %v2118_v18, %v2119_v61  ;;  %v2122_v23 = vsel %vm694_vm0, %v2119_v61, %v2121_v51  ;;  %v10500_v19 = vld [vmem:[#allocation45_spill] sm:$0xff]  ;;  %v10510_v12 = vld [vmem:[#allocation60_spill] sm:$0xff]  ;;  %v10512_v33 = vld [vmem:[#allocation42_spill] sm:$0xff] }
 0x1c7   : > { %v2125_v49 = vsel %vm694_vm0, %v2123_v43, %v2124_v53  ;;  %v7443_v57 = vadd.f32 %v7364_v26, %v7002_v48  ;;  %v7447_v44 = vadd.f32 %v7370_v4, %v7005_v29  ;;  %v2127_v35 = vsel %vm694_vm0, %v2124_v53, %v2126_v2  ;;  %v10481_v48 = vld [vmem:[#allocation58_spill] sm:$0xff]  ;;  %v10482_v4 = vld [vmem:[#allocation12_spill] sm:$0xff]  ;;  %v10514_v61 = vld [vmem:[#allocation43_spill] sm:$0xff] }
 0x1c8   : > { %v7451_v39 = vadd.f32 %v2055_v16, %v7008_v30  ;;  %v7454_v14 = vadd.f32 %v2057_v60, %v7011_v47  ;;  %v7457_v63 = vadd.f32 %v2060_v54, %v7014_v38  ;;  %v7460_v24 = vadd.f32 %v2062_v21, %v7017_v45  ;;  %v10486_v16 = vld [vmem:[#allocation34_spill] sm:$0xff]  ;;  %v10488_v38 = vld [vmem:[#allocation35_spill] sm:$0xff]  ;;  %v10490_v45 = vld [vmem:[#allocation36_spill] sm:$0xff] }
 0x1c9   : > { %v7463_v26 = vadd.f32 %v2065_v9, %v10481_v48  ;;  %v7466_v29 = vadd.f32 %v2067_v58, %v10482_v4  ;;  %v7469_v30 = vadd.f32 %v2070_v13, %v10484_v5  ;;  %v7472_v47 = vadd.f32 %v2072_v1, %v10486_v16  ;;  %v10492_v21 = vld [vmem:[#allocation38_spill] sm:$0xff]  ;;  %v10516_v51 = vld [vmem:[#allocation15_spill] sm:$0xff]  ;;  %v10522_v48 = vld [vmem:[#allocation73_spill] sm:$0xff] }
 0x1ca   : > { %v7475_v60 = vadd.f32 %v2075_v50, %v10488_v38  ;;  %v7478_v54 = vadd.f32 %v2077_v41, %v10490_v45  ;;  %v7481_v9 = vadd.f32 %v2080_v11, %v10492_v21  ;;  %v7484_v58 = vadd.f32 %v2082_v28, %v10494_v17  ;;  %v3960_v41 = vld [vmem:[%s4663_s26 + $0x30] sm:$0xe]  ;;  %v10504_v11 = vld [vmem:[#allocation47_spill] sm:$0xff]  ;;  %v3964_v53 = vld [vmem:[%s4663_s26 + $0x60] sm:$0xe] }
 0x1cb   : > { %10483 = vst [vmem:[#allocation57_spill] sm:$0xff] %v7466_v29  ;;  %v7487_v13 = vadd.f32 %v2085_v36, %v10496_v25  ;;  %v7490_v1 = vadd.f32 %v2087_v52, %v10498_v55  ;;  %v7493_v50 = vadd.f32 %v2090_v8, %v10500_v19  ;;  %v7497_v10 = vadd.f32 %v2092_v34, %v10502_v6  ;;  %v10506_v28 = vld [vmem:[#allocation48_spill] sm:$0xff]  ;;  %v3961_v52 = vld [vmem:[%s4663_s26 + $0x3c] sm:$0xe]  ;;  %v10518_v2 = vld [vmem:[#allocation62_spill] sm:$0xff] }
 0x1cc   : > { %10485 = vst [vmem:[#allocation25_spill] sm:$0xff] %v7469_v30  ;;  %v7500_v31 = vadd.f32 %v2095_v27, %v10504_v11  ;;  %v7503_v7 = vadd.f32 %v2097_v62, %v10506_v28  ;;  %v10508_v36 = vld [vmem:[#allocation52_spill] sm:$0xff]  ;;  %v7512_v42 = vadd.f32 %v2102_v20, %v10510_v12  ;;  %v7515_v18 = vadd.f32 %v2105_v3, %v10512_v33  ;;  %v3965_v27 = vld [vmem:[%s4663_s26 + $0x6c] sm:$0xe]  ;;  %v3966_v62 = vld [vmem:[%s4663_s26 + $0x78] sm:$0xe] }
 0x1cd   : > { %10487 = vst [vmem:[#allocation66_spill] sm:$0xff] %v7472_v47  ;;  %v7506_v56 = vadd.f32 %v2100_v22, %v10508_v36  ;;  %v3963_v8 = vld [vmem:[%s4663_s26 + $0x54] sm:$0xe]  ;;  %v7518_v34 = vadd.f32 %v2107_v40, %v10514_v61  ;;  %v7521_v43 = vadd.f32 %v2110_v46, %v10516_v51  ;;  %v7529_v22 = vld [vmem:[%s9540_s1 + $0x8] ss:$0 sm:$0xff]  ;;  %v7532_v20 = vadd.f32 %v2112_v32, %v10518_v2  ;;  %v10520_v3 = vld [vmem:[#allocation22_spill] sm:$0xff] }
 0x1ce   : > { %10489 = vst [vmem:[#allocation11_spill] sm:$0xff] %v7475_v60  ;;  %v7535_v40 = vadd.f32 %v2115_v15, %v10520_v3  ;;  %v7538_v46 = vadd.f32 %v2117_v59, %v10522_v48  ;;  %v10524_v4 = vld [vmem:[#allocation24_spill] sm:$0xff]  ;;  %v3967_v16 = vld [vmem:[%s4663_s26 + $0x84] sm:$0xe]  ;;  %v3969_v45 = vld [vmem:[%s4663_s26 + $0x9c] sm:$0xe]  ;;  %v2210_v59 = vunpack.c.l.bf16 %v3960_v41  ;;  %v2212_v36 = vunpack.c.l.bf16 %v3962_v37 }
 0x1cf   : > { %10491 = vst [vmem:[#allocation74_spill] sm:$0xff] %v7478_v54  ;;  %v7541_v5 = vadd.f32 %v2120_v0, %v10524_v4  ;;  %v3968_v38 = vld [vmem:[%s4663_s26 + $0x90] sm:$0xe]  ;;  %v10526_v21 = vld [vmem:[#allocation23_spill] sm:$0xff]  ;;  %v3971_v6 = vld [vmem:[%s4663_s26 + $0xb4] sm:$0xe]  ;;  %v2211_v0 = vunpack.c.l.bf16 %v3961_v52  ;;  %v2213_v12 = vunpack.c.l.bf16 %v3963_v8  ;;  %v2214_v33 = vunpack.c.l.bf16 %v3964_v53 }
 0x1d0   : > { %10493 = vst [vmem:[#allocation28_spill] sm:$0xff] %v7481_v9  ;;  %v7547_v17 = vadd.f32 %v2122_v23, %v10526_v21  ;;  %v10528_v25 = vld [vmem:[#allocation72_spill] sm:$0xff]  ;;  %v10530_v32 = vld [vmem:[#allocation67_spill] sm:$0xff]  ;;  %v7558_v11 = vld [vmem:[%s4663_s26 + $0xc0] sm:$0xe]  ;;  %v2215_v61 = vunpack.c.l.bf16 %v3965_v27  ;;  %v2216_v23 = vunpack.c.l.bf16 %v3966_v62  ;;  %v2217_v51 = vunpack.c.l.bf16 %v3967_v16 }
 0x1d1   : > { %10495 = vst [vmem:[#allocation6_spill] sm:$0xff] %v7484_v58  ;;  %v7550_v55 = vadd.f32 %v2125_v49, %v10528_v25  ;;  %v7553_v19 = vadd.f32 %v2127_v35, %v10530_v32  ;;  %v3970_v15 = vld [vmem:[%s4663_s26 + $0xa8] sm:$0xe]  ;;  %v7561_v28 = vld [vmem:[%s4663_s26 + $0xcc] sm:$0xe]  ;;  %v2218_v2 = vunpack.c.l.bf16 %v3968_v38  ;;  %v2219_v49 = vunpack.c.l.bf16 %v3969_v45  ;;  %v10534_v32 = vld [vmem:[#allocation8_spill] sm:$0xff] }
 0x1d2   : > { %10497 = vst [vmem:[#allocation13_spill] sm:$0xff] %v7487_v13  ;;  %v2220_v3 = vunpack.c.l.bf16 %v3970_v15  ;;  %v2221_v48 = vunpack.c.l.bf16 %v3971_v6  ;;  %v2222_v35 = vunpack.c.l.bf16 %v7558_v11  ;;  %v2223_v4 = vunpack.c.l.bf16 %v7561_v28  ;;  %v10532_v21 = vld [vmem:[#allocation27_spill] sm:$0xff]  ;;  %v10535_v37 = vld [vmem:[#allocation18_spill] sm:$0xff]  ;;  %v10537_v27 = vld [vmem:[#allocation9_spill] sm:$0xff] }
 0x1d3   : > { %10499 = vst [vmem:[#allocation26_spill] sm:$0xff] %v7490_v1  ;;  %v10533_v25 = vunpack.c.l.bf16 %v10532_v21  ;;  %v2226_v52 = vmul.f32 %v7529_v22, %v10534_v32  ;;  %v10536_v8 = vunpack.c.l.bf16 %v10535_v37  ;;  %v10538_v62 = vunpack.c.l.bf16 %v10537_v27  ;;  %v10539_v38 = vld [vmem:[#allocation32_spill] sm:$0xff]  ;;  %v10540_v15 = vld [vmem:[#allocation69_spill] sm:$0xff]  ;;  %v10542_v21 = vld [vmem:[#allocation30_spill] sm:$0xff] }
 0x1d4   : > { %10501 = vst [vmem:[#allocation29_spill] sm:$0xff] %v7493_v50  ;;  %v2229_v45 = vmul.f32 %v7529_v22, %v10539_v38  ;;  %v10541_v6 = vunpack.c.l.bf16 %v10540_v15  ;;  %v7582_v28 = vmul.f32 %v7529_v22, %v2210_v59  ;;  %v10543_v32 = vld [vmem:[#allocation71_spill] sm:$0xff]  ;;  %v7594_v27 = vmul.f32 %v7529_v22, %v2211_v0  ;;  %v10546_v15 = vld [vmem:[#allocation61_spill] sm:$0xff]  ;;  %v10576_v60 = vld [vmem:[#allocation68_spill] sm:$0xff] }
 0x1d5   : > { %10503 = vst [vmem:[#allocation16_spill] sm:$0xff] %v7497_v10  ;;  %v2225_v41 = vmul.f32 %v7529_v22, %v10533_v25  ;;  %v2227_v53 = vmul.f32 %v7529_v22, %v10536_v8  ;;  %v2228_v16 = vmul.f32 %v7529_v22, %v10538_v62  ;;  %v7586_v25 = vmul.f32 %v7529_v22, %v10542_v21  ;;  %v10545_v62 = vld [vmem:[#allocation49_spill] sm:$0xff]  ;;  %v10569_v10 = vld [vmem:[#allocation19_spill] sm:$0xff] }
 0x1d6   : > { %10505 = vst [vmem:[#allocation63_spill] sm:$0xff] %v7500_v31  ;;  %v2230_v11 = vmul.f32 %v7529_v22, %v10541_v6  ;;  %v10544_v37 = vunpack.c.l.bf16 %v10543_v32  ;;  %v7598_v38 = vmul.f32 %v7529_v22, %v10545_v62  ;;  %v10547_v6 = vunpack.c.l.bf16 %v10546_v15  ;;  %v10572_v13 = vld [vmem:[#allocation37_spill] sm:$0xff] }
 0x1d7   : > { %10507 = vst [vmem:[#allocation44_spill] sm:$0xff] %v7503_v7  ;;  %v7606_v21 = vmul.f32 %v7529_v22, %v2212_v36  ;;  %v7618_v62 = vmul.f32 %v7529_v22, %v2213_v12  ;;  %v10566_v7 = vld [vmem:[#allocation17_spill] sm:$0xff]  ;;  %v2321_v1 = vrot.slane %v2225_v41, 2  ;;  %v2327_v41 = vrot.slane %v2229_v45, 2  ;;  %v10581_v45 = vld [vmem:[#allocation10_spill] sm:$0xff] }
 0x1d8   : > { %10509 = vst [vmem:[#allocation58_spill] sm:$0xff] %v7506_v56  ;;  %v7591_v8 = vmul.f32 %v7529_v22, %v10544_v37  ;;  %v7603_v59 = vmul.f32 %v7529_v22, %v10547_v6  ;;  %v10549_v37 = vld [vmem:[#allocation5_spill] sm:$0xff]  ;;  %v10552_v6 = vld [vmem:[#allocation50_spill] sm:$0xff]  ;;  %v10577_v47 = vunpack.c.l.bf16 %v10576_v60  ;;  %v7742_v60 = vmul.f32 %v7529_v22, %v10581_v45 }
 0x1d9   : > { %10511 = vst [vmem:[#allocation12_spill] sm:$0xff] %v7512_v42  ;;  %v10563_v42 = vld [vmem:[#allocation3_spill] sm:$0xff] }
 0x1da   : > { %10513 = vst [vmem:[#allocation14_spill] sm:$0xff] %v7515_v18  ;;  %v2334_v29 = vrot.slane %v7591_v8, 2  ;;  %v2346_v8 = vrot.slane %v7618_v62, 2 }
 0x1db   : > { %10515 = vst [vmem:[#allocation34_spill] sm:$0xff] %v7518_v34  ;;  %v10560_v34 = vld [vmem:[#allocation2_spill] sm:$0xff] }
 0x1dc   : > { %10517 = vst [vmem:[#allocation35_spill] sm:$0xff] %v7521_v43 }
 0x1dd   : > { %10519 = vst [vmem:[#allocation36_spill] sm:$0xff] %v7532_v20  ;;  %v10557_v20 = vld [vmem:[#allocation70_spill] sm:$0xff] }
 0x1de   : > { %10521 = vst [vmem:[#allocation38_spill] sm:$0xff] %v7535_v40 }
 0x1df   : > { %10523 = vst [vmem:[#allocation39_spill] sm:$0xff] %v7538_v46  ;;  %v10554_v46 = vld [vmem:[#allocation53_spill] sm:$0xff] }
 0x1e0   : > { %10525 = vst [vmem:[#allocation40_spill] sm:$0xff] %v7541_v5  ;;  %v10553_v5 = vunpack.c.l.bf16 %v10552_v6  ;;  %v7646_v6 = vmul.f32 %v7529_v22, %v10557_v20  ;;  %v7666_v20 = vmul.f32 %v7529_v22, %v2217_v51 }
 0x1e1   : > { %10527 = vst [vmem:[#allocation41_spill] sm:$0xff] %v7547_v17  ;;  %v10551_v17 = vld [vmem:[#allocation33_spill] sm:$0xff] }
 0x1e2   : > { %10529 = vst [vmem:[#allocation45_spill] sm:$0xff] %v7550_v55  ;;  %v10550_v55 = vunpack.c.l.bf16 %v10549_v37  ;;  %v7622_v15 = vmul.f32 %v7529_v22, %v10551_v17  ;;  %v7627_v36 = vmul.f32 %v7529_v22, %v10553_v5  ;;  %v7634_v37 = vmul.f32 %v7529_v22, %v10554_v46  ;;  %v10558_v5 = vld [vmem:[#allocation54_spill] sm:$0xff] }
 0x1e3   : > { %10531 = vst [vmem:[#allocation46_spill] sm:$0xff] %v7553_v19  ;;  %v10548_v19 = vld [vmem:[#allocation31_spill] sm:$0xff]  ;;  %v7642_v17 = vmul.f32 %v7529_v22, %v2215_v61  ;;  %v10559_v43 = vunpack.c.l.bf16 %v10558_v5  ;;  %v7654_v46 = vmul.f32 %v7529_v22, %v2216_v23  ;;  %v7670_v5 = vmul.f32 %v7529_v22, %v10563_v42 }
 0x1e4   : > { %v7610_v32 = vmul.f32 %v7529_v22, %v10548_v19  ;;  %v7615_v0 = vmul.f32 %v7529_v22, %v10550_v55  ;;  %v7630_v19 = vmul.f32 %v7529_v22, %v2214_v33  ;;  %v10555_v55 = vld [vmem:[#allocation7_spill] sm:$0xff]  ;;  %v7690_v42 = vmul.f32 %v7529_v22, %v2219_v49  ;;  %v10573_v49 = vld [vmem:[#allocation56_spill] sm:$0xff] }
 0x1e5   : > { %v10556_v40 = vunpack.c.l.bf16 %v10555_v55  ;;  %v7651_v33 = vmul.f32 %v7529_v22, %v10559_v43  ;;  %v7658_v55 = vmul.f32 %v7529_v22, %v10560_v34  ;;  %v10564_v43 = vld [vmem:[#allocation59_spill] sm:$0xff]  ;;  %v7678_v34 = vmul.f32 %v7529_v22, %v2218_v2 }
 0x1e6   : > { %v10565_v56 = vunpack.c.l.bf16 %v10564_v43  ;;  %v7694_v43 = vmul.f32 %v7529_v22, %v10569_v10  ;;  %v10574_v58 = vunpack.c.l.bf16 %v10573_v49  ;;  %v7714_v10 = vmul.f32 %v7529_v22, %v2221_v48 }
 0x1e7   : > { %v7639_v12 = vmul.f32 %v7529_v22, %v10556_v40  ;;  %v10561_v40 = vld [vmem:[#allocation55_spill] sm:$0xff]  ;;  %v7726_v49 = vmul.f32 %v7529_v22, %v2222_v35  ;;  %v2361_v62 = vrot.slane %v7654_v46, 2 }
 0x1e8   : > { %v10562_v18 = vunpack.c.l.bf16 %v10561_v40  ;;  %v7675_v23 = vmul.f32 %v7529_v22, %v10565_v56  ;;  %v7682_v40 = vmul.f32 %v7529_v22, %v10566_v7  ;;  %v10570_v56 = vld [vmem:[#allocation20_spill] sm:$0xff]  ;;  %v7702_v7 = vmul.f32 %v7529_v22, %v2220_v3 }
 0x1e9   : > { %v10571_v50 = vunpack.c.l.bf16 %v10570_v56  ;;  %v7711_v9 = vmul.f32 %v7529_v22, %v10574_v58  ;;  %v2324_v56 = vrot.slane %v2227_v53, 2  ;;  %v2326_v3 = vrot.slane %v2228_v16, 2  ;;  %v10578_v58 = vld [vmem:[#allocation64_spill] sm:$0xff] }
 0x1ea   : > { %v7663_v61 = vmul.f32 %v7529_v22, %v10562_v18  ;;  %v10567_v18 = vld [vmem:[#allocation51_spill] sm:$0xff]  ;;  %v7730_v48 = vmul.f32 %v7529_v22, %v10578_v58  ;;  %v10579_v53 = vld [vmem:[#allocation4_spill] sm:$0xff]  ;;  %v7738_v16 = vmul.f32 %v7529_v22, %v2223_v4  ;;  %v2332_v4 = vrot.slane %v7586_v25, 2 }
 0x1eb   : > { %v10568_v31 = vunpack.c.l.bf16 %v10567_v18  ;;  %v7699_v2 = vmul.f32 %v7529_v22, %v10571_v50  ;;  %v2322_v18 = vrot.slane %v2226_v52, 2  ;;  %v10575_v50 = vld [vmem:[#allocation21_spill] sm:$0xff]  ;;  %v2329_v52 = vrot.slane %v2230_v11, 2 }
 0x1ec   : > { %v7718_v54 = vmul.f32 %v7529_v22, %v10575_v50  ;;  %v10580_v30 = vunpack.c.l.bf16 %v10579_v53  ;;  %v7759_v45 = vsel %vm968_vm1, %v2326_v3, %v2327_v41  ;;  %v2344_v25 = vrot.slane %v7615_v0, 2 }
 0x1ed   : > { %v7687_v51 = vmul.f32 %v7529_v22, %v10568_v31  ;;  %v7706_v31 = vmul.f32 %v7529_v22, %v10572_v13  ;;  %v7723_v13 = vmul.f32 %v7529_v22, %v10577_v47  ;;  %v10582_v47 = vld [vmem:[#allocation65_spill] sm:$0xff]  ;;  %v7750_v58 = vsel %vm968_vm1, %v2321_v1, %v2322_v18 }
 0x1ee   : > { %v7735_v50 = vmul.f32 %v7529_v22, %v10580_v30  ;;  %v10583_v11 = vunpack.c.l.bf16 %v10582_v47  ;;  %v7753_v53 = vsel %vm968_vm1, %v2322_v18, %v2324_v56  ;;  %v2331_v30 = vrot.slane %v7582_v28, 2 }
 0x1ef   : > { %v7762_v47 = vsel %vm968_vm1, %v2327_v41, %v2329_v52  ;;  %v2337_v1 = vrot.slane %v7598_v38, 2  ;;  %v2341_v18 = vrot.slane %v7606_v21, 2  ;;  %v2342_v28 = vrot.slane %v7610_v32, 2 }
 0x1f0   : > { %v7747_v35 = vmul.f32 %v7529_v22, %v10583_v11  ;;  %v2336_v22 = vrot.slane %v7594_v27, 2  ;;  %v2339_v11 = vrot.slane %v7603_v59, 2  ;;  %v2347_v56 = vrot.slane %v7622_v15, 2 }
 0x1f1   : > { %v2349_v3 = vrot.slane %v7627_v36, 2  ;;  %v2351_v41 = vrot.slane %v7630_v19, 2  ;;  %v2352_v27 = vrot.slane %v7634_v37, 2  ;;  %v2354_v38 = vrot.slane %v7639_v12, 2 }
 0x1f2   : > { %v2356_v59 = vrot.slane %v7642_v17, 2  ;;  %v2357_v21 = vrot.slane %v7646_v6, 2  ;;  %v2333_v32 = vsel %vm968_vm1, %v2331_v30, %v2332_v4  ;;  %v2359_v0 = vrot.slane %v7651_v33, 2 }
 0x1f3   : > { %v2362_v15 = vrot.slane %v7658_v55, 2  ;;  %v2335_v36 = vsel %vm968_vm1, %v2332_v4, %v2334_v29  ;;  %v2338_v19 = vsel %vm968_vm1, %v2336_v22, %v2337_v1  ;;  %v2340_v37 = vsel %vm968_vm1, %v2337_v1, %v2339_v11 }
 0x1f4   : > { %v2364_v12 = vrot.slane %v7663_v61, 2  ;;  %v2343_v17 = vsel %vm968_vm1, %v2341_v18, %v2342_v28  ;;  %v2345_v6 = vsel %vm968_vm1, %v2342_v28, %v2344_v25  ;;  %v2348_v52 = vsel %vm968_vm1, %v2346_v8, %v2347_v56 }
 0x1f5   : > { %v2350_v33 = vsel %vm968_vm1, %v2347_v56, %v2349_v3  ;;  %v2353_v46 = vsel %vm968_vm1, %v2351_v41, %v2352_v27  ;;  %v2355_v55 = vsel %vm968_vm1, %v2352_v27, %v2354_v38  ;;  %v2358_v29 = vsel %vm968_vm1, %v2356_v59, %v2357_v21 }
 0x1f6   : > { %v2366_v30 = vrot.slane %v7666_v20, 2  ;;  %v2360_v4 = vsel %vm968_vm1, %v2357_v21, %v2359_v0  ;;  %v2363_v61 = vsel %vm968_vm1, %v2361_v62, %v2362_v15  ;;  %v2367_v22 = vrot.slane %v7670_v5, 2 }
 0x1f7   : > { %v2369_v1 = vrot.slane %v7675_v23, 2  ;;  %v2365_v11 = vsel %vm968_vm1, %v2362_v15, %v2364_v12  ;;  %v2371_v18 = vrot.slane %v7678_v34, 2  ;;  %v2372_v28 = vrot.slane %v7682_v40, 2 }
 0x1f8   : > { %v2374_v25 = vrot.slane %v7687_v51, 2  ;;  %v2376_v8 = vrot.slane %v7690_v42, 2  ;;  %v2377_v20 = vrot.slane %v7694_v43, 2  ;;  %v2379_v56 = vrot.slane %v7699_v2, 2 }
 0x1f9   : > { %v2381_v3 = vrot.slane %v7702_v7, 2  ;;  %v2382_v5 = vrot.slane %v7706_v31, 2  ;;  %v2384_v23 = vrot.slane %v7711_v9, 2  ;;  %v2386_v41 = vrot.slane %v7714_v10, 2 }
 0x1fa   : > { %v2387_v34 = vrot.slane %v7718_v54, 2  ;;  %v2389_v40 = vrot.slane %v7723_v13, 2  ;;  %v2391_v51 = vrot.slane %v7726_v49, 2  ;;  %v2392_v42 = vrot.slane %v7730_v48, 2 }
 0x1fb   : > { %v2394_v43 = vrot.slane %v7735_v50, 2  ;;  %v2368_v2 = vsel %vm968_vm1, %v2366_v30, %v2367_v22  ;;  %v2370_v7 = vsel %vm968_vm1, %v2367_v22, %v2369_v1  ;;  %v2396_v31 = vrot.slane %v7738_v16, 2  ;;  %v10584_v1 = vld [vmem:[#allocation57_spill] sm:$0xff] }
 0x1fc   : > { %v2397_v9 = vrot.slane %v7742_v60, 2  ;;  %v2373_v10 = vsel %vm968_vm1, %v2371_v18, %v2372_v28  ;;  %v2375_v54 = vsel %vm968_vm1, %v2372_v28, %v2374_v25  ;;  %v2378_v13 = vsel %vm968_vm1, %v2376_v8, %v2377_v20  ;;  %v10585_v28 = vld [vmem:[#allocation25_spill] sm:$0xff]  ;;  %v10586_v8 = vld [vmem:[#allocation66_spill] sm:$0xff] }
 0x1fd   : > { %v2399_v49 = vrot.slane %v7747_v35, 2  ;;  %v2380_v48 = vsel %vm968_vm1, %v2377_v20, %v2379_v56  ;;  %v2383_v50 = vsel %vm968_vm1, %v2381_v3, %v2382_v5  ;;  %v2385_v27 = vsel %vm968_vm1, %v2382_v5, %v2384_v23  ;;  %v7834_v35 = vld [vmem:[%s9541_s2] ss:$0 sm:$0xff]  ;;  %v10589_v56 = vld [vmem:[#allocation28_spill] sm:$0xff] }
 0x1fe   : > { %v2388_v38 = vsel %vm968_vm1, %v2386_v41, %v2387_v34  ;;  %v2390_v16 = vsel %vm968_vm1, %v2387_v34, %v2389_v40  ;;  %v2393_v60 = vsel %vm968_vm1, %v2391_v51, %v2392_v42  ;;  %v2395_v59 = vsel %vm968_vm1, %v2392_v42, %v2394_v43  ;;  %v10597_v34 = vld [vmem:[#allocation58_spill] sm:$0xff]  ;;  %v10598_v51 = vld [vmem:[#allocation12_spill] sm:$0xff] }
 0x1ff   : > { %v2433_v21 = vadd.f32 %v7750_v58, %v7443_v57  ;;  %v2398_v0 = vsel %vm968_vm1, %v2396_v31, %v2397_v9  ;;  %v2434_v62 = vadd.f32 %v7753_v53, %v7447_v44  ;;  %v2435_v15 = vadd.f32 %v7759_v45, %v7451_v39  ;;  %v10587_v53 = vld [vmem:[#allocation11_spill] sm:$0xff]  ;;  %v10588_v39 = vld [vmem:[#allocation74_spill] sm:$0xff] }
 0x200   : > { %v2436_v12 = vadd.f32 %v7762_v47, %v7454_v14  ;;  %v2400_v30 = vsel %vm968_vm1, %v2397_v9, %v2399_v49  ;;  %v2437_v57 = vadd.f32 %v2333_v32, %v7457_v63  ;;  %v2438_v58 = vadd.f32 %v2335_v36, %v7460_v24  ;;  %v10590_v47 = vld [vmem:[#allocation6_spill] sm:$0xff]  ;;  %v10601_v9 = vld [vmem:[#allocation35_spill] sm:$0xff]  ;;  %v10603_v49 = vld [vmem:[#allocation36_spill] sm:$0xff] }
 0x201   : > { %v2439_v22 = vadd.f32 %v2338_v19, %v7463_v26  ;;  %v2440_v18 = vadd.f32 %v2340_v37, %v10584_v1  ;;  %v2441_v25 = vadd.f32 %v2343_v17, %v10585_v28  ;;  %v2442_v44 = vadd.f32 %v2345_v6, %v10586_v8  ;;  %v7858_v24 = vld [vmem:[%s9542_s3] ss:$0 sm:$0xff]  ;;  %v10591_v26 = vld [vmem:[#allocation13_spill] sm:$0xff] }
 0x202   : > { %v2443_v20 = vadd.f32 %v2348_v52, %v10587_v53  ;;  %v2444_v45 = vadd.f32 %v2350_v33, %v10588_v39  ;;  %v2445_v14 = vadd.f32 %v2353_v46, %v10589_v56  ;;  %v2446_v3 = vadd.f32 %v2355_v55, %v10590_v47  ;;  %v10592_v36 = vld [vmem:[#allocation26_spill] sm:$0xff]  ;;  %v10593_v37 = vld [vmem:[#allocation29_spill] sm:$0xff]  ;;  %v10594_v52 = vld [vmem:[#allocation16_spill] sm:$0xff] }
 0x203   : > { %v2469_v63 = vmul.f32 %v7834_v35, %v2433_v21  ;;  %v2447_v32 = vadd.f32 %v2358_v29, %v10591_v26  ;;  %v2448_v19 = vadd.f32 %v2360_v4, %v10592_v36  ;;  %v2449_v17 = vadd.f32 %v2363_v61, %v10593_v37  ;;  %v10595_v46 = vld [vmem:[#allocation63_spill] sm:$0xff]  ;;  %v10596_v55 = vld [vmem:[#allocation44_spill] sm:$0xff]  ;;  %v10599_v43 = vld [vmem:[#allocation14_spill] sm:$0xff] }
 0x204   : > { %v2470_v6 = vmul.f32 %v7834_v35, %v2434_v62  ;;  %v2450_v33 = vadd.f32 %v2365_v11, %v10594_v52  ;;  %v2451_v5 = vadd.f32 %v2368_v2, %v10595_v46  ;;  %v2452_v23 = vadd.f32 %v2370_v7, %v10596_v55  ;;  %v10600_v61 = vld [vmem:[#allocation34_spill] sm:$0xff] }
 0x205   : > { %v2471_v41 = vmul.f32 %v7834_v35, %v2435_v15  ;;  %v2453_v40 = vadd.f32 %v2373_v10, %v10597_v34  ;;  %v2454_v42 = vadd.f32 %v2375_v54, %v10598_v51  ;;  %v7871_v29 = vadd.f32 %v2378_v13, %v10599_v43  ;;  %v10604_v54 = vld [vmem:[#allocation38_spill] sm:$0xff] }
 0x206   : > { %v2472_v4 = vmul.f32 %v7834_v35, %v2436_v12  ;;  %v7875_v31 = vadd.f32 %v2380_v48, %v10600_v61  ;;  %v7878_v11 = vadd.f32 %v2383_v50, %v10601_v9  ;;  %v2473_v2 = vmul.f32 %v7834_v35, %v2437_v57  ;;  %v10606_v48 = vld [vmem:[#allocation39_spill] sm:$0xff]  ;;  %v10607_v50 = vld [vmem:[#allocation40_spill] sm:$0xff] }
 0x207   : > { %v7882_v7 = vadd.f32 %v7858_v24, %v2469_v63  ;;  %v7885_v10 = vadd.f32 %v2385_v27, %v10603_v49  ;;  %v7888_v21 = vadd.f32 %v2388_v38, %v10604_v54  ;;  %v2474_v13 = vmul.f32 %v7834_v35, %v2438_v58  ;;  %v10609_v27 = vld [vmem:[#allocation41_spill] sm:$0xff] }
 0x208   : > { %v7892_v62 = vadd.f32 %v7858_v24, %v2470_v6  ;;  %v7895_v15 = vadd.f32 %v2390_v16, %v10606_v48  ;;  %v7898_v12 = vadd.f32 %v2393_v60, %v10607_v50  ;;  %v2475_v57 = vmul.f32 %v7834_v35, %v2439_v22  ;;  %v10610_v38 = vld [vmem:[#allocation45_spill] sm:$0xff]  ;;  %v10612_v16 = vld [vmem:[#allocation46_spill] sm:$0xff] }
 0x209   : > { %10602 = vst [vmem:[#allocation47_spill] sm:$0xff] %v7882_v7  ;;  %v7902_v1 = vadd.f32 %v7858_v24, %v2471_v41  ;;  %v7905_v28 = vadd.f32 %v2395_v59, %v10609_v27  ;;  %v7908_v8 = vadd.f32 %v2398_v0, %v10610_v38  ;;  %v2476_v58 = vmul.f32 %v7834_v35, %v2440_v18 }
 0x20a   : > { %10605 = vst [vmem:[#allocation48_spill] sm:$0xff] %v7892_v62  ;;  %v7912_v53 = vadd.f32 %v7858_v24, %v2472_v4  ;;  %v7915_v39 = vadd.f32 %v2400_v30, %v10612_v16  ;;  %v2477_v60 = vmul.f32 %v7834_v35, %v2441_v25  ;;  %v7919_v22 = vadd.f32 %v7858_v24, %v2473_v2 }
 0x20b   : > { %10608 = vst [vmem:[#allocation52_spill] sm:$0xff] %v7902_v1  ;;  %v3974_v56 = vmul.f32 -1.442695, %v7882_v7  ;;  %v2478_v59 = vmul.f32 %v7834_v35, %v2442_v44  ;;  %v2479_v0 = vmul.f32 %v7834_v35, %v2443_v20  ;;  %v7925_v47 = vadd.f32 %v7858_v24, %v2474_v13 }
 0x20c   : > { %10611 = vst [vmem:[#allocation60_spill] sm:$0xff] %v7912_v53  ;;  %v3975_v18 = vmul.f32 -1.442695, %v7892_v62  ;;  %v2480_v63 = vmul.f32 %v7834_v35, %v2444_v45  ;;  %v2481_v30 = vmul.f32 %v7834_v35, %v2445_v14  ;;  %v7931_v25 = vadd.f32 %v7858_v24, %v2475_v57 }
 0x20d   : > { %10613 = vst [vmem:[#allocation42_spill] sm:$0xff] %v7919_v22  ;;  %v3976_v26 = vmul.f32 -1.442695, %v7902_v1  ;;  %v2482_v36 = vmul.f32 %v7834_v35, %v2446_v3  ;;  %v2483_v44 = vmul.f32 %v7834_v35, %v2447_v32  ;;  %v7937_v20 = vadd.f32 %v7858_v24, %v2476_v58 }
 0x20e   : > { %10614 = vst [vmem:[#allocation43_spill] sm:$0xff] %v7925_v47  ;;  %v3977_v37 = vmul.f32 -1.442695, %v7912_v53  ;;  %v2484_v6 = vmul.f32 %v7834_v35, %v2448_v19  ;;  %v7942_v45 = vadd.f32 %v7858_v24, %v2477_v60  ;;  %4384 = vpow2.f32 %v3974_v56 }
 0x20f   : > { %10615 = vst [vmem:[#allocation15_spill] sm:$0xff] %v7931_v25  ;;  %v3978_v14 = vmul.f32 -1.442695, %v7919_v22  ;;  %v2485_v52 = vmul.f32 %v7834_v35, %v2449_v17  ;;  %v7947_v46 = vadd.f32 %v7858_v24, %v2478_v59  ;;  %4386 = vpow2.f32 %v3975_v18 }
 0x210   : > { %10616 = vst [vmem:[#allocation62_spill] sm:$0xff] %v7937_v20  ;;  %v3979_v3 = vmul.f32 -1.442695, %v7925_v47  ;;  %v2486_v32 = vmul.f32 %v7834_v35, %v2450_v33  ;;  %v7952_v55 = vadd.f32 %v7858_v24, %v2479_v0  ;;  %4388 = vpow2.f32 %v3976_v26 }
 0x211   : > { %10617 = vst [vmem:[#allocation22_spill] sm:$0xff] %v7942_v45  ;;  %v3980_v19 = vmul.f32 -1.442695, %v7931_v25  ;;  %v2487_v41 = vmul.f32 %v7834_v35, %v2451_v5  ;;  %v7957_v34 = vadd.f32 %v7858_v24, %v2480_v63  ;;  %4390 = vpow2.f32 %v3977_v37 }
 0x212   : > { %10618 = vst [vmem:[#allocation73_spill] sm:$0xff] %v7947_v46  ;;  %v3981_v17 = vmul.f32 -1.442695, %v7937_v20  ;;  %v2488_v51 = vmul.f32 %v7834_v35, %v2452_v23  ;;  %v7962_v43 = vadd.f32 %v7858_v24, %v2481_v30  ;;  %4392 = vpow2.f32 %v3978_v14 }
 0x213   : > { %10619 = vst [vmem:[#allocation24_spill] sm:$0xff] %v7952_v55  ;;  %v3982_v33 = vmul.f32 -1.442695, %v7942_v45  ;;  %v2489_v4 = vmul.f32 %v7834_v35, %v2453_v40  ;;  %v7967_v61 = vadd.f32 %v7858_v24, %v2482_v36  ;;  %4394 = vpow2.f32 %v3979_v3 }
 0x214   : > { %10620 = vst [vmem:[#allocation23_spill] sm:$0xff] %v7957_v34  ;;  %v3983_v5 = vmul.f32 -1.442695, %v7947_v46  ;;  %v7970_v9 = vpop.eup %4384  ;;  %v2490_v2 = vmul.f32 %v7834_v35, %v2454_v42  ;;  %v7974_v23 = vadd.f32 %v7858_v24, %v2483_v44  ;;  %4396 = vpow2.f32 %v3980_v19 }
 0x215   : > { %10621 = vst [vmem:[#allocation72_spill] sm:$0xff] %v7962_v43  ;;  %v3984_v49 = vmul.f32 -1.442695, %v7952_v55  ;;  %v7977_v54 = vpop.eup %4386  ;;  %v2491_v40 = vmul.f32 %v7834_v35, %v7871_v29  ;;  %v7982_v13 = vadd.f32 %v7858_v24, %v2484_v6  ;;  %4398 = vpow2.f32 %v3981_v17 }
 0x216   : > { %10622 = vst [vmem:[#allocation67_spill] sm:$0xff] %v7967_v61  ;;  %v3985_v48 = vmul.f32 -1.442695, %v7957_v34  ;;  %v7985_v50 = vpop.eup %4388  ;;  %v2492_v42 = vmul.f32 %v7834_v35, %v7875_v31  ;;  %v7990_v57 = vadd.f32 %v7858_v24, %v2485_v52  ;;  %4400 = vpow2.f32 %v3982_v33 }
 0x217   : > { %10623 = vst [vmem:[#allocation27_spill] sm:$0xff] %v7974_v23  ;;  %v3986_v27 = vmul.f32 -1.442695, %v7962_v43  ;;  %v7993_v38 = vpop.eup %4390  ;;  %v2493_v29 = vmul.f32 %v7834_v35, %v7878_v11  ;;  %v7998_v58 = vadd.f32 %v7858_v24, %v2486_v32  ;;  %4402 = vpow2.f32 %v3983_v5 }
 0x218   : > { %10624 = vst [vmem:[#allocation8_spill] sm:$0xff] %v7982_v13  ;;  %v3987_v16 = vmul.f32 -1.442695, %v7967_v61  ;;  %v8001_v60 = vpop.eup %4392  ;;  %v2494_v31 = vmul.f32 %v7834_v35, %v7885_v10  ;;  %v8006_v56 = vadd.f32 %v7858_v24, %v2487_v41  ;;  %4404 = vpow2.f32 %v3984_v49 }
 0x219   : > { %10625 = vst [vmem:[#allocation18_spill] sm:$0xff] %v7990_v57  ;;  %v3988_v59 = vmul.f32 -1.442695, %v7974_v23  ;;  %v8009_v0 = vpop.eup %4394  ;;  %v2495_v11 = vmul.f32 %v7834_v35, %v7888_v21  ;;  %v8014_v18 = vadd.f32 %v7858_v24, %v2488_v51  ;;  %4406 = vpow2.f32 %v3985_v48 }
 0x21a   : > { %10626 = vst [vmem:[#allocation9_spill] sm:$0xff] %v7998_v58  ;;  %v3989_v63 = vmul.f32 -1.442695, %v7982_v13  ;;  %v8017_v30 = vpop.eup %4396  ;;  %v2496_v10 = vmul.f32 %v7834_v35, %v7895_v15  ;;  %v8022_v26 = vadd.f32 %v7858_v24, %v2489_v4  ;;  %4408 = vpow2.f32 %v3986_v27 }
 0x21b   : > { %10627 = vst [vmem:[#allocation32_spill] sm:$0xff] %v8006_v56  ;;  %v3990_v36 = vmul.f32 -1.442695, %v7990_v57  ;;  %v8025_v44 = vpop.eup %4398  ;;  %v2497_v21 = vmul.f32 %v7834_v35, %v7898_v12  ;;  %v8030_v37 = vadd.f32 %v7858_v24, %v2490_v2  ;;  %4410 = vpow2.f32 %v3987_v16 }
 0x21c   : > { %10628 = vst [vmem:[#allocation69_spill] sm:$0xff] %v8014_v18  ;;  %v3991_v6 = vmul.f32 -1.442695, %v7998_v58  ;;  %v8033_v14 = vpop.eup %4400  ;;  %v2498_v15 = vmul.f32 %v7834_v35, %v7905_v28  ;;  %v8038_v52 = vadd.f32 %v7858_v24, %v2491_v40  ;;  %4412 = vpow2.f32 %v3988_v59 }
 0x21d   : > { %10629 = vst [vmem:[#allocation30_spill] sm:$0xff] %v8022_v26  ;;  %v3992_v3 = vmul.f32 -1.442695, %v8006_v56  ;;  %v8041_v32 = vpop.eup %4402  ;;  %v2499_v12 = vmul.f32 %v7834_v35, %v7908_v8  ;;  %v8046_v19 = vadd.f32 %v7858_v24, %v2492_v42  ;;  %4414 = vpow2.f32 %v3989_v63 }
 0x21e   : > { %10630 = vst [vmem:[#allocation71_spill] sm:$0xff] %v8030_v37  ;;  %v3993_v41 = vmul.f32 -1.442695, %v8014_v18  ;;  %v8049_v17 = vpop.eup %4404  ;;  %v2500_v28 = vmul.f32 %v7834_v35, %v7915_v39  ;;  %v8054_v51 = vadd.f32 %v7858_v24, %v2493_v29  ;;  %4416 = vpow2.f32 %v3990_v36 }
 0x21f   : > { %10631 = vst [vmem:[#allocation49_spill] sm:$0xff] %v8038_v52  ;;  %v3994_v33 = vmul.f32 -1.442695, %v8022_v26  ;;  %v4407_v4 = vpop.eup %4406  ;;  %v8058_v8 = vadd.f32 %v7858_v24, %v2494_v31  ;;  %v8061_v5 = vadd.f32 %v7858_v24, %v2495_v11  ;;  %4418 = vpow2.f32 %v3991_v6 }
 0x220   : > { %10632 = vst [vmem:[#allocation61_spill] sm:$0xff] %v8046_v19  ;;  %v3995_v2 = vmul.f32 -1.442695, %v8030_v37  ;;  %v4409_v49 = vpop.eup %4408  ;;  %v8065_v40 = vadd.f32 %v7858_v24, %v2496_v10  ;;  %v8068_v35 = vadd.f32 %v7858_v24, %v2497_v21  ;;  %4420 = vpow2.f32 %v3992_v3 }
 0x221   : > { %10633 = vst [vmem:[#allocation31_spill] sm:$0xff] %v8054_v51  ;;  %v3996_v39 = vmul.f32 -1.442695, %v8038_v52  ;;  %v4411_v48 = vpop.eup %4410  ;;  %v8072_v42 = vadd.f32 %v7858_v24, %v2498_v15  ;;  %v8075_v27 = vadd.f32 %v7858_v24, %v2499_v12  ;;  %4422 = vpow2.f32 %v3993_v41 }
 0x222   : > { %10634 = vst [vmem:[#allocation5_spill] sm:$0xff] %v8058_v8  ;;  %v3997_v29 = vmul.f32 -1.442695, %v8046_v19  ;;  %v4413_v16 = vpop.eup %4412  ;;  %v8079_v31 = vadd.f32 %v7858_v24, %v2500_v28  ;;  %4424 = vpow2.f32 %v3994_v33  ;;  %v3998_v59 = vmul.f32 -1.442695, %v8054_v51 }
 0x223   : > { %10635 = vst [vmem:[#allocation33_spill] sm:$0xff] %v8061_v5  ;;  %v4415_v11 = vpop.eup %4414  ;;  %4426 = vpow2.f32 %v3995_v2  ;;  %v3999_v63 = vmul.f32 -1.442695, %v8058_v8  ;;  %v8084_v10 = vadd.f32 1.0, %v7970_v9  ;;  %v4000_v21 = vmul.f32 -1.442695, %v8061_v5 }
 0x224   : > { %10636 = vst [vmem:[#allocation50_spill] sm:$0xff] %v8065_v40  ;;  %v4417_v36 = vpop.eup %4416  ;;  %4428 = vpow2.f32 %v3996_v39  ;;  %v4001_v6 = vmul.f32 -1.442695, %v8065_v40  ;;  %v4002_v15 = vmul.f32 -1.442695, %v8068_v35  ;;  %v8100_v33 = vadd.f32 1.0, %v7977_v54 }
 0x225   : > { %10637 = vst [vmem:[#allocation53_spill] sm:$0xff] %v8068_v35  ;;  %v4419_v24 = vpop.eup %4418  ;;  %4430 = vpow2.f32 %v3997_v29  ;;  %v8090_v3 = vmul.f32 -1.442695, %v8072_v42  ;;  %v8093_v12 = vmul.f32 -1.442695, %v8075_v27  ;;  %v2676_v41 = vand.u32 2147483648, %v8084_v10 }
 0x226   : > { %10638 = vst [vmem:[#allocation7_spill] sm:$0xff] %v8072_v42  ;;  %v4421_v9 = vpop.eup %4420  ;;  %4432 = vpow2.f32 %v3998_v59  ;;  %v8097_v28 = vmul.f32 -1.442695, %v8079_v31  ;;  %v8103_v2 = vadd.f32 1.0, %v7985_v50  ;;  %v8106_v29 = vadd.f32 1.0, %v7993_v38 }
 0x227   : > { %10639 = vst [vmem:[#allocation70_spill] sm:$0xff] %v8075_v27  ;;  %v4423_v39 = vpop.eup %4422  ;;  %4434 = vpow2.f32 %v3999_v63  ;;  %v8109_v27 = vadd.f32 1.0, %v8001_v60  ;;  %v8112_v42 = vadd.f32 1.0, %v8009_v0  ;;  %v2691_v50 = vand.u32 2147483648, %v8100_v33 }
 0x228   : > { %10640 = vst [vmem:[#allocation54_spill] sm:$0xff] %v8079_v31  ;;  %v4425_v59 = vpop.eup %4424  ;;  %4436 = vpow2.f32 %v4000_v21  ;;  %v8115_v31 = vadd.f32 1.0, %v8017_v30  ;;  %v8120_v38 = vadd.f32 1.0, %v8025_v44  ;;  %v8122_v63 = vor.u32 1.1754944e-38, %v2676_v41 }
 0x229   : > { %v4427_v35 = vpop.eup %4426  ;;  %4438 = vpow2.f32 %v4001_v6  ;;  %v2706_v60 = vand.u32 2147483648, %v8103_v2  ;;  %v8126_v40 = vadd.f32 1.0, %v8033_v14  ;;  %v8129_v30 = vadd.f32 1.0, %v8041_v32 }
 0x22a   : > { %v4429_v0 = vpop.eup %4428  ;;  %4440 = vrcp.f32 %v8084_v10  ;;  %v8134_v6 = vadd.f32 1.0, %v8049_v17  ;;  %v8136_v44 = vadd.f32 1.0, %v4407_v4  ;;  %v8140_v14 = vadd.f32 1.0, %v4409_v49 }
 0x22b   : > { %v4431_v54 = vpop.eup %4430  ;;  %4442 = vrcp.f32 %v8100_v33  ;;  %v8142_v8 = vor.u32 1.1754944e-38, %v2691_v50  ;;  %v2721_v32 = vand.u32 2147483648, %v8106_v29  ;;  %v8146_v51 = vadd.f32 1.0, %v4411_v48 }
 0x22c   : > { %v4433_v5 = vpop.eup %4432  ;;  %4444 = vrcp.f32 %v8103_v2  ;;  %v8148_v17 = vor.u32 1.1754944e-38, %v2706_v60  ;;  %v2736_v4 = vand.u32 2147483648, %v8109_v27  ;;  %v8152_v41 = vadd.f32 1.0, %v4413_v16 }
 0x22d   : > { %v4435_v21 = vpop.eup %4434  ;;  %4446 = vrcp.f32 %v8106_v29  ;;  %v8154_v49 = vadd.f32 1.0, %v4415_v11  ;;  %v8158_v37 = vadd.f32 1.0, %v4417_v36  ;;  %v2751_v60 = vand.u32 2147483648, %v8112_v42 }
 0x22e   : > { %v4437_v19 = vpop.eup %4436  ;;  %4448 = vrcp.f32 %v8109_v27  ;;  %v8165_v18 = vadd.f32 1.0, %v4419_v24  ;;  %v8167_v16 = vadd.f32 1.0, %v4421_v9  ;;  %v8169_v11 = vor.u32 1.1754944e-38, %v2721_v32 }
 0x22f   : > { %v4439_v52 = vpop.eup %4438  ;;  %4450 = vrcp.f32 %v8112_v42  ;;  %v8174_v36 = vor.u32 1.1754944e-38, %v2736_v4  ;;  %v2766_v56 = vand.u32 2147483648, %v8115_v31  ;;  %v8181_v24 = vadd.f32 1.0, %v4423_v39 }
 0x230   : > { %v8163_v26 = vpop.eup %4440  ;;  %4452 = vrcp.f32 %v8115_v31  ;;  %v8183_v9 = vadd.f32 1.0, %v4425_v59  ;;  %v8193_v48 = vor.u32 1.1754944e-38, %v2751_v60  ;;  %v2781_v59 = vand.u32 2147483648, %v8120_v38 }
 0x231   : > { %v8172_v50 = vpop.eup %4442  ;;  %4454 = vpow2.f32 %v4002_v15  ;;  %v8189_v15 = vadd.f32 1.0, %v4427_v35  ;;  %v2666_v4 = vmul.f32 %v8163_v26, %v8084_v10  ;;  %v8205_v35 = vadd.f32 1.0, %v4431_v54 }
 0x232   : > { %v8178_v58 = vpop.eup %4444  ;;  %4456 = vpow2.f32 %v8090_v3  ;;  %10641 = vst [vmem:[#allocation2_spill] sm:$0xff] %v8183_v9  ;;  %v8198_v3 = vadd.f32 1.0, %v4429_v0  ;;  %v2681_v39 = vmul.f32 %v8172_v50, %v8100_v33  ;;  %vm2670_vm2 = vweird.f32 %v8084_v10 }
 0x233   : > { %v8186_v57 = vpop.eup %4446  ;;  %4458 = vpow2.f32 %v8093_v12  ;;  %10642 = vst [vmem:[#allocation55_spill] sm:$0xff] %v8189_v15  ;;  %v8208_v12 = vor.u32 1.1754944e-38, %v2766_v56  ;;  %v8214_v0 = vadd.f32 1.0, %v4433_v5  ;;  %v8216_v23 = vadd.f32 1.0, %v4435_v21 }
 0x234   : > { %v8195_v13 = vpop.eup %4448  ;;  %4460 = vpow2.f32 %v8097_v28  ;;  %10643 = vst [vmem:[#allocation3_spill] sm:$0xff] %v8198_v3  ;;  %vm2685_vm3 = vweird.f32 %v8100_v33  ;;  %v2796_v54 = vand.u32 2147483648, %v8126_v40  ;;  %v2667_v43 = vsub.f32 1.0, %v2666_v4 }
 0x235   : > { %v8203_v32 = vpop.eup %4450  ;;  %10644 = vst [vmem:[#allocation59_spill] sm:$0xff] %v8205_v35  ;;  %4462 = vrcp.f32 %v8120_v38  ;;  %v2696_v56 = vmul.f32 %v8178_v58, %v8103_v2  ;;  %vm2700_vm4 = vweird.f32 %v8103_v2  ;;  %v8226_v21 = vadd.f32 1.0, %v4437_v19 }
 0x236   : > { %v8212_v28 = vpop.eup %4452  ;;  %10645 = vst [vmem:[#allocation17_spill] sm:$0xff] %v8214_v0  ;;  %4464 = vrcp.f32 %v8126_v40  ;;  %v2682_v34 = vsub.f32 1.0, %v2681_v39  ;;  %v2711_v55 = vmul.f32 %v8186_v57, %v8106_v29  ;;  %vm2715_vm5 = vweird.f32 %v8106_v29 }
 0x237   : > { %10646 = vst [vmem:[#allocation51_spill] sm:$0xff] %v8216_v23  ;;  %v4455_v61 = vpop.eup %4454  ;;  %4466 = vrcp.f32 %v8129_v30  ;;  %v8231_v46 = vor.u32 1.1754944e-38, %v2781_v59  ;;  %v2726_v45 = vmul.f32 %v8195_v13, %v8109_v27  ;;  %vm2730_vm6 = vweird.f32 %v8109_v27 }
 0x238   : > { %v4457_v5 = vpop.eup %4456  ;;  %10647 = vst [vmem:[#allocation19_spill] sm:$0xff] %v8226_v21  ;;  %v2741_v60 = vmul.f32 %v8203_v32, %v8112_v42  ;;  %v2756_v19 = vmul.f32 %v8212_v28, %v8115_v31  ;;  %4468 = vrcp.f32 %v8134_v6  ;;  %v8243_v21 = vadd.f32 1.0, %v4439_v52 }
 0x239   : > { %v4459_v4 = vpop.eup %4458  ;;  %v8245_v59 = vadd.f32 1.0, %v4455_v61  ;;  %v8248_v20 = vor.u32 1.1754944e-38, %v2796_v54  ;;  %v8253_v0 = vadd.f32 1.0, %v4457_v5  ;;  %v2668_v47 = vmul.f32 %v8163_v26, %v2667_v43 }
 0x23a   : > { %v8241_v39 = vpop.eup %4460  ;;  %10648 = vst [vmem:[#allocation20_spill] sm:$0xff] %v8243_v21  ;;  %v2697_v22 = vsub.f32 1.0, %v2696_v56  ;;  %v8260_v61 = vadd.f32 1.0, %v4459_v4  ;;  %v10652_v54 = vand.u32 2147483647, %v8084_v10  ;;  %v2683_v5 = vmul.f32 %v8172_v50, %v2682_v34 }
 0x23b   : > { %10649 = vst [vmem:[#allocation37_spill] sm:$0xff] %v8245_v59  ;;  %v8251_v25 = vpop.eup %4462  ;;  %v10655_v23 = vand.u32 2147483647, %v8100_v33  ;;  %v2712_v56 = vsub.f32 1.0, %v2711_v55  ;;  %vm2671_vm11 = vweird.f32 %v8163_v26  ;;  %v2727_v4 = vsub.f32 1.0, %v2726_v45 }
 0x23c   : > { %10650 = vst [vmem:[#allocation56_spill] sm:$0xff] %v8253_v0  ;;  %v8258_v21 = vpop.eup %4464  ;;  %vm8264_vm9 = vcmp.eq.f32.partialorder %v10652_v54, 8.507059e+37  ;;  %v2742_v54 = vsub.f32 1.0, %v2741_v60  ;;  %vm2686_vm12 = vweird.f32 %v8172_v50  ;;  %vm2701_vm13 = vweird.f32 %v8178_v58  ;;  %vm8293_vm14 = vmor %vm2670_vm2, %vm2671_vm11 }
 0x23d   : > { %10651 = vst [vmem:[#allocation21_spill] sm:$0xff] %v8260_v61  ;;  %vm8271_vm10 = vcmp.eq.f32.partialorder %v10655_v23, 8.507059e+37  ;;  %v8276_v0 = vpop.eup %4466  ;;  %v2757_v61 = vsub.f32 1.0, %v2756_v19  ;;  %v2771_v34 = vmul.f32 %v8251_v25, %v8120_v38  ;;  %v2826_v23 = vand.u32 2147483648, %v8134_v6  ;;  %vm8307_vm1 = vmor %vm2685_vm3, %vm2686_vm12 }
 0x23e   : > { %v8284_v53 = vpop.eup %4468  ;;  %v2669_v55 = vadd.f32 %v8163_v26, %v2668_v47  ;;  %v2698_v52 = vmul.f32 %v8178_v58, %v2697_v22  ;;  %v2786_v45 = vmul.f32 %v8258_v21, %v8126_v40  ;;  %4470 = vrcp.f32 %v8136_v44  ;;  %vm8320_vm0 = vmor %vm2700_vm4, %vm2701_vm13 }
 0x23f   : > { %v2684_v19 = vadd.f32 %v8172_v50, %v2683_v5  ;;  %v2713_v35 = vmul.f32 %v8186_v57, %v2712_v56  ;;  %vm2716_vm15 = vweird.f32 %v8186_v57  ;;  %v2801_v22 = vmul.f32 %v8276_v0, %v8129_v30 }
 0x240   : > { %v2728_v10 = vmul.f32 %v8195_v13, %v2727_v4  ;;  %vm2731_vm2 = vweird.f32 %v8195_v13  ;;  %v2743_v5 = vmul.f32 %v8203_v32, %v2742_v54  ;;  %v2758_v56 = vmul.f32 %v8212_v28, %v2757_v61  ;;  %vm8355_vm7 = vmor %vm2715_vm5, %vm2716_vm15 }
 0x241   : > { %v10664_v1 = vand.u32 2147483647, %v8103_v2  ;;  %v10667_v54 = vand.u32 2147483647, %v8106_v29  ;;  %v10670_v62 = vand.u32 2147483647, %v8109_v27  ;;  %vm2746_vm4 = vweird.f32 %v8203_v32  ;;  %vm8374_vm5 = vmor %vm2730_vm6, %vm2731_vm2 }
 0x242   : > { %vm2761_vm13 = vweird.f32 %v8212_v28  ;;  %v2816_v2 = vmul.f32 %v8284_v53, %v8134_v6  ;;  %v2699_v3 = vadd.f32 %v8178_v58, %v2698_v52  ;;  %v2787_v9 = vsub.f32 1.0, %v2786_v45 }
 0x243   : > { %vm8326_vm3 = vcmp.eq.f32.partialorder %v10664_v1, 8.507059e+37  ;;  %vm8332_vm12 = vcmp.eq.f32.partialorder %v10667_v54, 8.507059e+37  ;;  %vm8338_vm11 = vcmp.eq.f32.partialorder %v10670_v62, 8.507059e+37  ;;  %v2772_v1 = vsub.f32 1.0, %v2771_v34 }
 0x244   : > { %v2673_v54 = vsel %vm8293_vm14, %v8163_v26, %v2669_v55  ;;  %v10675_v34 = vand.u32 2147483647, %v8112_v42  ;;  %4472 = vrcp.f32 %v8140_v14  ;;  %v2688_v26 = vsel %vm8307_vm1, %v8172_v50, %v2684_v19  ;;  %v8386_v50 = vpop.eup %4470 }
 0x245   : > { %v2714_v52 = vadd.f32 %v8186_v57, %v2713_v35  ;;  %v10680_v55 = vand.u32 2147483647, %v8115_v31  ;;  %v10681_v45 = vmov 0  ;;  %v2802_v60 = vsub.f32 1.0, %v2801_v22 }
 0x246   : > { %vm8361_vm8 = vcmp.eq.f32.partialorder %v10675_v34, 8.507059e+37  ;;  %4474 = vrcp.f32 %v8146_v51  ;;  %v8389_v35 = vadd.f32 1.0, %v8241_v39  ;;  %v2729_v27 = vadd.f32 %v8195_v13, %v2728_v10 }
 0x247   : > { %vm8380_vm14 = vcmp.eq.f32.partialorder %v10680_v55, 8.507059e+37  ;;  %v2744_v19 = vadd.f32 %v8203_v32, %v2743_v5  ;;  %vm10684_vm6 = vweird.f32 %v8112_v42  ;;  %v2759_v22 = vadd.f32 %v8212_v28, %v2758_v56 }
 0x248   : > { %v10682_v45 = vsel %vm8380_vm14, 4294967295, %v10681_v45  ;;  %10683 = vst [vmem:[#allocation68_spill] sm:$0xff] %v8389_v35  ;;  %vm8397_vm1 = vmor %vm10684_vm6, %vm2746_vm4  ;;  %vm10687_vm2 = vweird.f32 %v8115_v31  ;;  %v2773_v10 = vmul.f32 %v8251_v25, %v2772_v1  ;;  %v10690_v5 = vand.u32 2147483647, %v8120_v38 }
 0x249   : > { %vm8406_vm15 = vmor %vm10687_vm2, %vm2761_vm13  ;;  %v10693_v34 = vand.u32 2147483648, %v8129_v30  ;;  %v2817_v56 = vsub.f32 1.0, %v2816_v2  ;;  %v8421_v35 = vor.u32 1.1754944e-38, %v2826_v23  ;;  %v8426_v31 = vsel %vm8264_vm9, %v8122_v63, %v2673_v54 }
 0x24a   : > { %vm8413_vm14 = vcmp.eq.f32.partialorder %v10690_v5, 8.507059e+37  ;;  %v8431_v1 = vsel %vm8271_vm10, %v8142_v8, %v2688_v26  ;;  %v2703_v5 = vsel %vm8320_vm0, %v8178_v58, %v2699_v3  ;;  %v10694_v2 = vand.u32 2147483647, %v8126_v40  ;;  %v8456_v3 = vpop.eup %4472 }
 0x24b   : > { %v8419_v55 = vor.u32 1.1754944e-38, %v10693_v34  ;;  %v2788_v34 = vmul.f32 %v8258_v21, %v2787_v9  ;;  %v2718_v63 = vsel %vm8355_vm7, %v8186_v57, %v2714_v52  ;;  %vm2776_vm9 = vweird.f32 %v8251_v25 }
 0x24c   : > { %vm8439_vm4 = vcmp.eq.f32.partialorder %v10694_v2, 8.507059e+37  ;;  %v2803_v8 = vmul.f32 %v8276_v0, %v2802_v60  ;;  %v10697_v59 = vand.u32 2147483647, %v8129_v30  ;;  %v2831_v9 = vmul.f32 %v8386_v50, %v8136_v44  ;;  %v8468_v54 = vpop.eup %4474 }
 0x24d   : > { %v2733_v43 = vsel %vm8374_vm5, %v8195_v13, %v2729_v27  ;;  %v2748_v57 = vsel %vm8397_vm1, %v8203_v32, %v2744_v19  ;;  %v2763_v33 = vsel %vm8406_vm15, %v8212_v28, %v2759_v22  ;;  %vm2791_vm7 = vweird.f32 %v8258_v21 }
 0x24e   : > { %vm8450_vm10 = vcmp.eq.f32.partialorder %v10697_v59, 8.507059e+37  ;;  %v2774_v62 = vadd.f32 %v8251_v25, %v2773_v10  ;;  %vm2806_vm0 = vweird.f32 %v8276_v0  ;;  %v2818_v26 = vmul.f32 %v8284_v53, %v2817_v56 }
 0x24f   : > { %v10700_v13 = vand.u32 2147483647, %v8134_v6  ;;  %4476 = vrcp.f32 %v8152_v41  ;;  %vm10703_vm5 = vweird.f32 %v8120_v38  ;;  %v2789_v28 = vadd.f32 %v8258_v21, %v2788_v34 }
 0x250   : > { %vm8484_vm15 = vmor %vm10703_vm5, %vm2776_vm9  ;;  %vm2821_vm6 = vweird.f32 %v8284_v53  ;;  %v2839_v29 = vand.u32 2147483647, %v8136_v44  ;;  %4478 = vrcp.f32 %v8154_v49  ;;  %vm10706_vm1 = vweird.f32 %v8126_v40 }
 0x251   : > { %vm8475_vm13 = vcmp.eq.f32.partialorder %v10700_v13, 8.507059e+37  ;;  %vm8494_vm2 = vmor %vm10706_vm1, %vm2791_vm7  ;;  %v2804_v38 = vadd.f32 %v8276_v0, %v2803_v8  ;;  %v2832_v27 = vsub.f32 1.0, %v2831_v9  ;;  %v2846_v19 = vmul.f32 %v8456_v3, %v8140_v14 }
 0x252   : > { %4480 = vrcp.f32 %v8158_v37  ;;  %v8505_v47 = vsel %vm8326_vm3, %v8148_v17, %v2703_v5  ;;  %v8510_v40 = vsel %vm8332_vm12, %v8169_v11, %v2718_v63  ;;  %v8515_v22 = vsel %vm8338_vm11, %v8174_v36, %v2733_v43 }
 0x253   : > { %vm10709_vm9 = vweird.f32 %v8129_v30  ;;  %v2861_v17 = vmul.f32 %v8468_v54, %v8146_v51  ;;  %v8530_v11 = vsel %vm8361_vm8, %v8193_v48, %v2748_v57  ;;  %v2778_v7 = vsel %vm8484_vm15, %v8251_v25, %v2774_v62 }
 0x254   : > { %vm8521_vm7 = vmor %vm10709_vm9, %vm2806_vm0  ;;  %v2819_v36 = vadd.f32 %v8284_v53, %v2818_v26  ;;  %v2841_v30 = vand.u32 2147483648, %v8136_v44  ;;  %vm10712_vm11 = vnez %v10682_v45  ;;  %v2793_v61 = vsel %vm8494_vm2, %v8258_v21, %v2789_v28 }
 0x255   : > { %v8540_v4 = vsel %vm10712_vm11, %v8208_v12, %v2763_v33  ;;  %vm10713_vm8 = vweird.f32 %v8134_v6  ;;  %vm2835_vm12 = vweird.f32 %v8136_v44  ;;  %v2856_v25 = vand.u32 2147483648, %v8140_v14  ;;  %v8555_v15 = vpop.eup %4476 }
 0x256   : > { %vm8549_vm3 = vmor %vm10713_vm8, %vm2821_vm6  ;;  %v2808_v12 = vsel %vm8521_vm7, %v8276_v0, %v2804_v38  ;;  %v2833_v21 = vmul.f32 %v8386_v50, %v2832_v27  ;;  %vm8561_vm0 = vcmp.eq.f32.partialorder %v2839_v29, 8.507059e+37  ;;  %v2847_v6 = vsub.f32 1.0, %v2846_v19  ;;  %v8566_v56 = vpop.eup %4478 }
 0x257   : > { %v2854_v10 = vand.u32 2147483647, %v8140_v14  ;;  %v8571_v5 = vsel %vm8413_vm14, %v8231_v46, %v2778_v7  ;;  %vm2850_vm5 = vweird.f32 %v8140_v14  ;;  %v2862_v34 = vsub.f32 1.0, %v2861_v17 }
 0x258   : > { %4482 = vrcp.f32 %v8165_v18  ;;  %v8575_v0 = vpop.eup %4480  ;;  %v8580_v2 = vsel %vm8439_vm4, %v8248_v20, %v2793_v61  ;;  %v2823_v63 = vsel %vm8549_vm3, %v8284_v53, %v2819_v36  ;;  %vm2836_vm15 = vweird.f32 %v8386_v50 }
 0x259   : > { %v2842_v46 = vor.u32 1.1754944e-38, %v2841_v30  ;;  %v8589_v42 = vsel %vm8450_vm10, %v8419_v55, %v2808_v12  ;;  %v2857_v8 = vor.u32 1.1754944e-38, %v2856_v25  ;;  %vm2865_vm14 = vweird.f32 %v8146_v51  ;;  %vm8610_vm10 = vmor %vm2835_vm12, %vm2836_vm15 }
 0x25a   : > { %v2876_v23 = vmul.f32 %v8555_v15, %v8152_v41  ;;  %v2834_v20 = vadd.f32 %v8386_v50, %v2833_v21  ;;  %v2848_v59 = vmul.f32 %v8456_v3, %v2847_v6  ;;  %vm8596_vm4 = vcmp.eq.f32.partialorder %v2854_v10, 8.507059e+37 }
 0x25b   : > { %v2869_v9 = vand.u32 2147483647, %v8146_v51  ;;  %v2891_v55 = vmul.f32 %v8566_v56, %v8154_v49  ;;  %v8606_v58 = vsel %vm8475_vm13, %v8421_v35, %v2823_v63  ;;  %v2863_v57 = vmul.f32 %v8468_v54, %v2862_v34 }
 0x25c   : > { %v2871_v33 = vand.u32 2147483648, %v8146_v51  ;;  %v2906_v62 = vmul.f32 %v8575_v0, %v8158_v37  ;;  %vm2851_vm6 = vweird.f32 %v8456_v3  ;;  %vm2866_vm1 = vweird.f32 %v8468_v54 }
 0x25d   : > { %v2884_v35 = vand.u32 2147483647, %v8152_v41  ;;  %v2886_v26 = vand.u32 2147483648, %v8152_v41  ;;  %v2877_v13 = vsub.f32 1.0, %v2876_v23  ;;  %v2899_v52 = vand.u32 2147483647, %v8154_v49  ;;  %vm8634_vm13 = vmor %vm2850_vm5, %vm2851_vm6 }
 0x25e   : > { %v8622_v44 = vpop.eup %4482  ;;  %v2901_v32 = vand.u32 2147483648, %v8154_v49  ;;  %4484 = vrcp.f32 %v8167_v16  ;;  %v2838_v28 = vsel %vm8610_vm10, %v8386_v50, %v2834_v20  ;;  %v2849_v29 = vadd.f32 %v8456_v3, %v2848_v59  ;;  %vm8647_vm9 = vmor %vm2865_vm14, %vm2866_vm1  ;;  %v10732_v20 = vld [vmem:[#allocation2_spill] sm:$0xff]  ;;  %v10745_v50 = vld [vmem:[#allocation47_spill] sm:$0xff] }
 0x25f   : > { %v2892_v60 = vsub.f32 1.0, %v2891_v55  ;;  %4486 = vrcp.f32 %v8181_v24  ;;  %v2864_v27 = vadd.f32 %v8468_v54, %v2863_v57  ;;  %vm8639_vm2 = vcmp.eq.f32.partialorder %v2869_v9, 8.507059e+37 }
 0x260   : > { %v2872_v39 = vor.u32 1.1754944e-38, %v2871_v33  ;;  %v2907_v17 = vsub.f32 1.0, %v2906_v62  ;;  %vm2880_vm7 = vweird.f32 %v8152_v41  ;;  %v2887_v14 = vor.u32 1.1754944e-38, %v2886_v26 }
 0x261   : > { %vm2895_vm11 = vweird.f32 %v8154_v49  ;;  %v2921_v7 = vmul.f32 %v8622_v44, %v8165_v18  ;;  %v8657_v36 = vsel %vm8561_vm0, %v2842_v46, %v2838_v28  ;;  %v2878_v30 = vmul.f32 %v8555_v15, %v2877_v13  ;;  %v10776_v49 = vld [vmem:[#allocation19_spill] sm:$0xff] }
 0x262   : > { %vm8660_vm8 = vcmp.eq.f32.partialorder %v2884_v35, 8.507059e+37  ;;  %vm2910_vm3 = vweird.f32 %v8158_v37  ;;  %v2914_v61 = vand.u32 2147483647, %v8158_v37  ;;  %v2853_v48 = vsel %vm8634_vm13, %v8456_v3, %v2849_v29  ;;  %v10739_v35 = vld [vmem:[#allocation55_spill] sm:$0xff] }
 0x263   : > { %v2893_v25 = vmul.f32 %v8566_v56, %v2892_v60  ;;  %vm8670_vm12 = vcmp.eq.f32.partialorder %v2899_v52, 8.507059e+37  ;;  %v2902_v21 = vor.u32 1.1754944e-38, %v2901_v32  ;;  %v2916_v45 = vand.u32 2147483648, %v8158_v37  ;;  %v10744_v29 = vld [vmem:[#allocation3_spill] sm:$0xff] }
 0x264   : > { %v8675_v6 = vpop.eup %4484  ;;  %v2868_v10 = vsel %vm8647_vm9, %v8468_v54, %v2864_v27  ;;  %vm2881_vm0 = vweird.f32 %v8555_v15  ;;  %vm2896_vm5 = vweird.f32 %v8566_v56  ;;  %v2908_v3 = vmul.f32 %v8575_v0, %v2907_v17 }
 0x265   : > { %v8683_v34 = vpop.eup %4486  ;;  %v2922_v63 = vsub.f32 1.0, %v2921_v7  ;;  %v2929_v46 = vand.u32 2147483647, %v8165_v18  ;;  %v2931_v23 = vand.u32 2147483648, %v8165_v18  ;;  %4488 = vrcp.f32 %v10732_v20  ;;  %vm8700_vm10 = vmor %vm2880_vm7, %vm2881_vm0 }
 0x266   : > { %v8690_v59 = vsel %vm8596_vm4, %v2857_v8, %v2853_v48  ;;  %v2879_v54 = vadd.f32 %v8555_v15, %v2878_v30  ;;  %vm2911_vm15 = vweird.f32 %v8575_v0  ;;  %vm8694_vm14 = vcmp.eq.f32.partialorder %v2914_v61, 8.507059e+37  ;;  %vm8716_vm6 = vmor %vm2895_vm11, %vm2896_vm5  ;;  %v10746_v30 = vld [vmem:[#allocation48_spill] sm:$0xff] }
 0x267   : > { %v2894_v43 = vadd.f32 %v8566_v56, %v2893_v25  ;;  %v2917_v57 = vor.u32 1.1754944e-38, %v2916_v45  ;;  %vm2925_vm4 = vweird.f32 %v8165_v18  ;;  %v2936_v8 = vmul.f32 %v8675_v6, %v8167_v16  ;;  %vm8726_vm1 = vmor %vm2910_vm3, %vm2911_vm15  ;;  %v10749_v25 = vld [vmem:[#allocation52_spill] sm:$0xff] }
 0x268   : > { %v8710_v53 = vsel %vm8639_vm2, %v2872_v39, %v2868_v10  ;;  %v2909_v33 = vadd.f32 %v8575_v0, %v2908_v3  ;;  %v2951_v62 = vmul.f32 %v8683_v34, %v8181_v24  ;;  %4490 = vrcp.f32 %v10739_v35 }
 0x269   : > { %v2923_v13 = vmul.f32 %v8622_v44, %v2922_v63  ;;  %vm8731_vm13 = vcmp.eq.f32.partialorder %v2929_v46, 8.507059e+37  ;;  %v2932_v52 = vor.u32 1.1754944e-38, %v2931_v23  ;;  %v2944_v32 = vand.u32 2147483647, %v8167_v16  ;;  %v10754_v46 = vld [vmem:[#allocation59_spill] sm:$0xff]  ;;  %v10755_v23 = vld [vmem:[#allocation60_spill] sm:$0xff] }
 0x26a   : > { %v2883_v28 = vsel %vm8700_vm10, %v8555_v15, %v2879_v54  ;;  %vm2926_vm2 = vweird.f32 %v8622_v44  ;;  %v2946_v37 = vand.u32 2147483648, %v8167_v16  ;;  %4492 = vrcp.f32 %v10744_v29 }
 0x26b   : > { %v8742_v60 = vpop.eup %4488  ;;  %v2898_v38 = vsel %vm8716_vm6, %v8566_v56, %v2894_v43  ;;  %v2937_v27 = vsub.f32 1.0, %v2936_v8  ;;  %v2959_v19 = vand.u32 2147483647, %v8181_v24  ;;  %v2961_v39 = vand.u32 2147483648, %v8181_v24  ;;  %vm8777_vm11 = vmor %vm2925_vm4, %vm2926_vm2 }
 0x26c   : > { %v2913_v15 = vsel %vm8726_vm1, %v8575_v0, %v2909_v33  ;;  %v2952_v17 = vsub.f32 1.0, %v2951_v62  ;;  %v8754_v7 = vmul.f32 %v8426_v31, %v10745_v50  ;;  %v8758_v61 = vmul.f32 %v8431_v1, %v10746_v30  ;;  %v10756_v33 = vld [vmem:[#allocation42_spill] sm:$0xff] }
 0x26d   : > { %v8762_v56 = vsel %vm8660_vm8, %v2887_v14, %v2883_v28  ;;  %v2924_v48 = vadd.f32 %v8622_v44, %v2923_v13  ;;  %vm2940_vm9 = vweird.f32 %v8167_v16  ;;  %vm2955_vm7 = vweird.f32 %v8181_v24  ;;  %v10765_v24 = vld [vmem:[#allocation15_spill] sm:$0xff] }
 0x26e   : > { %v8767_v0 = vpop.eup %4490  ;;  %v8771_v31 = vsel %vm8670_vm12, %v2902_v21, %v2898_v38  ;;  %v2947_v14 = vor.u32 1.1754944e-38, %v2946_v37  ;;  %v2966_v51 = vmul.f32 %v8742_v60, %v10732_v20  ;;  %v8785_v45 = vmul.f32 %v8505_v47, %v10749_v25  ;;  %v10759_v37 = vld [vmem:[#allocation43_spill] sm:$0xff]  ;;  %v10798_v47 = vld [vmem:[#allocation8_spill] sm:$0xff] }
 0x26f   : > { %v8789_v12 = vsel %vm8694_vm14, %v2917_v57, %v2913_v15  ;;  %v2938_v21 = vmul.f32 %v8675_v6, %v2937_v27  ;;  %vm2941_vm8 = vweird.f32 %v8675_v6  ;;  %vm8793_vm3 = vcmp.eq.f32.partialorder %v2944_v32, 8.507059e+37  ;;  %v10766_v25 = vld [vmem:[#allocation51_spill] sm:$0xff] }
 0x270   : > { %v2962_v10 = vor.u32 1.1754944e-38, %v2961_v39  ;;  %v8797_v3 = vpop.eup %4492  ;;  %v2953_v63 = vmul.f32 %v8683_v34, %v2952_v17  ;;  %vm8800_vm12 = vcmp.eq.f32.partialorder %v2959_v19, 8.507059e+37  ;;  %vm2970_vm0 = vweird.f32 %v10732_v20  ;;  %vm8838_vm14 = vmor %vm2940_vm9, %vm2941_vm8  ;;  %v10762_v39 = vld [vmem:[#allocation17_spill] sm:$0xff] }
 0x271   : > { %4494 = vrcp.f32 %v10754_v46  ;;  %v8808_v54 = vmul.f32 %v8510_v40, %v10755_v23  ;;  %v3177_v9 = vadd.f32 %v8758_v61, %v8754_v7  ;;  %v2928_v55 = vsel %vm8777_vm11, %v8622_v44, %v2924_v48  ;;  %v10767_v23 = vld [vmem:[#allocation62_spill] sm:$0xff] }
 0x272   : > { %v2974_v43 = vand.u32 2147483647, %v10732_v20  ;;  %v2976_v57 = vand.u32 2147483648, %v10732_v20  ;;  %v2981_v8 = vmul.f32 %v8767_v0, %v10739_v35  ;;  %vm2956_vm5 = vweird.f32 %v8683_v34  ;;  %v10775_v20 = vld [vmem:[#allocation73_spill] sm:$0xff] }
 0x273   : > { %v2967_v41 = vsub.f32 1.0, %v2966_v51  ;;  %v8822_v40 = vmul.f32 %v8515_v22, %v10756_v33  ;;  %v3178_v62 = vadd.f32 %v3177_v9, %v8785_v45  ;;  %v2939_v26 = vadd.f32 %v8675_v6, %v2938_v21  ;;  %vm8850_vm10 = vmor %vm2955_vm7, %vm2956_vm5 }
 0x274   : > { %vm2985_vm15 = vweird.f32 %v10739_v35  ;;  %v2989_v44 = vand.u32 2147483647, %v10739_v35  ;;  %v2996_v13 = vmul.f32 %v8797_v3, %v10744_v29  ;;  %v8832_v32 = vsel %vm8731_vm13, %v2932_v52, %v2928_v55 }
 0x275   : > { %v2954_v28 = vadd.f32 %v8683_v34, %v2953_v63  ;;  %v8845_v38 = vmul.f32 %v8530_v11, %v10759_v37  ;;  %v3179_v27 = vadd.f32 %v3178_v62, %v8808_v54  ;;  %v2977_v52 = vor.u32 1.1754944e-38, %v2976_v57  ;;  %v10787_v11 = vld [vmem:[#allocation72_spill] sm:$0xff] }
 0x276   : > { %v2982_v16 = vsub.f32 1.0, %v2981_v8  ;;  %v2991_v19 = vand.u32 2147483648, %v10739_v35  ;;  %4496 = vrcp.f32 %v10762_v39  ;;  %v2968_v17 = vmul.f32 %v8742_v60, %v2967_v41 }
 0x277   : > { %v8856_v15 = vpop.eup %4494  ;;  %vm2971_vm4 = vweird.f32 %v8742_v60  ;;  %vm8860_vm6 = vcmp.eq.f32.partialorder %v2974_v43, 8.507059e+37  ;;  %v8866_v50 = vmul.f32 %v8540_v4, %v10765_v24  ;;  %v3180_v30 = vadd.f32 %v3179_v27, %v8822_v40 }
 0x278   : > { %v2943_v48 = vsel %vm8838_vm14, %v8675_v6, %v2939_v26  ;;  %v2997_v1 = vsub.f32 1.0, %v2996_v13  ;;  %v3004_v51 = vand.u32 2147483647, %v10744_v29  ;;  %4498 = vrcp.f32 %v10766_v25  ;;  %vm8911_vm2 = vmor %vm2970_vm0, %vm2971_vm4 }
 0x279   : > { %v2958_v21 = vsel %vm8850_vm10, %v8683_v34, %v2954_v28  ;;  %v3006_v63 = vand.u32 2147483648, %v10744_v29  ;;  %v8880_v4 = vmul.f32 %v8571_v5, %v10767_v23  ;;  %v3181_v9 = vadd.f32 %v3180_v30, %v8845_v38  ;;  %v10770_v5 = vld [vmem:[#allocation22_spill] sm:$0xff] }
 0x27a   : > { %v2983_v55 = vmul.f32 %v8767_v0, %v2982_v16  ;;  %v2992_v6 = vor.u32 1.1754944e-38, %v2991_v19  ;;  %vm3000_vm1 = vweird.f32 %v10744_v29  ;;  %v3011_v43 = vmul.f32 %v8856_v15, %v10754_v46 }
 0x27b   : > { %v8889_v57 = vsel %vm8793_vm3, %v2947_v14, %v2943_v48  ;;  %v2969_v34 = vadd.f32 %v8742_v60, %v2968_v17  ;;  %vm8892_vm13 = vcmp.eq.f32.partialorder %v2989_v44, 8.507059e+37  ;;  %v8898_v41 = vmul.f32 %v8580_v2, %v10770_v5  ;;  %v10779_v17 = vld [vmem:[#allocation24_spill] sm:$0xff] }
 0x27c   : > { %v3182_v33 = vadd.f32 %v3181_v9, %v8866_v50  ;;  %v8901_v62 = vpop.eup %4496  ;;  %v8905_v26 = vsel %vm8800_vm12, %v2962_v10, %v2958_v21  ;;  %vm2986_vm9 = vweird.f32 %v8767_v0  ;;  %v2998_v2 = vmul.f32 %v8797_v3, %v2997_v1  ;;  %v10782_v21 = vld [vmem:[#allocation20_spill] sm:$0xff] }
 0x27d   : > { %vm3015_vm7 = vweird.f32 %v10754_v46  ;;  %v3021_v18 = vand.u32 2147483648, %v10754_v46  ;;  %vm8919_vm11 = vcmp.eq.f32.partialorder %v3004_v51, 8.507059e+37  ;;  %v3007_v10 = vor.u32 1.1754944e-38, %v3006_v63  ;;  %vm8941_vm3 = vmor %vm2985_vm15, %vm2986_vm9  ;;  %v10783_v63 = vld [vmem:[#allocation23_spill] sm:$0xff] }
 0x27e   : > { %v3019_v44 = vand.u32 2147483647, %v10754_v46  ;;  %v8926_v13 = vmul.f32 %v8589_v42, %v10775_v20  ;;  %v3183_v22 = vadd.f32 %v3182_v33, %v8880_v4  ;;  %v8929_v28 = vpop.eup %4498  ;;  %v2984_v37 = vadd.f32 %v8767_v0, %v2983_v55  ;;  %v10786_v33 = vld [vmem:[#allocation37_spill] sm:$0xff] }
 0x27f   : > { %vm3001_vm8 = vweird.f32 %v8797_v3  ;;  %v3012_v27 = vsub.f32 1.0, %v3011_v43  ;;  %4500 = vrcp.f32 %v10776_v49  ;;  %v2973_v16 = vsel %vm8911_vm2, %v8742_v60, %v2969_v34 }
 0x280   : > { %v3026_v19 = vmul.f32 %v8901_v62, %v10762_v39  ;;  %v8949_v24 = vmul.f32 %v8606_v58, %v10779_v17  ;;  %v3184_v30 = vadd.f32 %v3183_v22, %v8898_v41  ;;  %v2999_v48 = vadd.f32 %v8797_v3, %v2998_v2  ;;  %vm8959_vm12 = vmor %vm3000_vm1, %vm3001_vm8  ;;  %v10788_v22 = vld [vmem:[#allocation56_spill] sm:$0xff] }
 0x281   : > { %v8953_v60 = vor.u32 1.1754944e-38, %v3021_v18  ;;  %v3034_v1 = vand.u32 2147483647, %v10762_v39  ;;  %v3036_v35 = vand.u32 2147483648, %v10762_v39  ;;  %vm3030_vm0 = vweird.f32 %v10762_v39  ;;  %v10803_v39 = vld [vmem:[#allocation9_spill] sm:$0xff] }
 0x282   : > { %v3041_v58 = vmul.f32 %v8929_v28, %v10766_v25  ;;  %4502 = vrcp.f32 %v10782_v21  ;;  %v8969_v23 = vmul.f32 %v8657_v36, %v10783_v63  ;;  %v3185_v9 = vadd.f32 %v3184_v30, %v8926_v13  ;;  %v10794_v30 = vld [vmem:[#allocation27_spill] sm:$0xff] }
 0x283   : > { %v8974_v29 = vsel %vm8860_vm6, %v2977_v52, %v2973_v16  ;;  %v2988_v55 = vsel %vm8941_vm3, %v8767_v0, %v2984_v37  ;;  %v3013_v43 = vmul.f32 %v8856_v15, %v3012_v27  ;;  %vm8980_vm5 = vcmp.eq.f32.partialorder %v3019_v44, 8.507059e+37  ;;  %v10789_v37 = vld [vmem:[#allocation67_spill] sm:$0xff] }
 0x284   : > { %v3051_v5 = vand.u32 2147483648, %v10766_v25  ;;  %v3027_v36 = vsub.f32 1.0, %v3026_v19  ;;  %vm3045_vm15 = vweird.f32 %v10766_v25  ;;  %4504 = vrcp.f32 %v10786_v33 }
 0x285   : > { %v8989_v52 = vmul.f32 %v8690_v59, %v10787_v11  ;;  %v3186_v14 = vadd.f32 %v3185_v9, %v8949_v24  ;;  %v8992_v0 = vpop.eup %4500  ;;  %v3003_v2 = vsel %vm8959_vm12, %v8797_v3, %v2999_v48  ;;  %vm3016_vm14 = vweird.f32 %v8856_v15  ;;  %v10799_v11 = vld [vmem:[#allocation68_spill] sm:$0xff] }
 0x286   : > { %v8998_v18 = vor.u32 1.1754944e-38, %v3036_v35  ;;  %v3049_v44 = vand.u32 2147483647, %v10766_v25  ;;  %v3042_v20 = vsub.f32 1.0, %v3041_v58  ;;  %4506 = vrcp.f32 %v10788_v22  ;;  %vm9019_vm4 = vmor %vm3015_vm7, %vm3016_vm14  ;;  %v10795_v58 = vld [vmem:[#allocation21_spill] sm:$0xff] }
 0x287   : > { %v9004_v59 = vmul.f32 %v8710_v53, %v10789_v37  ;;  %v3187_v27 = vadd.f32 %v3186_v14, %v8969_v23  ;;  %v9009_v16 = vsel %vm8892_vm13, %v2992_v6, %v2988_v55  ;;  %v3014_v3 = vadd.f32 %v8856_v15, %v3013_v43 }
 0x288   : > { %vm3031_vm10 = vweird.f32 %v8901_v62  ;;  %v9013_v42 = vor.u32 1.1754944e-38, %v3051_v5  ;;  %v9015_v19 = vpop.eup %4502  ;;  %v3028_v53 = vmul.f32 %v8901_v62, %v3027_v36  ;;  %vm9024_vm6 = vcmp.eq.f32.partialorder %v3034_v1, 8.507059e+37 }
 0x289   : > { %v3056_v6 = vmul.f32 %v8992_v0, %v10776_v49  ;;  %v9032_v48 = vmul.f32 %v8762_v56, %v10794_v30  ;;  %v3188_v35 = vadd.f32 %v3187_v27, %v8989_v52  ;;  %v9037_v46 = vsel %vm8919_vm11, %v3007_v10, %v3003_v2  ;;  %vm9075_vm9 = vmor %vm3030_vm0, %vm3031_vm10 }
 0x28a   : > { %v3064_v51 = vand.u32 2147483647, %v10776_v49  ;;  %v3066_v1 = vand.u32 2147483648, %v10776_v49  ;;  %4508 = vrcp.f32 %v10795_v58  ;;  %v9042_v63 = vpop.eup %4504  ;;  %v3043_v9 = vmul.f32 %v8929_v28, %v3042_v20 }
 0x28b   : > { %vm3046_vm1 = vweird.f32 %v8929_v28  ;;  %vm9046_vm13 = vcmp.eq.f32.partialorder %v3049_v44, 8.507059e+37  ;;  %vm3060_vm2 = vweird.f32 %v10776_v49  ;;  %v9053_v10 = vmul.f32 %v8771_v31, %v10798_v47  ;;  %v10800_v31 = vld [vmem:[#allocation18_spill] sm:$0xff] }
 0x28c   : > { %v3189_v55 = vadd.f32 %v3188_v35, %v9004_v59  ;;  %v3018_v43 = vsel %vm9019_vm4, %v8856_v15, %v3014_v3  ;;  %v3071_v5 = vmul.f32 %v9015_v19, %v10782_v21  ;;  %v3081_v36 = vand.u32 2147483648, %v10782_v21  ;;  %v9063_v14 = vpop.eup %4506  ;;  %vm9100_vm11 = vmor %vm3045_vm15, %vm3046_vm1 }
 0x28d   : > { %4510 = vrcp.f32 %v10799_v11  ;;  %v3029_v2 = vadd.f32 %v8901_v62, %v3028_v53  ;;  %v3057_v44 = vsub.f32 1.0, %v3056_v6  ;;  %v9068_v20 = vmul.f32 %v8789_v12, %v10800_v31 }
 0x28e   : > { %v3190_v37 = vadd.f32 %v3189_v55, %v9032_v48  ;;  %v9079_v27 = vor.u32 1.1754944e-38, %v3066_v1  ;;  %vm3075_vm7 = vweird.f32 %v10782_v21  ;;  %v3079_v3 = vand.u32 2147483647, %v10782_v21  ;;  %v10808_v55 = vld [vmem:[#allocation32_spill] sm:$0xff]  ;;  %v10812_v1 = vld [vmem:[#allocation30_spill] sm:$0xff] }
 0x28f   : > { %v3086_v12 = vmul.f32 %v9042_v63, %v10786_v33  ;;  %v3023_v17 = vsel %vm8980_vm5, %v8953_v60, %v3018_v43  ;;  %v3044_v53 = vadd.f32 %v8929_v28, %v3043_v9  ;;  %v9091_v6 = vmul.f32 %v8832_v32, %v10803_v39  ;;  %v10835_v21 = vld [vmem:[#allocation50_spill] sm:$0xff] }
 0x290   : > { %v3191_v30 = vadd.f32 %v3190_v37, %v9053_v10  ;;  %v9094_v35 = vpop.eup %4508  ;;  %vm3061_vm8 = vweird.f32 %v8992_v0  ;;  %v3072_v60 = vsub.f32 1.0, %v3071_v5  ;;  %v9105_v34 = vor.u32 1.1754944e-38, %v3081_v36 }
 0x291   : > { %v3101_v32 = vmul.f32 %v9063_v14, %v10788_v22  ;;  %v3033_v9 = vsel %vm9075_vm9, %v8901_v62, %v3029_v2  ;;  %v3058_v47 = vmul.f32 %v8992_v0, %v3057_v44  ;;  %vm9113_vm3 = vcmp.eq.f32.partialorder %v3064_v51, 8.507059e+37  ;;  %vm9161_vm15 = vmor %vm3060_vm2, %vm3061_vm8 }
 0x292   : > { %v9119_v43 = vmul.f32 %v8889_v57, %v10808_v55  ;;  %v3192_v5 = vadd.f32 %v3191_v30, %v9068_v20  ;;  %v3087_v31 = vsub.f32 1.0, %v3086_v12  ;;  %vm3090_vm12 = vweird.f32 %v10786_v33  ;;  %v10809_v57 = vld [vmem:[#allocation69_spill] sm:$0xff] }
 0x293   : > { %v9122_v36 = vpop.eup %4510  ;;  %v3094_v37 = vand.u32 2147483647, %v10786_v33  ;;  %v3096_v62 = vand.u32 2147483648, %v10786_v33  ;;  %v3048_v51 = vsel %vm9100_vm11, %v8929_v28, %v3044_v53  ;;  %v3116_v2 = vmul.f32 %v9094_v35, %v10795_v58 }
 0x294   : > { %v9134_v44 = vmul.f32 %v8905_v26, %v10809_v57  ;;  %v3193_v15 = vadd.f32 %v3192_v5, %v9091_v6  ;;  %v3038_v12 = vsel %vm9024_vm6, %v8998_v18, %v3033_v9  ;;  %v3073_v39 = vmul.f32 %v9015_v19, %v3072_v60  ;;  %v10817_v9 = vld [vmem:[#allocation71_spill] sm:$0xff] }
 0x295   : > { %vm3076_vm0 = vweird.f32 %v9015_v19  ;;  %v3102_v30 = vsub.f32 1.0, %v3101_v32  ;;  %v3059_v28 = vadd.f32 %v8992_v0, %v3058_v47  ;;  %vm9143_vm5 = vcmp.eq.f32.partialorder %v3079_v3, 8.507059e+37 }
 0x296   : > { %v3131_v26 = vmul.f32 %v9122_v36, %v10799_v11  ;;  %v9151_v55 = vmul.f32 %v8974_v29, %v10812_v1  ;;  %v3194_v18 = vadd.f32 %v3193_v15, %v9119_v43  ;;  %v3053_v8 = vsel %vm9046_vm13, %v9013_v42, %v3048_v51  ;;  %vm9188_vm6 = vmor %vm3075_vm7, %vm3076_vm0 }
 0x297   : > { %v3088_v60 = vmul.f32 %v9042_v63, %v3087_v31  ;;  %v3097_v32 = vor.u32 1.1754944e-38, %v3096_v62  ;;  %vm3105_vm14 = vweird.f32 %v10788_v22  ;;  %vm9167_vm10 = vcmp.eq.f32.partialorder %v3094_v37, 8.507059e+37 }
 0x298   : > { %v3109_v56 = vand.u32 2147483647, %v10788_v22  ;;  %v3117_v42 = vsub.f32 1.0, %v3116_v2  ;;  %v9174_v47 = vmul.f32 %v9009_v16, %v10817_v9  ;;  %v3195_v49 = vadd.f32 %v3194_v18, %v9134_v44  ;;  %v10820_v2 = vld [vmem:[#allocation49_spill] sm:$0xff] }
 0x299   : > { %v3074_v5 = vadd.f32 %v9015_v19, %v3073_v39  ;;  %vm3091_vm4 = vweird.f32 %v9042_v63  ;;  %v3103_v31 = vmul.f32 %v9063_v14, %v3102_v30  ;;  %v3111_v37 = vand.u32 2147483648, %v10788_v22 }
 0x29a   : > { %v3063_v62 = vsel %vm9161_vm15, %v8992_v0, %v3059_v28  ;;  %v3132_v51 = vsub.f32 1.0, %v3131_v26  ;;  %v9194_v57 = vmul.f32 %v9037_v46, %v10820_v2  ;;  %v3196_v15 = vadd.f32 %v3195_v49, %v9151_v55  ;;  %vm9203_vm2 = vmor %vm3090_vm12, %vm3091_vm4  ;;  %v10825_v28 = vld [vmem:[#allocation61_spill] sm:$0xff] }
 0x29b   : > { %v3089_v39 = vadd.f32 %v9042_v63, %v3088_v60  ;;  %vm3106_vm1 = vweird.f32 %v9063_v14  ;;  %vm3120_vm13 = vweird.f32 %v10795_v58  ;;  %v3124_v0 = vand.u32 2147483647, %v10795_v58  ;;  %v10829_v49 = vld [vmem:[#allocation5_spill] sm:$0xff] }
 0x29c   : > { %vm9207_vm9 = vcmp.eq.f32.partialorder %v3109_v56, 8.507059e+37  ;;  %v3118_v46 = vmul.f32 %v9094_v35, %v3117_v42  ;;  %v9213_v26 = vmul.f32 %v3023_v17, %v10825_v28  ;;  %v3197_v1 = vadd.f32 %v3196_v15, %v9174_v47  ;;  %vm9225_vm7 = vmor %vm3105_vm14, %vm3106_vm1  ;;  %v10828_v42 = vld [vmem:[#allocation31_spill] sm:$0xff]  ;;  %v3294_v15 = vld [vmem:[%s9545_s6 + $0x78] sm:$0xff] }
 0x29d   : > { %v3068_v18 = vsel %vm9113_vm3, %v9079_v27, %v3063_v62  ;;  %v3078_v33 = vsel %vm9188_vm6, %v9015_v19, %v3074_v5  ;;  %v3104_v3 = vadd.f32 %v9063_v14, %v3103_v31  ;;  %v3112_v60 = vor.u32 1.1754944e-38, %v3111_v37  ;;  %3296 = vmatpush.msra.mxu1 %v3294_v15 }
 0x29e   : > { %vm3121_vm11 = vweird.f32 %v9094_v35  ;;  %v3133_v17 = vmul.f32 %v9122_v36, %v3132_v51  ;;  %v9232_v25 = vmul.f32 %v3038_v12, %v10828_v42  ;;  %v3198_v27 = vadd.f32 %v3197_v1, %v9194_v57  ;;  %v10832_v51 = vld [vmem:[#allocation33_spill] sm:$0xff] }
 0x29f   : > { %v3093_v19 = vsel %vm9203_vm2, %v9042_v63, %v3089_v39  ;;  %v3126_v9 = vand.u32 2147483648, %v10795_v58  ;;  %vm3135_vm8 = vweird.f32 %v10799_v11  ;;  %v3119_v22 = vadd.f32 %v9094_v35, %v3118_v46  ;;  %vm9254_vm12 = vmor %vm3120_vm13, %vm3121_vm11  ;;  %v10836_v1 = vld [vmem:[#allocation53_spill] sm:$0xff] }
 0x2a0   : > { %vm3136_vm3 = vweird.f32 %v9122_v36  ;;  %v9243_v5 = vmul.f32 %v3053_v8, %v10829_v49  ;;  %v3199_v12 = vadd.f32 %v3198_v27, %v9213_v26  ;;  %v3083_v31 = vsel %vm9143_vm5, %v9105_v34, %v3078_v33 }
 0x2a1   : > { %v3108_v63 = vsel %vm9225_vm7, %v9063_v14, %v3104_v3  ;;  %v3139_v62 = vand.u32 2147483647, %v10799_v11  ;;  %v3141_v8 = vand.u32 2147483648, %v10799_v11  ;;  %v3134_v16 = vadd.f32 %v9122_v36, %v3133_v17  ;;  %vm9271_vm0 = vmor %vm3135_vm8, %vm3136_vm3  ;;  %v10837_v3 = vld [vmem:[#allocation7_spill] sm:$0xff] }
 0x2a2   : > { %v9262_v2 = vmul.f32 %v3068_v18, %v10832_v51  ;;  %v3200_v34 = vadd.f32 %v3199_v12, %v9232_v25  ;;  %v4531_v53 = vmov 256.0   ;;  %v3098_v58 = vsel %vm9167_vm10, %v3097_v32, %v3093_v19  ;;  %v10839_v19 = vld [vmem:[#allocation54_spill] sm:$0xff] }
 0x2a3   : > { %4512 = vrcp.f32 %v4531_v53  ;;  %v3127_v14 = vor.u32 1.1754944e-38, %v3126_v9  ;;  %v3123_v39 = vsel %vm9254_vm12, %v9094_v35, %v3119_v22  ;;  %vm3125_vm5 = vcmp.eq.f32.partialorder %v3124_v0, 8.507059e+37 }
 0x2a4   : > { %v9279_v46 = vmul.f32 %v3083_v31, %v10835_v21  ;;  %v3201_v29 = vadd.f32 %v3200_v34, %v9243_v5  ;;  %v3113_v32 = vsel %vm9207_vm9, %v3112_v60, %v3108_v63  ;;  %v3142_v28 = vor.u32 1.1754944e-38, %v3141_v8  ;;  %v10838_v60 = vld [vmem:[#allocation70_spill] sm:$0xff]  ;;  %v3292_v21 = vld [vmem:[%s9545_s6 + $0x68] sm:$0xff] }
 0x2a5   : > { %v3138_v11 = vsel %vm9271_vm0, %v9122_v36, %v3134_v16  ;;  %vm3140_vm15 = vcmp.eq.f32.partialorder %v3139_v62, 8.507059e+37  ;;  %v9288_v18 = vmul.f32 %v3098_v58, %v10836_v1  ;;  %v3128_v0 = vsel %vm3125_vm5, %v3127_v14, %v3123_v39  ;;  %v3293_v39 = vld [vmem:[%s9545_s6 + $0x70] sm:$0xff]  ;;  %v3287_v1 = vld [vmem:[%s9545_s6 + $0x40] sm:$0xff] }
 0x2a6   : > { %v3202_v35 = vadd.f32 %v3201_v29, %v9262_v2  ;;  %v9292_v56 = vmul.f32 %v3113_v32, %v10837_v3  ;;  %v3143_v30 = vsel %vm3140_vm15, %v3142_v28, %v3138_v11  ;;  %v9296_v42 = vmul.f32 %v3128_v0, %v10838_v60  ;;  %3297 = vmatpush.msra.mxu1 %v3293_v39  ;;  %v3291_v29 = vld [vmem:[%s9545_s6 + $0x60] sm:$0xff]  ;;  %v3290_v32 = vld [vmem:[%s9545_s6 + $0x58] sm:$0xff]  ;;  %v3289_v28 = vld [vmem:[%s9545_s6 + $0x50] sm:$0xff] }
 0x2a7   : > { %v9300_v9 = vmul.f32 %v3143_v30, %v10839_v19  ;;  %v3288_v11 = vld [vmem:[%s9545_s6 + $0x48] sm:$0xff]  ;;  %v3285_v0 = vld [vmem:[%s9545_s6 + $0x30] sm:$0xff]  ;;  %v3283_v3 = vld [vmem:[%s9545_s6 + $0x20] sm:$0xff] }
 0x2a8   : > { %v3203_v17 = vadd.f32 %v3202_v35, %v9279_v46  ;;  %3298 = vmatpush.msra.mxu1 %v3292_v21  ;;  %v3286_v35 = vld [vmem:[%s9545_s6 + $0x38] sm:$0xff]  ;;  %v3281_v30 = vld [vmem:[%s9545_s6 + $0x10] sm:$0xff]  ;;  %v3280_v60 = vld [vmem:[%s9545_s6 + $0x8] sm:$0xff] }
 0x2a9   : > { %v4513_v33 = vpop.eup %4512  ;;  %v4051_v39 = vld [vmem:[%s9547_s8 + $0x38] sm:$0xff]  ;;  %v4050_v21 = vld [vmem:[%s9547_s8 + $0x30] sm:$0xff] }
 0x2aa   : > { %v3204_v27 = vadd.f32 %v3203_v17, %v9288_v18  ;;  %v3215_v36 = vmul.f32 256.0, %v4513_v33  ;;  %vm3219_vm14 = vweird.f32 %v4513_v33  ;;  %3299 = vmatpush.msra.mxu1 %v3291_v29  ;;  %v3282_v17 = vld [vmem:[%s9545_s6 + $0x18] sm:$0xff]  ;;  %3448 = vmatpush.bf16.msrb.mxu0 %v4051_v39  ;;  %v4049_v29 = vld [vmem:[%s9547_s8 + $0x28] sm:$0xff] }
 0x2ab   : > { %4346 = vmatpush.bf16.msra.mxu2 %v4051_v39  ;;  %4347 = vmatpush.bf16.msra.mxu3 %v4051_v39 }
 0x2ac   : > { %v3205_v22 = vadd.f32 %v3204_v27, %v9292_v56  ;;  %v3216_v12 = vsub.f32 1.0, %v3215_v36  ;;  %3300 = vmatpush.msra.mxu1 %v3290_v32  ;;  %v3279_v27 = vld [vmem:[%s9545_s6] sm:$0xff] }
 0x2ad   : > { %v3238_v36 = vld [vmem:[%s9544_s5] sm:$0x1] }
 0x2ae   : > { %v3206_v49 = vadd.f32 %v3205_v22, %v9296_v42  ;;  %v3217_v37 = vmul.f32 %v4513_v33, %v3216_v12  ;;  %3301 = vmatpush.msra.mxu1 %v3289_v28  ;;  %3449 = vmatpush.bf16.msrb.mxu0 %v4050_v21  ;;  %v4048_v32 = vld [vmem:[%s9547_s8 + $0x20] sm:$0xff]  ;;  %v4047_v28 = vld [vmem:[%s9547_s8 + $0x18] sm:$0xff] }
 0x2af   : > { %4349 = vmatpush.bf16.msra.mxu2 %v4050_v21  ;;  %4350 = vmatpush.bf16.msra.mxu3 %v4050_v21 }
 0x2b0   : > { %v3207_v31 = vadd.f32 %v3206_v49, %v9300_v9  ;;  %v3218_v16 = vadd.f32 %v4513_v33, %v3217_v37  ;;  %3302 = vmatpush.msra.mxu1 %v3288_v11  ;;  %v4046_v11 = vld [vmem:[%s9547_s8 + $0x10] sm:$0xff] }
 0x2b2   : > { %v3208_v63 = vrot.slane %v3207_v31, 4  ;;  %v3220_v53 = vsel %vm3219_vm14, %v4513_v33, %v3218_v16  ;;  %3303 = vmatpush.msra.mxu1 %v3287_v1  ;;  %v3284_v33 = vld [vmem:[%s9545_s6 + $0x28] sm:$0xff]  ;;  %3450 = vmatpush.bf16.msrb.mxu0 %v4049_v29 }
 0x2b3   : > { %4352 = vmatpush.bf16.msra.mxu2 %v4049_v29  ;;  %4353 = vmatpush.bf16.msra.mxu3 %v4049_v29  ;;  %v4045_v1 = vld [vmem:[%s9547_s8 + $0x8] sm:$0xff] }
 0x2b4   : > { %v3209_v62 = vadd.f32 %v3208_v63, %v3207_v31  ;;  %3304 = vmatpush.msra.mxu1 %v3286_v35  ;;  %v3295_v35 = vld [vmem:[%s9546_s7] sm:$0x1] }
 0x2b6   : > { %v3210_v8 = vrot.slane %v3209_v62, 2  ;;  %3305 = vmatpush.msra.mxu1 %v3285_v0  ;;  %3451 = vmatpush.bf16.msrb.mxu0 %v4048_v32  ;;  %v4044_v0 = vld [vmem:[%s9547_s8] sm:$0xff] }
 0x2b7   : > { %4355 = vmatpush.bf16.msra.mxu2 %v4048_v32  ;;  %4356 = vmatpush.bf16.msra.mxu3 %v4048_v32 }
 0x2b8   : > { %v3211_v51 = vadd.f32 %v3210_v8, %v3209_v62  ;;  %3306 = vmatpush.msra.mxu1 %v3284_v33 }
 0x2ba   : > { %v3212_v34 = vrot.slane %v3211_v51, 1  ;;  %3307 = vmatpush.msra.mxu1 %v3283_v3  ;;  %3452 = vmatpush.bf16.msrb.mxu0 %v4047_v28 }
 0x2bb   : > { %4358 = vmatpush.bf16.msra.mxu2 %v4047_v28  ;;  %4359 = vmatpush.bf16.msra.mxu3 %v4047_v28 }
 0x2bc   : > { %v3213_v58 = vadd.f32 %v3212_v34, %v3211_v51  ;;  %3308 = vmatpush.msra.mxu1 %v3282_v17 }
 0x2be   : > { %v3221_v14 = vmul.f32 %v3220_v53, %v3213_v58  ;;  %3309 = vmatpush.msra.mxu1 %v3281_v30  ;;  %3453 = vmatpush.bf16.msrb.mxu0 %v4046_v11 }
 0x2bf   : > { %4361 = vmatpush.bf16.msra.mxu2 %v4046_v11  ;;  %4362 = vmatpush.bf16.msra.mxu3 %v4046_v11 }
 0x2c0   : > { %3255 = vmatmul.f32.vlgmr.msra.gmra.mxu0 %v3221_v14  ;;  %3310 = vmatpush.msra.mxu1 %v3280_v60 }
 0x2c2   : > { %3311 = vmatpush.msra.mxu1 %v3279_v27  ;;  %3454 = vmatpush.bf16.msrb.mxu0 %v4045_v1 }
 0x2c3   : > { %4364 = vmatpush.bf16.msra.mxu2 %v4045_v1  ;;  %4365 = vmatpush.bf16.msra.mxu3 %v4045_v1 }
 0x2c4   : > { %4345 = vmatpush.bf16.msrb.mxu1 %v4051_v39 }
 0x2c6   : > { %3455 = vmatpush.bf16.msrb.mxu0 %v4044_v0 }
 0x2c7   : > { %4367 = vmatpush.bf16.msra.mxu2 %v4044_v0  ;;  %4368 = vmatpush.bf16.msra.mxu3 %v4044_v0 }
 0x2c8   : > { %4348 = vmatpush.bf16.msrb.mxu1 %v4050_v21 }
 0x2cc   : > { %4351 = vmatpush.bf16.msrb.mxu1 %v4049_v29 }
 0x2d0   : > { %4354 = vmatpush.bf16.msrb.mxu1 %v4048_v32 }
 0x2d4   : > { %4357 = vmatpush.bf16.msrb.mxu1 %v4047_v28 }
 0x2d8   : > { %4360 = vmatpush.bf16.msrb.mxu1 %v4046_v11 }
 0x2dc   : > { %4363 = vmatpush.bf16.msrb.mxu1 %v4045_v1 }
 0x2e0   : > { %4366 = vmatpush.bf16.msrb.mxu1 %v4044_v0 }
 0x33d   : > { %v3256_v19 = vpop.f32.mrf.mxu0 }
 0x33e   : > { %v3257_v22 = vadd.f32 %v3256_v19, %v3238_v36 }
 0x340   : > { %v4006_v49 = vmul.f32 -1.442695, %v3257_v22 }
 0x342   : > { %4514 = vpow2.f32 %v4006_v49 }
 0x348   : > { %v4515_v12 = vpop.eup %4514 }
 0x349   : > { %v3262_v31 = vadd.f32 1.0, %v4515_v12 }
 0x34b   : > { %4516 = vrcp.f32 %v3262_v31  ;;  %v3274_v8 = vand.u32 2147483648, %v3262_v31  ;;  %v3272_v51 = vand.u32 2147483647, %v3262_v31  ;;  %vm3268_vm4 = vweird.f32 %v3262_v31 }
 0x34d   : > { %v3275_v53 = vor.u32 1.1754944e-38, %v3274_v8  ;;  %vm3273_vm1 = vcmp.eq.f32.partialorder %v3272_v51, 8.507059e+37 }
 0x351   : > { %v4517_v63 = vpop.eup %4516 }
 0x352   : > { %v3264_v37 = vmul.f32 %v4517_v63, %v3262_v31  ;;  %vm3269_vm10 = vweird.f32 %v4517_v63 }
 0x353   : > { %vm3270_vm6 = vmor %vm3268_vm4, %vm3269_vm10 }
 0x354   : > { %v3265_v62 = vsub.f32 1.0, %v3264_v37 }
 0x356   : > { %v3266_v16 = vmul.f32 %v4517_v63, %v3265_v62 }
 0x358   : > { %v3267_v34 = vadd.f32 %v4517_v63, %v3266_v16 }
 0x35a   : > { %v3271_v58 = vsel %vm3270_vm6, %v4517_v63, %v3267_v34 }
 0x35b   : > { %v3276_v14 = vsel %vm3273_vm1, %v3275_v53, %v3271_v58 }
 0x35c   : > { %v3278_v15 = vmul.f32 %v3276_v14, %v3257_v22 }
 0x35e   : > { %3312 = vmatmul.f32.vlgmr.msra.gmra.mxu1 %v3278_v15 }
 0x3db   : > { %v3313_v33 = vpop.f32.mrf.mxu1 }
 0x3dc   : > { %v3314_v3 = vadd.f32 %v3313_v33, %v3295_v35 }
 0x3de   : > { %v4007_v17 = vmul.f32 -1.442695, %v3314_v3 }
 0x3e0   : > { %4518 = vpow2.f32 %v4007_v17 }
 0x3e6   : > { %v4519_v30 = vpop.eup %4518 }
 0x3e7   : > { %v3319_v60 = vadd.f32 1.0, %v4519_v30 }
 0x3e9   : > { %4520 = vrcp.f32 %v3319_v60  ;;  %v3331_v22 = vand.u32 2147483648, %v3319_v60  ;;  %v3329_v12 = vand.u32 2147483647, %v3319_v60  ;;  %vm3325_vm2 = vweird.f32 %v3319_v60 }
 0x3eb   : > { %v3332_v63 = vor.u32 1.1754944e-38, %v3331_v22  ;;  %vm3330_vm7 = vcmp.eq.f32.partialorder %v3329_v12, 8.507059e+37 }
 0x3ef   : > { %v4521_v27 = vpop.eup %4520 }
 0x3f0   : > { %v3321_v36 = vmul.f32 %v4521_v27, %v3319_v60  ;;  %vm3326_vm13 = vweird.f32 %v4521_v27 }
 0x3f1   : > { %vm3327_vm9 = vmor %vm3325_vm2, %vm3326_vm13 }
 0x3f2   : > { %v3322_v19 = vsub.f32 1.0, %v3321_v36 }
 0x3f4   : > { %v3323_v49 = vmul.f32 %v4521_v27, %v3322_v19  ;;  %v4317_v19 = vld [vmem:[%s9426_s30 + $0x18] sm:$0xff]  }
 0x3f6   : > { %v3324_v31 = vadd.f32 %v4521_v27, %v3323_v49 }
 0x3f8   : > { %v3328_v37 = vsel %vm3327_vm9, %v4521_v27, %v3324_v31  ;;  %v4162_v31 = vunpack.c.l.bf16 %v4317_v19 }
 0x3f9   : > { %v3333_v62 = vsel %vm3330_vm7, %v3332_v63, %v3328_v37 }
 0x3fa   : > { %v3335_v8 = vperm.slane %v3333_v62, 0 }
 0x3fc   : > { %v3336_v16 = vmul.f32 %v3335_v8, %v8754_v7  ;;  %v3337_v51 = vmul.f32 %v3335_v8, %v8758_v61  ;;  %v3342_v34 = vmul.f32 %v3335_v8, %v8866_v50  ;;  %v3343_v53 = vmul.f32 %v3335_v8, %v8880_v4 }
 0x3fd   : > { %v3348_v58 = vmul.f32 %v3335_v8, %v8989_v52  ;;  %v3349_v14 = vmul.f32 %v3335_v8, %v9004_v59  ;;  %v3358_v15 = vmul.f32 %v3335_v8, %v9194_v57  ;;  %v3359_v39 = vmul.f32 %v3335_v8, %v9213_v26 }
 0x3fe   : > { %v3368_v21 = vpack.c.bf16 %v3337_v51, %v3336_v16  ;;  %v3371_v29 = vpack.c.bf16 %v3343_v53, %v3342_v34  ;;  %v3338_v7 = vmul.f32 %v3335_v8, %v8785_v45  ;;  %v3339_v61 = vmul.f32 %v3335_v8, %v8808_v54 }
 0x3ff   : > { %v3374_v32 = vpack.c.bf16 %v3349_v14, %v3348_v58  ;;  %v3379_v28 = vpack.c.bf16 %v3359_v39, %v3358_v15  ;;  %v3344_v50 = vmul.f32 %v3335_v8, %v8898_v41  ;;  %v3345_v4 = vmul.f32 %v3335_v8, %v8926_v13  ;;  %v4320_v58 = vld [vmem:[%s9426_s30 + $0x30] sm:$0xff]   ;;  %v4325_v14 = vld [vmem:[%s9426_s30 + $0x58] sm:$0xff]  }
 0x400   : > { %3456 = vmatmul.bf16.vlgmr.msrb.gmra.mxu0 %v3368_v21  ;;  %3471 = vmatmul.bf16.vlgmr.msrb.gmra.mxu1 %v3371_v29  ;;  %v3350_v52 = vmul.f32 %v3335_v8, %v9032_v48  ;;  %v3351_v59 = vmul.f32 %v3335_v8, %v9053_v10  ;;  %v3360_v57 = vmul.f32 %v3335_v8, %v9232_v25 }
 0x401   : > { %3486 = vmatmul.bf16.vlgmr.msra.gmra.mxu2 %v3374_v32  ;;  %3511 = vmatmul.bf16.vlgmr.msra.gmra.mxu3 %v3379_v28  ;;  %v3361_v26 = vmul.f32 %v3335_v8, %v9243_v5  ;;  %v3369_v11 = vpack.c.bf16 %v3339_v61, %v3338_v7  ;;  %v3372_v1 = vpack.c.bf16 %v3345_v4, %v3344_v50  ;;  %v4174_v50 = vunpack.c.l.bf16 %v4320_v58 }
 0x402   : > { %v3375_v35 = vpack.c.bf16 %v3351_v59, %v3350_v52  ;;  %v3340_v45 = vmul.f32 %v3335_v8, %v8822_v40  ;;  %v3341_v54 = vmul.f32 %v3335_v8, %v8845_v38  ;;  %v3346_v41 = vmul.f32 %v3335_v8, %v8949_v24 }
 0x403   : > { %v3380_v0 = vpack.c.bf16 %v3361_v26, %v3360_v57  ;;  %v3347_v13 = vmul.f32 %v3335_v8, %v8969_v23  ;;  %v3352_v48 = vmul.f32 %v3335_v8, %v9068_v20  ;;  %v3353_v10 = vmul.f32 %v3335_v8, %v9091_v6 }
 0x404   : > { %v3362_v25 = vmul.f32 %v3335_v8, %v9262_v2  ;;  %v3363_v5 = vmul.f32 %v3335_v8, %v9279_v46  ;;  %v3370_v33 = vpack.c.bf16 %v3341_v54, %v3340_v45  ;;  %v3354_v40 = vmul.f32 %v3335_v8, %v9119_v43 }
 0x405   : > { %v3373_v3 = vpack.c.bf16 %v3347_v13, %v3346_v41  ;;  %v3376_v17 = vpack.c.bf16 %v3353_v10, %v3352_v48  ;;  %v3355_v38 = vmul.f32 %v3335_v8, %v9134_v44  ;;  %v3364_v24 = vmul.f32 %v3335_v8, %v9288_v18 }
 0x406   : > { %v3381_v30 = vpack.c.bf16 %v3363_v5, %v3362_v25  ;;  %v3365_v23 = vmul.f32 %v3335_v8, %v9292_v56  ;;  %v3356_v2 = vmul.f32 %v3335_v8, %v9151_v55  ;;  %v3357_v46 = vmul.f32 %v3335_v8, %v9174_v47  ;;  %v9419_v56 = vld [vmem:[%s9548_s9] ss:$0 sm:$0xff] }
 0x407   : > { %v3377_v20 = vpack.c.bf16 %v3355_v38, %v3354_v40  ;;  %v3366_v60 = vmul.f32 %v3335_v8, %v9296_v42  ;;  %v3367_v43 = vmul.f32 %v3335_v8, %v9300_v9  ;;  %v9432_v47 = vld [vmem:[%s9549_s10] ss:$0 sm:$0xff]  ;;  %v4163_v8 = vunpack.c.h.bf16 %v4317_v19 }
 0x408   : > { %v3382_v6 = vpack.c.bf16 %v3365_v23, %v3364_v24  ;;  %v3378_v27 = vpack.c.bf16 %v3357_v46, %v3356_v2  ;;  %v4149_v42 = vld [vmem:[%s9426_s30] sm:$0xff]   ;;  %v4194_v4 = vunpack.c.l.bf16 %v4325_v14  ;;  %v4175_v26 = vunpack.c.h.bf16 %v4320_v58 }
 0x409   : > { %v3383_v36 = vpack.c.bf16 %v3367_v43, %v3366_v60  ;;  %v4150_v12 = vunpack.c.l.bf16 %v4149_v42  ;;  %v4151_v37 = vunpack.c.h.bf16 %v4149_v42  ;;  %v4318_v38 = vld [vmem:[%s9426_s30 + $0x20] sm:$0xff]  }
 0x40a   : > { %v4166_v46 = vunpack.c.l.bf16 %v4318_v38  ;;  %v4326_v19 = vld [vmem:[%s9426_s30 + $0x60] sm:$0xff]  }
 0x410   : > { %3461 = vmatmul.bf16.gmra.mxu0 %v3369_v11  ;;  %3476 = vmatmul.bf16.gmra.mxu1 %v3372_v1  ;;  %v4195_v1 = vunpack.c.h.bf16 %v4325_v14 }
 0x411   : > { %3491 = vmatmul.bf16.gmra.mxu2 %v3375_v35  ;;  %3516 = vmatmul.bf16.gmra.mxu3 %v3380_v0 }
 0x420   : > { %3466 = vmatmul.bf16.gmra.mxu0 %v3370_v33  ;;  %3481 = vmatmul.bf16.gmra.mxu1 %v3373_v3 }
 0x421   : > { %3496 = vmatmul.bf16.gmra.mxu2 %v3376_v17  ;;  %3521 = vmatmul.bf16.gmra.mxu3 %v3381_v30  ;;  %v4315_v30 = vld [vmem:[%s9426_s30 + $0x8] sm:$0xff]  }
 0x422   : > { %v4154_v2 = vunpack.c.l.bf16 %v4315_v30  ;;  %v4155_v43 = vunpack.c.h.bf16 %v4315_v30 }
 0x431   : > { %3501 = vmatmul.bf16.gmra.mxu2 %v3377_v20  ;;  %3526 = vmatmul.bf16.gmra.mxu3 %v3382_v6 }
 0x441   : > { %3506 = vmatmul.bf16.gmra.mxu2 %v3378_v27  ;;  %3531 = vmatmul.bf16.gmra.mxu3 %v3383_v36  ;;  %v4167_v36 = vunpack.c.h.bf16 %v4318_v38 }
 0x47d   : > { %v3457_v44 = vpop.f32.mrf.mxu0  ;;  %v3472_v18 = vpop.f32.mrf.mxu1 }
 0x47e   : > { %v3541_v55 = vmul.f32 %v9419_v56, %v3457_v44  ;;  %v3547_v9 = vmul.f32 %v9419_v56, %v3472_v18 }
 0x480   : > { %v3577_v16 = vadd.f32 %v9432_v47, %v3541_v55  ;;  %v3583_v51 = vadd.f32 %v9432_v47, %v3547_v9  ;;  %v4321_v9 = vld [vmem:[%s9426_s30 + $0x38] sm:$0xff]  }
 0x481   : > { %v4179_v14 = vunpack.c.h.bf16 %v4321_v9 }
 0x482   : > { %v3673_v32 = vadd.f32 %v4150_v12, %v3577_v16  ;;  %v3679_v28 = vadd.f32 %v4162_v31, %v3583_v51  ;;  %v4178_v16 = vunpack.c.l.bf16 %v4321_v9  ;;  %v4198_v51 = vunpack.c.l.bf16 %v4326_v19 }
 0x484   : > { %v3487_v22 = vpop.f32.mrf.mxu2  ;;  %v3512_v49 = vpop.f32.mrf.mxu3 }
 0x485   : > { %v3459_v63 = vpop.f32.mrf.mxu0  ;;  %v3474_v62 = vpop.f32.mrf.mxu1  ;;  %v3553_v21 = vmul.f32 %v9419_v56, %v3487_v22  ;;  %v3563_v29 = vmul.f32 %v9419_v56, %v3512_v49 }
 0x486   : > { %v3542_v34 = vmul.f32 %v9419_v56, %v3459_v63  ;;  %v3548_v53 = vmul.f32 %v9419_v56, %v3474_v62 }
 0x487   : > { %v3589_v35 = vadd.f32 %v9432_v47, %v3553_v21  ;;  %v3599_v0 = vadd.f32 %v9432_v47, %v3563_v29 }
 0x488   : > { %v3578_v15 = vadd.f32 %v9432_v47, %v3542_v34  ;;  %v3584_v39 = vadd.f32 %v9432_v47, %v3548_v53 }
 0x489   : > { %v3685_v25 = vadd.f32 %v4174_v50, %v3589_v35  ;;  %v3695_v5 = vadd.f32 %v4194_v4, %v3599_v0  ;;  %v4319_v0 = vld [vmem:[%s9426_s30 + $0x28] sm:$0xff]  }
 0x48a   : > { %v3674_v7 = vadd.f32 %v4151_v37, %v3578_v15  ;;  %v3680_v61 = vadd.f32 %v4163_v8, %v3584_v39  ;;  %v4199_v39 = vunpack.c.h.bf16 %v4326_v19 }
 0x48c   : > { %v4215_v52 = vpack.c.bf16 %v3674_v7, %v3673_v32  ;;  %v4230_v59 = vpack.c.bf16 %v3680_v61, %v3679_v28  ;;  %v3489_v57 = vpop.f32.mrf.mxu2  ;;  %v3514_v11 = vpop.f32.mrf.mxu3 }
 0x48d   : > { %v3554_v45 = vmul.f32 %v9419_v56, %v3489_v57  ;;  %v3564_v54 = vmul.f32 %v9419_v56, %v3514_v11  ;;  %v3462_v41 = vpop.f32.mrf.mxu0  ;;  %v3477_v13 = vpop.f32.mrf.mxu1 }
 0x48e   : > { %4216 = vst [vmem:[%s9452_s17] sm:$0xff] %v4215_v52   ;;  %v3543_v17 = vmul.f32 %v9419_v56, %v3462_v41  ;;  %v3549_v40 = vmul.f32 %v9419_v56, %v3477_v13 }
 0x48f   : > { %4332 = vst [vmem:[%s9452_s17 + $0x18] sm:$0xff] %v4230_v59   ;;  %v3590_v48 = vadd.f32 %v9432_v47, %v3554_v45  ;;  %v3600_v10 = vadd.f32 %v9432_v47, %v3564_v54 }
 0x490   : > { %v3579_v44 = vadd.f32 %v9432_v47, %v3543_v17  ;;  %v3585_v18 = vadd.f32 %v9432_v47, %v3549_v40 }
 0x491   : > { %v3686_v33 = vadd.f32 %v4175_v26, %v3590_v48  ;;  %v3696_v3 = vadd.f32 %v4195_v1, %v3600_v10  ;;  %v4316_v1 = vld [vmem:[%s9426_s30 + $0x10] sm:$0xff]   ;;  %v4170_v10 = vunpack.c.l.bf16 %v4319_v0 }
 0x492   : > { %v3675_v63 = vadd.f32 %v4154_v2, %v3579_v44  ;;  %v3681_v37 = vadd.f32 %v4166_v46, %v3585_v18  ;;  %v4158_v48 = vunpack.c.l.bf16 %v4316_v1 }
 0x493   : > { %v4245_v24 = vpack.c.bf16 %v3686_v33, %v3685_v25  ;;  %v4270_v23 = vpack.c.bf16 %v3696_v3, %v3695_v5  ;;  %v4159_v5 = vunpack.c.h.bf16 %v4316_v1  ;;  %v4171_v3 = vunpack.c.h.bf16 %v4319_v0 }
 0x494   : > { %v3492_v20 = vpop.f32.mrf.mxu2  ;;  %v3517_v6 = vpop.f32.mrf.mxu3 }
 0x495   : > { %4335 = vst [vmem:[%s9452_s17 + $0x30] sm:$0xff] %v4245_v24   ;;  %v3464_v60 = vpop.f32.mrf.mxu0  ;;  %v3479_v27 = vpop.f32.mrf.mxu1  ;;  %v3555_v12 = vmul.f32 %v9419_v56, %v3492_v20  ;;  %v3565_v31 = vmul.f32 %v9419_v56, %v3517_v6  ;;  %v4322_v24 = vld [vmem:[%s9426_s30 + $0x40] sm:$0xff]  }
 0x496   : > { %4340 = vst [vmem:[%s9452_s17 + $0x58] sm:$0xff] %v4270_v23   ;;  %v3544_v55 = vmul.f32 %v9419_v56, %v3464_v60  ;;  %v3550_v42 = vmul.f32 %v9419_v56, %v3479_v27  ;;  %v4327_v23 = vld [vmem:[%s9426_s30 + $0x68] sm:$0xff]   ;;  %v4182_v44 = vunpack.c.l.bf16 %v4322_v24  ;;  %v4183_v19 = vunpack.c.h.bf16 %v4322_v24 }
 0x497   : > { %v3591_v21 = vadd.f32 %v9432_v47, %v3555_v12  ;;  %v3601_v29 = vadd.f32 %v9432_v47, %v3565_v31  ;;  %v4202_v18 = vunpack.c.l.bf16 %v4327_v23 }
 0x498   : > { %v3580_v22 = vadd.f32 %v9432_v47, %v3544_v55  ;;  %v3586_v49 = vadd.f32 %v9432_v47, %v3550_v42 }
 0x499   : > { %v3687_v52 = vadd.f32 %v4178_v16, %v3591_v21  ;;  %v3697_v59 = vadd.f32 %v4198_v51, %v3601_v29  ;;  %v4323_v29 = vld [vmem:[%s9426_s30 + $0x48] sm:$0xff]  }
 0x49a   : > { %v3676_v62 = vadd.f32 %v4155_v43, %v3580_v22  ;;  %v3682_v8 = vadd.f32 %v4167_v36, %v3586_v49  ;;  %v4203_v49 = vunpack.c.h.bf16 %v4327_v23 }
 0x49c   : > { %v4220_v34 = vpack.c.bf16 %v3676_v62, %v3675_v63  ;;  %v4235_v53 = vpack.c.bf16 %v3682_v8, %v3681_v37  ;;  %v3494_v58 = vpop.f32.mrf.mxu2  ;;  %v3519_v15 = vpop.f32.mrf.mxu3 }
 0x49d   : > { %v3556_v32 = vmul.f32 %v9419_v56, %v3494_v58  ;;  %v3566_v28 = vmul.f32 %v9419_v56, %v3519_v15  ;;  %v3467_v7 = vpop.f32.mrf.mxu0  ;;  %v3482_v61 = vpop.f32.mrf.mxu1 }
 0x49e   : > { %4330 = vst [vmem:[%s9452_s17 + $0x8] sm:$0xff] %v4220_v34   ;;  %v3545_v11 = vmul.f32 %v9419_v56, %v3467_v7  ;;  %v3551_v35 = vmul.f32 %v9419_v56, %v3482_v61  ;;  %v4186_v7 = vunpack.c.l.bf16 %v4323_v29 }
 0x49f   : > { %4333 = vst [vmem:[%s9452_s17 + $0x20] sm:$0xff] %v4235_v53   ;;  %v3592_v50 = vadd.f32 %v9432_v47, %v3556_v32  ;;  %v3602_v4 = vadd.f32 %v9432_v47, %v3566_v28  ;;  %v4328_v28 = vld [vmem:[%s9426_s30 + $0x70] sm:$0xff]  }
 0x4a0   : > { %v3581_v17 = vadd.f32 %v9432_v47, %v3545_v11  ;;  %v3587_v30 = vadd.f32 %v9432_v47, %v3551_v35  ;;  %v4206_v61 = vunpack.c.l.bf16 %v4328_v28 }
 0x4a1   : > { %v3688_v57 = vadd.f32 %v4179_v14, %v3592_v50  ;;  %v3698_v26 = vadd.f32 %v4199_v39, %v3602_v4  ;;  %v4187_v4 = vunpack.c.h.bf16 %v4323_v29 }
 0x4a2   : > { %v3677_v60 = vadd.f32 %v4158_v48, %v3581_v17  ;;  %v3683_v43 = vadd.f32 %v4170_v10, %v3587_v30  ;;  %v4329_v30 = vld [vmem:[%s9426_s30 + $0x78] sm:$0xff]  }
 0x4a3   : > { %v4250_v45 = vpack.c.bf16 %v3688_v57, %v3687_v52  ;;  %v4275_v54 = vpack.c.bf16 %v3698_v26, %v3697_v59  ;;  %v4207_v59 = vunpack.c.h.bf16 %v4328_v28 }
 0x4a4   : > { %v3497_v41 = vpop.f32.mrf.mxu2  ;;  %v3522_v13 = vpop.f32.mrf.mxu3 }
 0x4a5   : > { %4336 = vst [vmem:[%s9452_s17 + $0x38] sm:$0xff] %v4250_v45   ;;  %v3469_v25 = vpop.f32.mrf.mxu0  ;;  %v3484_v33 = vpop.f32.mrf.mxu1  ;;  %v3557_v2 = vmul.f32 %v9419_v56, %v3497_v41  ;;  %v3567_v46 = vmul.f32 %v9419_v56, %v3522_v13 }
 0x4a6   : > { %4341 = vst [vmem:[%s9452_s17 + $0x60] sm:$0xff] %v4275_v54   ;;  %v3546_v40 = vmul.f32 %v9419_v56, %v3469_v25  ;;  %v3552_v38 = vmul.f32 %v9419_v56, %v3484_v33 }
 0x4a7   : > { %v3593_v12 = vadd.f32 %v9432_v47, %v3557_v2  ;;  %v3603_v31 = vadd.f32 %v9432_v47, %v3567_v46 }
 0x4a8   : > { %v3582_v20 = vadd.f32 %v9432_v47, %v3546_v40  ;;  %v3588_v6 = vadd.f32 %v9432_v47, %v3552_v38  ;;  %v4210_v38 = vunpack.c.l.bf16 %v4329_v30 }
 0x4a9   : > { %v3689_v16 = vadd.f32 %v4182_v44, %v3593_v12  ;;  %v3699_v51 = vadd.f32 %v4202_v18, %v3603_v31 }
 0x4aa   : > { %v3678_v27 = vadd.f32 %v4159_v5, %v3582_v20  ;;  %v3684_v36 = vadd.f32 %v4171_v3, %v3588_v6  ;;  %v4324_v3 = vld [vmem:[%s9426_s30 + $0x50] sm:$0xff]   ;;  %v4211_v6 = vunpack.c.h.bf16 %v4329_v30 }
 0x4ab   : > { %v4190_v40 = vunpack.c.l.bf16 %v4324_v3  ;;  %v4191_v23 = vunpack.c.h.bf16 %v4324_v3 }
 0x4ac   : > { %v4225_v55 = vpack.c.bf16 %v3678_v27, %v3677_v60  ;;  %v4240_v42 = vpack.c.bf16 %v3684_v36, %v3683_v43  ;;  %v3499_v9 = vpop.f32.mrf.mxu2  ;;  %v3524_v22 = vpop.f32.mrf.mxu3 }
 0x4ad   : > { %v3558_v63 = vmul.f32 %v9419_v56, %v3499_v9  ;;  %v3568_v37 = vmul.f32 %v9419_v56, %v3524_v22 }
 0x4ae   : > { %4331 = vst [vmem:[%s9452_s17 + $0x10] sm:$0xff] %v4225_v55  }
 0x4af   : > { %4334 = vst [vmem:[%s9452_s17 + $0x28] sm:$0xff] %v4240_v42   ;;  %v3594_v62 = vadd.f32 %v9432_v47, %v3558_v63  ;;  %v3604_v8 = vadd.f32 %v9432_v47, %v3568_v37 }
 0x4b1   : > { %v3690_v34 = vadd.f32 %v4183_v19, %v3594_v62  ;;  %v3700_v53 = vadd.f32 %v4203_v49, %v3604_v8 }
 0x4b3   : > { %v4255_v58 = vpack.c.bf16 %v3690_v34, %v3689_v16  ;;  %v4280_v14 = vpack.c.bf16 %v3700_v53, %v3699_v51 }
 0x4b4   : > { %v3502_v15 = vpop.f32.mrf.mxu2  ;;  %v3527_v39 = vpop.f32.mrf.mxu3 }
 0x4b5   : > { %4337 = vst [vmem:[%s9452_s17 + $0x40] sm:$0xff] %v4255_v58   ;;  %v3559_v21 = vmul.f32 %v9419_v56, %v3502_v15  ;;  %v3569_v32 = vmul.f32 %v9419_v56, %v3527_v39 }
 0x4b6   : > { %4342 = vst [vmem:[%s9452_s17 + $0x68] sm:$0xff] %v4280_v14  }
 0x4b7   : > { %v3595_v57 = vadd.f32 %v9432_v47, %v3559_v21  ;;  %v3605_v26 = vadd.f32 %v9432_v47, %v3569_v32 }
 0x4b9   : > { %v3691_v45 = vadd.f32 %v4186_v7, %v3595_v57  ;;  %v3701_v54 = vadd.f32 %v4206_v61, %v3605_v26 }
 0x4bc   : > { %v3504_v50 = vpop.f32.mrf.mxu2  ;;  %v3529_v52 = vpop.f32.mrf.mxu3 }
 0x4bd   : > { %v3560_v11 = vmul.f32 %v9419_v56, %v3504_v50  ;;  %v3570_v1 = vmul.f32 %v9419_v56, %v3529_v52 }
 0x4bf   : > { %v3596_v35 = vadd.f32 %v9432_v47, %v3560_v11  ;;  %v3606_v0 = vadd.f32 %v9432_v47, %v3570_v1 }
 0x4c1   : > { %v3692_v41 = vadd.f32 %v4187_v4, %v3596_v35  ;;  %v3702_v13 = vadd.f32 %v4207_v59, %v3606_v0 }
 0x4c3   : > { %v4260_v48 = vpack.c.bf16 %v3692_v41, %v3691_v45  ;;  %v4285_v10 = vpack.c.bf16 %v3702_v13, %v3701_v54 }
 0x4c4   : > { %v3507_v25 = vpop.f32.mrf.mxu2  ;;  %v3532_v5 = vpop.f32.mrf.mxu3 }
 0x4c5   : > { %4338 = vst [vmem:[%s9452_s17 + $0x48] sm:$0xff] %v4260_v48   ;;  %v3561_v33 = vmul.f32 %v9419_v56, %v3507_v25  ;;  %v3571_v17 = vmul.f32 %v9419_v56, %v3532_v5 }
 0x4c6   : > { %4343 = vst [vmem:[%s9452_s17 + $0x70] sm:$0xff] %v4285_v10  }
 0x4c7   : > { %v3597_v2 = vadd.f32 %v9432_v47, %v3561_v33  ;;  %v3607_v46 = vadd.f32 %v9432_v47, %v3571_v17 }
 0x4c9   : > { %v3693_v44 = vadd.f32 %v4190_v40, %v3597_v2  ;;  %v3703_v18 = vadd.f32 %v4210_v38, %v3607_v46 }
 0x4cc   : > { %v3509_v24 = vpop.f32.mrf.mxu2  ;;  %v3534_v20 = vpop.f32.mrf.mxu3 }
 0x4cd   : > { %v3562_v60 = vmul.f32 %v9419_v56, %v3509_v24  ;;  %v3572_v43 = vmul.f32 %v9419_v56, %v3534_v20 }
 0x4cf   : > { %v3598_v27 = vadd.f32 %v9432_v47, %v3562_v60  ;;  %v3608_v36 = vadd.f32 %v9432_v47, %v3572_v43 }
 0x4d1   : > { %v3694_v55 = vadd.f32 %v4191_v23, %v3598_v27  ;;  %v3704_v42 = vadd.f32 %v4211_v6, %v3608_v36 }
 0x4d3   : > { %v4265_v9 = vpack.c.bf16 %v3694_v55, %v3693_v44  ;;  %v4290_v19 = vpack.c.bf16 %v3704_v42, %v3703_v18 }
 0x4d5   : > { %4339 = vst [vmem:[%s9452_s17 + $0x50] sm:$0xff] %v4265_v9  }
 0x4d6   : > { %4344 = vst [vmem:[%s9452_s17 + $0x78] sm:$0xff] %v4290_v19  }
 0x4d7 PF: > { %s22_s21 = sadd.s32 1, %s4529_s21  }
 0x4d8   : > { %p19_p4 = scmp.ge.s32.totalorder %s22_s21, 4  }
 0x4da   :  { %21 = sbr.rel (!%p19_p4) target bundleno = 1 (0x1), region = 103 }

// kernel: effinet_forward.6
= control target key start
LH: loop header
LB: loop body
LE: loop exit
PB: predicated region body
PF: predicated region fallthrough
CT: control target
= control target key end

     0   :  { %s4819_s18 = smov 0   ;;  %s7030_s0 = inlined_call_operand.vmem [shape: bf16[2,576,128], index: 0, kind: input, shape index: {}]   ;;  %s7031_s1 = inlined_call_operand.vmem [shape: f32[576,1], index: 1, kind: input, shape index: {}]   ;;  %s7032_s2 = inlined_call_operand.vmem [shape: bf16[128,128], index: 2, kind: input, shape index: {}]   ;;  %s7033_s3 = inlined_call_operand.vmem [shape: f32[1,128], index: 3, kind: input, shape index: {}]   ;;  %s7034_s4 = inlined_call_operand.vmem [shape: f32[1,128], index: 4, kind: input, shape index: {}]   ;;  %s7035_s5 = inlined_call_operand.vmem [shape: f32[9,128], index: 5, kind: input, shape index: {}]   ;;  %s7036_s6 = inlined_call_operand.vmem [shape: f32[1,128], index: 6, kind: input, shape index: {}]   ;;  %s7037_s7 = inlined_call_operand.vmem [shape: f32[1,128], index: 7, kind: input, shape index: {}]   ;;  %s7038_s8 = inlined_call_operand.vmem [shape: f32[128,128], index: 8, kind: input, shape index: {}]   ;;  %s7039_s9 = inlined_call_operand.vmem [shape: f32[1,128], index: 9, kind: input, shape index: {}]   ;;  %s7040_s10 = inlined_call_operand.vmem [shape: f32[128,128], index: 10, kind: input, shape index: {}]   ;;  %s7041_s11 = inlined_call_operand.vmem [shape: f32[1,128], index: 11, kind: input, shape index: {}]   ;;  %s7042_s12 = inlined_call_operand.vmem [shape: bf16[128,128], index: 12, kind: input, shape index: {}]   ;;  %s7043_s13 = inlined_call_operand.vmem [shape: f32[1,128], index: 13, kind: input, shape index: {}]   ;;  %s7044_s14 = inlined_call_operand.vmem [shape: f32[1,128], index: 14, kind: input, shape index: {}]   ;;  %s7045_s15 = inlined_call_operand.vmem [shape: bf16[2,64,128], index: 15, kind: output, shape index: {}]  }
   0x1 LB: > { %s3955_s19 = sadd.s32 4294967295, %s4735_s18   ;;  %p3959_p0 = scmp.ge.s32.totalorder %s4735_s18, 1  ;;  %s4735_s18 = sphi %s4819_s18, %s25_s18  }
   0x2   : > { %p437_p1 = scmp.lt.s32.totalorder %s4735_s18, 3 }
   0x4   : > { %p438_p2 = pnand %p3959_p0, %p437_p1 }
   0x6   : > { %441 = sbr.rel (%p438_p2) target bundleno = 1135 (0x46f), region = 80 }
   0xb   : > { %v2646_v0 = vld [vmem:[%s7031_s1 + $0x90] sm:$0xff]  ;;  %v2629_v1 = vld [vmem:[%s7031_s1 + $0x8] sm:$0xff]  ;;  %v2628_v2 = vld [vmem:[%s7031_s1] sm:$0xff]  ;;  %v4737_v3 = vmov 0   ;;  %p485_p3 = scmp.lt.s32.totalorder %s3955_s19, 1 }
   0xc   : > { %4368 = vset.pattern.permute.xlu2 %v4737_v3  ;;  %4367 = vset.pattern.permute.xlu1 %v4737_v3  ;;  %v4299_v4 = vld [vmem:[%s7032_s2 + $0x38] sm:$0xff]  ;;  %v4298_v5 = vld [vmem:[%s7032_s2 + $0x30] sm:$0xff]  ;;  %v2648_v6 = vld [vmem:[%s7031_s1 + $0xa0] sm:$0xff] }
   0xd   : > { %4366 = vset.pattern.permute.xlu0 %v4737_v3  ;;  %2792 = vperm.xlu1 %4367, %v2646_v0   ;;  %v2631_v7 = vld [vmem:[%s7031_s1 + $0x18] sm:$0xff]  ;;  %v2630_v8 = vld [vmem:[%s7031_s1 + $0x10] sm:$0xff]  ;;  %v4297_v9 = vld [vmem:[%s7032_s2 + $0x28] sm:$0xff]  ;;  %s7187_s19 = smov (!%p485_p3, %s3955_s19), 1 }
   0xe   : > { %2707 = vperm.xlu2 %4368, %v2629_v1   ;;  %2702 = vperm.xlu0 %4366, %v2628_v2   ;;  %v4296_v10 = vld [vmem:[%s7032_s2 + $0x20] sm:$0xff]  ;;  %v2650_v11 = vld [vmem:[%s7031_s1 + $0xb0] sm:$0xff]  ;;  %v2633_v12 = vld [vmem:[%s7031_s1 + $0x28] sm:$0xff]  ;;  %s4355_s17 = smul.u32 288, %s7187_s19  ;;  %s4255_s26 = sshll.u32 %s7187_s19, 5 }
   0xf   : > { %847 = vmatpush.bf16.msra.mxu0 %v4299_v4  ;;  %4331 = vmatpush.bf16.msra.mxu1 %v4299_v4  ;;  %v2632_v13 = vld [vmem:[%s7031_s1 + $0x20] sm:$0xff]  ;;  %v4295_v14 = vld [vmem:[%s7032_s2 + $0x18] sm:$0xff]  ;;  %v4294_v15 = vld [vmem:[%s7032_s2 + $0x10] sm:$0xff] }
  0x10   : > { %4332 = vmatpush.bf16.msra.mxu2 %v4299_v4  ;;  %4333 = vmatpush.bf16.msra.mxu3 %v4299_v4  ;;  %v2652_v16 = vld [vmem:[%s7031_s1 + $0xc0] sm:$0xff]  ;;  %v2634_v18 = vld [vmem:[%s7031_s1 + $0x30] sm:$0xff]  ;;  %v4293_v19 = vld [vmem:[%s7032_s2 + $0x8] sm:$0xff]  ;;  %s4897_s24 = scalar_lea.vmem %s7030_s0, %s4355_s17 }
  0x11   : > { %v2664_v17 = vld [vmem:[%s7031_s1 + $0x120] sm:$0xff]  ;;  %v2635_v21 = vld [vmem:[%s7031_s1 + $0x38] sm:$0xff]  ;;  %v2666_v23 = vld [vmem:[%s7031_s1 + $0x130] sm:$0xff] }
  0x12   : > { %v4292_v20 = vld [vmem:[%s7032_s2] sm:$0xff]  ;;  %v4267_v25 = vld [vmem:[%s4897_s24 + $0x58] sm:$0xff]  ;;  %v4277_v26 = vld [vmem:[%s4897_s24 + $0xa8] sm:$0xff] }
  0x13   : > { %848 = vmatpush.bf16.msra.mxu0 %v4298_v5  ;;  %4334 = vmatpush.bf16.msra.mxu1 %v4298_v5  ;;  %v2636_v22 = vld [vmem:[%s7031_s1 + $0x40] sm:$0xff]  ;;  %v4287_v27 = vld [vmem:[%s4897_s24 + $0xf8] sm:$0xff]  ;;  %v2682_v29 = vld [vmem:[%s7031_s1 + $0x1b0] sm:$0xff] }
  0x14   : > { %4335 = vmatpush.bf16.msra.mxu2 %v4298_v5  ;;  %4336 = vmatpush.bf16.msra.mxu3 %v4298_v5  ;;  %v4256_v24 = vld [vmem:[%s4897_s24] sm:$0xff]  ;;  %v2654_v30 = vld [vmem:[%s7031_s1 + $0xd0] sm:$0xff]  ;;  %v2637_v31 = vld [vmem:[%s7031_s1 + $0x48] sm:$0xff] }
  0x15   : > { %2802 = vperm.xlu1 %4367, %v2648_v6   ;;  %v2668_v28 = vld [vmem:[%s7031_s1 + $0x140] sm:$0xff]  ;;  %v2638_v32 = vld [vmem:[%s7031_s1 + $0x50] sm:$0xff]  ;;  %v4257_v34 = vld [vmem:[%s4897_s24 + $0x8] sm:$0xff] }
  0x16   : > { %2717 = vperm.xlu2 %4368, %v2631_v7   ;;  %2712 = vperm.xlu0 %4366, %v2630_v8   ;;  %v2684_v33 = vld [vmem:[%s7031_s1 + $0x1c0] sm:$0xff]  ;;  %v4278_v36 = vld [vmem:[%s4897_s24 + $0xb0] sm:$0xff]  ;;  %v2665_v38 = vld [vmem:[%s7031_s1 + $0x128] sm:$0xff] }
  0x17   : > { %849 = vmatpush.bf16.msra.mxu0 %v4297_v9  ;;  %4337 = vmatpush.bf16.msra.mxu1 %v4297_v9  ;;  %v4268_v35 = vld [vmem:[%s4897_s24 + $0x60] sm:$0xff]  ;;  %v2667_v39 = vld [vmem:[%s7031_s1 + $0x138] sm:$0xff]  ;;  %v2686_v41 = vld [vmem:[%s7031_s1 + $0x1d0] sm:$0xff] }
  0x18   : > { %4338 = vmatpush.bf16.msra.mxu2 %v4297_v9  ;;  %4339 = vmatpush.bf16.msra.mxu3 %v4297_v9  ;;  %v4288_v37 = vld [vmem:[%s4897_s24 + $0x100] sm:$0xff]  ;;  %v2639_v42 = vld [vmem:[%s7031_s1 + $0x58] sm:$0xff]  ;;  %v2670_v43 = vld [vmem:[%s7031_s1 + $0x150] sm:$0xff] }
  0x19   : > { %v2656_v40 = vld [vmem:[%s7031_s1 + $0xe0] sm:$0xff]  ;;  %v4258_v44 = vld [vmem:[%s4897_s24 + $0x10] sm:$0xff]  ;;  %v4269_v45 = vld [vmem:[%s4897_s24 + $0x68] sm:$0xff] }
  0x1a   : > { %v4279_v46 = vld [vmem:[%s4897_s24 + $0xb8] sm:$0xff]  ;;  %v4289_v47 = vld [vmem:[%s4897_s24 + $0x108] sm:$0xff]  ;;  %v2658_v48 = vld [vmem:[%s7031_s1 + $0xf0] sm:$0xff] }
  0x1b   : > { %850 = vmatpush.bf16.msra.mxu0 %v4296_v10  ;;  %4340 = vmatpush.bf16.msra.mxu1 %v4296_v10  ;;  %v2669_v49 = vld [vmem:[%s7031_s1 + $0x148] sm:$0xff]  ;;  %v2640_v50 = vld [vmem:[%s7031_s1 + $0x60] sm:$0xff]  ;;  %v4259_v54 = vld [vmem:[%s4897_s24 + $0x18] sm:$0xff] }
  0x1c   : > { %4341 = vmatpush.bf16.msra.mxu2 %v4296_v10  ;;  %4342 = vmatpush.bf16.msra.mxu3 %v4296_v10  ;;  %v2688_v51 = vld [vmem:[%s7031_s1 + $0x1e0] sm:$0xff]  ;;  %v2641_v52 = vld [vmem:[%s7031_s1 + $0x68] sm:$0xff]  ;;  %v4270_v55 = vld [vmem:[%s4897_s24 + $0x70] sm:$0xff] }
  0x1d   : > { %2812 = vperm.xlu1 %4367, %v2650_v11   ;;  %v2672_v53 = vld [vmem:[%s7031_s1 + $0x160] sm:$0xff]  ;;  %v4290_v57 = vld [vmem:[%s4897_s24 + $0x110] sm:$0xff]  ;;  %v2671_v59 = vld [vmem:[%s7031_s1 + $0x158] sm:$0xff] }
  0x1e   : > { %2727 = vperm.xlu2 %4368, %v2633_v12   ;;  %2722 = vperm.xlu0 %4366, %v2632_v13   ;;  %v4280_v56 = vld [vmem:[%s4897_s24 + $0xc0] sm:$0xff]  ;;  %v2642_v60 = vld [vmem:[%s7031_s1 + $0x70] sm:$0xff]  ;;  %v2643_v62 = vld [vmem:[%s7031_s1 + $0x78] sm:$0xff] }
  0x1f   : > { %851 = vmatpush.bf16.msra.mxu0 %v4295_v14  ;;  %4343 = vmatpush.bf16.msra.mxu1 %v4295_v14  ;;  %v2660_v58 = vld [vmem:[%s7031_s1 + $0x100] sm:$0xff]  ;;  %v2690_v61 = vld [vmem:[%s7031_s1 + $0x1f0] sm:$0xff]  ;;  %v4271_v1 = vld [vmem:[%s4897_s24 + $0x78] sm:$0xff] }
  0x20   : > { %4344 = vmatpush.bf16.msra.mxu2 %v4295_v14  ;;  %4345 = vmatpush.bf16.msra.mxu3 %v4295_v14  ;;  %v2674_v63 = vld [vmem:[%s7031_s1 + $0x170] sm:$0xff]  ;;  %v4260_v0 = vld [vmem:[%s4897_s24 + $0x20] sm:$0xff]  ;;  %v4281_v2 = vld [vmem:[%s4897_s24 + $0xc8] sm:$0xff] }
  0x21   : > { %v4291_v3 = vld [vmem:[%s4897_s24 + $0x118] sm:$0xff]  ;;  %v2676_v4 = vld [vmem:[%s7031_s1 + $0x180] sm:$0xff]  ;;  %v2673_v7 = vld [vmem:[%s7031_s1 + $0x168] sm:$0xff] }
  0x22   : > { %v2692_v6 = vld [vmem:[%s7031_s1 + $0x200] sm:$0xff]  ;;  %v2678_v8 = vld [vmem:[%s7031_s1 + $0x190] sm:$0xff]  ;;  %v2675_v10 = vld [vmem:[%s7031_s1 + $0x178] sm:$0xff] }
  0x23   : > { %852 = vmatpush.bf16.msra.mxu0 %v4294_v15  ;;  %4346 = vmatpush.bf16.msra.mxu1 %v4294_v15  ;;  %v2694_v9 = vld [vmem:[%s7031_s1 + $0x210] sm:$0xff]  ;;  %v4261_v11 = vld [vmem:[%s4897_s24 + $0x28] sm:$0xff]  ;;  %v4272_v12 = vld [vmem:[%s4897_s24 + $0x80] sm:$0xff] }
  0x24   : > { %4347 = vmatpush.bf16.msra.mxu2 %v4294_v15  ;;  %4348 = vmatpush.bf16.msra.mxu3 %v4294_v15  ;;  %v4282_v13 = vld [vmem:[%s4897_s24 + $0xd0] sm:$0xff]  ;;  %v2696_v15 = vld [vmem:[%s7031_s1 + $0x220] sm:$0xff] }
  0x25   : > { %2822 = vperm.xlu1 %4367, %v2652_v16   ;;  %v2679_v16 = vld [vmem:[%s7031_s1 + $0x198] sm:$0xff] }
  0x26   : > { %2882 = vperm.xlu2 %4368, %v2664_v17   ;;  %2732 = vperm.xlu0 %4366, %v2634_v18   ;;  %v2677_v17 = vld [vmem:[%s7031_s1 + $0x188] sm:$0xff] }
  0x27   : > { %853 = vmatpush.bf16.msra.mxu0 %v4293_v19  ;;  %4349 = vmatpush.bf16.msra.mxu1 %v4293_v19 }
  0x28   : > { %4350 = vmatpush.bf16.msra.mxu2 %v4293_v19  ;;  %4351 = vmatpush.bf16.msra.mxu3 %v4293_v19  ;;  %v2662_v19 = vld [vmem:[%s7031_s1 + $0x110] sm:$0xff] }
  0x2b   : > { %854 = vmatpush.bf16.msra.mxu0 %v4292_v20  ;;  %4352 = vmatpush.bf16.msra.mxu1 %v4292_v20 }
  0x2c   : > { %4353 = vmatpush.bf16.msra.mxu2 %v4292_v20  ;;  %4354 = vmatpush.bf16.msra.mxu3 %v4292_v20  ;;  %v2645_v20 = vld [vmem:[%s7031_s1 + $0x88] sm:$0xff] }
  0x2d   : > { %2737 = vperm.xlu1 %4367, %v2635_v21   ;;  %v2644_v21 = vld [vmem:[%s7031_s1 + $0x80] sm:$0xff] }
  0x2e   : > { %2742 = vperm.xlu2 %4368, %v2636_v22   ;;  %2892 = vperm.xlu0 %4366, %v2666_v23   ;;  %v4262_v22 = vld [vmem:[%s4897_s24 + $0x30] sm:$0xff]  ;;  %v4273_v23 = vld [vmem:[%s4897_s24 + $0x88] sm:$0xff] }
  0x2f   : > { %855 = vmatmul.bf16.vlgmr.msra.gmra.mxu0 %v4256_v24  ;;  %910 = vmatmul.bf16.vlgmr.msra.gmra.mxu1 %v4267_v25  ;;  %v4283_v24 = vld [vmem:[%s4897_s24 + $0xd8] sm:$0xff] }
  0x30   : > { %960 = vmatmul.bf16.vlgmr.msra.gmra.mxu2 %v4277_v26  ;;  %1010 = vmatmul.bf16.vlgmr.msra.gmra.mxu3 %v4287_v27  ;;  %v2649_v27 = vld [vmem:[%s7031_s1 + $0xa8] sm:$0xff] }
  0x35   : > { %2902 = vperm.xlu1 %4367, %v2668_v28   ;;  %v2651_v28 = vld [vmem:[%s7031_s1 + $0xb8] sm:$0xff] }
  0x36   : > { %2972 = vperm.xlu2 %4368, %v2682_v29   ;;  %2832 = vperm.xlu0 %4366, %v2654_v30   ;;  %v2647_v29 = vld [vmem:[%s7031_s1 + $0x98] sm:$0xff] }
  0x3d   : > { %2747 = vperm.xlu1 %4367, %v2637_v31   ;;  %v2655_v31 = vld [vmem:[%s7031_s1 + $0xd8] sm:$0xff] }
  0x3e   : > { %2752 = vperm.xlu2 %4368, %v2638_v32   ;;  %2982 = vperm.xlu0 %4366, %v2684_v33   ;;  %v2657_v32 = vld [vmem:[%s7031_s1 + $0xe8] sm:$0xff] }
  0x3f   : > { %860 = vmatmul.bf16.gmra.mxu0 %v4257_v34  ;;  %915 = vmatmul.bf16.gmra.mxu1 %v4268_v35  ;;  %v2653_v34 = vld [vmem:[%s7031_s1 + $0xc8] sm:$0xff]  ;;  %v4263_v35 = vld [vmem:[%s4897_s24 + $0x38] sm:$0xff] }
  0x40   : > { %965 = vmatmul.bf16.gmra.mxu2 %v4278_v36  ;;  %1015 = vmatmul.bf16.gmra.mxu3 %v4288_v37  ;;  %v4274_v36 = vld [vmem:[%s4897_s24 + $0x90] sm:$0xff]  ;;  %v4284_v37 = vld [vmem:[%s4897_s24 + $0xe0] sm:$0xff] }
  0x45   : > { %2887 = vperm.xlu1 %4367, %v2665_v38  }
  0x46   : > { %2897 = vperm.xlu2 %4368, %v2667_v39   ;;  %2842 = vperm.xlu0 %4366, %v2656_v40   ;;  %v2661_v40 = vld [vmem:[%s7031_s1 + $0x108] sm:$0xff] }
  0x4d   : > { %2992 = vperm.xlu1 %4367, %v2686_v41   ;;  %v2663_v41 = vld [vmem:[%s7031_s1 + $0x118] sm:$0xff] }
  0x4e   : > { %2757 = vperm.xlu2 %4368, %v2639_v42   ;;  %2912 = vperm.xlu0 %4366, %v2670_v43   ;;  %v2659_v42 = vld [vmem:[%s7031_s1 + $0xf8] sm:$0xff] }
  0x4f   : > { %865 = vmatmul.bf16.gmra.mxu0 %v4258_v44  ;;  %920 = vmatmul.bf16.gmra.mxu1 %v4269_v45  ;;  %v5095_v44 = vld [vmem:[%s7033_s3] ss:$0 sm:$0xff] }
  0x50   : > { %970 = vmatmul.bf16.gmra.mxu2 %v4279_v46  ;;  %1020 = vmatmul.bf16.gmra.mxu3 %v4289_v47  ;;  %v5100_v45 = vld [vmem:[%s7034_s4] ss:$0 sm:$0xff]  ;;  %v2681_v46 = vld [vmem:[%s7031_s1 + $0x1a8] sm:$0xff] }
  0x51   : > { %v4264_v47 = vld [vmem:[%s4897_s24 + $0x40] sm:$0xff] }
  0x55   : > { %2852 = vperm.xlu1 %4367, %v2658_v48  }
  0x56   : > { %2907 = vperm.xlu2 %4368, %v2669_v49   ;;  %2762 = vperm.xlu0 %4366, %v2640_v50   ;;  %v2683_v50 = vld [vmem:[%s7031_s1 + $0x1b8] sm:$0xff] }
  0x5d   : > { %3002 = vperm.xlu1 %4367, %v2688_v51   ;;  %v2680_v51 = vld [vmem:[%s7031_s1 + $0x1a0] sm:$0xff] }
  0x5e   : > { %2767 = vperm.xlu2 %4368, %v2641_v52   ;;  %2922 = vperm.xlu0 %4366, %v2672_v53   ;;  %v4275_v52 = vld [vmem:[%s4897_s24 + $0x98] sm:$0xff] }
  0x5f   : > { %870 = vmatmul.bf16.gmra.mxu0 %v4259_v54  ;;  %925 = vmatmul.bf16.gmra.mxu1 %v4270_v55  ;;  %v4285_v55 = vld [vmem:[%s4897_s24 + $0xe8] sm:$0xff] }
  0x60   : > { %975 = vmatmul.bf16.gmra.mxu2 %v4280_v56  ;;  %1025 = vmatmul.bf16.gmra.mxu3 %v4290_v57 }
  0x65   : > { %2862 = vperm.xlu1 %4367, %v2660_v58  }
  0x66   : > { %2917 = vperm.xlu2 %4368, %v2671_v59   ;;  %2772 = vperm.xlu0 %4366, %v2642_v60  }
  0x68   : > { %v5003_v5 = vpop.permute.xlu2 %2707 }
  0x6d   : > { %3012 = vperm.xlu1 %4367, %v2690_v61  }
  0x6e   : > { %2777 = vperm.xlu2 %4368, %v2643_v62   ;;  %2932 = vperm.xlu0 %4366, %v2674_v63   ;;  %v2687_v63 = vld [vmem:[%s7031_s1 + $0x1d8] sm:$0xff] }
  0x6f   : > { %875 = vmatmul.bf16.gmra.mxu0 %v4260_v0  ;;  %930 = vmatmul.bf16.gmra.mxu1 %v4271_v1  ;;  %v2689_v1 = vld [vmem:[%s7031_s1 + $0x1e8] sm:$0xff] }
  0x70   : > { %980 = vmatmul.bf16.gmra.mxu2 %v4281_v2  ;;  %1030 = vmatmul.bf16.gmra.mxu3 %v4291_v3  ;;  %v5023_v14 = vpop.permute.xlu2 %2717  ;;  %v2685_v2 = vld [vmem:[%s7031_s1 + $0x1c8] sm:$0xff] }
  0x75   : > { %2942 = vperm.xlu1 %4367, %v2676_v4  }
  0x76   : > { %3022 = vperm.xlu2 %4368, %v2692_v6   ;;  %2927 = vperm.xlu0 %4366, %v2673_v7  }
  0x78   : > { %v5034_v18 = vpop.permute.xlu2 %2727 }
  0x7d   : > { %2952 = vperm.xlu1 %4367, %v2678_v8  }
  0x7e   : > { %3032 = vperm.xlu2 %4368, %v2694_v9   ;;  %2937 = vperm.xlu0 %4366, %v2675_v10  }
  0x7f   : > { %880 = vmatmul.bf16.gmra.mxu0 %v4261_v11  ;;  %935 = vmatmul.bf16.gmra.mxu1 %v4272_v12  ;;  %v5077_v38 = vpop.permute.xlu1 %2792 }
  0x80   : > { %985 = vmatmul.bf16.gmra.mxu2 %v4282_v13  ;;  %v5048_v25 = vpop.permute.xlu0 %2702  ;;  %v5050_v26 = vpop.permute.xlu2 %2882  ;;  %7046 = vst [vmem:[#allocation3_spill] sm:$0xff] %v5077_v38 }
  0x85   : > { %3042 = vperm.xlu1 %4367, %v2696_v15  }
  0x86   : > { %2957 = vperm.xlu2 %4368, %v2679_v16   ;;  %2947 = vperm.xlu0 %4366, %v2677_v17  }
  0x87   : > { %v5106_v48 = vpop.permute.xlu1 %2802 }
  0x88   : > { %v5061_v30 = vpop.permute.xlu0 %2712  ;;  %v5069_v33 = vpop.permute.xlu2 %2742  ;;  %7047 = vst [vmem:[#allocation4_spill] sm:$0xff] %v5106_v48 }
  0x8d   : > { %2872 = vperm.xlu1 %4367, %v2662_v19  }
  0x8e   : > { %2787 = vperm.xlu2 %4368, %v2645_v20   ;;  %2782 = vperm.xlu0 %4366, %v2644_v21   ;;  %v2693_v20 = vld [vmem:[%s7031_s1 + $0x208] sm:$0xff] }
  0x8f   : > { %885 = vmatmul.bf16.gmra.mxu0 %v4262_v22  ;;  %940 = vmatmul.bf16.gmra.mxu1 %v4273_v23  ;;  %v5140_v7 = vpop.permute.xlu1 %2812  ;;  %v4265_v21 = vld [vmem:[%s4897_s24 + $0x48] sm:$0xff] }
  0x90   : > { %990 = vmatmul.bf16.gmra.mxu2 %v4283_v24  ;;  %v5079_v39 = vpop.permute.xlu0 %2722  ;;  %v5090_v43 = vpop.permute.xlu2 %2972 }
  0x95   : > { %2807 = vperm.xlu1 %4367, %v2649_v27   ;;  %v2695_v27 = vld [vmem:[%s7031_s1 + $0x218] sm:$0xff] }
  0x96   : > { %2817 = vperm.xlu2 %4368, %v2651_v28   ;;  %2797 = vperm.xlu0 %4366, %v2647_v29   ;;  %v2691_v28 = vld [vmem:[%s7031_s1 + $0x1f8] sm:$0xff]  ;;  %v4276_v29 = vld [vmem:[%s4897_s24 + $0xa0] sm:$0xff] }
  0x98   : > { %v5108_v49 = vpop.permute.xlu0 %2732  ;;  %v5120_v58 = vpop.permute.xlu2 %2752 }
  0x9d   : > { %2837 = vperm.xlu1 %4367, %v2655_v31  }
  0x9e   : > { %2847 = vperm.xlu2 %4368, %v2657_v32   ;;  %2827 = vperm.xlu0 %4366, %v2653_v34   ;;  %v4286_v34 = vld [vmem:[%s4897_s24 + $0xf0] sm:$0xff] }
  0x9f   : > { %890 = vmatmul.bf16.gmra.mxu0 %v4263_v35  ;;  %945 = vmatmul.bf16.gmra.mxu1 %v4274_v36 }
  0xa0   : > { %995 = vmatmul.bf16.gmra.mxu2 %v4284_v37  ;;  %v5143_v9 = vpop.permute.xlu0 %2892  ;;  %v5152_v15 = vpop.permute.xlu2 %2897 }
  0xa1   : > { %7048 = vst [vmem:[#allocation5_spill] sm:$0xff] %v5152_v15  ;;  %v5175_v37 = vpop.permute.xlu1 %2822 }
  0xa5   : > { %2867 = vperm.xlu1 %4367, %v2661_v40  }
  0xa6   : > { %2877 = vperm.xlu2 %4368, %v2663_v41   ;;  %2857 = vperm.xlu0 %4366, %v2659_v42  }
  0xac   : > { %v856_v53 = vpop.f32.mrf.mxu0  ;;  %v911_v54 = vpop.f32.mrf.mxu1 }
  0xad   : > { %v1040_v56 = vmul.f32 %v5095_v44, %v856_v53  ;;  %v1062_v57 = vmul.f32 %v5095_v44, %v911_v54  ;;  %2967 = vperm.xlu1 %4367, %v2681_v46  }
  0xae   : > { %2977 = vperm.xlu2 %4368, %v2683_v50   ;;  %2962 = vperm.xlu0 %4366, %v2680_v51  }
  0xaf   : > { %v5123_v59 = vadd.f32 %v5100_v45, %v1040_v56  ;;  %v5126_v60 = vadd.f32 %v5100_v45, %v1062_v57  ;;  %895 = vmatmul.bf16.gmra.mxu0 %v4264_v47  ;;  %950 = vmatmul.bf16.gmra.mxu1 %v4275_v52  ;;  %v5180_v47 = vpop.permute.xlu0 %2832 }
  0xb0   : > { %1000 = vmatmul.bf16.gmra.mxu2 %v4285_v55 }
  0xb1   : > { %v4139_v61 = vmul.f32 -1.442695, %v5123_v59  ;;  %v4161_v62 = vmul.f32 -1.442695, %v5126_v60 }
  0xb3   : > { %4376 = vpow2.f32 %v4139_v61  ;;  %v961_v0 = vpop.f32.mrf.mxu2  ;;  %v1011_v35 = vpop.f32.mrf.mxu3  ;;  %v2698_v61 = vld [vmem:[%s7031_s1 + $0x230] sm:$0xff] }
  0xb4   : > { %4378 = vpow2.f32 %v4161_v62  ;;  %v1082_v3 = vmul.f32 %v5095_v44, %v961_v0  ;;  %v858_v4 = vpop.f32.mrf.mxu0  ;;  %v913_v6 = vpop.f32.mrf.mxu1 }
  0xb5   : > { %v1041_v8 = vmul.f32 %v5095_v44, %v858_v4  ;;  %2997 = vperm.xlu1 %4367, %v2687_v63   ;;  %v1063_v23 = vmul.f32 %v5095_v44, %v913_v6  ;;  %v5199_v63 = vpop.permute.xlu2 %2757 }
  0xb6   : > { %v5146_v10 = vadd.f32 %v5100_v45, %v1082_v3  ;;  %3007 = vperm.xlu2 %4368, %v2689_v1   ;;  %2987 = vperm.xlu0 %4366, %v2685_v2   ;;  %v2699_v2 = vld [vmem:[%s7031_s1 + $0x238] sm:$0xff]  ;;  %v2697_v3 = vld [vmem:[%s7031_s1 + $0x228] sm:$0xff] }
  0xb7   : > { %v5149_v11 = vadd.f32 %v5100_v45, %v1041_v8  ;;  %v1139_v40 = vadd.f32 %v5100_v45, %v1063_v23  ;;  %v1102_v8 = vmul.f32 %v5095_v44, %v1011_v35 }
  0xb8   : > { %v4181_v12 = vmul.f32 -1.442695, %v5146_v10 }
  0xb9   : > { %v4377_v13 = vpop.eup %4376  ;;  %v4140_v16 = vmul.f32 -1.442695, %v5149_v11  ;;  %v4162_v1 = vmul.f32 -1.442695, %v1139_v40 }
  0xba   : > { %v4379_v17 = vpop.eup %4378  ;;  %v5155_v19 = vadd.f32 1.0, %v4377_v13  ;;  %4380 = vpow2.f32 %v4181_v12 }
  0xbb   : > { %v5161_v22 = vadd.f32 1.0, %v4379_v17  ;;  %4382 = vpow2.f32 %v4140_v16  ;;  %v963_v24 = vpop.f32.mrf.mxu2 }
  0xbc   : > { %4384 = vrcp.f32 %v5155_v19  ;;  %v861_v31 = vpop.f32.mrf.mxu0  ;;  %v916_v32 = vpop.f32.mrf.mxu1  ;;  %v1083_v36 = vmul.f32 %v5095_v44, %v963_v24  ;;  %vm1481_vm0 = vweird.f32 %v5155_v19  ;;  %v1485_v4 = vand.u32 2147483647, %v5155_v19 }
  0xbd   : > { %4386 = vrcp.f32 %v5161_v22  ;;  %3027 = vperm.xlu1 %4367, %v2693_v20   ;;  %v1042_v41 = vmul.f32 %v5095_v44, %v861_v31  ;;  %v1064_v42 = vmul.f32 %v5095_v44, %v916_v32  ;;  %v1487_v13 = vand.u32 2147483648, %v5155_v19 }
  0xbe   : > { %3037 = vperm.xlu2 %4368, %v2695_v27   ;;  %3017 = vperm.xlu0 %4366, %v2691_v28   ;;  %v5183_v50 = vadd.f32 %v5100_v45, %v1083_v36  ;;  %v1815_v16 = vand.u32 2147483647, %v5161_v22  ;;  %vm1811_vm2 = vweird.f32 %v5161_v22  ;;  %v1013_v27 = vpop.f32.mrf.mxu3  ;;  %vm5228_vm4 = vcmp.eq.f32.partialorder %v1485_v4, 8.507059e+37 }
  0xbf   : > { %900 = vmatmul.bf16.gmra.mxu0 %v4265_v21  ;;  %955 = vmatmul.bf16.gmra.mxu1 %v4276_v29  ;;  %v5188_v53 = vadd.f32 %v5100_v45, %v1042_v41  ;;  %v5194_v57 = vadd.f32 %v5100_v45, %v1064_v42  ;;  %v1817_v21 = vand.u32 2147483648, %v5161_v22  ;;  %v5221_v29 = vadd.f32 %v5100_v45, %v1102_v8 }
  0xc0   : > { %v4381_v46 = vpop.eup %4380  ;;  %1005 = vmatmul.bf16.gmra.mxu2 %v4286_v34  ;;  %v4182_v56 = vmul.f32 -1.442695, %v5183_v50  ;;  %v1103_v31 = vmul.f32 %v5095_v44, %v1013_v27  ;;  %v5226_v34 = vpop.permute.xlu1 %2737  ;;  %v1488_v40 = vor.u32 1.1754944e-38, %v1487_v13  ;;  %vm5235_vm6 = vcmp.eq.f32.partialorder %v1815_v16, 8.507059e+37 }
  0xc1   : > { %v4383_v51 = vpop.eup %4382  ;;  %v5185_v52 = vadd.f32 1.0, %v4381_v46  ;;  %v4141_v17 = vmul.f32 -1.442695, %v5188_v53  ;;  %v4163_v23 = vmul.f32 -1.442695, %v5194_v57  ;;  %v5256_v16 = vpop.permute.xlu2 %2907 }
  0xc2   : > { %v4385_v54 = vpop.eup %4384  ;;  %v5190_v55 = vadd.f32 1.0, %v4383_v51  ;;  %v1818_v51 = vor.u32 1.1754944e-38, %v1817_v21  ;;  %v4201_v8 = vmul.f32 -1.442695, %v5221_v29  ;;  %7053 = vst [vmem:[#allocation6_spill] sm:$0xff] %v5256_v16 }
  0xc3   : > { %v4387_v62 = vpop.eup %4386  ;;  %v1477_v0 = vmul.f32 %v4385_v54, %v5155_v19  ;;  %4388 = vrcp.f32 %v5185_v52  ;;  %vm1482_vm1 = vweird.f32 %v4385_v54  ;;  %v2115_v36 = vand.u32 2147483647, %v5185_v52 }
  0xc4   : > { %v1807_v6 = vmul.f32 %v4387_v62, %v5161_v22  ;;  %4390 = vrcp.f32 %v5190_v55  ;;  %vm1812_vm3 = vweird.f32 %v4387_v62  ;;  %vm1483_vm5 = vmor %vm1481_vm0, %vm1482_vm1  ;;  %vm1496_vm8 = vweird.f32 %v5190_v55 }
  0xc5   : > { %v1478_v12 = vsub.f32 1.0, %v1477_v0  ;;  %3052 = vperm.xlu1 %4367, %v2698_v61   ;;  %4392 = vpow2.f32 %v4182_v56  ;;  %v5239_v56 = vpop.permute.xlu0 %2982  ;;  %vm1813_vm7 = vmor %vm1811_vm2, %vm1812_vm3  ;;  %vm2111_vm12 = vweird.f32 %v5185_v52  ;;  %vm5289_vm14 = vcmp.eq.f32.partialorder %v2115_v36, 8.507059e+37 }
  0xc6   : > { %v1808_v20 = vsub.f32 1.0, %v1807_v6  ;;  %3057 = vperm.xlu2 %4368, %v2699_v2   ;;  %3047 = vperm.xlu0 %4366, %v2697_v3   ;;  %4394 = vpow2.f32 %v4162_v1  ;;  %v1500_v1 = vand.u32 2147483647, %v5190_v55  ;;  %v4266_v2 = vld [vmem:[%s4897_s24 + $0x50] sm:$0xff]  ;;  %s494_s24 = scalar_lea.vmem %s7045_s15, %s4255_s26 }
  0xc7   : > { %v1479_v24 = vmul.f32 %v4385_v54, %v1478_v12  ;;  %4396 = vpow2.f32 %v4141_v17 }
  0xc8   : > { %v1809_v28 = vmul.f32 %v4387_v62, %v1808_v20  ;;  %4398 = vpow2.f32 %v4163_v23  ;;  %vm1501_vm10 = vcmp.eq.f32.partialorder %v1500_v1, 8.507059e+37  ;;  %v5280_v46 = vpop.permute.xlu1 %2902 }
  0xc9   : > { %v5224_v32 = vpop.eup %4388  ;;  %v1480_v35 = vadd.f32 %v4385_v54, %v1479_v24  ;;  %7054 = vst [vmem:[#allocation7_spill] sm:$0xff] %v5280_v46 }
  0xca   : > { %v4391_v41 = vpop.eup %4390  ;;  %v1810_v42 = vadd.f32 %v4387_v62, %v1809_v28  ;;  %v2107_v19 = vmul.f32 %v5224_v32, %v5185_v52  ;;  %vm2112_vm13 = vweird.f32 %v5224_v32 }
  0xcb   : > { %v1484_v61 = vsel %vm1483_vm5, %v4385_v54, %v1480_v35  ;;  %v1492_v0 = vmul.f32 %v4391_v41, %v5190_v55  ;;  %v4393_v3 = vpop.eup %4392  ;;  %v1179_v54 = vadd.f32 %v5100_v45, %v1103_v31  ;;  %vm1497_vm9 = vweird.f32 %v4391_v41  ;;  %vm5309_vm2 = vmor %vm2111_vm12, %vm2112_vm13 }
  0xcc   : > { %v1489_v4 = vsel %vm5228_vm4, %v1488_v40, %v1484_v61  ;;  %v1814_v6 = vsel %vm1813_vm7, %v4387_v62, %v1810_v42  ;;  %v4395_v12 = vpop.eup %4394  ;;  %v5258_v20 = vadd.f32 1.0, %v4393_v3  ;;  %v1502_v62 = vand.u32 2147483648, %v5190_v55  ;;  %vm1498_vm11 = vmor %vm1496_vm8, %vm1497_vm9 }
  0xcd   : > { %v2556_v22 = vmul.f32 %v1489_v4, %v5123_v59  ;;  %v1819_v13 = vsel %vm5235_vm6, %v1818_v51, %v1814_v6  ;;  %v1493_v17 = vsub.f32 1.0, %v1492_v0  ;;  %v4397_v23 = vpop.eup %4396  ;;  %v2108_v59 = vsub.f32 1.0, %v2107_v19  ;;  %v5287_v55 = vpop.permute.xlu0 %2842 }
  0xce   : > { %v2578_v21 = vmul.f32 %v1819_v13, %v5126_v60  ;;  %4400 = vrcp.f32 %v5258_v20  ;;  %v4399_v28 = vpop.eup %4398  ;;  %v5268_v35 = vadd.f32 1.0, %v4397_v23  ;;  %v4202_v60 = vmul.f32 -1.442695, %v1179_v54 }
  0xcf   : > { %v3060_v24 = vmul.f32 %v5048_v25, %v2556_v22  ;;  %v1494_v27 = vmul.f32 %v4391_v41, %v1493_v17  ;;  %905 = vmatmul.bf16.gmra.mxu0 %v4266_v2  ;;  %4402 = vpow2.f32 %v4201_v8  ;;  %v5271_v42 = vadd.f32 1.0, %v4399_v28  ;;  %v966_v2 = vpop.f32.mrf.mxu2  ;;  %v863_v8 = vpop.f32.mrf.mxu0 }
  0xd0   : > { %v5266_v31 = vmul.f32 %v5140_v7, %v2578_v21  ;;  %v1503_v25 = vor.u32 1.1754944e-38, %v1502_v62  ;;  %4404 = vrcp.f32 %v5268_v35  ;;  %v2130_v7 = vand.u32 2147483647, %v5258_v20  ;;  %v5316_v62 = vpop.permute.xlu2 %2767 }
  0xd1   : > { %3132 = vst [vmem:[#allocation2] sm:$0xff] %v3060_v24  ;;  %v1495_v40 = vadd.f32 %v4391_v41, %v1494_v27  ;;  %4406 = vrcp.f32 %v5271_v42  ;;  %v2109_v61 = vmul.f32 %v5224_v32, %v2108_v59  ;;  %v5285_v1 = vadd.f32 1.0, %v4395_v12  ;;  %v918_v27 = vpop.f32.mrf.mxu1 }
  0xd2   : > { %3154 = vst [vmem:[#allocation2 + $0xb0] sm:$0xff] %v5266_v31  ;;  %4408 = vpow2.f32 %v4202_v60  ;;  %v1517_v6 = vand.u32 2147483648, %v5268_v35  ;;  %vm2126_vm15 = vweird.f32 %v5258_v20  ;;  %vm1841_vm0 = vweird.f32 %v5271_v42 }
  0xd3   : > { %v1499_v51 = vsel %vm1498_vm11, %v4391_v41, %v1495_v40  ;;  %v1847_v12 = vand.u32 2147483648, %v5271_v42  ;;  %vm5301_vm1 = vcmp.eq.f32.partialorder %v2130_v7, 8.507059e+37  ;;  %vm1511_vm3 = vweird.f32 %v5268_v35 }
  0xd4   : > { %v1504_v0 = vsel %vm1501_vm10, %v1503_v25, %v1499_v51  ;;  %v4401_v3 = vpop.eup %4400  ;;  %v2132_v23 = vand.u32 2147483648, %v5258_v20  ;;  %v2110_v24 = vadd.f32 %v5224_v32, %v2109_v61  ;;  %v2117_v60 = vand.u32 2147483648, %v5185_v52 }
  0xd5   : > { %v2557_v41 = vmul.f32 %v1504_v0, %v5149_v11  ;;  %v2122_v22 = vmul.f32 %v4401_v3, %v5258_v20  ;;  %v5313_v17 = vpop.eup %4402  ;;  %vm2127_vm4 = vweird.f32 %v4401_v3  ;;  %v1084_v36 = vmul.f32 %v5095_v44, %v966_v2 }
  0xd6   : > { %v4405_v59 = vpop.eup %4404  ;;  %v1043_v40 = vmul.f32 %v5095_v44, %v863_v8  ;;  %v2133_v7 = vor.u32 1.1754944e-38, %v2132_v23  ;;  %v2114_v51 = vsel %vm5309_vm2, %v5224_v32, %v2110_v24  ;;  %vm5334_vm7 = vmor %vm2126_vm15, %vm2127_vm4  ;;  %v1065_v11 = vmul.f32 %v5095_v44, %v918_v27 }
  0xd7   : > { %v3061_v21 = vmul.f32 %v5003_v5, %v2557_v41  ;;  %v2123_v28 = vsub.f32 1.0, %v2122_v22  ;;  %v4407_v25 = vpop.eup %4406  ;;  %v1507_v5 = vmul.f32 %v4405_v59, %v5268_v35  ;;  %vm1512_vm5 = vweird.f32 %v4405_v59 }
  0xd8   : > { %v5328_v61 = vpop.eup %4408  ;;  %v1837_v0 = vmul.f32 %v4407_v25, %v5271_v42  ;;  %vm1842_vm6 = vweird.f32 %v4407_v25  ;;  %v2118_v41 = vor.u32 1.1754944e-38, %v2117_v60  ;;  %v5339_v22 = vadd.f32 %v5100_v45, %v1084_v36  ;;  %v5348_v60 = vpop.permute.xlu1 %2747  ;;  %vm1513_vm8 = vmor %vm1511_vm3, %vm1512_vm5 }
  0xd9   : > { %3133 = vst [vmem:[#allocation2 + $0x8] sm:$0xff] %v3061_v21  ;;  %v2124_v52 = vmul.f32 %v4401_v3, %v2123_v28  ;;  %v1508_v2 = vsub.f32 1.0, %v1507_v5  ;;  %v5342_v32 = vadd.f32 %v5100_v45, %v1043_v40  ;;  %v1016_v21 = vpop.f32.mrf.mxu3  ;;  %vm1843_vm10 = vmor %vm1841_vm0, %vm1842_vm6  ;;  %v2918_v13 = vpop.permute.xlu2 %2917 }
  0xda   : > { %v1838_v23 = vsub.f32 1.0, %v1837_v0  ;;  %v2119_v28 = vsel %vm5289_vm14, %v2118_v41, %v2114_v51  ;;  %v1104_v20 = vmul.f32 %v5095_v44, %v1016_v21  ;;  %v4183_v36 = vmul.f32 -1.442695, %v5339_v22  ;;  %v2913_v0 = vpop.permute.xlu0 %2912  ;;  %v968_v51 = vpop.f32.mrf.mxu2 }
  0xdb   : > { %v2125_v24 = vadd.f32 %v4401_v3, %v2124_v52  ;;  %v1509_v5 = vmul.f32 %v4405_v59, %v1508_v2  ;;  %v2598_v54 = vmul.f32 %v2119_v28, %v5146_v10  ;;  %v4142_v40 = vmul.f32 -1.442695, %v5342_v32  ;;  %v921_v28 = vpop.f32.mrf.mxu1 }
  0xdc   : > { %v1839_v4 = vmul.f32 %v4407_v25, %v1838_v23  ;;  %v1141_v52 = vadd.f32 %v5100_v45, %v1065_v11  ;;  %v5357_v19 = vadd.f32 %v5100_v45, %v1104_v20  ;;  %4410 = vpow2.f32 %v4183_v36  ;;  %v866_v11 = vpop.f32.mrf.mxu0 }
  0xdd   : > { %v2129_v27 = vsel %vm5334_vm7, %v4401_v3, %v2125_v24  ;;  %v1510_v41 = vadd.f32 %v4405_v59, %v1509_v5  ;;  %v3102_v10 = vmul.f32 %v2913_v0, %v2598_v54  ;;  %v1518_v21 = vor.u32 1.1754944e-38, %v1517_v6 }
  0xde   : > { %v2134_v2 = vsel %vm5301_vm1, %v2133_v7, %v2129_v27  ;;  %v1840_v8 = vadd.f32 %v4407_v25, %v1839_v4  ;;  %4412 = vpow2.f32 %v4142_v40  ;;  %v7063_v24 = vand.u32 2147483647, %v5268_v35 }
  0xdf   : > { %v2599_v3 = vmul.f32 %v2134_v2, %v5183_v50  ;;  %v1514_v23 = vsel %vm1513_vm8, %v4405_v59, %v1510_v41  ;;  %v1848_v54 = vor.u32 1.1754944e-38, %v1847_v12  ;;  %3174 = vst [vmem:[#allocation2 + $0x150] sm:$0xff] %v3102_v10  ;;  %v4203_v7 = vmul.f32 -1.442695, %v5357_v19 }
  0xe0   : > { %vm1516_vm9 = vcmp.eq.f32.partialorder %v7063_v24, 8.507059e+37  ;;  %v1844_v4 = vsel %vm1843_vm10, %v4407_v25, %v1840_v8  ;;  %v7064_v50 = vand.u32 2147483647, %v5271_v42  ;;  %v4164_v5 = vmul.f32 -1.442695, %v1141_v52  ;;  %v5394_v2 = vpop.permute.xlu1 %2887 }
  0xe1   : > { %v1519_v6 = vsel %vm1516_vm9, %v1518_v21, %v1514_v23  ;;  %v3103_v20 = vmul.f32 %v2918_v13, %v2599_v3  ;;  %4414 = vpow2.f32 %v4203_v7  ;;  %v1044_v12 = vmul.f32 %v5095_v44, %v866_v11 }
  0xe2   : > { %vm1846_vm11 = vcmp.eq.f32.partialorder %v7064_v50, 8.507059e+37  ;;  %v2558_v59 = vmul.f32 %v1519_v6, %v5188_v53  ;;  %v1066_v40 = vmul.f32 %v5095_v44, %v921_v28  ;;  %v4411_v27 = vpop.eup %4410  ;;  %4416 = vrcp.f32 %v5285_v1  ;;  %v3204_v1 = vld [vmem:[%s7035_s5] sm:$0xff]  ;;  %v971_v21 = vpop.f32.mrf.mxu2 }
  0xe3   : > { %v1849_v35 = vsel %vm1846_vm11, %v1848_v54, %v1844_v4  ;;  %3175 = vst [vmem:[#allocation2 + $0x158] sm:$0xff] %v3103_v20  ;;  %v5379_v25 = vadd.f32 1.0, %v5313_v17  ;;  %v5383_v52 = vadd.f32 1.0, %v4411_v27  ;;  %4418 = vpow2.f32 %v4164_v5  ;;  %v5421_v50 = vpop.f32.mrf.mxu3 }
  0xe4   : > { %v2580_v36 = vmul.f32 %v1849_v35, %v5194_v57  ;;  %v3062_v42 = vmul.f32 %v5061_v30, %v2558_v59  ;;  %v4413_v0 = vpop.eup %4412  ;;  %v5386_v57 = vadd.f32 %v5100_v45, %v1044_v12  ;;  %v5389_v41 = vadd.f32 %v5100_v45, %v1066_v40 }
  0xe5   : > { %v5396_v17 = vadd.f32 1.0, %v4413_v0  ;;  %v1085_v30 = vmul.f32 %v5095_v44, %v968_v51  ;;  %4420 = vrcp.f32 %v5383_v52  ;;  %v5403_v3 = vperm.slane %v3204_v1, 1  ;;  %v868_v51 = vpop.f32.mrf.mxu0 }
  0xe6   : > { %v3084_v53 = vmul.f32 %v5175_v37, %v2580_v36  ;;  %3134 = vst [vmem:[#allocation2 + $0x10] sm:$0xff] %v3062_v42  ;;  %v1467_v37 = vadd.f32 1.0, %v5328_v61  ;;  %v4143_v10 = vmul.f32 -1.442695, %v5386_v57  ;;  %v4165_v23 = vmul.f32 -1.442695, %v5389_v41 }
  0xe7   : > { %v4415_v8 = vpop.eup %4414  ;;  %4422 = vrcp.f32 %v5396_v17  ;;  %v5410_v61 = vadd.f32 %v5100_v45, %v1085_v30  ;;  %v1086_v54 = vmul.f32 %v5095_v44, %v971_v21  ;;  %v1045_v7 = vmul.f32 %v5095_v44, %v868_v51 }
  0xe8   : > { %3156 = vst [vmem:[#allocation2 + $0xc0] sm:$0xff] %v3084_v53  ;;  %4424 = vrcp.f32 %v5379_v25  ;;  %v5406_v11 = vadd.f32 1.0, %v4415_v8  ;;  %v4417_v24 = vpop.eup %4416  ;;  %v5415_v6 = vperm.slane %v3204_v1, 0  ;;  %v5419_v4 = vmul.f32 %v5403_v3, %v5266_v31  ;;  %v5434_v0 = vpop.permute.xlu1 %2992 }
  0xe9   : > { %4426 = vpow2.f32 %v4143_v10  ;;  %v4419_v13 = vpop.eup %4418  ;;  %v1530_v59 = vand.u32 2147483647, %v5396_v17  ;;  %v4184_v35 = vmul.f32 -1.442695, %v5410_v61  ;;  %v5427_v36 = vadd.f32 %v5100_v45, %v1086_v54  ;;  %7065 = vst [vmem:[#allocation8_spill] sm:$0xff] %v5434_v0  ;;  %v5436_v53 = vpop.permute.xlu0 %2762 }
  0xea   : > { %4428 = vrcp.f32 %v1467_v37  ;;  %vm1526_vm12 = vweird.f32 %v5396_v17  ;;  %v1532_v31 = vand.u32 2147483648, %v5396_v17  ;;  %v1429_v27 = vadd.f32 1.0, %v4419_v13 }
  0xeb   : > { %4430 = vrcp.f32 %v5406_v11  ;;  %v4421_v28 = vpop.eup %4420  ;;  %vm2141_vm13 = vweird.f32 %v5383_v52  ;;  %v2147_v30 = vand.u32 2147483648, %v5383_v52  ;;  %v5441_v37 = vadd.f32 %v5100_v45, %v1045_v7 }
  0xec   : > { %4432 = vpow2.f32 %v4165_v23  ;;  %v2137_v5 = vmul.f32 %v4421_v28, %v5383_v52  ;;  %vm2142_vm14 = vweird.f32 %v4421_v28  ;;  %v2145_v23 = vand.u32 2147483647, %v5383_v52 }
  0xed   : > { %v4423_v20 = vpop.eup %4422  ;;  %vm5448_vm15 = vcmp.eq.f32.partialorder %v1530_v59, 8.507059e+37  ;;  %4434 = vpow2.f32 %v4184_v35  ;;  %v4144_v13 = vmul.f32 -1.442695, %v5441_v37  ;;  %vm5460_vm1 = vmor %vm2141_vm13, %vm2142_vm14  ;;  %v2148_v35 = vor.u32 1.1754944e-38, %v2147_v30 }
  0xee   : > { %v5429_v12 = vpop.eup %4424  ;;  %v1522_v40 = vmul.f32 %v4423_v20, %v5396_v17  ;;  %v2138_v1 = vsub.f32 1.0, %v2137_v5  ;;  %vm1527_vm0 = vweird.f32 %v4423_v20  ;;  %vm5465_vm2 = vcmp.eq.f32.partialorder %v2145_v23, 8.507059e+37  ;;  %v1021_v17 = vpop.f32.mrf.mxu3 }
  0xef   : > { %v4427_v42 = vpop.eup %4426  ;;  %vm1528_vm3 = vmor %vm1526_vm12, %vm1527_vm0  ;;  %vm2441_vm4 = vweird.f32 %v5406_v11  ;;  %v2445_v52 = vand.u32 2147483647, %v5406_v11  ;;  %v2447_v30 = vand.u32 2147483648, %v5406_v11  ;;  %v1106_v15 = vmul.f32 %v5095_v44, %v1021_v17 }
  0xf0   : > { %v4429_v10 = vpop.eup %4428  ;;  %v1523_v21 = vsub.f32 1.0, %v1522_v40  ;;  %v5443_v8 = vadd.f32 1.0, %v4427_v42  ;;  %v2139_v54 = vmul.f32 %v4421_v28, %v2138_v1  ;;  %v4185_v1 = vmul.f32 -1.442695, %v5427_v36  ;;  %v5489_v59 = vpop.permute.xlu1 %2852 }
  0xf1   : > { %v5446_v51 = vpop.eup %4430  ;;  %v1533_v10 = vor.u32 1.1754944e-38, %v1532_v31  ;;  %vm5500_vm7 = vcmp.eq.f32.partialorder %v2445_v52, 8.507059e+37  ;;  %v5512_v52 = vadd.f32 %v5100_v45, %v1106_v15 }
  0xf2   : > { %v4433_v5 = vpop.eup %4432  ;;  %v1524_v7 = vmul.f32 %v4423_v20, %v1523_v21  ;;  %4436 = vrcp.f32 %v5443_v8  ;;  %v2437_v42 = vmul.f32 %v5446_v51, %v5406_v11  ;;  %v2140_v21 = vadd.f32 %v4421_v28, %v2139_v54 }
  0xf3   : > { %v5454_v40 = vadd.f32 1.0, %v4433_v5  ;;  %4438 = vpow2.f32 %v4144_v13  ;;  %v5471_v5 = vpop.permute.xlu2 %2777  ;;  %vm2442_vm5 = vweird.f32 %v5446_v51  ;;  %v4435_v16 = vpop.eup %4434  ;;  %vm1541_vm8 = vweird.f32 %v5443_v8 }
  0xf4   : > { %v1525_v48 = vadd.f32 %v4423_v20, %v1524_v7  ;;  %v923_v7 = vpop.f32.mrf.mxu1  ;;  %v2438_v23 = vsub.f32 1.0, %v2437_v42  ;;  %v2144_v13 = vsel %vm5460_vm1, %v4421_v28, %v2140_v21  ;;  %vm5496_vm6 = vmor %vm2441_vm4, %vm2442_vm5  ;;  %v5507_v11 = vadd.f32 1.0, %v4435_v16 }
  0xf5   : > { %4440 = vrcp.f32 %v5454_v40  ;;  %v2149_v38 = vsel %vm5465_vm2, %v2148_v35, %v2144_v13  ;;  %v1067_v28 = vmul.f32 %v5095_v44, %v923_v7  ;;  %v1547_v35 = vand.u32 2147483648, %v5443_v8 }
  0xf6   : > { %v1529_v54 = vsel %vm1528_vm3, %v4423_v20, %v1525_v48  ;;  %4442 = vpow2.f32 %v4185_v1  ;;  %v2439_v20 = vmul.f32 %v5446_v51, %v2438_v23  ;;  %v2600_v42 = vmul.f32 %v2149_v38, %v5339_v22  ;;  %v2923_v22 = vpop.permute.xlu0 %2922 }
  0xf7   : > { %v1534_v46 = vsel %vm5448_vm15, %v1533_v10, %v1529_v54  ;;  %4444 = vrcp.f32 %v1429_v27  ;;  %v2448_v38 = vor.u32 1.1754944e-38, %v2447_v30  ;;  %v1545_v30 = vand.u32 2147483647, %v5443_v8 }
  0xf8   : > { %v4437_v0 = vpop.eup %4436  ;;  %v2559_v48 = vmul.f32 %v1534_v46, %v5342_v32  ;;  %v2440_v1 = vadd.f32 %v5446_v51, %v2439_v20  ;;  %v3104_v21 = vmul.f32 %v2923_v22, %v2600_v42  ;;  %v1548_v15 = vor.u32 1.1754944e-38, %v1547_v35  ;;  %v871_v42 = vpop.f32.mrf.mxu0 }
  0xf9   : > { %v1537_v24 = vmul.f32 %v4437_v0, %v5443_v8  ;;  %v4439_v32 = vpop.eup %4438  ;;  %vm1542_vm9 = vweird.f32 %v4437_v0  ;;  %vm1871_vm10 = vweird.f32 %v5454_v40  ;;  %v1877_v10 = vand.u32 2147483648, %v5454_v40 }
  0xfa   : > { %v3063_v27 = vmul.f32 %v5023_v14, %v2559_v48  ;;  %v5509_v54 = vadd.f32 1.0, %v4439_v32  ;;  %v2444_v23 = vsel %vm5496_vm6, %v5446_v51, %v2440_v1  ;;  %3176 = vst [vmem:[#allocation2 + $0x160] sm:$0xff] %v3104_v21  ;;  %v1875_v51 = vand.u32 2147483647, %v5454_v40  ;;  %vm1543_vm11 = vmor %vm1541_vm8, %vm1542_vm9 }
  0xfb   : > { %v4441_v31 = vpop.eup %4440  ;;  %v1538_v7 = vsub.f32 1.0, %v1537_v24  ;;  %v2449_v17 = vsel %vm5500_vm7, %v2448_v38, %v2444_v23  ;;  %v3023_v32 = vpop.permute.xlu2 %3022  ;;  %v4205_v46 = vmul.f32 -1.442695, %v5512_v52  ;;  %vm1546_vm13 = vcmp.eq.f32.partialorder %v1545_v30, 8.507059e+37 }
  0xfc   : > { %3135 = vst [vmem:[#allocation2 + $0x18] sm:$0xff] %v3063_v27  ;;  %v1867_v14 = vmul.f32 %v4441_v31, %v5454_v40  ;;  %v4443_v13 = vpop.eup %4442  ;;  %4446 = vrcp.f32 %v5509_v54  ;;  %v2620_v20 = vmul.f32 %v2449_v17, %v5357_v19  ;;  %v926_v38 = vpop.f32.mrf.mxu1  ;;  %vm1872_vm12 = vweird.f32 %v4441_v31 }
  0xfd   : > { %v1539_v16 = vmul.f32 %v4437_v0, %v1538_v7  ;;  %v4445_v24 = vpop.eup %4444  ;;  %v5531_v1 = vadd.f32 1.0, %v4443_v13  ;;  %v973_v19 = vpop.f32.mrf.mxu2  ;;  %4448 = vpow2.f32 %v4205_v46  ;;  %v1046_v7 = vmul.f32 %v5095_v44, %v871_v42  ;;  %vm1873_vm14 = vmor %vm1871_vm10, %vm1872_vm12 }
  0xfe   : > { %v1868_v48 = vsub.f32 1.0, %v1867_v14  ;;  %v3124_v35 = vmul.f32 %v3023_v32, %v2620_v20  ;;  %v1068_v17 = vmul.f32 %v5095_v44, %v926_v38  ;;  %v1878_v13 = vor.u32 1.1754944e-38, %v1877_v10 }
  0xff   : > { %v1540_v22 = vadd.f32 %v4437_v0, %v1539_v16  ;;  %v1143_v16 = vadd.f32 %v5100_v45, %v1067_v28  ;;  %v1087_v30 = vmul.f32 %v5095_v44, %v973_v19  ;;  %vm1876_vm15 = vcmp.eq.f32.partialorder %v1875_v51, 8.507059e+37 }
 0x100   : > { %v1869_v27 = vmul.f32 %v4441_v31, %v1868_v48  ;;  %3196 = vst [vmem:[#allocation2 + $0x200] sm:$0xff] %v3124_v35  ;;  %4450 = vrcp.f32 %v5531_v1  ;;  %v2407_v24 = vmul.f32 %v5429_v12, %v5379_v25  ;;  %v1560_v32 = vand.u32 2147483647, %v5509_v54 }
 0x101   : > { %v1544_v21 = vsel %vm1543_vm11, %v4437_v0, %v1540_v22  ;;  %v5540_v0 = vpop.permute.xlu1 %3002  ;;  %v5560_v38 = vadd.f32 %v5100_v45, %v1087_v30  ;;  %vm1556_vm1 = vweird.f32 %v5509_v54  ;;  %vm2411_vm4 = vweird.f32 %v5379_v25 }
 0x102   : > { %v1549_v14 = vsel %vm1546_vm13, %v1548_v15, %v1544_v21  ;;  %v1870_v23 = vadd.f32 %v4441_v31, %v1869_v27  ;;  %v4447_v8 = vpop.eup %4446  ;;  %7076 = vst [vmem:[#allocation9_spill] sm:$0xff] %v5540_v0  ;;  %v5544_v15 = vadd.f32 %v5100_v45, %v1046_v7  ;;  %v4166_v21 = vmul.f32 -1.442695, %v1143_v16 }
 0x103   : > { %v2560_v48 = vmul.f32 %v1549_v14, %v5386_v57  ;;  %v1552_v28 = vmul.f32 %v4447_v8, %v5509_v54  ;;  %v4449_v51 = vpop.eup %4448  ;;  %vm1557_vm0 = vweird.f32 %v4447_v8  ;;  %v2408_v14 = vsub.f32 1.0, %v2407_v24 }
 0x104   : > { %v1874_v20 = vsel %vm1873_vm14, %v4441_v31, %v1870_v23  ;;  %v4145_v40 = vmul.f32 -1.442695, %v5544_v15  ;;  %v5555_v31 = vadd.f32 %v5100_v45, %v1068_v17  ;;  %v1105_v17 = vmul.f32 %v5095_v44, %v5421_v50  ;;  %vm1558_vm2 = vmor %vm1556_vm1, %vm1557_vm0 }
 0x105   : > { %v3064_v57 = vmul.f32 %v5079_v39, %v2560_v48  ;;  %v1879_v42 = vsel %vm1876_vm15, %v1878_v13, %v1874_v20  ;;  %v1553_v10 = vsub.f32 1.0, %v1552_v28  ;;  %v1562_v39 = vand.u32 2147483648, %v5509_v54 }
 0x106   : > { %v2582_v22 = vmul.f32 %v1879_v42, %v5389_v41  ;;  %4452 = vpow2.f32 %v4145_v40  ;;  %v5563_v41 = vadd.f32 1.0, %v4449_v51  ;;  %v4167_v7 = vmul.f32 -1.442695, %v5555_v31  ;;  %v5569_v23 = vpop.eup %4450 }
 0x107   : > { %3136 = vst [vmem:[#allocation2 + $0x20] sm:$0xff] %v3064_v57  ;;  %v3217_v46 = vmul.f32 %v5415_v6, %v3064_v57  ;;  %v1554_v35 = vmul.f32 %v4447_v8, %v1553_v10  ;;  %v2409_v16 = vmul.f32 %v5429_v12, %v2408_v14  ;;  %vm1561_vm3 = vcmp.eq.f32.partialorder %v1560_v32, 8.507059e+37  ;;  %v1023_v32 = vpop.f32.mrf.mxu3 }
 0x108   : > { %v3086_v27 = vmul.f32 %v5180_v47, %v2582_v22  ;;  %4454 = vrcp.f32 %v5563_v41  ;;  %v1563_v47 = vor.u32 1.1754944e-38, %v1562_v39  ;;  %vm2412_vm5 = vweird.f32 %v5429_v12 }
 0x109   : > { %v5566_v19 = vadd.f32 %v5419_v4, %v3217_v46  ;;  %v1555_v48 = vadd.f32 %v4447_v8, %v1554_v35  ;;  %v4186_v4 = vmul.f32 -1.442695, %v5560_v38  ;;  %4456 = vpow2.f32 %v4167_v7  ;;  %v5579_v50 = vpop.permute.xlu1 %2862  ;;  %vm5586_vm6 = vmor %vm2411_vm4, %vm2412_vm5 }
 0x10a   : > { %3158 = vst [vmem:[#allocation2 + $0xd0] sm:$0xff] %v3086_v27  ;;  %4458 = vrcp.f32 %v5507_v11  ;;  %v2410_v28 = vadd.f32 %v5429_v12, %v2409_v16  ;;  %v2417_v42 = vand.u32 2147483648, %v5379_v25  ;;  %v2167_v40 = vmul.f32 %v5569_v23, %v5531_v1 }
 0x10b   : > { %7077 = vst [vmem:[#allocation10_spill] sm:$0xff] %v5566_v19  ;;  %v1559_v13 = vsel %vm1558_vm2, %v4447_v8, %v1555_v48  ;;  %4460 = vpow2.f32 %v4166_v21  ;;  %v2415_v8 = vand.u32 2147483647, %v5379_v25  ;;  %v2475_v10 = vand.u32 2147483647, %v5563_v41 }
 0x10c   : > { %v4453_v30 = vpop.eup %4452  ;;  %v1564_v44 = vsel %vm1561_vm3, %v1563_v47, %v1559_v13  ;;  %4462 = vpow2.f32 %v4186_v4  ;;  %vm2471_vm7 = vweird.f32 %v5563_v41  ;;  %v2477_v25 = vand.u32 2147483648, %v5563_v41  ;;  %v5622_v47 = vld [vmem:[%s7033_s3] ss:$0 sm:$0xff] }
 0x10d   : > { %v2561_v54 = vmul.f32 %v1564_v44, %v5441_v37  ;;  %v5582_v20 = vadd.f32 1.0, %v4453_v30  ;;  %v5595_v37 = vadd.f32 %v5100_v45, %v1105_v17  ;;  %vm2416_vm8 = vcmp.eq.f32.partialorder %v2415_v8, 8.507059e+37  ;;  %v5638_v8 = vpop.permute.xlu0 %2772 }
 0x10e   : > { %v4455_v24 = vpop.eup %4454  ;;  %v2418_v35 = vor.u32 1.1754944e-38, %v2417_v42  ;;  %v2168_v17 = vsub.f32 1.0, %v2167_v40  ;;  %vm5614_vm10 = vcmp.eq.f32.partialorder %v2475_v10, 8.507059e+37  ;;  %vm2171_vm11 = vweird.f32 %v5531_v1 }
 0x10f   : > { %v3065_v22 = vmul.f32 %v5034_v18, %v2561_v54  ;;  %4464 = vrcp.f32 %v5582_v20  ;;  %v4457_v51 = vpop.eup %4456  ;;  %v2467_v46 = vmul.f32 %v4455_v24, %v5563_v41  ;;  %v1577_v39 = vand.u32 2147483648, %v5582_v20  ;;  %v976_v54 = vpop.f32.mrf.mxu2 }
 0x110   : > { %v5604_v27 = vpop.eup %4458  ;;  %v5606_v45 = vadd.f32 1.0, %v4457_v51  ;;  %v2414_v18 = vsel %vm5586_vm6, %v5429_v12, %v2410_v28  ;;  %vm2472_vm9 = vweird.f32 %v4455_v24  ;;  %v1575_v14 = vand.u32 2147483647, %v5582_v20 }
 0x111   : > { %3137 = vst [vmem:[#allocation2 + $0x28] sm:$0xff] %v3065_v22  ;;  %v5611_v21 = vpop.eup %4460  ;;  %v2468_v7 = vsub.f32 1.0, %v2467_v46  ;;  %v5625_v12 = vmul.f32 %v5622_v47, %v1023_v32  ;;  %v2478_v13 = vor.u32 1.1754944e-38, %v2477_v25  ;;  %v2419_v30 = vsel %vm2416_vm8, %v2418_v35, %v2414_v18  ;;  %vm5634_vm12 = vmor %vm2471_vm7, %vm2472_vm9  ;;  %v873_v22 = vpop.f32.mrf.mxu0 }
 0x112   : > { %4466 = vrcp.f32 %v5606_v45  ;;  %v5628_v4 = vpop.eup %4462  ;;  %v2169_v44 = vmul.f32 %v5569_v23, %v2168_v17  ;;  %vm1571_vm13 = vweird.f32 %v5582_v20  ;;  %v1578_v42 = vor.u32 1.1754944e-38, %v1577_v39  ;;  %v3013_v46 = vpop.permute.xlu1 %3012 }
 0x113   : > { %v2469_v16 = vmul.f32 %v4455_v24, %v2468_v7  ;;  %v2618_v40 = vmul.f32 %v2419_v30, %v5221_v29  ;;  %vm2172_vm14 = vweird.f32 %v5569_v23  ;;  %vm5644_vm15 = vcmp.eq.f32.partialorder %v1575_v14, 8.507059e+37 }
 0x114   : > { %vm1901_vm0 = vweird.f32 %v5606_v45  ;;  %v1905_v41 = vand.u32 2147483647, %v5606_v45  ;;  %v2170_v25 = vadd.f32 %v5569_v23, %v2169_v44  ;;  %vm5653_vm1 = vmor %vm2171_vm11, %vm2172_vm14  ;;  %v2175_v18 = vand.u32 2147483647, %v5531_v1  ;;  %v928_v44 = vpop.f32.mrf.mxu1 }
 0x115   : > { %v4465_v28 = vpop.eup %4464  ;;  %v2470_v10 = vadd.f32 %v4455_v24, %v2469_v16  ;;  %v3122_v39 = vmul.f32 %v3013_v46, %v2618_v40  ;;  %v2177_v35 = vand.u32 2147483648, %v5531_v1  ;;  %v1088_v7 = vmul.f32 %v5622_v47, %v976_v54 }
 0x116   : > { %v1567_v32 = vmul.f32 %v4465_v28, %v5582_v20  ;;  %v1907_v16 = vand.u32 2147483648, %v5606_v45  ;;  %v1047_v30 = vmul.f32 %v5622_v47, %v873_v22  ;;  %vm1572_vm2 = vweird.f32 %v4465_v28 }
 0x117   : > { %v2474_v14 = vsel %vm5634_vm12, %v4455_v24, %v2470_v10  ;;  %3194 = vst [vmem:[#allocation2 + $0x1f0] sm:$0xff] %v3122_v39  ;;  %v2174_v1 = vsel %vm5653_vm1, %v5569_v23, %v2170_v25  ;;  %vm5669_vm3 = vcmp.eq.f32.partialorder %v2175_v18, 8.507059e+37  ;;  %v1026_v24 = vpop.f32.mrf.mxu3  ;;  %v3033_v10 = vpop.permute.xlu2 %3032  ;;  %v2178_v48 = vor.u32 1.1754944e-38, %v2177_v35  ;;  %vm1573_vm5 = vmor %vm1571_vm13, %vm1572_vm2 }
 0x118   : > { %v1568_v17 = vsub.f32 1.0, %v1567_v32  ;;  %v4467_v19 = vpop.eup %4466  ;;  %v2479_v0 = vsel %vm5614_vm10, %v2478_v13, %v2474_v14  ;;  %v5678_v13 = vld [vmem:[%s7034_s4] ss:$0 sm:$0xff]  ;;  %v1069_v46 = vmul.f32 %v5622_v47, %v928_v44  ;;  %v1108_v29 = vmul.f32 %v5622_v47, %v1026_v24  ;;  %v2933_v24 = vpop.permute.xlu0 %2932 }
 0x119   : > { %v2622_v57 = vmul.f32 %v2479_v0, %v5512_v52  ;;  %v1897_v22 = vmul.f32 %v4467_v19, %v5606_v45  ;;  %vm1902_vm4 = vweird.f32 %v4467_v19  ;;  %v5681_v23 = vadd.f32 %v5678_v13, %v1088_v7 }
 0x11a   : > { %v1569_v40 = vmul.f32 %v4465_v28, %v1568_v17  ;;  %v5684_v32 = vadd.f32 %v5678_v13, %v1047_v30  ;;  %v2179_v39 = vsel %vm5669_vm3, %v2178_v48, %v2174_v1  ;;  %v1145_v7 = vadd.f32 %v5678_v13, %v1069_v46  ;;  %vm1903_vm6 = vmor %vm1901_vm0, %vm1902_vm4 }
 0x11b   : > { %v3126_v52 = vmul.f32 %v3033_v10, %v2622_v57  ;;  %v1898_v25 = vsub.f32 1.0, %v1897_v22  ;;  %v4187_v18 = vmul.f32 -1.442695, %v5681_v23  ;;  %v2602_v30 = vmul.f32 %v2179_v39, %v5427_v36 }
 0x11c   : > { %v1570_v0 = vadd.f32 %v4465_v28, %v1569_v40  ;;  %v4146_v35 = vmul.f32 -1.442695, %v5684_v32  ;;  %v5698_v44 = vadd.f32 %v5678_v13, %v1108_v29  ;;  %v4168_v1 = vmul.f32 -1.442695, %v1145_v7  ;;  %v931_v48 = vpop.f32.mrf.mxu1 }
 0x11d   : > { %3198 = vst [vmem:[#allocation2 + $0x210] sm:$0xff] %v3126_v52  ;;  %v1899_v17 = vmul.f32 %v4467_v19, %v1898_v25  ;;  %4468 = vpow2.f32 %v4187_v18  ;;  %v2152_v54 = vmul.f32 %v5604_v27, %v5507_v11  ;;  %v3106_v22 = vmul.f32 %v2933_v24, %v2602_v30  ;;  %v978_v52 = vpop.f32.mrf.mxu2 }
 0x11e   : > { %v1574_v14 = vsel %vm1573_vm5, %v4465_v28, %v1570_v0  ;;  %4470 = vpow2.f32 %v4146_v35  ;;  %v5706_v28 = vadd.f32 1.0, %v5628_v4  ;;  %vm1906_vm7 = vcmp.eq.f32.partialorder %v1905_v41, 8.507059e+37 }
 0x11f   : > { %v1579_v20 = vsel %vm5644_vm15, %v1578_v42, %v1574_v14  ;;  %v1900_v40 = vadd.f32 %v4467_v19, %v1899_v17  ;;  %v1908_v36 = vor.u32 1.1754944e-38, %v1907_v16  ;;  %v2153_v42 = vsub.f32 1.0, %v2152_v54  ;;  %3178 = vst [vmem:[#allocation2 + $0x170] sm:$0xff] %v3106_v22  ;;  %v5736_v14 = vpop.permute.xlu2 %2957 }
 0x120   : > { %v2562_v57 = vmul.f32 %v1579_v20, %v5544_v15  ;;  %vm2156_vm8 = vweird.f32 %v5507_v11  ;;  %vm2157_vm9 = vweird.f32 %v5604_v27  ;;  %v876_v15 = vpop.f32.mrf.mxu0  ;;  %4472 = vpow2.f32 %v4168_v1 }
 0x121   : > { %v1904_v10 = vsel %vm1903_vm6, %v4467_v19, %v1900_v40  ;;  %v4207_v4 = vmul.f32 -1.442695, %v5698_v44  ;;  %v2154_v45 = vmul.f32 %v5604_v27, %v2153_v42  ;;  %v4204_v41 = vmul.f32 -1.442695, %v5595_v37  ;;  %vm5726_vm10 = vmor %vm2156_vm8, %vm2157_vm9 }
 0x122   : > { %v3066_v51 = vmul.f32 %v5108_v49, %v2562_v57  ;;  %v1909_v46 = vsel %vm1906_vm7, %v1908_v36, %v1904_v10  ;;  %v2160_v49 = vand.u32 2147483647, %v5507_v11  ;;  %v2162_v19 = vand.u32 2147483648, %v5507_v11  ;;  %v2928_v10 = vpop.permute.xlu0 %2927 }
 0x123   : > { %v2584_v16 = vmul.f32 %v1909_v46, %v5555_v31  ;;  %v4469_v0 = vpop.eup %4468  ;;  %v1431_v25 = vadd.f32 1.0, %v5611_v21  ;;  %v2155_v29 = vadd.f32 %v5604_v27, %v2154_v45  ;;  %v1048_v31 = vmul.f32 %v5622_v47, %v876_v15 }
 0x124   : > { %3138 = vst [vmem:[#allocation2 + $0x30] sm:$0xff] %v3066_v51  ;;  %v1070_v37 = vmul.f32 %v5622_v47, %v931_v48  ;;  %v4471_v18 = vpop.eup %4470  ;;  %4474 = vrcp.f32 %v5706_v28  ;;  %v1183_v21 = vadd.f32 %v5678_v13, %v5625_v12  ;;  %v1452_v7 = vadd.f32 1.0, %v4469_v0 }
 0x125   : > { %v3088_v35 = vmul.f32 %v5287_v55, %v2584_v16  ;;  %v5738_v11 = vadd.f32 1.0, %v4471_v18  ;;  %4476 = vpow2.f32 %v4207_v4  ;;  %v2163_v17 = vor.u32 1.1754944e-38, %v2162_v19 }
 0x126   : > { %v1089_v30 = vmul.f32 %v5622_v47, %v978_v52  ;;  %4478 = vrcp.f32 %v1452_v7  ;;  %v2159_v20 = vsel %vm5726_vm10, %v5604_v27, %v2155_v29  ;;  %vm2161_vm11 = vcmp.eq.f32.partialorder %v2160_v49, 8.507059e+37  ;;  %v4473_v12 = vpop.eup %4472 }
 0x127   : > { %3160 = vst [vmem:[#allocation2 + $0xe0] sm:$0xff] %v3088_v35  ;;  %v5745_v55 = vadd.f32 %v5678_v13, %v1048_v31  ;;  %4480 = vrcp.f32 %v5738_v11  ;;  %v5749_v24 = vadd.f32 %v5678_v13, %v1070_v37  ;;  %v4206_v1 = vmul.f32 -1.442695, %v1183_v21  ;;  %v5774_v31 = vpop.permute.xlu2 %2787 }
 0x128   : > { %4482 = vpow2.f32 %v4204_v41  ;;  %v2164_v54 = vsel %vm2161_vm11, %v2163_v17, %v2159_v20  ;;  %v5753_v40 = vadd.f32 1.0, %v4473_v12  ;;  %v5757_v22 = vadd.f32 %v5678_v13, %v1089_v30 }
 0x129   : > { %4484 = vrcp.f32 %v1431_v25  ;;  %v2601_v27 = vmul.f32 %v2164_v54, %v5410_v61  ;;  %v4147_v36 = vmul.f32 -1.442695, %v5745_v55  ;;  %vm2201_vm12 = vweird.f32 %v1452_v7 }
 0x12a   : > { %v5751_v57 = vpop.eup %4474  ;;  %v2205_v51 = vand.u32 2147483647, %v1452_v7  ;;  %v4169_v15 = vmul.f32 -1.442695, %v5749_v24  ;;  %v1590_v46 = vand.u32 2147483647, %v5738_v11  ;;  %vm1586_vm13 = vweird.f32 %v5738_v11 }
 0x12b   : > { %v4477_v42 = vpop.eup %4476  ;;  %v1592_v4 = vand.u32 2147483648, %v5738_v11  ;;  %v3105_v45 = vmul.f32 %v2928_v10, %v2601_v27  ;;  %4486 = vpow2.f32 %v4147_v36  ;;  %v2207_v16 = vand.u32 2147483648, %v1452_v7 }
 0x12c   : > { %v4479_v48 = vpop.eup %4478  ;;  %4488 = vpow2.f32 %v4169_v15  ;;  %v5767_v52 = vadd.f32 1.0, %v4477_v42  ;;  %v4188_v0 = vmul.f32 -1.442695, %v5757_v22  ;;  %vm5770_vm15 = vcmp.eq.f32.partialorder %v2205_v51, 8.507059e+37 }
 0x12d   : > { %v4481_v41 = vpop.eup %4480  ;;  %v2197_v61 = vmul.f32 %v4479_v48, %v1452_v7  ;;  %3177 = vst [vmem:[#allocation2 + $0x168] sm:$0xff] %v3105_v45  ;;  %vm2202_vm14 = vweird.f32 %v4479_v48  ;;  %v2182_v37 = vmul.f32 %v5751_v57, %v5706_v28  ;;  %vm5778_vm0 = vcmp.eq.f32.partialorder %v1590_v46, 8.507059e+37  ;;  %v1028_v45 = vpop.f32.mrf.mxu3 }
 0x12e   : > { %v5764_v49 = vpop.eup %4482  ;;  %v1582_v19 = vmul.f32 %v4481_v41, %v5738_v11  ;;  %v1593_v21 = vor.u32 1.1754944e-38, %v1592_v4  ;;  %v2208_v30 = vor.u32 1.1754944e-38, %v2207_v16  ;;  %vm1587_vm1 = vweird.f32 %v4481_v41  ;;  %vm2203_vm2 = vmor %vm2201_vm12, %vm2202_vm14 }
 0x12f   : > { %v4485_v25 = vpop.eup %4484  ;;  %v2198_v29 = vsub.f32 1.0, %v2197_v61  ;;  %v2183_v20 = vsub.f32 1.0, %v2182_v37  ;;  %4490 = vpow2.f32 %v4188_v0  ;;  %vm2186_vm3 = vweird.f32 %v5706_v28  ;;  %vm1588_vm4 = vmor %vm1586_vm13, %vm1587_vm1  ;;  %v2943_v0 = vpop.permute.xlu1 %2942 }
 0x130   : > { %v1583_v18 = vsub.f32 1.0, %v1582_v19  ;;  %vm2187_vm5 = vweird.f32 %v5751_v57  ;;  %v2190_v25 = vand.u32 2147483647, %v5706_v28  ;;  %v2818_v39 = vpop.permute.xlu2 %2817  ;;  %v981_v37 = vpop.f32.mrf.mxu2 }
 0x131   : > { %v2199_v17 = vmul.f32 %v4479_v48, %v2198_v29  ;;  %v4487_v12 = vpop.eup %4486  ;;  %v2184_v46 = vmul.f32 %v5751_v57, %v2183_v20  ;;  %vm5803_vm6 = vmor %vm2186_vm3, %vm2187_vm5  ;;  %v1090_v20 = vmul.f32 %v5622_v47, %v981_v37 }
 0x132   : > { %v1584_v54 = vmul.f32 %v4481_v41, %v1583_v18  ;;  %v4489_v27 = vpop.eup %4488  ;;  %v5783_v42 = vadd.f32 1.0, %v4487_v12  ;;  %vm5822_vm7 = vcmp.eq.f32.partialorder %v2190_v25, 8.507059e+37 }
 0x133   : > { %v2200_v36 = vadd.f32 %v4479_v48, %v2199_v17  ;;  %v5785_v10 = vadd.f32 1.0, %v4489_v27 }
 0x134   : > { %v1585_v51 = vadd.f32 %v4481_v41, %v1584_v54  ;;  %4492 = vrcp.f32 %v5783_v42  ;;  %vm1601_vm8 = vweird.f32 %v5783_v42  ;;  %v1605_v12 = vand.u32 2147483647, %v5783_v42 }
 0x135   : > { %v2204_v15 = vsel %vm2203_vm2, %v4479_v48, %v2200_v36  ;;  %4494 = vrcp.f32 %v5785_v10  ;;  %v1109_v48 = vmul.f32 %v5622_v47, %v1028_v45  ;;  %v4491_v16 = vpop.eup %4490  ;;  %v1937_v45 = vand.u32 2147483648, %v5785_v10 }
 0x136   : > { %v1589_v7 = vsel %vm1588_vm4, %v4481_v41, %v1585_v51  ;;  %v2209_v4 = vsel %vm5770_vm15, %v2208_v30, %v2204_v15  ;;  %4496 = vpow2.f32 %v4206_v1  ;;  %v5812_v18 = vadd.f32 1.0, %v4491_v16 }
 0x137   : > { %v1594_v61 = vsel %vm5778_vm0, %v1593_v21, %v1589_v7  ;;  %v2604_v11 = vmul.f32 %v2209_v4, %v5681_v23  ;;  %4498 = vrcp.f32 %v5753_v40  ;;  %v2185_v23 = vadd.f32 %v5751_v57, %v2184_v46 }
 0x138   : > { %v2563_v19 = vmul.f32 %v1594_v61, %v5684_v32  ;;  %4500 = vrcp.f32 %v5767_v52  ;;  %v5815_v35 = vadd.f32 %v5678_v13, %v1109_v48  ;;  %v2192_v21 = vand.u32 2147483648, %v5706_v28 }
 0x139   : > { %v3108_v29 = vmul.f32 %v2943_v0, %v2604_v11  ;;  %v2189_v40 = vsel %vm5803_vm6, %v5751_v57, %v2185_v23  ;;  %v878_v57 = vpop.f32.mrf.mxu0  ;;  %v1607_v51 = vand.u32 2147483648, %v5783_v42  ;;  %v5834_v15 = vadd.f32 %v5678_v13, %v1090_v20 }
 0x13a   : > { %v3067_v1 = vmul.f32 %v5226_v34, %v2563_v19  ;;  %v4493_v32 = vpop.eup %4492  ;;  %v2193_v27 = vor.u32 1.1754944e-38, %v2192_v21  ;;  %v1049_v46 = vmul.f32 %v5622_v47, %v878_v57  ;;  %vm1931_vm10 = vweird.f32 %v5785_v10 }
 0x13b   : > { %3180 = vst [vmem:[#allocation2 + $0x180] sm:$0xff] %v3108_v29  ;;  %v4495_v17 = vpop.eup %4494  ;;  %v1597_v30 = vmul.f32 %v4493_v32, %v5783_v42  ;;  %vm1602_vm9 = vweird.f32 %v4493_v32  ;;  %v4189_v19 = vmul.f32 -1.442695, %v5834_v15  ;;  %v1935_v25 = vand.u32 2147483647, %v5785_v10  ;;  %v2938_v29 = vpop.permute.xlu0 %2937 }
 0x13c   : > { %3139 = vst [vmem:[#allocation2 + $0x38] sm:$0xff] %v3067_v1  ;;  %v1927_v54 = vmul.f32 %v4495_v17, %v5785_v10  ;;  %v5830_v36 = vpop.eup %4496  ;;  %v2194_v61 = vsel %vm5822_vm7, %v2193_v27, %v2189_v40  ;;  %v5845_v0 = vadd.f32 %v5678_v13, %v1049_v46  ;;  %vm1932_vm11 = vweird.f32 %v4495_v17  ;;  %vm1603_vm12 = vmor %vm1601_vm8, %vm1602_vm9  ;;  %v933_v10 = vpop.f32.mrf.mxu1 }
 0x13d   : > { %v1598_v28 = vsub.f32 1.0, %v1597_v30  ;;  %v4499_v7 = vpop.eup %4498  ;;  %v2603_v16 = vmul.f32 %v2194_v61, %v5560_v38  ;;  %4502 = vpow2.f32 %v4189_v19  ;;  %vm1606_vm13 = vcmp.eq.f32.partialorder %v1605_v12, 8.507059e+37  ;;  %vm1933_vm14 = vmor %vm1931_vm10, %vm1932_vm11  ;;  %v5857_v27 = vpop.permute.xlu1 %2952 }
 0x13e   : > { %v1928_v4 = vsub.f32 1.0, %v1927_v54  ;;  %v5840_v11 = vpop.eup %4500  ;;  %v4148_v37 = vmul.f32 -1.442695, %v5845_v0  ;;  %v1608_v38 = vor.u32 1.1754944e-38, %v1607_v51  ;;  %v1938_v30 = vor.u32 1.1754944e-38, %v1937_v45  ;;  %v983_v19 = vpop.f32.mrf.mxu2 }
 0x13f   : > { %v1599_v48 = vmul.f32 %v4493_v32, %v1598_v28  ;;  %v3107_v23 = vmul.f32 %v2938_v29, %v2603_v16  ;;  %v2497_v40 = vmul.f32 %v5840_v11, %v5767_v52  ;;  %vm1936_vm15 = vcmp.eq.f32.partialorder %v1935_v25, 8.507059e+37 }
 0x140   : > { %v1929_v41 = vmul.f32 %v4495_v17, %v1928_v4  ;;  %4504 = vpow2.f32 %v4148_v37  ;;  %v2507_v51 = vand.u32 2147483648, %v5767_v52  ;;  %vm2501_vm0 = vweird.f32 %v5767_v52 }
 0x141   : > { %v1600_v39 = vadd.f32 %v4493_v32, %v1599_v48  ;;  %3179 = vst [vmem:[#allocation2 + $0x178] sm:$0xff] %v3107_v23  ;;  %v2498_v54 = vsub.f32 1.0, %v2497_v40  ;;  %4506 = vrcp.f32 %v5812_v18  ;;  %vm2502_vm1 = vweird.f32 %v5840_v11  ;;  %v881_v48 = vpop.f32.mrf.mxu0 }
 0x142   : > { %v1930_v1 = vadd.f32 %v4495_v17, %v1929_v41  ;;  %vm5869_vm2 = vmor %vm2501_vm0, %vm2502_vm1  ;;  %v2508_v61 = vor.u32 1.1754944e-38, %v2507_v51  ;;  %v5877_v41 = vadd.f32 1.0, %v5830_v36  ;;  %vm2216_vm6 = vweird.f32 %v5812_v18 }
 0x143   : > { %v1604_v21 = vsel %vm1603_vm12, %v4493_v32, %v1600_v39  ;;  %v1071_v32 = vmul.f32 %v5622_v47, %v933_v10  ;;  %v2499_v28 = vmul.f32 %v5840_v11, %v2498_v54  ;;  %v4503_v46 = vpop.eup %4502 }
 0x144   : > { %v1609_v34 = vsel %vm1606_vm13, %v1608_v38, %v1604_v21  ;;  %v1934_v20 = vsel %vm1933_vm14, %v4495_v17, %v1930_v1  ;;  %v1454_v4 = vadd.f32 1.0, %v4503_v46  ;;  %v5885_v38 = vmul.f32 -1.442695, %v5815_v35  ;;  %v936_v1 = vpop.f32.mrf.mxu1 }
 0x145   : > { %v2564_v42 = vmul.f32 %v1609_v34, %v5745_v55  ;;  %v1939_v12 = vsel %vm1936_vm15, %v1938_v30, %v1934_v20  ;;  %v2505_v55 = vand.u32 2147483647, %v5767_v52  ;;  %v1147_v52 = vadd.f32 %v5678_v13, %v1071_v32 }
 0x146   : > { %v2586_v57 = vmul.f32 %v1939_v12, %v5749_v24  ;;  %v2500_v24 = vadd.f32 %v5840_v11, %v2499_v28  ;;  %v4505_v16 = vpop.eup %4504  ;;  %4508 = vrcp.f32 %v1454_v4  ;;  %v2235_v25 = vand.u32 2147483647, %v1454_v4  ;;  %v986_v45 = vpop.f32.mrf.mxu2 }
 0x147   : > { %v3068_v17 = vmul.f32 %v5069_v33, %v2564_v42  ;;  %v5873_v33 = vpop.f32.mrf.mxu3  ;;  %vm2506_vm3 = vcmp.eq.f32.partialorder %v2505_v55, 8.507059e+37  ;;  %v5879_v29 = vadd.f32 1.0, %v4505_v16  ;;  %v2237_v23 = vand.u32 2147483648, %v1454_v4  ;;  %v2848_v42 = vpop.permute.xlu2 %2847 }
 0x148   : > { %v3090_v7 = vmul.f32 %v5489_v59, %v2586_v57  ;;  %v4507_v59 = vpop.eup %4506  ;;  %v2504_v39 = vsel %vm5869_vm2, %v5840_v11, %v2500_v24  ;;  %v5888_v40 = vmul.f32 -1.442695, %v1147_v52  ;;  %v1091_v21 = vmul.f32 %v5622_v47, %v983_v19  ;;  %v3043_v11 = vpop.permute.xlu1 %3042 }
 0x149   : > { %3140 = vst [vmem:[#allocation2 + $0x40] sm:$0xff] %v3068_v17  ;;  %v2509_v37 = vsel %vm2506_vm3, %v2508_v61, %v2504_v39  ;;  %4510 = vrcp.f32 %v5879_v29  ;;  %vm2231_vm4 = vweird.f32 %v1454_v4  ;;  %vm5892_vm5 = vcmp.eq.f32.partialorder %v2235_v25, 8.507059e+37  ;;  %v883_v28 = vpop.f32.mrf.mxu0 }
 0x14a   : > { %3162 = vst [vmem:[#allocation2 + $0xf0] sm:$0xff] %v3090_v7  ;;  %v2624_v36 = vmul.f32 %v2509_v37, %v5698_v44  ;;  %v2212_v10 = vmul.f32 %v4507_v59, %v5812_v18  ;;  %v2238_v35 = vor.u32 1.1754944e-38, %v2237_v23  ;;  %vm2217_vm8 = vweird.f32 %v4507_v59 }
 0x14b   : > { %v2220_v44 = vand.u32 2147483647, %v5812_v18  ;;  %v2222_v57 = vand.u32 2147483648, %v5812_v18  ;;  %v5901_v32 = vadd.f32 %v5678_v13, %v1091_v21  ;;  %v1050_v55 = vmul.f32 %v5622_v47, %v881_v48  ;;  %vm5910_vm9 = vmor %vm2216_vm6, %vm2217_vm8 }
 0x14c   : > { %v4509_v34 = vpop.eup %4508  ;;  %v3128_v20 = vmul.f32 %v3043_v11, %v2624_v36  ;;  %v2213_v12 = vsub.f32 1.0, %v2212_v10  ;;  %v1072_v7 = vmul.f32 %v5622_v47, %v936_v1  ;;  %v1620_v16 = vand.u32 2147483647, %v5879_v29 }
 0x14d   : > { %v2227_v54 = vmul.f32 %v4509_v34, %v1454_v4  ;;  %vm2232_vm7 = vweird.f32 %v4509_v34  ;;  %vm5914_vm10 = vcmp.eq.f32.partialorder %v2220_v44, 8.507059e+37  ;;  %v2223_v48 = vor.u32 1.1754944e-38, %v2222_v57 }
 0x14e   : > { %3200 = vst [vmem:[#allocation2 + $0x220] sm:$0xff] %v3128_v20  ;;  %v2214_v17 = vmul.f32 %v4507_v59, %v2213_v12  ;;  %v4190_v23 = vmul.f32 -1.442695, %v5901_v32  ;;  %v5920_v37 = vadd.f32 %v5678_v13, %v1050_v55  ;;  %vm5924_vm11 = vmor %vm2231_vm4, %vm2232_vm7  ;;  %v1622_v36 = vand.u32 2147483648, %v5879_v29 }
 0x14f   : > { %v4511_v51 = vpop.eup %4510  ;;  %v2228_v46 = vsub.f32 1.0, %v2227_v54  ;;  %v1033_v24 = vpop.f32.mrf.mxu3  ;;  %v5930_v21 = vadd.f32 %v5678_v13, %v1072_v7  ;;  %v1092_v55 = vmul.f32 %v5622_v47, %v986_v45  ;;  %vm1616_vm13 = vweird.f32 %v5879_v29 }
 0x150   : > { %v1612_v61 = vmul.f32 %v4511_v51, %v5879_v29  ;;  %v2215_v39 = vadd.f32 %v4507_v59, %v2214_v17  ;;  %v1111_v11 = vmul.f32 %v5622_v47, %v1033_v24  ;;  %vm1617_vm12 = vweird.f32 %v4511_v51  ;;  %v938_v54 = vpop.f32.mrf.mxu1  ;;  %v2948_v24 = vpop.permute.xlu0 %2947 }
 0x151   : > { %v2229_v25 = vmul.f32 %v4509_v34, %v2228_v46  ;;  %4512 = vpow2.f32 %v4190_v23  ;;  %v4149_v12 = vmul.f32 -1.442695, %v5920_v37  ;;  %v4171_v44 = vmul.f32 -1.442695, %v5930_v21  ;;  %vm1618_vm14 = vmor %vm1616_vm13, %vm1617_vm12  ;;  %v886_v30 = vpop.f32.mrf.mxu0 }
 0x152   : > { %v1613_v1 = vsub.f32 1.0, %v1612_v61  ;;  %v2219_v20 = vsel %vm5910_vm9, %v4507_v59, %v2215_v39  ;;  %v1187_v17 = vadd.f32 %v5678_v13, %v1111_v11  ;;  %v1623_v19 = vor.u32 1.1754944e-38, %v1622_v36 }
 0x153   : > { %v2230_v10 = vadd.f32 %v4509_v34, %v2229_v25  ;;  %v2224_v42 = vsel %vm5914_vm10, %v2223_v48, %v2219_v20  ;;  %4514 = vpow2.f32 %v4149_v12  ;;  %vm1621_vm15 = vcmp.eq.f32.partialorder %v1620_v16, 8.507059e+37  ;;  %v988_v25 = vpop.f32.mrf.mxu2 }
 0x154   : > { %v1614_v4 = vmul.f32 %v4511_v51, %v1613_v1  ;;  %v2605_v46 = vmul.f32 %v2224_v42, %v5757_v22  ;;  %4516 = vpow2.f32 %v4171_v44  ;;  %v1051_v45 = vmul.f32 %v5622_v47, %v883_v28  ;;  %v4708_v28 = vld [vmem:[%s7035_s5] sm:$0xff] }
 0x155   : > { %v2234_v57 = vsel %vm5924_vm11, %v4509_v34, %v2230_v10  ;;  %4518 = vpow2.f32 %v5888_v40  ;;  %v4210_v48 = vmul.f32 -1.442695, %v1187_v17  ;;  %v1073_v40 = vmul.f32 %v5622_v47, %v938_v54 }
 0x156   : > { %v2239_v59 = vsel %vm5892_vm5, %v2238_v35, %v2234_v57  ;;  %v1615_v7 = vadd.f32 %v4511_v51, %v1614_v4  ;;  %v3109_v34 = vmul.f32 %v2948_v24, %v2605_v46  ;;  %v5965_v16 = vperm.slane %v4708_v28, 3  ;;  %v4709_v57 = vld [vmem:[#allocation2] sm:$0xff] }
 0x157   : > { %v2606_v61 = vmul.f32 %v2239_v59, %v5834_v15  ;;  %v4513_v35 = vpop.eup %4512  ;;  %v1168_v15 = vadd.f32 %v5678_v13, %v1092_v55  ;;  %4520 = vrcp.f32 %v5877_v41  ;;  %v5969_v1 = vperm.slane %v4708_v28, 5 }
 0x158   : > { %v1619_v22 = vsel %vm1618_vm14, %v4511_v51, %v1615_v7  ;;  %3181 = vst [vmem:[#allocation2 + $0x188] sm:$0xff] %v3109_v34  ;;  %v5954_v23 = vadd.f32 1.0, %v4513_v35  ;;  %v5957_v51 = vadd.f32 %v5678_v13, %v1051_v45  ;;  %v1093_v11 = vmul.f32 %v5622_v47, %v988_v25  ;;  %v941_v4 = vpop.f32.mrf.mxu1 }
 0x159   : > { %v3110_v52 = vmul.f32 %v5857_v27, %v2606_v61  ;;  %v1624_v29 = vsel %vm1621_vm15, %v1623_v19, %v1619_v22  ;;  %v5963_v27 = vperm.slane %v4708_v28, 2  ;;  %v4515_v18 = vpop.eup %4514  ;;  %v1110_v20 = vmul.f32 %v5622_v47, %v5873_v33 }
 0x15a   : > { %v2565_v39 = vmul.f32 %v1624_v29, %v5845_v0  ;;  %v1052_v0 = vmul.f32 %v5622_v47, %v886_v30  ;;  %4522 = vrcp.f32 %v5954_v23  ;;  %v4517_v10 = vpop.eup %4516  ;;  %v5977_v54 = vadd.f32 1.0, %v4515_v18 }
 0x15b   : > { %3182 = vst [vmem:[#allocation2 + $0x190] sm:$0xff] %v3110_v52  ;;  %4524 = vpow2.f32 %v5885_v38  ;;  %v4191_v41 = vmul.f32 -1.442695, %v1168_v15  ;;  %v4519_v42 = vpop.eup %4518  ;;  %v5979_v12 = vadd.f32 1.0, %v4517_v10  ;;  %v1149_v44 = vadd.f32 %v5678_v13, %v1073_v40  ;;  %v6010_v52 = vpop.permute.xlu1 %2872 }
 0x15c   : > { %v3069_v36 = vmul.f32 %v5348_v60, %v2565_v39  ;;  %4526 = vpow2.f32 %v4210_v48  ;;  %v4150_v60 = vmul.f32 -1.442695, %v5957_v51  ;;  %v5984_v46 = vmul.f32 %v4709_v57, %v5415_v6 }
 0x15d   : > { %v2250_v38 = vand.u32 2147483647, %v5954_v23  ;;  %4528 = vrcp.f32 %v5977_v54  ;;  %v5989_v33 = vadd.f32 %v5678_v13, %v1052_v0  ;;  %v2252_v17 = vand.u32 2147483648, %v5954_v23  ;;  %v4521_v7 = vpop.eup %4520 }
 0x15e   : > { %3141 = vst [vmem:[#allocation2 + $0x48] sm:$0xff] %v3069_v36  ;;  %4530 = vrcp.f32 %v5979_v12  ;;  %v1169_v55 = vadd.f32 %v5678_v13, %v1093_v11  ;;  %v1074_v59 = vmul.f32 %v5622_v47, %v941_v4  ;;  %v5995_v24 = vadd.f32 1.0, %v4519_v42 }
 0x15f   : > { %v5998_v61 = vadd.f32 %v5678_v13, %v1110_v20  ;;  %4532 = vpow2.f32 %v4191_v41  ;;  %vm2246_vm0 = vweird.f32 %v5954_v23  ;;  %v1635_v34 = vand.u32 2147483647, %v5977_v54 }
 0x160   : > { %v4523_v19 = vpop.eup %4522  ;;  %4534 = vpow2.f32 %v4150_v60  ;;  %v4172_v22 = vmul.f32 -1.442695, %v1149_v44  ;;  %vm6005_vm1 = vcmp.eq.f32.partialorder %v2250_v38, 8.507059e+37  ;;  %v1637_v35 = vand.u32 2147483648, %v5977_v54 }
 0x161   : > { %v6002_v45 = vpop.eup %4524  ;;  %v2242_v30 = vmul.f32 %v4523_v19, %v5954_v23  ;;  %v4151_v29 = vmul.f32 -1.442695, %v5989_v33  ;;  %v2253_v15 = vor.u32 1.1754944e-38, %v2252_v17  ;;  %v1965_v25 = vand.u32 2147483647, %v5979_v12  ;;  %v6041_v17 = vpop.permute.xlu0 %2782 }
 0x162   : > { %v6013_v48 = vpop.eup %4526  ;;  %v4192_v39 = vmul.f32 -1.442695, %v1169_v55  ;;  %v6017_v40 = vadd.f32 %v5678_v13, %v1074_v59  ;;  %vm2247_vm2 = vweird.f32 %v4523_v19  ;;  %vm1631_vm3 = vweird.f32 %v5977_v54 }
 0x163   : > { %v4529_v28 = vpop.eup %4528  ;;  %v2243_v0 = vsub.f32 1.0, %v2242_v30  ;;  %vm1961_vm4 = vweird.f32 %v5979_v12  ;;  %vm6022_vm5 = vcmp.eq.f32.partialorder %v1635_v34, 8.507059e+37  ;;  %v1967_v10 = vand.u32 2147483648, %v5979_v12  ;;  %vm6033_vm6 = vmor %vm2246_vm0, %vm2247_vm2 }
 0x164   : > { %v4531_v18 = vpop.eup %4530  ;;  %v1627_v36 = vmul.f32 %v4529_v28, %v5977_v54  ;;  %v4173_v20 = vmul.f32 -1.442695, %v6017_v40  ;;  %v1638_v4 = vor.u32 1.1754944e-38, %v1637_v35  ;;  %4536 = vpow2.f32 %v4151_v29 }
 0x165   : > { %v6028_v13 = vpop.eup %4532  ;;  %v2244_v41 = vmul.f32 %v4523_v19, %v2243_v0  ;;  %v1957_v42 = vmul.f32 %v4531_v18, %v5979_v12  ;;  %vm6037_vm7 = vcmp.eq.f32.partialorder %v1965_v25, 8.507059e+37  ;;  %4538 = vpow2.f32 %v4172_v22 }
 0x166   : > { %v4535_v60 = vpop.eup %4534  ;;  %v1628_v57 = vsub.f32 1.0, %v1627_v36  ;;  %4540 = vpow2.f32 %v4173_v20  ;;  %vm1632_vm8 = vweird.f32 %v4529_v28  ;;  %v1968_v30 = vor.u32 1.1754944e-38, %v1967_v10  ;;  %v2808_v20 = vpop.permute.xlu1 %2807 }
 0x167   : > { %v2245_v55 = vadd.f32 %v4523_v19, %v2244_v41  ;;  %v1958_v59 = vsub.f32 1.0, %v1957_v42  ;;  %v1415_v7 = vadd.f32 1.0, %v4535_v60  ;;  %vm1962_vm9 = vweird.f32 %v4531_v18  ;;  %vm1633_vm10 = vmor %vm1631_vm3, %vm1632_vm8 }
 0x168   : > { %v1629_v34 = vmul.f32 %v4529_v28, %v1628_v57  ;;  %vm1963_vm11 = vmor %vm1961_vm4, %vm1962_vm9 }
 0x169   : > { %v2249_v23 = vsel %vm6033_vm6, %v4523_v19, %v2245_v55  ;;  %v1959_v35 = vmul.f32 %v4531_v18, %v1958_v59  ;;  %4542 = vrcp.f32 %v1415_v7  ;;  %v1650_v19 = vand.u32 2147483647, %v1415_v7  ;;  %v2798_v59 = vpop.permute.xlu0 %2797 }
 0x16a   : > { %v2254_v29 = vsel %vm6005_vm1, %v2253_v15, %v2249_v23  ;;  %v1630_v25 = vadd.f32 %v4529_v28, %v1629_v34  ;;  %v4537_v0 = vpop.eup %4536  ;;  %4544 = vpow2.f32 %v4192_v39  ;;  %v1652_v54 = vand.u32 2147483648, %v1415_v7  ;;  %v2878_v23 = vpop.permute.xlu2 %2877 }
 0x16b   : > { %v2607_v22 = vmul.f32 %v2254_v29, %v5901_v32  ;;  %v1960_v36 = vadd.f32 %v4531_v18, %v1959_v35  ;;  %v4539_v10 = vpop.eup %4538  ;;  %v6052_v42 = vadd.f32 1.0, %v4537_v0  ;;  %vm1646_vm12 = vweird.f32 %v1415_v7 }
 0x16c   : > { %v1634_v41 = vsel %vm1633_vm10, %v4529_v28, %v1630_v25  ;;  %v4541_v47 = vpop.eup %4540  ;;  %v1437_v57 = vadd.f32 1.0, %v4539_v10  ;;  %vm6068_vm13 = vcmp.eq.f32.partialorder %v1650_v19, 8.507059e+37  ;;  %v1653_v38 = vor.u32 1.1754944e-38, %v1652_v54  ;;  %v6079_v25 = vld [vmem:[%s7033_s3] ss:$0 sm:$0xff] }
 0x16d   : > { %v3111_v15 = vmul.f32 %v5736_v14, %v2607_v22  ;;  %v1639_v32 = vsel %vm6022_vm5, %v1638_v4, %v1634_v41  ;;  %v1964_v60 = vsel %vm1963_vm11, %v4531_v18, %v1960_v36  ;;  %4546 = vrcp.f32 %v6052_v42  ;;  %v6088_v10 = vld [vmem:[%s7034_s4] ss:$0 sm:$0xff] }
 0x16e   : > { %v2566_v44 = vmul.f32 %v1639_v32, %v5920_v37  ;;  %v1969_v39 = vsel %vm6037_vm7, %v1968_v30, %v1964_v60  ;;  %v6063_v11 = vadd.f32 1.0, %v4541_v47  ;;  %v1667_v34 = vand.u32 2147483648, %v6052_v42  ;;  %v2838_v29 = vpop.permute.xlu1 %2837 }
 0x16f   : > { %v4543_v28 = vpop.eup %4542  ;;  %3183 = vst [vmem:[#allocation2 + $0x198] sm:$0xff] %v3111_v15  ;;  %v2588_v12 = vmul.f32 %v1969_v39, %v5930_v21  ;;  %v1665_v30 = vand.u32 2147483647, %v6052_v42  ;;  %vm1661_vm15 = vweird.f32 %v6052_v42  ;;  %v1475_v23 = vadd.f32 1.0, %v6013_v48 }
 0x170   : > { %v3070_v55 = vmul.f32 %v5120_v58, %v2566_v44  ;;  %v1642_v14 = vmul.f32 %v4543_v28, %v1415_v7  ;;  %v6065_v18 = vpop.eup %4544  ;;  %4548 = vrcp.f32 %v6063_v11  ;;  %v991_v58 = vpop.f32.mrf.mxu2  ;;  %vm1647_vm14 = vweird.f32 %v4543_v28 }
 0x171   : > { %v3092_v37 = vmul.f32 %v5579_v50, %v2588_v12  ;;  %4550 = vrcp.f32 %v1437_v57  ;;  %v1094_v0 = vmul.f32 %v6079_v25, %v991_v58  ;;  %v1668_v20 = vor.u32 1.1754944e-38, %v1667_v34  ;;  %vm1648_vm0 = vmor %vm1646_vm12, %vm1647_vm14  ;;  %v2828_v39 = vpop.permute.xlu0 %2827  ;;  %v888_v57 = vpop.f32.mrf.mxu0 }
 0x172   : > { %3142 = vst [vmem:[#allocation2 + $0x50] sm:$0xff] %v3070_v55  ;;  %v1643_v21 = vsub.f32 1.0, %v1642_v14  ;;  %vm1991_vm2 = vweird.f32 %v6063_v11  ;;  %v1995_v14 = vand.u32 2147483647, %v6063_v11  ;;  %v1053_v59 = vmul.f32 %v6079_v25, %v888_v57 }
 0x173   : > { %3164 = vst [vmem:[#allocation2 + $0x100] sm:$0xff] %v3092_v37  ;;  %v4547_v50 = vpop.eup %4546  ;;  %v6091_v41 = vadd.f32 %v6088_v10, %v1094_v0  ;;  %v1997_v4 = vand.u32 2147483648, %v6063_v11  ;;  %v4209_v34 = vmul.f32 -1.442695, %v5998_v61  ;;  %vm1666_vm5 = vcmp.eq.f32.partialorder %v1665_v30, 8.507059e+37  ;;  %v943_v0 = vpop.f32.mrf.mxu1 }
 0x174   : > { %v1644_v35 = vmul.f32 %v4543_v28, %v1643_v21  ;;  %v1657_v36 = vmul.f32 %v4547_v50, %v6052_v42  ;;  %vm1662_vm1 = vweird.f32 %v4547_v50  ;;  %v3257_v21 = vld [vmem:[#allocation2 + $0x1] sm:$0xff]  ;;  %v1075_v61 = vmul.f32 %v6079_v25, %v943_v0 }
 0x175   : > { %v4193_v12 = vmul.f32 -1.442695, %v6091_v41  ;;  %vm1663_vm3 = vmor %vm1661_vm15, %vm1662_vm1  ;;  %v6119_v30 = vmul.f32 %v5963_v27, %v3257_v21  ;;  %vm1996_vm7 = vcmp.eq.f32.partialorder %v1995_v14, 8.507059e+37 }
 0x176   : > { %v1645_v22 = vadd.f32 %v4543_v28, %v1644_v35  ;;  %v4549_v19 = vpop.eup %4548  ;;  %v1658_v15 = vsub.f32 1.0, %v1657_v36 }
 0x177   : > { %v4551_v32 = vpop.eup %4550  ;;  %v1987_v7 = vmul.f32 %v4549_v19, %v6063_v11  ;;  %4552 = vpow2.f32 %v4193_v12  ;;  %vm1992_vm4 = vweird.f32 %v4549_v19  ;;  %v1457_v11 = vadd.f32 1.0, %v6065_v18 }
 0x178   : > { %v1649_v47 = vsel %vm1648_vm0, %v4543_v28, %v1645_v22  ;;  %v1659_v44 = vmul.f32 %v4547_v50, %v1658_v15  ;;  %4554 = vrcp.f32 %v5995_v24  ;;  %v1456_v22 = vadd.f32 1.0, %v6028_v13  ;;  %vm1993_vm6 = vmor %vm1991_vm2, %vm1992_vm4 }
 0x179   : > { %v1654_v60 = vsel %vm6068_vm13, %v1653_v38, %v1649_v47  ;;  %v1988_v55 = vsub.f32 1.0, %v1987_v7  ;;  %v6106_v38 = vadd.f32 %v6088_v10, %v1053_v59  ;;  %v1998_v24 = vor.u32 1.1754944e-38, %v1997_v4 }
 0x17a   : > { %v2567_v54 = vmul.f32 %v1654_v60, %v5957_v51  ;;  %v1660_v37 = vadd.f32 %v4547_v50, %v1659_v44  ;;  %v4712_v60 = vld [vmem:[#allocation2 + $0x150] sm:$0xff]  ;;  %v4714_v44 = vld [vmem:[#allocation2 + $0xc0] sm:$0xff] }
 0x17b   : > { %v1989_v51 = vmul.f32 %v4549_v19, %v1988_v55  ;;  %v4152_v42 = vmul.f32 -1.442695, %v6106_v38  ;;  %v6126_v7 = vmul.f32 %v4712_v60, %v5965_v16  ;;  %v6132_v39 = vmul.f32 %v4714_v44, %v5403_v3 }
 0x17c   : > { %v3071_v28 = vmul.f32 %v5199_v63, %v2567_v54  ;;  %v2978_v63 = vpop.permute.xlu2 %2977  ;;  %v1664_v58 = vsel %vm1663_vm3, %v4547_v50, %v1660_v37  ;;  %v4713_v54 = vld [vmem:[#allocation2 + $0x10] sm:$0xff]  ;;  %v1469_v55 = vadd.f32 1.0, %v5764_v49 }
 0x17d   : > { %v1669_v35 = vsel %vm1666_vm5, %v1668_v20, %v1664_v58  ;;  %v1990_v29 = vadd.f32 %v4549_v19, %v1989_v51  ;;  %4556 = vpow2.f32 %v4152_v42  ;;  %v4553_v50 = vpop.eup %4552  ;;  %v946_v51 = vpop.f32.mrf.mxu1 }
 0x17e   : > { %3143 = vst [vmem:[#allocation2 + $0x58] sm:$0xff] %v3071_v28  ;;  %v2568_v36 = vmul.f32 %v1669_v35, %v5989_v33  ;;  %4558 = vpow2.f32 %v4209_v34  ;;  %v1151_v33 = vadd.f32 %v6088_v10, %v1075_v61  ;;  %v1458_v15 = vadd.f32 1.0, %v4553_v50  ;;  %v4555_v32 = vpop.eup %4554  ;;  %v2868_v61 = vpop.permute.xlu1 %2867 }
 0x17f   : > { %v1994_v48 = vsel %vm1993_vm6, %v4549_v19, %v1990_v29  ;;  %4560 = vrcp.f32 %v1475_v23 }
 0x180   : > { %v3072_v20 = vmul.f32 %v5436_v53, %v2568_v36  ;;  %v1999_v13 = vsel %vm1996_vm7, %v1998_v24, %v1994_v48  ;;  %4562 = vrcp.f32 %v1456_v22  ;;  %v4174_v19 = vmul.f32 -1.442695, %v1151_v33  ;;  %v993_v48 = vpop.f32.mrf.mxu2 }
 0x181   : > { %v2590_v47 = vmul.f32 %v1999_v13, %v6017_v40  ;;  %v6129_v53 = vmul.f32 %v4713_v54, %v5415_v6  ;;  %4564 = vrcp.f32 %v1458_v15  ;;  %v2295_v40 = vand.u32 2147483647, %v1458_v15 }
 0x182   : > { %3144 = vst [vmem:[#allocation2 + $0x60] sm:$0xff] %v3072_v20  ;;  %v2297_v12 = vand.u32 2147483648, %v1458_v15  ;;  %4566 = vpow2.f32 %v4174_v19  ;;  %vm2291_vm8 = vweird.f32 %v1458_v15 }
 0x183   : > { %v3094_v18 = vmul.f32 %v6010_v52, %v2590_v47  ;;  %v4557_v57 = vpop.eup %4556  ;;  %4568 = vrcp.f32 %v1457_v11  ;;  %vm6138_vm9 = vcmp.eq.f32.partialorder %v2295_v40, 8.507059e+37  ;;  %v1095_v11 = vmul.f32 %v6079_v25, %v993_v48  ;;  %v2858_v40 = vpop.permute.xlu0 %2857 }
 0x184   : > { %v6136_v14 = vpop.eup %4558  ;;  %v3008_v59 = vpop.permute.xlu2 %3007  ;;  %v1417_v28 = vadd.f32 1.0, %v4557_v57  ;;  %v2298_v52 = vor.u32 1.1754944e-38, %v2297_v12 }
 0x185   : > { %3166 = vst [vmem:[#allocation2 + $0x110] sm:$0xff] %v3094_v18  ;;  %v4561_v37 = vpop.eup %4560  ;;  %v1171_v54 = vadd.f32 %v6088_v10, %v1095_v11  ;;  %v891_v57 = vpop.f32.mrf.mxu0 }
 0x186   : > { %v4563_v4 = vpop.eup %4562  ;;  %4570 = vrcp.f32 %v1417_v28  ;;  %v1682_v34 = vand.u32 2147483648, %v1417_v28  ;;  %v1680_v49 = vand.u32 2147483647, %v1417_v28  ;;  %vm1676_vm11 = vweird.f32 %v1417_v28  ;;  %v3337_v37 = vld [vmem:[#allocation2 + $0x151] sm:$0xff]  ;;  %v948_v24 = vpop.f32.mrf.mxu1 }
 0x187   : > { %v4565_v21 = vpop.eup %4564  ;;  %v4194_v12 = vmul.f32 -1.442695, %v1171_v54  ;;  %v1077_v54 = vmul.f32 %v6079_v25, %v948_v24 }
 0x188   : > { %v4567_v63 = vpop.eup %4566  ;;  %v2287_v58 = vmul.f32 %v4565_v21, %v1458_v15  ;;  %vm2292_vm10 = vweird.f32 %v4565_v21  ;;  %v1683_v42 = vor.u32 1.1754944e-38, %v1682_v34  ;;  %vm6143_vm13 = vcmp.eq.f32.partialorder %v1680_v49, 8.507059e+37  ;;  %v4715_v49 = vld [vmem:[#allocation2 + $0x160] sm:$0xff] }
 0x189   : > { %v4569_v23 = vpop.eup %4568  ;;  %v1439_v35 = vadd.f32 1.0, %v4567_v63  ;;  %vm2293_vm12 = vmor %vm2291_vm8, %vm2292_vm10 }
 0x18a   : > { %v2288_v29 = vsub.f32 1.0, %v2287_v58  ;;  %v6174_v23 = vmul.f32 %v4715_v49, %v5965_v16 }
 0x18b   : > { %4572 = vrcp.f32 %v1439_v35  ;;  %v6177_v35 = vadd.f32 1.0, %v6002_v45  ;;  %v2963_v40 = vpop.permute.xlu0 %2962 }
 0x18c   : > { %v4571_v0 = vpop.eup %4570  ;;  %v2289_v22 = vmul.f32 %v4565_v21, %v2288_v29  ;;  %v3038_v20 = vpop.permute.xlu2 %3037  ;;  %4574 = vpow2.f32 %v4194_v12 }
 0x18d   : > { %v1672_v36 = vmul.f32 %v4571_v0, %v1417_v28  ;;  %vm1677_vm14 = vweird.f32 %v4571_v0  ;;  %4576 = vrcp.f32 %v1469_v55  ;;  %v996_v29 = vpop.f32.mrf.mxu2 }
 0x18e   : > { %v2290_v50 = vadd.f32 %v4565_v21, %v2289_v22  ;;  %vm1678_vm15 = vmor %vm1676_vm11, %vm1677_vm14  ;;  %v6180_v22 = vadd.f32 1.0, %v6136_v14  ;;  %v1096_v20 = vmul.f32 %v6079_v25, %v996_v29 }
 0x18f   : > { %v1673_v13 = vsub.f32 1.0, %v1672_v36  ;;  %v893_v36 = vpop.f32.mrf.mxu0 }
 0x190   : > { %v2294_v33 = vsel %vm2293_vm12, %v4565_v21, %v2290_v50  ;;  %v6166_v21 = vmul.f32 %v5969_v1, %v3337_v37  ;;  %v1055_v45 = vmul.f32 %v6079_v25, %v893_v36 }
 0x191   : > { %v4573_v47 = vpop.eup %4572  ;;  %v2299_v32 = vsel %vm6138_vm9, %v2298_v52, %v2294_v33  ;;  %v1674_v60 = vmul.f32 %v4571_v0, %v1673_v13  ;;  %v1076_v52 = vmul.f32 %v6079_v25, %v946_v51 }
 0x192   : > { %v2610_v15 = vmul.f32 %v2299_v32, %v6091_v41  ;;  %v1054_v41 = vmul.f32 %v6079_v25, %v891_v57  ;;  %v4575_v58 = vpop.eup %4574  ;;  %v6185_v47 = vadd.f32 %v6088_v10, %v1096_v20 }
 0x193   : > { %v1675_v19 = vadd.f32 %v4571_v0, %v1674_v60  ;;  %v6169_v34 = vadd.f32 %v6088_v10, %v1076_v52  ;;  %v6188_v60 = vadd.f32 %v6088_v10, %v1055_v45  ;;  %v951_v52 = vpop.f32.mrf.mxu1 }
 0x194   : > { %v6153_v44 = vmul.f32 %v5090_v43, %v2610_v15  ;;  %v6163_v28 = vadd.f32 %v6088_v10, %v1054_v41  ;;  %v2968_v15 = vpop.permute.xlu1 %2967  ;;  %v1078_v29 = vmul.f32 %v6079_v25, %v951_v52 }
 0x195   : > { %v1679_v18 = vsel %vm1678_vm15, %v4571_v0, %v1675_v19  ;;  %v4175_v63 = vmul.f32 -1.442695, %v6169_v34  ;;  %v4577_v0 = vpop.eup %4576  ;;  %v998_v14 = vpop.f32.mrf.mxu2  ;;  %v4195_v19 = vmul.f32 -1.442695, %v6185_v47  ;;  %v4154_v12 = vmul.f32 -1.442695, %v6188_v60 }
 0x196   : > { %v1684_v59 = vsel %vm6143_vm13, %v1683_v42, %v1679_v18  ;;  %v3058_v42 = vpop.permute.xlu2 %3057  ;;  %v1097_v57 = vmul.f32 %v6079_v25, %v998_v14  ;;  %v6209_v45 = vadd.f32 %v6088_v10, %v1078_v29 }
 0x197   : > { %v2569_v4 = vmul.f32 %v1684_v59, %v6106_v38  ;;  %v4153_v38 = vmul.f32 -1.442695, %v6163_v28  ;;  %v896_v51 = vpop.f32.mrf.mxu0 }
 0x199   : > { %v3073_v43 = vmul.f32 %v5316_v62, %v2569_v4  ;;  %4578 = vpow2.f32 %v4153_v38  ;;  %v1459_v62 = vadd.f32 1.0, %v4575_v58  ;;  %v1173_v58 = vadd.f32 %v6088_v10, %v1097_v57  ;;  %v4716_v4 = vld [vmem:[%s7035_s5] sm:$0xff] }
 0x19a   : > { %4580 = vpow2.f32 %v4175_v63  ;;  %v6199_v63 = vadd.f32 %v6088_v10, %v1077_v54 }
 0x19b   : > { %3145 = vst [vmem:[#allocation2 + $0x68] sm:$0xff] %v3073_v43  ;;  %4582 = vrcp.f32 %v1459_v62  ;;  %v1056_v62 = vmul.f32 %v6079_v25, %v896_v51 }
 0x19c   : > { %v4176_v0 = vmul.f32 -1.442695, %v6199_v63 }
 0x19f   : > { %v4579_v55 = vpop.eup %4578 }
 0x1a0   : > { %v4581_v61 = vpop.eup %4580  ;;  %v1418_v48 = vadd.f32 1.0, %v4579_v55  ;;  %v4196_v55 = vmul.f32 -1.442695, %v1173_v58 }
 0x1a1   : > { %v1440_v50 = vadd.f32 1.0, %v4581_v61  ;;  %v4583_v13 = vpop.eup %4582  ;;  %v6206_v61 = vadd.f32 %v6088_v10, %v1056_v62 }
 0x1a2   : > { %4584 = vrcp.f32 %v1418_v48  ;;  %v1695_v33 = vand.u32 2147483647, %v1418_v48  ;;  %v1697_v11 = vand.u32 2147483648, %v1418_v48  ;;  %vm1691_vm1 = vweird.f32 %v1418_v48 }
 0x1a3   : > { %4586 = vrcp.f32 %v1440_v50  ;;  %vm2021_vm0 = vweird.f32 %v1440_v50  ;;  %v2025_v32 = vand.u32 2147483647, %v1440_v50  ;;  %v2027_v41 = vand.u32 2147483648, %v1440_v50 }
 0x1a4   : > { %vm6194_vm2 = vcmp.eq.f32.partialorder %v1695_v33, 8.507059e+37  ;;  %4588 = vpow2.f32 %v4195_v19  ;;  %v1698_v36 = vor.u32 1.1754944e-38, %v1697_v11  ;;  %v3258_v11 = vld [vmem:[#allocation2 + $0x11] sm:$0xff] }
 0x1a5   : > { %4590 = vpow2.f32 %v4154_v12  ;;  %vm2026_vm6 = vcmp.eq.f32.partialorder %v2025_v32, 8.507059e+37  ;;  %v2028_v54 = vor.u32 1.1754944e-38, %v2027_v41  ;;  %v6231_v41 = vperm.slane %v4716_v4, 4 }
 0x1a6   : > { %4592 = vpow2.f32 %v4176_v0 }
 0x1a7   : > { %4594 = vpow2.f32 %v4196_v55 }
 0x1a8   : > { %v4585_v18 = vpop.eup %4584 }
 0x1a9   : > { %v4587_v59 = vpop.eup %4586  ;;  %v1687_v37 = vmul.f32 %v4585_v18, %v1418_v48  ;;  %vm1692_vm3 = vweird.f32 %v4585_v18  ;;  %v4155_v48 = vmul.f32 -1.442695, %v6206_v61 }
 0x1aa   : > { %v2017_v43 = vmul.f32 %v4587_v59, %v1440_v50  ;;  %vm2022_vm4 = vweird.f32 %v4587_v59  ;;  %v4589_v20 = vpop.eup %4588  ;;  %vm1693_vm5 = vmor %vm1691_vm1, %vm1692_vm3  ;;  %v6226_v50 = vmul.f32 %v5963_v27, %v3258_v11 }
 0x1ab   : > { %v1688_v38 = vsub.f32 1.0, %v1687_v37  ;;  %v4591_v33 = vpop.eup %4590  ;;  %v6213_v15 = vadd.f32 1.0, %v4589_v20  ;;  %vm2023_vm7 = vmor %vm2021_vm0, %vm2022_vm4 }
 0x1ac   : > { %v2018_v49 = vsub.f32 1.0, %v2017_v43  ;;  %v6216_v40 = vadd.f32 1.0, %v4591_v33 }
 0x1ad   : > { %v1689_v42 = vmul.f32 %v4585_v18, %v1688_v38  ;;  %4596 = vrcp.f32 %v6213_v15  ;;  %v2325_v52 = vand.u32 2147483647, %v6213_v15  ;;  %vm2321_vm8 = vweird.f32 %v6213_v15 }
 0x1ae   : > { %v2019_v24 = vmul.f32 %v4587_v59, %v2018_v49  ;;  %4598 = vrcp.f32 %v6177_v35  ;;  %v4593_v35 = vpop.eup %4592  ;;  %v4717_v49 = vld [vmem:[#allocation2 + $0xd0] sm:$0xff]  ;;  %v1712_v29 = vand.u32 2147483648, %v6216_v40  ;;  %vm1706_vm10 = vweird.f32 %v6216_v40 }
 0x1af   : > { %v1690_v13 = vadd.f32 %v4585_v18, %v1689_v42  ;;  %4600 = vrcp.f32 %v6216_v40  ;;  %v4595_v43 = vpop.eup %4594  ;;  %v6245_v58 = vadd.f32 1.0, %v4593_v35  ;;  %v6248_v62 = vmul.f32 %v4717_v49, %v5403_v3 }
 0x1b0   : > { %v2020_v14 = vadd.f32 %v4587_v59, %v2019_v24  ;;  %4602 = vrcp.f32 %v6180_v22  ;;  %v1461_v22 = vadd.f32 1.0, %v4595_v43  ;;  %vm6256_vm9 = vcmp.eq.f32.partialorder %v2325_v52, 8.507059e+37  ;;  %v898_v43 = vpop.f32.mrf.mxu0 }
 0x1b1   : > { %v1694_v19 = vsel %vm1693_vm5, %v4585_v18, %v1690_v13  ;;  %v4177_v18 = vmul.f32 -1.442695, %v6209_v45  ;;  %4604 = vpow2.f32 %v4155_v48  ;;  %v2040_v11 = vand.u32 2147483647, %v6245_v58 }
 0x1b2   : > { %v1699_v12 = vsel %vm6194_vm2, %v1698_v36, %v1694_v19  ;;  %v2024_v57 = vsel %vm2023_vm7, %v4587_v59, %v2020_v14  ;;  %v2042_v36 = vand.u32 2147483648, %v6245_v58  ;;  %vm2036_vm14 = vweird.f32 %v6245_v58 }
 0x1b3   : > { %v2570_v32 = vmul.f32 %v1699_v12, %v6163_v28  ;;  %v2029_v37 = vsel %vm2026_vm6, %v2028_v54, %v2024_v57  ;;  %v3656_v28 = vld [vmem:[%s7038_s8 + $0x78] sm:$0xff]  ;;  %4606 = vpow2.f32 %v4177_v18  ;;  %v1713_v12 = vor.u32 1.1754944e-38, %v1712_v29 }
 0x1b4   : > { %v2592_v59 = vmul.f32 %v2029_v37, %v6169_v34  ;;  %3658 = vmatpush.msrb.mxu1 %v3656_v28  ;;  %v2327_v34 = vand.u32 2147483648, %v6213_v15  ;;  %4608 = vrcp.f32 %v6245_v58  ;;  %v2043_v37 = vor.u32 1.1754944e-38, %v2042_v36 }
 0x1b5   : > { %v3074_v51 = vmul.f32 %v5638_v8, %v2570_v32  ;;  %v4597_v8 = vpop.eup %4596  ;;  %4610 = vrcp.f32 %v1461_v22  ;;  %vm6274_vm0 = vcmp.eq.f32.partialorder %v2040_v11, 8.507059e+37 }
 0x1b6   : > { %v6242_v38 = vmul.f32 %v5050_v26, %v2592_v59  ;;  %v1710_v26 = vand.u32 2147483647, %v6216_v40  ;;  %v4599_v42 = vpop.eup %4598  ;;  %v2317_v0 = vmul.f32 %v4597_v8, %v6213_v15  ;;  %v2328_v20 = vor.u32 1.1754944e-38, %v2327_v34  ;;  %v2998_v34 = vpop.permute.xlu1 %2997 }
 0x1b7   : > { %3146 = vst [vmem:[#allocation2 + $0x70] sm:$0xff] %v3074_v51  ;;  %v4601_v24 = vpop.eup %4600  ;;  %vm2322_vm11 = vweird.f32 %v4597_v8  ;;  %v953_v34 = vpop.f32.mrf.mxu1 }
 0x1b8   : > { %3168 = vst [vmem:[#allocation2 + $0x120] sm:$0xff] %v6242_v38  ;;  %v4603_v13 = vpop.eup %4602  ;;  %v2318_v33 = vsub.f32 1.0, %v2317_v0  ;;  %v1702_v14 = vmul.f32 %v4601_v24, %v6216_v40  ;;  %vm1707_vm12 = vweird.f32 %v4601_v24  ;;  %vm6264_vm13 = vcmp.eq.f32.partialorder %v1710_v26, 8.507059e+37  ;;  %vm2323_vm15 = vmor %vm2321_vm8, %vm2322_vm11 }
 0x1b9   : > { %v4605_v19 = vpop.eup %4604  ;;  %vm1708_vm2 = vmor %vm1706_vm10, %vm1707_vm12 }
 0x1ba   : > { %v4607_v57 = vpop.eup %4606  ;;  %v2319_v48 = vmul.f32 %v4597_v8, %v2318_v33  ;;  %v1703_v32 = vsub.f32 1.0, %v1702_v14  ;;  %v1420_v18 = vadd.f32 1.0, %v4605_v19 }
 0x1bb   : > { %v4609_v4 = vpop.eup %4608  ;;  %v6271_v59 = vadd.f32 1.0, %v4607_v57  ;;  %v2988_v57 = vpop.permute.xlu0 %2987 }
 0x1bc   : > { %v4611_v28 = vpop.eup %4610  ;;  %v2320_v35 = vadd.f32 %v4597_v8, %v2319_v48  ;;  %v1704_v51 = vmul.f32 %v4601_v24, %v1703_v32  ;;  %v2032_v52 = vmul.f32 %v4609_v4, %v6245_v58  ;;  %vm2037_vm1 = vweird.f32 %v4609_v4 }
 0x1bd   : > { %4612 = vrcp.f32 %v1420_v18  ;;  %v1727_v29 = vand.u32 2147483648, %v1420_v18  ;;  %v1725_v13 = vand.u32 2147483647, %v1420_v18  ;;  %vm1721_vm3 = vweird.f32 %v1420_v18  ;;  %vm2038_vm4 = vmor %vm2036_vm14, %vm2037_vm1 }
 0x1be   : > { %v2324_v49 = vsel %vm2323_vm15, %v4597_v8, %v2320_v35  ;;  %v1705_v22 = vadd.f32 %v4601_v24, %v1704_v51  ;;  %v2033_v26 = vsub.f32 1.0, %v2032_v52  ;;  %4614 = vrcp.f32 %v6271_v59  ;;  %v3028_v28 = vpop.permute.xlu1 %3027  ;;  %v1001_v52 = vpop.f32.mrf.mxu2 }
 0x1bf   : > { %v2329_v15 = vsel %vm6256_vm9, %v2328_v20, %v2324_v49  ;;  %v2055_v40 = vand.u32 2147483647, %v6271_v59  ;;  %vm6297_vm5 = vcmp.eq.f32.partialorder %v1725_v13, 8.507059e+37  ;;  %vm2051_vm7 = vweird.f32 %v6271_v59  ;;  %v6333_v13 = vld [vmem:[%s7034_s4] ss:$0 sm:$0xff] }
 0x1c0   : > { %v2612_v42 = vmul.f32 %v2329_v15, %v6185_v47  ;;  %v1709_v0 = vsel %vm1708_vm2, %v4601_v24, %v1705_v22  ;;  %v2034_v36 = vmul.f32 %v4609_v4, %v2033_v26  ;;  %v1728_v47 = vor.u32 1.1754944e-38, %v1727_v29 }
 0x1c1   : > { %v1714_v8 = vsel %vm6264_vm13, %v1713_v12, %v1709_v0  ;;  %v2057_v24 = vand.u32 2147483648, %v6271_v59  ;;  %vm6306_vm8 = vcmp.eq.f32.partialorder %v2055_v40, 8.507059e+37  ;;  %v1098_v22 = vmul.f32 %v6079_v25, %v1001_v52 }
 0x1c2   : > { %v6288_v33 = vmul.f32 %v5239_v56, %v2612_v42  ;;  %v2571_v55 = vmul.f32 %v1714_v8, %v6188_v60  ;;  %v2035_v20 = vadd.f32 %v4609_v4, %v2034_v36  ;;  %v1057_v26 = vmul.f32 %v6079_v25, %v898_v43 }
 0x1c3   : > { %v4613_v14 = vpop.eup %4612 }
 0x1c4   : > { %v3075_v11 = vmul.f32 %v5471_v5, %v2571_v55  ;;  %v2039_v19 = vsel %vm2038_vm4, %v4609_v4, %v2035_v20  ;;  %v1717_v54 = vmul.f32 %v4613_v14, %v1420_v18  ;;  %v4615_v60 = vpop.eup %4614  ;;  %vm1722_vm6 = vweird.f32 %v4613_v14 }
 0x1c5   : > { %v2044_v12 = vsel %vm6274_vm0, %v2043_v37, %v2039_v19  ;;  %v2047_v5 = vmul.f32 %v4615_v60, %v6271_v59  ;;  %vm2052_vm9 = vweird.f32 %v4615_v60  ;;  %v2058_v4 = vor.u32 1.1754944e-38, %v2057_v24  ;;  %vm1723_vm10 = vmor %vm1721_vm3, %vm1722_vm6  ;;  %v3259_v24 = vld [vmem:[#allocation2 + $0x21] sm:$0xff] }
 0x1c6   : > { %3147 = vst [vmem:[#allocation2 + $0x78] sm:$0xff] %v3075_v11  ;;  %v2593_v58 = vmul.f32 %v2044_v12, %v6199_v63  ;;  %v1718_v48 = vsub.f32 1.0, %v1717_v54  ;;  %vm2053_vm11 = vmor %vm2051_vm7, %vm2052_vm9  ;;  %v6327_v18 = vadd.f32 %v6088_v10, %v1098_v22  ;;  %v6336_v8 = vadd.f32 %v6333_v13, %v1057_v26  ;;  %v3260_v54 = vld [vmem:[#allocation2 + $0x31] sm:$0xff]  ;;  %v1003_v56 = vpop.f32.mrf.mxu2  ;;  %v901_v12 = vpop.f32.mrf.mxu0 }
 0x1c7   : > { %v2048_v51 = vsub.f32 1.0, %v2047_v5  ;;  %v6368_v5 = vmul.f32 %v5963_v27, %v3260_v54  ;;  %v6380_v26 = vmul.f32 %v6231_v41, %v6153_v44 }
 0x1c8   : > { %v3097_v35 = vmul.f32 %v5394_v2, %v2593_v58  ;;  %v1719_v37 = vmul.f32 %v4613_v14, %v1718_v48  ;;  %v6318_v2 = vld [vmem:[%s7033_s3] ss:$0 sm:$0xff]  ;;  %v4197_v10 = vmul.f32 -1.442695, %v6327_v18  ;;  %v4721_v58 = vld [vmem:[#allocation2 + $0x30] sm:$0xff] }
 0x1c9   : > { %v2049_v49 = vmul.f32 %v4615_v60, %v2048_v51  ;;  %v1079_v42 = vmul.f32 %v6318_v2, %v953_v34  ;;  %v6362_v57 = vmul.f32 %v4721_v58, %v5415_v6  ;;  %v4722_v48 = vld [vmem:[#allocation2 + $0x170] sm:$0xff]  ;;  %v1099_v32 = vmul.f32 %v6318_v2, %v1003_v56  ;;  %v956_v51 = vpop.f32.mrf.mxu1  ;;  %v3053_v34 = vpop.permute.xlu1 %3052 }
 0x1ca   : > { %3169 = vst [vmem:[#allocation2 + $0x128] sm:$0xff] %v3097_v35  ;;  %v1720_v63 = vadd.f32 %v4613_v14, %v1719_v37  ;;  %4616 = vpow2.f32 %v4197_v10  ;;  %v1058_v28 = vmul.f32 %v6318_v2, %v901_v12 }
 0x1cb   : > { %v2050_v29 = vadd.f32 %v4615_v60, %v2049_v49  ;;  %v6339_v55 = vadd.f32 %v6333_v13, %v1079_v42  ;;  %v4723_v49 = vld [vmem:[#allocation2 + $0x40] sm:$0xff] }
 0x1cc   : > { %v1724_v15 = vsel %vm1723_vm10, %v4613_v14, %v1720_v63  ;;  %v3018_v14 = vpop.permute.xlu0 %3017  ;;  %v1175_v63 = vadd.f32 %v6333_v13, %v1099_v32  ;;  %v6376_v22 = vmul.f32 %v4723_v49, %v5415_v6  ;;  %v6392_v42 = vadd.f32 %v6333_v13, %v1058_v28 }
 0x1cd   : > { %v1729_v0 = vsel %vm6297_vm5, %v1728_v47, %v1724_v15  ;;  %v2054_v36 = vsel %vm2053_vm11, %v4615_v60, %v2050_v29  ;;  %v4156_v47 = vmul.f32 -1.442695, %v6336_v8  ;;  %v4178_v11 = vmul.f32 -1.442695, %v6339_v55 }
 0x1ce   : > { %v2572_v25 = vmul.f32 %v1729_v0, %v6206_v61  ;;  %v2059_v59 = vsel %vm6306_vm8, %v2058_v4, %v2054_v36  ;;  %v3655_v61 = vld [vmem:[%s7038_s8 + $0x70] sm:$0xff]  ;;  %v6384_v15 = vmul.f32 %v5965_v16, %v6242_v38  ;;  %v6388_v29 = vmul.f32 %v6231_v41, %v6288_v33  ;;  %v1006_v10 = vpop.f32.mrf.mxu2  ;;  %v903_v54 = vpop.f32.mrf.mxu0 }
 0x1cf   : > { %v2594_v40 = vmul.f32 %v2059_v59, %v6209_v45  ;;  %3659 = vmatpush.msrb.mxu1 %v3655_v61  ;;  %4618 = vpow2.f32 %v4156_v47  ;;  %v4720_v45 = vld [vmem:[#allocation2 + $0x1f0] sm:$0xff]  ;;  %v1080_v0 = vmul.f32 %v6318_v2, %v956_v51  ;;  %v4198_v59 = vmul.f32 -1.442695, %v1175_v63 }
 0x1d0   : > { %v6348_v20 = vmul.f32 %v6041_v17, %v2572_v25  ;;  %4620 = vpow2.f32 %v4178_v11  ;;  %v6356_v17 = vmul.f32 %v5963_v27, %v3259_v24  ;;  %v6359_v60 = vmul.f32 %v4720_v45, %v6231_v41  ;;  %v4617_v4 = vpop.eup %4616 }
 0x1d1   : > { %v3098_v19 = vmul.f32 %v5143_v9, %v2594_v40  ;;  %v6365_v9 = vmul.f32 %v4722_v48, %v5965_v16  ;;  %v1462_v37 = vadd.f32 1.0, %v4617_v4  ;;  %v4157_v61 = vmul.f32 -1.442695, %v6392_v42 }
 0x1d2   : > { %3148 = vst [vmem:[#allocation2 + $0x80] sm:$0xff] %v6348_v20  ;;  %v6404_v40 = vadd.f32 %v6333_v13, %v1080_v0 }
 0x1d3   : > { %3170 = vst [vmem:[#allocation2 + $0x130] sm:$0xff] %v3098_v19  ;;  %4622 = vrcp.f32 %v1462_v37  ;;  %v2355_v25 = vand.u32 2147483647, %v1462_v37  ;;  %v2357_v44 = vand.u32 2147483648, %v1462_v37  ;;  %v6398_v38 = vmul.f32 %v5965_v16, %v3098_v19 }
 0x1d4   : > { %vm2351_vm12 = vweird.f32 %v1462_v37  ;;  %v3048_v11 = vpop.permute.xlu0 %3047  ;;  %v1100_v19 = vmul.f32 %v6318_v2, %v1006_v10  ;;  %v4179_v32 = vmul.f32 -1.442695, %v6404_v40 }
 0x1d5   : > { %v4619_v35 = vpop.eup %4618  ;;  %vm6406_vm13 = vcmp.eq.f32.partialorder %v2355_v25, 8.507059e+37  ;;  %v2358_v12 = vor.u32 1.1754944e-38, %v2357_v44 }
 0x1d6   : > { %v4621_v52 = vpop.eup %4620  ;;  %v6372_v43 = vadd.f32 1.0, %v4619_v35  ;;  %v6420_v4 = vadd.f32 %v6333_v13, %v1100_v19  ;;  %v1059_v35 = vmul.f32 %v6318_v2, %v903_v54 }
 0x1d7   : > { %v6395_v36 = vadd.f32 1.0, %v4621_v52 }
 0x1d8   : > { %4624 = vrcp.f32 %v6372_v43  ;;  %v1740_v33 = vand.u32 2147483647, %v6372_v43  ;;  %vm1736_vm14 = vweird.f32 %v6372_v43  ;;  %v1742_v24 = vand.u32 2147483648, %v6372_v43 }
 0x1d9   : > { %4626 = vrcp.f32 %v6395_v36  ;;  %v4623_v14 = vpop.eup %4622  ;;  %v2070_v34 = vand.u32 2147483647, %v6395_v36  ;;  %v4199_v63 = vmul.f32 -1.442695, %v6420_v4  ;;  %v2072_v44 = vand.u32 2147483648, %v6395_v36 }
 0x1da   : > { %4628 = vpow2.f32 %v4198_v59  ;;  %v2347_v45 = vmul.f32 %v4623_v14, %v1462_v37  ;;  %vm6414_vm15 = vcmp.eq.f32.partialorder %v1740_v33, 8.507059e+37  ;;  %vm2352_vm0 = vweird.f32 %v4623_v14  ;;  %v3654_v59 = vld [vmem:[%s7038_s8 + $0x68] sm:$0xff]  ;;  %v958_v37 = vpop.f32.mrf.mxu1 }
 0x1db   : > { %4630 = vpow2.f32 %v4157_v61  ;;  %v1135_v10 = vadd.f32 %v6333_v13, %v1059_v35  ;;  %vm6432_vm1 = vmor %vm2351_vm12, %vm2352_vm0  ;;  %3660 = vmatpush.msrb.mxu1 %v3654_v59  ;;  %vm2066_vm3 = vweird.f32 %v6395_v36  ;;  %vm6437_vm4 = vcmp.eq.f32.partialorder %v2070_v34, 8.507059e+37 }
 0x1dc   : > { %v2348_v28 = vsub.f32 1.0, %v2347_v45  ;;  %4632 = vpow2.f32 %v4179_v32  ;;  %v1743_v45 = vor.u32 1.1754944e-38, %v1742_v24  ;;  %v2073_v59 = vor.u32 1.1754944e-38, %v2072_v44 }
 0x1dd   : > { %4634 = vpow2.f32 %v4199_v63  ;;  %v4158_v32 = vmul.f32 -1.442695, %v1135_v10 }
 0x1de   : > { %v4625_v56 = vpop.eup %4624  ;;  %v2349_v0 = vmul.f32 %v4623_v14, %v2348_v28 }
 0x1df   : > { %v1732_v58 = vmul.f32 %v4625_v56, %v6372_v43  ;;  %v4627_v51 = vpop.eup %4626  ;;  %vm1737_vm2 = vweird.f32 %v4625_v56  ;;  %v1081_v43 = vmul.f32 %v6318_v2, %v958_v37  ;;  %v7145_v37 = vld [vmem:[#allocation5_spill] sm:$0xff] }
 0x1e0   : > { %v4629_v49 = vpop.eup %4628  ;;  %v2062_v25 = vmul.f32 %v4627_v51, %v6395_v36  ;;  %v2350_v54 = vadd.f32 %v4623_v14, %v2349_v0  ;;  %vm1738_vm5 = vmor %vm1736_vm14, %vm1737_vm2  ;;  %vm2067_vm6 = vweird.f32 %v4627_v51 }
 0x1e1   : > { %v1733_v52 = vsub.f32 1.0, %v1732_v58  ;;  %v1463_v11 = vadd.f32 1.0, %v4629_v49  ;;  %v4631_v19 = vpop.eup %4630  ;;  %v1008_v49 = vpop.f32.mrf.mxu2  ;;  %vm2068_vm7 = vmor %vm2066_vm3, %vm2067_vm6 }
 0x1e2   : > { %v2063_v58 = vsub.f32 1.0, %v2062_v25  ;;  %v6446_v24 = vadd.f32 1.0, %v4631_v19  ;;  %v4633_v0 = vpop.eup %4632  ;;  %v1101_v47 = vmul.f32 %v6318_v2, %v1008_v49 }
 0x1e3   : > { %v1734_v61 = vmul.f32 %v4625_v56, %v1733_v52  ;;  %4636 = vrcp.f32 %v1463_v11  ;;  %v2354_v52 = vsel %vm6432_vm1, %v4623_v14, %v2350_v54  ;;  %v6462_v44 = vadd.f32 1.0, %v4633_v0 }
 0x1e4   : > { %v2064_v63 = vmul.f32 %v4627_v51, %v2063_v58  ;;  %v2359_v34 = vsel %vm6406_vm13, %v2358_v12, %v2354_v52  ;;  %4638 = vpow2.f32 %v4158_v32  ;;  %v1755_v58 = vand.u32 2147483647, %v6446_v24 }
 0x1e5   : > { %v1735_v28 = vadd.f32 %v4625_v56, %v1734_v61  ;;  %v2614_v10 = vmul.f32 %v2359_v34, %v6327_v18  ;;  %v4635_v61 = vpop.eup %4634  ;;  %4640 = vrcp.f32 %v6446_v24  ;;  %v6471_v32 = vadd.f32 %v6333_v13, %v1081_v43 }
 0x1e6   : > { %v2065_v33 = vadd.f32 %v4627_v51, %v2064_v63  ;;  %v1464_v36 = vadd.f32 1.0, %v4635_v61  ;;  %4642 = vrcp.f32 %v6462_v44  ;;  %vm1751_vm8 = vweird.f32 %v6446_v24 }
 0x1e7   : > { %v1739_v25 = vsel %vm1738_vm5, %v4625_v56, %v1735_v28  ;;  %v7144_v56 = vld [vmem:[#allocation8_spill] sm:$0xff]  ;;  %vm6479_vm9 = vcmp.eq.f32.partialorder %v1755_v58, 8.507059e+37  ;;  %v2085_v34 = vand.u32 2147483647, %v6462_v44  ;;  %vm2081_vm10 = vweird.f32 %v6462_v44 }
 0x1e8   : > { %v1744_v14 = vsel %vm6414_vm15, %v1743_v45, %v1739_v25  ;;  %v6460_v12 = vmul.f32 %v7144_v56, %v2614_v10  ;;  %v2069_v18 = vsel %vm2068_vm7, %v4627_v51, %v2065_v33  ;;  %v1177_v51 = vadd.f32 %v6333_v13, %v1101_v47  ;;  %v3653_v33 = vld [vmem:[%s7038_s8 + $0x60] sm:$0xff] }
 0x1e9   : > { %v2573_v11 = vmul.f32 %v1744_v14, %v6336_v8  ;;  %v4637_v48 = vpop.eup %4636  ;;  %v2074_v54 = vsel %vm6437_vm4, %v2073_v59, %v2069_v18  ;;  %v1757_v8 = vand.u32 2147483648, %v6446_v24  ;;  %4644 = vrcp.f32 %v1464_v36  ;;  %3661 = vmatpush.msrb.mxu1 %v3653_v33 }
 0x1ea   : > { %v2595_v45 = vmul.f32 %v2074_v54, %v6339_v55  ;;  %v4639_v28 = vpop.eup %4638  ;;  %v2087_v55 = vand.u32 2147483648, %v6462_v44  ;;  %v2385_v59 = vand.u32 2147483647, %v1464_v36  ;;  %v2387_v10 = vand.u32 2147483648, %v1464_v36 }
 0x1eb   : > { %v3077_v19 = vmul.f32 %v5774_v31, %v2573_v11  ;;  %v906_v31 = vpop.f32.mrf.mxu0  ;;  %v4641_v52 = vpop.eup %4640  ;;  %v1758_v63 = vor.u32 1.1754944e-38, %v1757_v8  ;;  %v1423_v25 = vadd.f32 1.0, %v4639_v28  ;;  %v4180_v14 = vmul.f32 -1.442695, %v6471_v32 }
 0x1ec   : > { %v3099_v35 = vmul.f32 %v7145_v37, %v2595_v45  ;;  %v1747_v49 = vmul.f32 %v4641_v52, %v6446_v24  ;;  %vm2381_vm11 = vweird.f32 %v1464_v36  ;;  %v4643_v61 = vpop.eup %4642  ;;  %vm1752_vm12 = vweird.f32 %v4641_v52 }
 0x1ed   : > { %3149 = vst [vmem:[#allocation2 + $0x88] sm:$0xff] %v3077_v19  ;;  %4646 = vrcp.f32 %v1423_v25  ;;  %v2088_v11 = vor.u32 1.1754944e-38, %v2087_v55  ;;  %v4200_v47 = vmul.f32 -1.442695, %v1177_v51  ;;  %v2077_v48 = vmul.f32 %v4643_v61, %v6462_v44  ;;  %vm1753_vm15 = vmor %vm1751_vm8, %vm1752_vm12 }
 0x1ee   : > { %3171 = vst [vmem:[#allocation2 + $0x138] sm:$0xff] %v3099_v35  ;;  %v1748_v43 = vsub.f32 1.0, %v1747_v49  ;;  %4648 = vpow2.f32 %v4180_v14  ;;  %vm6490_vm13 = vcmp.eq.f32.partialorder %v2085_v34, 8.507059e+37  ;;  %v1060_v54 = vmul.f32 %v6318_v2, %v906_v31 }
 0x1ef   : > { %v4645_v56 = vpop.eup %4644  ;;  %vm6495_vm14 = vcmp.eq.f32.partialorder %v2385_v59, 8.507059e+37  ;;  %v2388_v58 = vor.u32 1.1754944e-38, %v2387_v10  ;;  %v2078_v37 = vsub.f32 1.0, %v2077_v48  ;;  %vm2082_vm0 = vweird.f32 %v4643_v61 }
 0x1f0   : > { %v1749_v18 = vmul.f32 %v4641_v52, %v1748_v43  ;;  %v2377_v8 = vmul.f32 %v4645_v56, %v1464_v36  ;;  %vm2382_vm1 = vweird.f32 %v4645_v56  ;;  %4650 = vpow2.f32 %v4200_v47  ;;  %vm2083_vm3 = vmor %vm2081_vm10, %vm2082_vm0  ;;  %v7152_v47 = vld [vmem:[#allocation3_spill] sm:$0xff] }
 0x1f1   : > { %v2079_v34 = vmul.f32 %v4643_v61, %v2078_v37  ;;  %v6502_v31 = vadd.f32 %v6333_v13, %v1060_v54  ;;  %vm2383_vm2 = vmor %vm2381_vm11, %vm2382_vm1 }
 0x1f2   : > { %v1750_v28 = vadd.f32 %v4641_v52, %v1749_v18  ;;  %v2378_v51 = vsub.f32 1.0, %v2377_v8 }
 0x1f3   : > { %v908_v35 = vpop.f32.mrf.mxu0  ;;  %v4647_v55 = vpop.eup %4646  ;;  %v2080_v24 = vadd.f32 %v4643_v61, %v2079_v34 }
 0x1f4   : > { %v1754_v49 = vsel %vm1753_vm15, %v4641_v52, %v1750_v28  ;;  %v4649_v25 = vpop.eup %4648  ;;  %v2379_v10 = vmul.f32 %v4645_v56, %v2378_v51  ;;  %v1061_v43 = vmul.f32 %v6318_v2, %v908_v35  ;;  %v6526_v51 = vld [vmem:[#allocation2 + $0x60] sm:$0xff] }
 0x1f5   : > { %v1759_v59 = vsel %vm6479_vm9, %v1758_v63, %v1754_v49  ;;  %v6508_v33 = vadd.f32 1.0, %v4649_v25  ;;  %v2084_v48 = vsel %vm2083_vm3, %v4643_v61, %v2080_v24  ;;  %v4159_v63 = vmul.f32 -1.442695, %v6502_v31  ;;  %v7153_v35 = vld [vmem:[#allocation7_spill] sm:$0xff]  ;;  %v6552_v24 = vld [vmem:[#allocation2 + $0x70] sm:$0xff] }
 0x1f6   : > { %v2574_v14 = vmul.f32 %v1759_v59, %v6392_v42  ;;  %v2380_v52 = vadd.f32 %v4645_v56, %v2379_v10  ;;  %v4651_v42 = vpop.eup %4650  ;;  %v2089_v36 = vsel %vm6490_vm13, %v2088_v11, %v2084_v48  ;;  %v1137_v8 = vadd.f32 %v6333_v13, %v1061_v43  ;;  %v4724_v13 = vld [vmem:[#allocation2 + $0x50] sm:$0xff]  ;;  %v6562_v48 = vld [vmem:[#allocation2 + $0x100] sm:$0xff] }
 0x1f7   : > { %4652 = vrcp.f32 %v6508_v33  ;;  %v2596_v54 = vmul.f32 %v2089_v36, %v6404_v40  ;;  %v2100_v44 = vand.u32 2147483647, %v6508_v33  ;;  %v1465_v37 = vadd.f32 1.0, %v4651_v42  ;;  %v3652_v40 = vld [vmem:[%s7038_s8 + $0x58] sm:$0xff]  ;;  %v3651_v10 = vld [vmem:[%s7038_s8 + $0x50] sm:$0xff]  ;;  %v3261_v42 = vld [vmem:[#allocation2 + $0x41] sm:$0xff] }
 0x1f8   : > { %v3078_v18 = vmul.f32 %v7152_v47, %v2574_v14  ;;  %v2384_v0 = vsel %vm2383_vm2, %v4645_v56, %v2380_v52  ;;  %v2102_v11 = vand.u32 2147483648, %v6508_v33  ;;  %4654 = vpow2.f32 %v4159_v63  ;;  %v7154_v56 = vld [vmem:[#allocation9_spill] sm:$0xff]  ;;  %3662 = vmatpush.msrb.mxu1 %v3652_v40  ;;  %v3650_v14 = vld [vmem:[%s7038_s8 + $0x48] sm:$0xff] }
 0x1f9   : > { %v2389_v2 = vsel %vm6495_vm14, %v2388_v58, %v2384_v0  ;;  %v3100_v19 = vmul.f32 %v7153_v35, %v2596_v54  ;;  %4656 = vrcp.f32 %v1465_v37  ;;  %vm2096_vm4 = vweird.f32 %v6508_v33  ;;  %v6557_v52 = vld [vmem:[#allocation2 + $0xf0] sm:$0xff]  ;;  %v4725_v0 = vld [vmem:[#allocation2 + $0xe0] sm:$0xff]  ;;  %v3648_v37 = vld [vmem:[%s7038_s8 + $0x38] sm:$0xff] }
 0x1fa   : > { %v3241_v61 = vmul.f32 %v5403_v3, %v3078_v18  ;;  %v2616_v28 = vmul.f32 %v2389_v2, %v6420_v4  ;;  %v3220_v4 = vmul.f32 %v4724_v13, %v5415_v6  ;;  %v3221_v55 = vmul.f32 %v5415_v6, %v6526_v51  ;;  %3663 = vmatpush.msrb.mxu1 %v3651_v10  ;;  %v3649_v18 = vld [vmem:[%s7038_s8 + $0x40] sm:$0xff] }
 0x1fb   : > { %3172 = vst [vmem:[#allocation2 + $0x140] sm:$0xff] %v3100_v19  ;;  %vm6542_vm5 = vcmp.eq.f32.partialorder %v2100_v44, 8.507059e+37  ;;  %v4160_v59 = vmul.f32 -1.442695, %v1137_v8  ;;  %v6555_v43 = vmul.f32 %v5965_v16, %v3100_v19  ;;  %v3222_v36 = vmul.f32 %v5415_v6, %v6552_v24  ;;  %v3713_v6 = vld [vmem:[%s7040_s10 + $0x78] sm:$0xff] }
 0x1fc   : > { %v6534_v45 = vmul.f32 %v7154_v56, %v2616_v28  ;;  %v3249_v49 = vadd.f32 %v3241_v61, %v5984_v46  ;;  %v2103_v46 = vor.u32 1.1754944e-38, %v2102_v11  ;;  %3664 = vmatpush.msrb.mxu1 %v3650_v14  ;;  %v3246_v54 = vmul.f32 %v4725_v0, %v5403_v3  ;;  %3715 = vmatpush.msrb.mxu2 %v3713_v6  ;;  %v3647_v11 = vld [vmem:[%s7038_s8 + $0x30] sm:$0xff]  ;;  %v3645_v0 = vld [vmem:[%s7038_s8 + $0x20] sm:$0xff]  ;;  %v3644_v6 = vld [vmem:[%s7038_s8 + $0x18] sm:$0xff] }
 0x1fd   : > { %v4653_v58 = vpop.eup %4652  ;;  %4658 = vpow2.f32 %v4160_v59  ;;  %v3252_v2 = vadd.f32 %v6132_v39, %v6362_v57  ;;  %v3253_v44 = vadd.f32 %v6248_v62, %v6376_v22  ;;  %v3247_v35 = vmul.f32 %v5403_v3, %v6557_v52  ;;  %v6583_v57 = vld [vmem:[#allocation2 + $0x51] sm:$0xff]  ;;  %v6585_v22 = vld [vmem:[#allocation2 + $0x61] sm:$0xff] }
 0x1fe   : > { %v2092_v34 = vmul.f32 %v4653_v58, %v6508_v33  ;;  %vm2097_vm6 = vweird.f32 %v4653_v58  ;;  %v4655_v63 = vpop.eup %4654  ;;  %3665 = vmatpush.msrb.mxu1 %v3649_v18  ;;  %v3248_v39 = vmul.f32 %v5403_v3, %v6562_v48  ;;  %v3254_v62 = vadd.f32 %v3246_v54, %v3220_v4  ;;  %v6591_v56 = vld [vmem:[#allocation2 + $0x71] sm:$0xff] }
 0x1ff   : > { %v4657_v8 = vpop.eup %4656  ;;  %v6571_v28 = vadd.f32 1.0, %v4655_v63  ;;  %v3255_v40 = vadd.f32 %v3247_v35, %v3221_v55  ;;  %v3270_v13 = vmul.f32 %v5963_v27, %v3261_v42  ;;  %vm2098_vm7 = vmor %vm2096_vm4, %vm2097_vm6  ;;  %v3646_v55 = vld [vmem:[%s7038_s8 + $0x28] sm:$0xff]  ;;  %v3272_v18 = vmul.f32 %v5963_v27, %v6585_v22 }
 0x200   : > { %v2093_v47 = vsub.f32 1.0, %v2092_v34  ;;  %3666 = vmatpush.msrb.mxu1 %v3648_v37  ;;  %v3256_v34 = vadd.f32 %v3248_v39, %v3222_v36  ;;  %v3274_v54 = vadd.f32 %v6119_v30, %v3249_v49  ;;  %v7157_v8 = vld [vmem:[#allocation10_spill] sm:$0xff]  ;;  %v3277_v25 = vadd.f32 %v6368_v5, %v3252_v2  ;;  %v3290_v39 = vld [vmem:[#allocation2 + $0x190] sm:$0xff]  ;;  %v4726_v2 = vld [vmem:[#allocation2 + $0x180] sm:$0xff] }
 0x201   : > { %4660 = vrcp.f32 %v6571_v28  ;;  %v1787_v4 = vand.u32 2147483648, %v6571_v28  ;;  %v1785_v14 = vand.u32 2147483647, %v6571_v28  ;;  %vm1781_vm8 = vweird.f32 %v6571_v28  ;;  %v3643_v5 = vld [vmem:[%s7038_s8 + $0x10] sm:$0xff] }
 0x202   : > { %v2094_v61 = vmul.f32 %v4653_v58, %v2093_v47  ;;  %v3271_v47 = vmul.f32 %v5963_v27, %v6583_v57  ;;  %3667 = vmatpush.msrb.mxu1 %v3647_v11  ;;  %v3280_v49 = vadd.f32 %v3272_v18, %v3255_v40  ;;  %v3299_v11 = vmul.f32 %v5965_v16, %v3290_v39  ;;  %v3642_v40 = vld [vmem:[%s7038_s8 + $0x8] sm:$0xff] }
 0x203   : > { %v4659_v59 = vpop.eup %4658  ;;  %v6611_v36 = vor.u32 1.1754944e-38, %v1787_v4  ;;  %vm6626_vm9 = vcmp.eq.f32.partialorder %v1785_v14, 8.507059e+37  ;;  %v3315_v14 = vld [vmem:[#allocation2 + $0x210] sm:$0xff]  ;;  %v3340_v39 = vld [vmem:[#allocation2 + $0x181] sm:$0xff] }
 0x204   : > { %v2095_v19 = vadd.f32 %v4653_v58, %v2094_v61  ;;  %v1425_v63 = vadd.f32 1.0, %v4659_v59  ;;  %v3276_v61 = vadd.f32 %v6356_v17, %v7157_v8  ;;  %3668 = vmatpush.msrb.mxu1 %v3646_v55  ;;  %v3279_v35 = vadd.f32 %v3271_v47, %v3254_v62  ;;  %v3316_v55 = vld [vmem:[#allocation2 + $0x220] sm:$0xff]  ;;  %v3335_v8 = vld [vmem:[#allocation2 + $0x131] sm:$0xff] }
 0x205   : > { %v3360_v17 = vld [vmem:[#allocation2 + $0x10] sm:$0xff] }
 0x206   : > { %v2099_v10 = vsel %vm2098_vm7, %v4653_v58, %v2095_v19  ;;  %v3273_v58 = vmul.f32 %v5963_v27, %v6591_v56  ;;  %4662 = vrcp.f32 %v1425_v63  ;;  %v3278_v27 = vadd.f32 %v3270_v13, %v3253_v44  ;;  %3669 = vmatpush.msrb.mxu1 %v3645_v0  ;;  %v3338_v63 = vld [vmem:[#allocation2 + $0x161] sm:$0xff] }
 0x207   : > { %v2104_v33 = vsel %vm6542_vm5, %v2103_v46, %v2099_v10  ;;  %v4661_v46 = vpop.eup %4660  ;;  %v3298_v44 = vmul.f32 %v4726_v2, %v5965_v16  ;;  %v3300_v13 = vadd.f32 %v6384_v15, %v3274_v54  ;;  %v3302_v4 = vadd.f32 %v6555_v43, %v3276_v61  ;;  %v3641_v15 = vld [vmem:[%s7038_s8] sm:$0xff] }
 0x208   : > { %v2597_v42 = vmul.f32 %v2104_v33, %v6471_v32  ;;  %v7158_v32 = vld [vmem:[#allocation6_spill] sm:$0xff]  ;;  %v1777_v30 = vmul.f32 %v4661_v46, %v6571_v28  ;;  %v3281_v19 = vadd.f32 %v3273_v58, %v3256_v34  ;;  %vm1782_vm10 = vweird.f32 %v4661_v46  ;;  %3670 = vmatpush.msrb.mxu1 %v3644_v6  ;;  %v3334_v54 = vld [vmem:[#allocation2 + $0x121] sm:$0xff] }
 0x209   : > { %v3303_v34 = vadd.f32 %v6126_v7, %v3277_v25  ;;  %v3304_v59 = vadd.f32 %v6174_v23, %v3278_v27  ;;  %v3305_v10 = vadd.f32 %v6365_v9, %v3279_v35  ;;  %v3306_v16 = vadd.f32 %v3298_v44, %v3280_v49  ;;  %v4727_v23 = vld [vmem:[#allocation2 + $0x200] sm:$0xff]  ;;  %vm1783_vm11 = vmor %vm1781_vm8, %vm1782_vm10  ;;  %v3339_v35 = vld [vmem:[#allocation2 + $0x171] sm:$0xff] }
 0x20a   : > { %v3101_v37 = vmul.f32 %v7158_v32, %v2597_v42  ;;  %v1778_v62 = vsub.f32 1.0, %v1777_v30  ;;  %3671 = vmatpush.msrb.mxu1 %v3643_v5  ;;  %v3307_v33 = vadd.f32 %v3299_v11, %v3281_v19  ;;  %v3320_v43 = vmul.f32 %v6231_v41, %v6460_v12  ;;  %v3341_v49 = vld [vmem:[#allocation2 + $0x191] sm:$0xff] }
 0x20b   : > { %v3321_v7 = vmul.f32 %v6231_v41, %v6534_v45  ;;  %v3323_v9 = vmul.f32 %v4727_v23, %v6231_v41  ;;  %v3324_v42 = vmul.f32 %v6231_v41, %v3315_v14  ;;  %v3325_v0 = vmul.f32 %v6231_v41, %v3316_v55  ;;  %v4728_v45 = vld [vmem:[%s7035_s5] sm:$0xff]  ;;  %v3364_v55 = vld [vmem:[#allocation2 + $0x50] sm:$0xff] }
 0x20c   : > { %3173 = vst [vmem:[#allocation2 + $0x148] sm:$0xff] %v3101_v37  ;;  %v4663_v47 = vpop.eup %4662  ;;  %v1779_v18 = vmul.f32 %v4661_v46, %v1778_v62  ;;  %3672 = vmatpush.msrb.mxu1 %v3642_v40  ;;  %v3326_v12 = vadd.f32 %v6380_v26, %v3300_v13  ;;  %v3328_v61 = vadd.f32 %v3320_v43, %v3302_v4  ;;  %v3368_v25 = vperm.slane %v4728_v45, 6  ;;  %v3362_v4 = vld [vmem:[#allocation2 + $0x30] sm:$0xff] }
 0x20d   : > { %v3329_v32 = vadd.f32 %v3321_v7, %v3303_v34  ;;  %v3330_v37 = vadd.f32 %v6359_v60, %v3304_v59  ;;  %v3331_v41 = vadd.f32 %v3323_v9, %v3305_v10  ;;  %v3332_v26 = vadd.f32 %v3324_v42, %v3306_v16  ;;  %v3363_v34 = vld [vmem:[#allocation2 + $0x40] sm:$0xff] }
 0x20e   : > { %v1780_v58 = vadd.f32 %v4661_v46, %v1779_v18  ;;  %3673 = vmatpush.msrb.mxu1 %v3641_v15  ;;  %v3333_v30 = vadd.f32 %v3325_v0, %v3307_v33  ;;  %v3343_v5 = vmul.f32 %v5969_v1, %v3334_v54  ;;  %v3347_v2 = vmul.f32 %v5969_v1, %v3338_v63  ;;  %v3361_v33 = vld [vmem:[#allocation2 + $0x20] sm:$0xff]  ;;  %v3411_v0 = vld [vmem:[#allocation2 + $0x11] sm:$0xff] }
 0x20f   : > { %v3348_v44 = vmul.f32 %v5969_v1, %v3339_v35  ;;  %v3349_v62 = vmul.f32 %v5969_v1, %v3340_v39  ;;  %v3350_v13 = vmul.f32 %v5969_v1, %v3341_v49  ;;  %v3354_v59 = vadd.f32 %v6166_v21, %v3329_v32  ;;  %v4371_v21 = vld [vmem:[%s7035_s5 + $0x8] ss:$0 sm:$0xff]  ;;  %v3413_v54 = vld [vmem:[#allocation2 + $0x31] sm:$0xff]  ;;  %v3390_v35 = vld [vmem:[#allocation2 + $0xe0] sm:$0xff] }
 0x210   : > { %v1784_v27 = vsel %vm1783_vm11, %v4661_v46, %v1780_v58  ;;  %v6667_v46 = vmul.f32 %v5969_v1, %v3335_v8  ;;  %v3351_v40 = vadd.f32 %v3343_v5, %v3326_v12  ;;  %v3355_v10 = vadd.f32 %v3347_v2, %v3330_v37  ;;  %v3414_v8 = vld [vmem:[#allocation2 + $0x41] sm:$0xff]  ;;  %v3387_v32 = vld [vmem:[#allocation2 + $0xb0] sm:$0xff] }
 0x211   : > { %v1789_v28 = vsel %vm6626_vm9, %v6611_v36, %v1784_v27  ;;  %v7161_v36 = vld [vmem:[#allocation4_spill] sm:$0xff]  ;;  %v3356_v14 = vadd.f32 %v3348_v44, %v3331_v41  ;;  %v3357_v18 = vadd.f32 %v3349_v62, %v3332_v26  ;;  %v3358_v16 = vadd.f32 %v3350_v13, %v3333_v30  ;;  %v3389_v37 = vld [vmem:[#allocation2 + $0xd0] sm:$0xff] }
 0x212   : > { %v2576_v19 = vmul.f32 %v1789_v28, %v6502_v31  ;;  %v3369_v15 = vmul.f32 %v3368_v25, %v3360_v17  ;;  %v3371_v43 = vmul.f32 %v3368_v25, %v3362_v4  ;;  %v3372_v7 = vmul.f32 %v3368_v25, %v3363_v34 }
 0x213   : > { %v3336_v6 = vld [vmem:[#allocation2 + $0x141] sm:$0xff]  ;;  %v3374_v9 = vmul.f32 %v3368_v25, %v6526_v51  ;;  %v3375_v63 = vmul.f32 %v3368_v25, %v6552_v24  ;;  %v3370_v58 = vmul.f32 %v3368_v25, %v3361_v33  ;;  %v3394_v39 = vperm.slane %v4728_v45, 7 }
 0x214   : > { %v3345_v60 = vmul.f32 %v5969_v1, %v3336_v6  ;;  %v3080_v11 = vmul.f32 %v7161_v36, %v2576_v19  ;;  %v3373_v1 = vmul.f32 %v3368_v25, %v3364_v55  ;;  %v3377_v42 = vadd.f32 %v3369_v15, %v3351_v40  ;;  %v3388_v51 = vld [vmem:[#allocation2 + $0xc0] sm:$0xff] }
 0x215   : > { %v3382_v24 = vadd.f32 %v3374_v9, %v3356_v14  ;;  %v3383_v41 = vadd.f32 %v3375_v63, %v3357_v18  ;;  %v3422_v26 = vmul.f32 %v4371_v21, %v3413_v54  ;;  %v3423_v30 = vmul.f32 %v4371_v21, %v3414_v8 }
 0x216   : > { %v3353_v31 = vadd.f32 %v3345_v60, %v3328_v61  ;;  %v3242_v47 = vmul.f32 %v5403_v3, %v3080_v11  ;;  %v3376_v3 = vmul.f32 %v3368_v25, %v6348_v20  ;;  %v3381_v27 = vadd.f32 %v3373_v1, %v3355_v10  ;;  %v3393_v20 = vld [vmem:[#allocation2 + $0x110] sm:$0xff] }
 0x217   : > { %v3420_v25 = vmul.f32 %v4371_v21, %v3411_v0  ;;  %v3395_v49 = vmul.f32 %v3394_v39, %v3080_v11  ;;  %v3396_v19 = vmul.f32 %v3394_v39, %v3387_v32  ;;  %v3398_v5 = vmul.f32 %v3394_v39, %v3389_v37 }
 0x218   : > { %v3250_v23 = vadd.f32 %v3242_v47, %v6129_v53  ;;  %v3379_v61 = vadd.f32 %v3371_v43, %v3353_v31  ;;  %v3380_v53 = vadd.f32 %v3372_v7, %v3354_v59  ;;  %v3384_v6 = vadd.f32 %v3376_v3, %v3358_v16  ;;  %v3412_v59 = vld [vmem:[#allocation2 + $0x21] sm:$0xff] }
 0x219   : > { %v3399_v2 = vmul.f32 %v3394_v39, %v3390_v35  ;;  %v3400_v44 = vmul.f32 %v3394_v39, %v6557_v52  ;;  %v3401_v62 = vmul.f32 %v3394_v39, %v6562_v48  ;;  %v3402_v17 = vmul.f32 %v3394_v39, %v3393_v20  ;;  %v4372_v48 = vld [vmem:[%s7036_s6] ss:$0 sm:$0xff] }
 0x21a   : > { %v3275_v12 = vadd.f32 %v6226_v50, %v3250_v23  ;;  %v3397_v50 = vmul.f32 %v3394_v39, %v3388_v51  ;;  %v3403_v36 = vadd.f32 %v3395_v49, %v3377_v42  ;;  %v3406_v13 = vadd.f32 %v3398_v5, %v3380_v53 }
 0x21b   : > { %v3407_v31 = vadd.f32 %v3399_v2, %v3381_v27  ;;  %v3408_v4 = vadd.f32 %v3400_v44, %v3382_v24  ;;  %v3409_v11 = vadd.f32 %v3401_v62, %v3383_v41  ;;  %v3410_v34 = vadd.f32 %v3402_v17, %v3384_v6 }
 0x21c   : > { %v3301_v28 = vadd.f32 %v6398_v38, %v3275_v12  ;;  %v3405_v45 = vadd.f32 %v3397_v50, %v3379_v61  ;;  %v3418_v38 = vld [vmem:[#allocation2 + $0x81] sm:$0xff]  ;;  %v3424_v10 = vmul.f32 %v4371_v21, %v6583_v57  ;;  %v3426_v52 = vmul.f32 %v4371_v21, %v6591_v56  ;;  %v4373_v57 = vld [vmem:[%s7037_s7] ss:$0 sm:$0xff] }
 0x21d   : > { %v3427_v55 = vmul.f32 %v4371_v21, %v3418_v38  ;;  %v3428_v47 = vadd.f32 %v3420_v25, %v3403_v36 }
 0x21e   : > { %v3327_v60 = vadd.f32 %v6388_v29, %v3301_v28  ;;  %v3425_v29 = vmul.f32 %v4371_v21, %v6585_v22  ;;  %v3430_v18 = vadd.f32 %v3422_v26, %v3405_v45  ;;  %v3432_v16 = vadd.f32 %v3424_v10, %v3407_v31 }
 0x21f   : > { %v3434_v15 = vadd.f32 %v3426_v52, %v3409_v11  ;;  %v3421_v22 = vmul.f32 %v4371_v21, %v3412_v59  ;;  %v3440_v7 = vmul.f32 %v4372_v48, %v3428_v47  ;;  %v3435_v23 = vadd.f32 %v3427_v55, %v3410_v34 }
 0x220   : > { %v3352_v40 = vadd.f32 %v6667_v46, %v3327_v60  ;;  %v3431_v46 = vadd.f32 %v3423_v30, %v3406_v13  ;;  %v3433_v33 = vadd.f32 %v3425_v29, %v3408_v4  ;;  %v3442_v56 = vmul.f32 %v4372_v48, %v3430_v18 }
 0x221   : > { %v3444_v9 = vmul.f32 %v4372_v48, %v3432_v16  ;;  %v3446_v3 = vmul.f32 %v4372_v48, %v3434_v15  ;;  %v6699_v42 = vadd.f32 %v4373_v57, %v3440_v7  ;;  %v3447_v27 = vmul.f32 %v4372_v48, %v3435_v23 }
 0x222   : > { %v3378_v14 = vadd.f32 %v3370_v58, %v3352_v40  ;;  %v3443_v1 = vmul.f32 %v4372_v48, %v3431_v46  ;;  %v3445_v63 = vmul.f32 %v4372_v48, %v3433_v33  ;;  %v6701_v0 = vadd.f32 %v4373_v57, %v3442_v56 }
 0x223   : > { %v6705_v8 = vadd.f32 %v4373_v57, %v3444_v9  ;;  %v4211_v21 = vmul.f32 -1.442695, %v6699_v42  ;;  %v6715_v24 = vadd.f32 %v4373_v57, %v3446_v3  ;;  %v6719_v35 = vadd.f32 %v4373_v57, %v3447_v27 }
 0x224   : > { %v3404_v43 = vadd.f32 %v3396_v19, %v3378_v14  ;;  %v6703_v54 = vadd.f32 %v4373_v57, %v3443_v1  ;;  %v6707_v12 = vadd.f32 %v4373_v57, %v3445_v63  ;;  %v4213_v53 = vmul.f32 -1.442695, %v6701_v0 }
 0x225   : > { %v4215_v51 = vmul.f32 -1.442695, %v6705_v8  ;;  %4664 = vpow2.f32 %v4211_v21  ;;  %v4217_v39 = vmul.f32 -1.442695, %v6715_v24  ;;  %v4218_v25 = vmul.f32 -1.442695, %v6719_v35 }
 0x226   : > { %v3429_v58 = vadd.f32 %v3421_v22, %v3404_v43  ;;  %v4214_v32 = vmul.f32 -1.442695, %v6703_v54  ;;  %4666 = vpow2.f32 %v4213_v53  ;;  %v4216_v41 = vmul.f32 -1.442695, %v6707_v12 }
 0x228   : > { %v3441_v61 = vmul.f32 %v4372_v48, %v3429_v58  ;;  %4668 = vpow2.f32 %v4214_v32 }
 0x229   : > { %4670 = vpow2.f32 %v4215_v51 }
 0x22a   : > { %v6713_v37 = vadd.f32 %v4373_v57, %v3441_v61  ;;  %v4738_v61 = vmov 64.0  }
 0x22b   : > { %v4665_v28 = vpop.eup %4664 }
 0x22c   : > { %v4212_v6 = vmul.f32 -1.442695, %v6713_v37  ;;  %v4667_v20 = vpop.eup %4666  ;;  %v6723_v26 = vadd.f32 1.0, %v4665_v28 }
 0x22d   : > { %v6725_v49 = vadd.f32 1.0, %v4667_v20 }
 0x22e   : > { %4672 = vpow2.f32 %v4212_v6  ;;  %v4669_v30 = vpop.eup %4668  ;;  %v3503_v36 = vand.u32 2147483648, %v6723_v26  ;;  %vm3497_vm12 = vweird.f32 %v6723_v26  ;;  %v3501_v40 = vand.u32 2147483647, %v6723_v26 }
 0x22f   : > { %4674 = vpow2.f32 %v4216_v41  ;;  %v4671_v19 = vpop.eup %4670  ;;  %v6727_v50 = vadd.f32 1.0, %v4669_v30  ;;  %v3533_v31 = vand.u32 2147483648, %v6725_v49  ;;  %vm3527_vm13 = vweird.f32 %v6725_v49 }
 0x230   : > { %4676 = vpow2.f32 %v4217_v39  ;;  %v6733_v44 = vadd.f32 1.0, %v4671_v19  ;;  %v3531_v59 = vand.u32 2147483647, %v6725_v49  ;;  %v3504_v52 = vor.u32 1.1754944e-38, %v3503_v36 }
 0x231   : > { %4678 = vrcp.f32 %v6723_v26  ;;  %vm3542_vm15 = vweird.f32 %v6727_v50  ;;  %v3534_v15 = vor.u32 1.1754944e-38, %v3533_v31  ;;  %vm6771_vm0 = vcmp.eq.f32.partialorder %v3501_v40, 8.507059e+37 }
 0x232   : > { %4680 = vrcp.f32 %v6725_v49  ;;  %v3546_v23 = vand.u32 2147483647, %v6727_v50  ;;  %v3548_v1 = vand.u32 2147483648, %v6727_v50  ;;  %vm6787_vm5 = vcmp.eq.f32.partialorder %v3531_v59, 8.507059e+37 }
 0x233   : > { %4682 = vpow2.f32 %v4218_v25  ;;  %vm3557_vm8 = vweird.f32 %v6733_v44 }
 0x234   : > { %v4673_v5 = vpop.eup %4672  ;;  %4684 = vrcp.f32 %v6727_v50  ;;  %vm6813_vm10 = vcmp.eq.f32.partialorder %v3546_v23, 8.507059e+37  ;;  %v3710_v23 = vld [vmem:[%s7040_s10 + $0x60] sm:$0xff] }
 0x235   : > { %v4675_v60 = vpop.eup %4674  ;;  %v6731_v2 = vadd.f32 1.0, %v4673_v5  ;;  %v3561_v5 = vand.u32 2147483647, %v6733_v44 }
 0x236   : > { %v4677_v62 = vpop.eup %4676  ;;  %v6737_v17 = vadd.f32 1.0, %v4675_v60  ;;  %v3563_v60 = vand.u32 2147483648, %v6733_v44 }
 0x237   : > { %4686 = vrcp.f32 %v6731_v2  ;;  %v6740_v45 = vpop.eup %4678  ;;  %v3516_v11 = vand.u32 2147483647, %v6731_v2  ;;  %v3518_v48 = vand.u32 2147483648, %v6731_v2  ;;  %v6759_v55 = vadd.f32 1.0, %v4677_v62 }
 0x238   : > { %4688 = vrcp.f32 %v6733_v44  ;;  %v6743_v13 = vpop.eup %4680  ;;  %v3493_v38 = vmul.f32 %v6740_v45, %v6723_v26  ;;  %vm3512_vm14 = vweird.f32 %v6731_v2  ;;  %vm3498_vm2 = vweird.f32 %v6740_v45 }
 0x239   : > { %v4683_v4 = vpop.eup %4682  ;;  %v3523_v34 = vmul.f32 %v6743_v13, %v6725_v49  ;;  %4690 = vrcp.f32 %v6737_v17  ;;  %vm6775_vm1 = vcmp.eq.f32.partialorder %v3516_v11, 8.507059e+37  ;;  %v3519_v63 = vor.u32 1.1754944e-38, %v3518_v48  ;;  %vm6798_vm6 = vmor %vm3497_vm12, %vm3498_vm2 }
 0x23a   : > { %v6755_v10 = vpop.eup %4684  ;;  %v3494_v29 = vsub.f32 1.0, %v3493_v38  ;;  %v6765_v46 = vadd.f32 1.0, %v4683_v4  ;;  %vm3528_vm4 = vweird.f32 %v6743_v13  ;;  %4692 = vrcp.f32 %v6759_v55 }
 0x23b   : > { %v3524_v47 = vsub.f32 1.0, %v3523_v34  ;;  %v3538_v18 = vmul.f32 %v6755_v10, %v6727_v50  ;;  %vm3543_vm7 = vweird.f32 %v6755_v10  ;;  %vm6809_vm9 = vmor %vm3527_vm13, %vm3528_vm4  ;;  %v3549_v26 = vor.u32 1.1754944e-38, %v3548_v1  ;;  %v3702_v34 = vld [vmem:[%s7040_s10 + $0x20] sm:$0xff] }
 0x23c   : > { %v3495_v16 = vmul.f32 %v6740_v45, %v3494_v29  ;;  %vm6839_vm12 = vmor %vm3542_vm15, %vm3543_vm7  ;;  %4694 = vrcp.f32 %v6765_v46  ;;  %vm6857_vm2 = vcmp.eq.f32.partialorder %v3561_v5, 8.507059e+37  ;;  %v3564_v59 = vor.u32 1.1754944e-38, %v3563_v60  ;;  %v3706_v60 = vld [vmem:[%s7040_s10 + $0x40] sm:$0xff] }
 0x23d   : > { %v4687_v14 = vpop.eup %4686  ;;  %v3525_v7 = vmul.f32 %v6743_v13, %v3524_v47  ;;  %v3539_v56 = vsub.f32 1.0, %v3538_v18  ;;  %v3578_v18 = vand.u32 2147483648, %v6737_v17  ;;  %4696 = vrcp.f32 %v4738_v61 }
 0x23e   : > { %v3508_v33 = vmul.f32 %v4687_v14, %v6731_v2  ;;  %v6769_v57 = vpop.eup %4688  ;;  %v3496_v3 = vadd.f32 %v6740_v45, %v3495_v16  ;;  %vm3513_vm3 = vweird.f32 %v4687_v14  ;;  %v3712_v16 = vld [vmem:[%s7040_s10 + $0x70] sm:$0xff] }
 0x23f   : > { %v3553_v58 = vmul.f32 %v6769_v57, %v6733_v44  ;;  %v3540_v21 = vmul.f32 %v6755_v10, %v3539_v56  ;;  %v6792_v53 = vpop.eup %4690  ;;  %v3526_v32 = vadd.f32 %v6743_v13, %v3525_v7  ;;  %vm6824_vm11 = vmor %vm3512_vm14, %vm3513_vm3  ;;  %vm3558_vm13 = vweird.f32 %v6769_v57  ;;  %3716 = vmatpush.msrb.mxu2 %v3712_v16 }
 0x240   : > { %v3509_v9 = vsub.f32 1.0, %v3508_v33  ;;  %v3568_v39 = vmul.f32 %v6792_v53, %v6737_v17  ;;  %v3500_v19 = vsel %vm6798_vm6, %v6740_v45, %v3496_v3  ;;  %v3576_v45 = vand.u32 2147483647, %v6737_v17  ;;  %v4693_v4 = vpop.eup %4692  ;;  %v3711_v33 = vld [vmem:[%s7040_s10 + $0x68] sm:$0xff] }
 0x241   : > { %v3554_v51 = vsub.f32 1.0, %v3553_v58  ;;  %v3541_v6 = vadd.f32 %v6755_v10, %v3540_v21  ;;  %v3530_v38 = vsel %vm6809_vm9, %v6743_v13, %v3526_v32  ;;  %v3505_v50 = vsel %vm6771_vm0, %v3504_v52, %v3500_v19  ;;  %vm6871_vm0 = vmor %vm3557_vm8, %vm3558_vm13  ;;  %3717 = vmatpush.msrb.mxu2 %v3711_v33  ;;  %v3709_v21 = vld [vmem:[%s7040_s10 + $0x58] sm:$0xff]  ;;  %v3657_v33 = vld [vmem:[%s7039_s9] sm:$0x1] }
 0x242   : > { %v3510_v27 = vmul.f32 %v4687_v14, %v3509_v9  ;;  %v3569_v62 = vsub.f32 1.0, %v3568_v39  ;;  %vm3572_vm14 = vweird.f32 %v6737_v17  ;;  %vm3573_vm15 = vweird.f32 %v6792_v53  ;;  %v4695_v1 = vpop.eup %4694 }
 0x243   : > { %v3555_v30 = vmul.f32 %v6769_v57, %v3554_v51  ;;  %v3545_v40 = vsel %vm6839_vm12, %v6755_v10, %v3541_v6  ;;  %v3583_v29 = vmul.f32 %v4693_v4, %v6759_v55  ;;  %v3535_v48 = vsel %vm6787_vm5, %v3534_v15, %v3530_v38  ;;  %vm6889_vm3 = vmor %vm3572_vm14, %vm3573_vm15  ;;  %3718 = vmatpush.msrb.mxu2 %v3710_v23  ;;  %v3708_v6 = vld [vmem:[%s7040_s10 + $0x50] sm:$0xff]  ;;  %v3699_v15 = vld [vmem:[%s7040_s10 + $0x8] sm:$0xff] }
 0x244   : > { %v3511_v28 = vadd.f32 %v4687_v14, %v3510_v27  ;;  %v3570_v13 = vmul.f32 %v6792_v53, %v3569_v62  ;;  %v3550_v52 = vsel %vm6813_vm10, %v3549_v26, %v3545_v40  ;;  %v6894_v22 = vmul.f32 %v3505_v50, %v6699_v42  ;;  %v3703_v50 = vld [vmem:[%s7040_s10 + $0x28] sm:$0xff] }
 0x245   : > { %v3556_v31 = vadd.f32 %v6769_v57, %v3555_v30  ;;  %v3584_v43 = vsub.f32 1.0, %v3583_v29  ;;  %vm3588_vm4 = vweird.f32 %v4693_v4  ;;  %v3591_v56 = vand.u32 2147483647, %v6759_v55  ;;  %3719 = vmatpush.msrb.mxu2 %v3709_v21  ;;  %v3707_v30 = vld [vmem:[%s7040_s10 + $0x48] sm:$0xff] }
 0x246   : > { %v3515_v36 = vsel %vm6824_vm11, %v4687_v14, %v3511_v28  ;;  %v3571_v10 = vadd.f32 %v6792_v53, %v3570_v13  ;;  %v6908_v9 = vmul.f32 %v3535_v48, %v6701_v0  ;;  %v3579_v58 = vor.u32 1.1754944e-38, %v3578_v18 }
 0x247   : > { %v3520_v11 = vsel %vm6775_vm1, %v3519_v63, %v3515_v36  ;;  %vm6875_vm1 = vcmp.eq.f32.partialorder %v3576_v45, 8.507059e+37  ;;  %v3560_v44 = vsel %vm6871_vm0, %v6769_v57, %v3556_v31  ;;  %v3593_v57 = vand.u32 2147483648, %v6759_v55  ;;  %3720 = vmatpush.msrb.mxu2 %v3708_v6  ;;  %v3705_v45 = vld [vmem:[%s7040_s10 + $0x38] sm:$0xff] }
 0x248   : > { %v6897_v17 = vmul.f32 %v3520_v11, %v6713_v37  ;;  %v3575_v7 = vsel %vm6889_vm3, %v6792_v53, %v3571_v10  ;;  %v3585_v42 = vmul.f32 %v4693_v4, %v3584_v43  ;;  %v3565_v63 = vsel %vm6857_vm2, %v3564_v59, %v3560_v44  ;;  %v3701_v10 = vld [vmem:[%s7040_s10 + $0x18] sm:$0xff]  ;;  %v3700_v44 = vld [vmem:[%s7040_s10 + $0x10] sm:$0xff] }
 0x249   : > { %v3598_v3 = vmul.f32 %v4695_v1, %v6765_v46  ;;  %vm3587_vm5 = vweird.f32 %v6759_v55  ;;  %v6920_v0 = vmul.f32 %v3550_v52, %v6703_v54  ;;  %v3580_v32 = vsel %vm6875_vm1, %v3579_v58, %v3575_v7  ;;  %3721 = vmatpush.msrb.mxu2 %v3707_v30 }
 0x24a   : > { %v3620_v37 = vadd.f32 %v6897_v17, %v6894_v22  ;;  %v3586_v53 = vadd.f32 %v4693_v4, %v3585_v42  ;;  %vm3589_vm6 = vmor %vm3587_vm5, %vm3588_vm4  ;;  %vm3592_vm7 = vcmp.eq.f32.partialorder %v3591_v56, 8.507059e+37  ;;  %v3594_v51 = vor.u32 1.1754944e-38, %v3593_v57  ;;  %v3698_v56 = vld [vmem:[%s7040_s10] sm:$0xff]  ;;  %v4307_v57 = vld [vmem:[%s7042_s12 + $0x38] sm:$0xff] }
 0x24b   : > { %v3599_v41 = vsub.f32 1.0, %v3598_v3  ;;  %v3608_v55 = vand.u32 2147483648, %v6765_v46  ;;  %v6931_v54 = vmul.f32 %v3565_v63, %v6705_v8  ;;  %vm3603_vm8 = vweird.f32 %v4695_v1  ;;  %v4697_v8 = vpop.eup %4696  ;;  %3722 = vmatpush.msrb.mxu2 %v3706_v60  ;;  %3831 = vmatpush.bf16.msrb.mxu3 %v4307_v57  ;;  %v4305_v42 = vld [vmem:[%s7042_s12 + $0x28] sm:$0xff]  ;;  %v4304_v63 = vld [vmem:[%s7042_s12 + $0x20] sm:$0xff]  ;;  %v4303_v3 = vld [vmem:[%s7042_s12 + $0x18] sm:$0xff] }
 0x24c   : > { %v3621_v27 = vadd.f32 %v3620_v37, %v6908_v9  ;;  %v3590_v39 = vsel %vm3589_vm6, %v4693_v4, %v3586_v53  ;;  %v3606_v26 = vand.u32 2147483647, %v6765_v46  ;;  %v6939_v19 = vmul.f32 %v3580_v32, %v6707_v12 }
 0x24d   : > { %v3595_v20 = vsel %vm3592_vm7, %v3594_v51, %v3590_v39  ;;  %v3600_v25 = vmul.f32 %v4695_v1, %v3599_v41  ;;  %vm3602_vm9 = vweird.f32 %v6765_v46  ;;  %v3609_v62 = vor.u32 1.1754944e-38, %v3608_v55  ;;  %3723 = vmatpush.msrb.mxu2 %v3705_v45 }
 0x24e   : > { %v3622_v28 = vadd.f32 %v3621_v27, %v6920_v0  ;;  %vm3604_vm10 = vmor %vm3602_vm9, %vm3603_vm8  ;;  %v6947_v36 = vmul.f32 %v3595_v20, %v6715_v24  ;;  %v3634_v12 = vmul.f32 64.0, %v4697_v8  ;;  %vm3607_vm11 = vcmp.eq.f32.partialorder %v3606_v26, 8.507059e+37  ;;  %v3704_v24 = vld [vmem:[%s7040_s10 + $0x30] sm:$0xff]  ;;  %v3714_v20 = vld [vmem:[%s7041_s11] sm:$0x1] }
 0x24f   : > { %v3601_v5 = vadd.f32 %v4695_v1, %v3600_v25  ;;  %3724 = vmatpush.msrb.mxu2 %v3704_v24  ;;  %vm3638_vm12 = vweird.f32 %v4697_v8  ;;  %v4302_v25 = vld [vmem:[%s7042_s12 + $0x10] sm:$0xff] }
 0x250   : > { %v3623_v49 = vadd.f32 %v3622_v28, %v6931_v54  ;;  %v3635_v13 = vsub.f32 1.0, %v3634_v12 }
 0x251   : > { %v3605_v2 = vsel %vm3604_vm10, %v4695_v1, %v3601_v5  ;;  %3725 = vmatpush.msrb.mxu2 %v3703_v50  ;;  %v4306_v1 = vld [vmem:[%s7042_s12 + $0x30] sm:$0xff]  ;;  %v4300_v5 = vld [vmem:[%s7042_s12] sm:$0xff] }
 0x252   : > { %v3624_v38 = vadd.f32 %v3623_v49, %v6939_v19  ;;  %v3610_v46 = vsel %vm3607_vm11, %v3609_v62, %v3605_v2  ;;  %3832 = vmatpush.bf16.msrb.mxu3 %v4306_v1  ;;  %v4301_v49 = vld [vmem:[%s7042_s12 + $0x8] sm:$0xff] }
 0x253   : > { %v6955_v31 = vmul.f32 %v3610_v46, %v6719_v35  ;;  %v3636_v35 = vmul.f32 %v4697_v8, %v3635_v13  ;;  %3726 = vmatpush.msrb.mxu2 %v3702_v34 }
 0x254   : > { %v3625_v40 = vadd.f32 %v3624_v38, %v6947_v36 }
 0x255   : > { %v3637_v48 = vadd.f32 %v4697_v8, %v3636_v35  ;;  %3727 = vmatpush.msrb.mxu2 %v3701_v10 }
 0x256   : > { %v3626_v4 = vadd.f32 %v3625_v40, %v6955_v31  ;;  %3833 = vmatpush.bf16.msrb.mxu3 %v4305_v42 }
 0x257   : > { %v3639_v47 = vsel %vm3638_vm12, %v4697_v8, %v3637_v48  ;;  %3728 = vmatpush.msrb.mxu2 %v3700_v44 }
 0x258   : > { %v3627_v11 = vrot.slane %v3626_v4, 4 }
 0x259   : > { %3729 = vmatpush.msrb.mxu2 %v3699_v15 }
 0x25a   : > { %v3628_v59 = vadd.f32 %v3627_v11, %v3626_v4  ;;  %3834 = vmatpush.bf16.msrb.mxu3 %v4304_v63 }
 0x25b   : > { %3730 = vmatpush.msrb.mxu2 %v3698_v56 }
 0x25c   : > { %v3629_v29 = vrot.slane %v3628_v59, 2 }
 0x25e   : > { %v3630_v52 = vadd.f32 %v3629_v29, %v3628_v59  ;;  %3835 = vmatpush.bf16.msrb.mxu3 %v4303_v3 }
 0x260   : > { %v3631_v14 = vrot.slane %v3630_v52, 1 }
 0x262   : > { %v3632_v18 = vadd.f32 %v3631_v14, %v3630_v52  ;;  %3836 = vmatpush.bf16.msrb.mxu3 %v4302_v25 }
 0x264   : > { %v3640_v16 = vmul.f32 %v3639_v47, %v3632_v18 }
 0x266   : > { %3674 = vmatmul.f32.vlgmr.msrb.gmra.mxu1 %v3640_v16  ;;  %3837 = vmatpush.bf16.msrb.mxu3 %v4301_v49 }
 0x26a   : > { %3838 = vmatpush.bf16.msrb.mxu3 %v4300_v5 }
 0x2e3   : > { %v3675_v43 = vpop.f32.mrf.mxu1 }
 0x2e4   : > { %v3676_v7 = vadd.f32 %v3675_v43, %v3657_v33 }
 0x2e6   : > { %v4219_v23 = vmul.f32 -1.442695, %v3676_v7 }
 0x2e8   : > { %4698 = vpow2.f32 %v4219_v23 }
 0x2ee   : > { %v4699_v37 = vpop.eup %4698 }
 0x2ef   : > { %v3681_v58 = vadd.f32 1.0, %v4699_v37 }
 0x2f1   : > { %4700 = vrcp.f32 %v3681_v58  ;;  %v3693_v27 = vand.u32 2147483648, %v3681_v58  ;;  %v3691_v51 = vand.u32 2147483647, %v3681_v58  ;;  %vm3687_vm14 = vweird.f32 %v3681_v58 }
 0x2f3   : > { %v3694_v6 = vor.u32 1.1754944e-38, %v3693_v27  ;;  %vm3692_vm2 = vcmp.eq.f32.partialorder %v3691_v51, 8.507059e+37 }
 0x2f7   : > { %v4701_v61 = vpop.eup %4700 }
 0x2f8   : > { %v3683_v21 = vmul.f32 %v4701_v61, %v3681_v58  ;;  %vm3688_vm13 = vweird.f32 %v4701_v61 }
 0x2f9   : > { %vm3689_vm15 = vmor %vm3687_vm14, %vm3688_vm13 }
 0x2fa   : > { %v3684_v53 = vsub.f32 1.0, %v3683_v21 }
 0x2fc   : > { %v3685_v32 = vmul.f32 %v4701_v61, %v3684_v53 }
 0x2fe   : > { %v3686_v41 = vadd.f32 %v4701_v61, %v3685_v32 }
 0x300   : > { %v3690_v39 = vsel %vm3689_vm15, %v4701_v61, %v3686_v41 }
 0x301   : > { %v3695_v55 = vsel %vm3692_vm2, %v3694_v6, %v3690_v39 }
 0x302   : > { %v3697_v28 = vmul.f32 %v3695_v55, %v3676_v7 }
 0x304   : > { %3731 = vmatmul.f32.vlgmr.msrb.gmra.mxu2 %v3697_v28 }
 0x387   : > { %v3732_v26 = vpop.f32.mrf.mxu2 }
 0x388   : > { %v3733_v30 = vadd.f32 %v3732_v26, %v3714_v20 }
 0x38a   : > { %v4220_v8 = vmul.f32 -1.442695, %v3733_v30 }
 0x38c   : > { %4702 = vpow2.f32 %v4220_v8 }
 0x392   : > { %v4703_v60 = vpop.eup %4702 }
 0x393   : > { %v3738_v62 = vadd.f32 1.0, %v4703_v60 }
 0x395   : > { %4704 = vrcp.f32 %v3738_v62  ;;  %v3750_v45 = vand.u32 2147483648, %v3738_v62  ;;  %v3748_v40 = vand.u32 2147483647, %v3738_v62  ;;  %vm3744_vm1 = vweird.f32 %v3738_v62 }
 0x397   : > { %v3751_v13 = vor.u32 1.1754944e-38, %v3750_v45  ;;  %vm3749_vm4 = vcmp.eq.f32.partialorder %v3748_v40, 8.507059e+37 }
 0x39b   : > { %v4705_v38 = vpop.eup %4704 }
 0x39c   : > { %v3740_v12 = vmul.f32 %v4705_v38, %v3738_v62  ;;  %vm3745_vm0 = vweird.f32 %v4705_v38 }
 0x39d   : > { %vm3746_vm3 = vmor %vm3744_vm1, %vm3745_vm0 }
 0x39e   : > { %v3741_v2 = vsub.f32 1.0, %v3740_v12 }
 0x3a0   : > { %v3742_v46 = vmul.f32 %v4705_v38, %v3741_v2 }
 0x3a2   : > { %v3743_v24 = vadd.f32 %v4705_v38, %v3742_v46 }
 0x3a4   : > { %v3747_v4 = vsel %vm3746_vm3, %v4705_v38, %v3743_v24 }
 0x3a5   : > { %v3752_v50 = vsel %vm3749_vm4, %v3751_v13, %v3747_v4 }
 0x3a6   : > { %v3754_v11 = vperm.slane %v3752_v50, 0 }
 0x3a8   : > { %v3755_v34 = vmul.f32 %v3754_v11, %v6894_v22  ;;  %v3756_v35 = vmul.f32 %v3754_v11, %v6897_v17  ;;  %v3757_v10 = vmul.f32 %v3754_v11, %v6908_v9  ;;  %v3758_v29 = vmul.f32 %v3754_v11, %v6920_v0  ;;  %v4374_v9 = vld [vmem:[%s7043_s13] ss:$0 sm:$0xff] }
 0x3a9   : > { %v3759_v52 = vmul.f32 %v3754_v11, %v6931_v54  ;;  %v3760_v14 = vmul.f32 %v3754_v11, %v6939_v19  ;;  %v3761_v18 = vmul.f32 %v3754_v11, %v6947_v36  ;;  %v3762_v22 = vmul.f32 %v3754_v11, %v6955_v31  ;;  %v4375_v54 = vld [vmem:[%s7044_s14] ss:$0 sm:$0xff] }
 0x3aa   : > { %v3763_v59 = vpack.c.bf16 %v3756_v35, %v3755_v34  ;;  %v3764_v48 = vpack.c.bf16 %v3758_v29, %v3757_v10 }
 0x3ab   : > { %v3765_v47 = vpack.c.bf16 %v3760_v14, %v3759_v52  ;;  %v3766_v17 = vpack.c.bf16 %v3762_v22, %v3761_v18 }
 0x3ac   : > { %3839 = vmatmul.bf16.vlgmr.msrb.gmra.mxu3 %v3763_v59 }
 0x3bc   : > { %3844 = vmatmul.bf16.gmra.mxu3 %v3764_v48 }
 0x3cc   : > { %3849 = vmatmul.bf16.gmra.mxu3 %v3765_v47 }
 0x3dc   : > { %3854 = vmatmul.bf16.gmra.mxu3 %v3766_v17 }
 0x42f   : > { %v3840_v16 = vpop.f32.mrf.mxu3 }
 0x430   : > { %v3864_v0 = vmul.f32 %v4374_v9, %v3840_v16 }
 0x432   : > { %v3876_v44 = vadd.f32 %v4375_v54, %v3864_v0 }
 0x437   : > { %v3842_v33 = vpop.f32.mrf.mxu3 }
 0x438   : > { %v3865_v19 = vmul.f32 %v4374_v9, %v3842_v33 }
 0x43a   : > { %v3877_v15 = vadd.f32 %v4375_v54, %v3865_v19 }
 0x43c   : > { %v4311_v36 = vpack.c.bf16 %v3877_v15, %v3876_v44 }
 0x43e   : > { %4312 = vst [vmem:[%s494_s24] sm:$0xff] %v4311_v36  }
 0x43f   : > { %v3845_v31 = vpop.f32.mrf.mxu3 }
 0x440   : > { %v3866_v43 = vmul.f32 %v4374_v9, %v3845_v31 }
 0x442   : > { %v3878_v57 = vadd.f32 %v4375_v54, %v3866_v43 }
 0x447   : > { %v3847_v7 = vpop.f32.mrf.mxu3 }
 0x448   : > { %v3867_v56 = vmul.f32 %v4374_v9, %v3847_v7 }
 0x44a   : > { %v3879_v23 = vadd.f32 %v4375_v54, %v3867_v56 }
 0x44c   : > { %v4316_v1 = vpack.c.bf16 %v3879_v23, %v3878_v57 }
 0x44e   : > { %4328 = vst [vmem:[%s494_s24 + $0x8] sm:$0xff] %v4316_v1  }
 0x44f   : > { %v3850_v42 = vpop.f32.mrf.mxu3 }
 0x450   : > { %v3868_v37 = vmul.f32 %v4374_v9, %v3850_v42 }
 0x452   : > { %v3880_v3 = vadd.f32 %v4375_v54, %v3868_v37 }
 0x457   : > { %v3852_v63 = vpop.f32.mrf.mxu3 }
 0x458   : > { %v3869_v58 = vmul.f32 %v4374_v9, %v3852_v63 }
 0x45a   : > { %v3881_v61 = vadd.f32 %v4375_v54, %v3869_v58 }
 0x45c   : > { %v4321_v21 = vpack.c.bf16 %v3881_v61, %v3880_v3 }
 0x45e   : > { %4329 = vst [vmem:[%s494_s24 + $0x10] sm:$0xff] %v4321_v21  }
 0x45f   : > { %v3855_v53 = vpop.f32.mrf.mxu3 }
 0x460   : > { %v3870_v27 = vmul.f32 %v4374_v9, %v3855_v53 }
 0x462   : > { %v3882_v41 = vadd.f32 %v4375_v54, %v3870_v27 }
 0x467   : > { %v3857_v32 = vpop.f32.mrf.mxu3 }
 0x468   : > { %v3871_v51 = vmul.f32 %v4374_v9, %v3857_v32 }
 0x46a   : > { %v3883_v6 = vadd.f32 %v4375_v54, %v3871_v51 }
 0x46c   : > { %v4326_v39 = vpack.c.bf16 %v3883_v6, %v3882_v41 }
 0x46e   : > { %4330 = vst [vmem:[%s494_s24 + $0x18] sm:$0xff] %v4326_v39  }
 0x46f PF: > { %s25_s18 = sadd.s32 1, %s4735_s18  }
 0x470   : > { %p22_p4 = scmp.ge.s32.totalorder %s25_s18, 4  }
 0x472   :  { %24 = sbr.rel (!%p22_p4) target bundleno = 1 (0x1), region = 115 }

</bundles_post_ra>
